<compile_context>
chip_gen: v6e
topology: v6e:2x2x1
jax: 0.10.0
libtpu: 0.0.40
codegen_flags: <defaults>
</compile_context>

<pallas_src>
import functools

import jax
import jax.numpy as jnp
from jax.experimental import pallas as pl
from jax.experimental.pallas import tpu as pltpu

LRELU_SLOPE = 0.01          # nn.LeakyReLU default negative_slope
IN_EPS = 1e-5               # nn.InstanceNorm3d eps
LANE = 128


def _round_up(c, m=LANE):
    return ((c + m - 1) // m) * m


def _vmem_limit_bytes():
    # ~3/4 of physical VMEM: ~96 MiB on v5e/v6e (128 MiB), ~48 MiB on v7x (64 MiB).
    try:
        cap = getattr(pltpu.get_tpu_info(), "vmem_capacity_bytes", None)
    except Exception:
        cap = None
    if not cap:
        cap = 64 * 1024 * 1024
    return int(min(cap * 3 // 4, 100 * 1024 * 1024))


VMEM_LIMIT = _vmem_limit_bytes()


# ---------------------------------------------------------------------------
# Kernel 1: ConvTranspose3d(kernel=2, stride=2) + bias + skip add
#           (all 8 taps in a single wide matmul per coarse D-slice)
# ---------------------------------------------------------------------------
def _upconv_add_kernel(xb_ref, sk_ref, w_ref, b_ref, o_ref, *, hc, wc, cxp):
    # xb: (Hc, Wc, Cbp)          bf16   one coarse D-slice of x_big
    # sk: (2, Hc, 2, Wc, 2*Cxp)  bf16   matching skip, dims (kd, h, kh, w, (kw, c))
    # w : (Cbp, 8*Cxp)           bf16   transposed-conv weight, lanes pack (kd, kh, kw, c)
    # b : (1, 8*Cxp)             f32
    # o : (2, Hc, 2, Wc, 2*Cxp)  bf16
    cbp = xb_ref.shape[-1]
    x2 = xb_ref[...].reshape(hc * wc, cbp)
    # one matmul covers all 8 transposed-conv taps (N = 8*cxp lanes)
    acc = jnp.dot(x2, w_ref[...], preferred_element_type=jnp.float32) + b_ref[...]
    for kd in range(2):
        for kh in range(2):
            lo = (kd * 2 + kh) * 2 * cxp
            chunk = acc[:, lo:lo + 2 * cxp]                              # (Hc*Wc, 2*Cxp)
            skc = sk_ref[kd:kd + 1, :, kh:kh + 1, :, :].reshape(hc * wc, 2 * cxp)
            chunk = chunk + skc.astype(jnp.float32)
            o_ref[kd:kd + 1, :, kh:kh + 1, :, :] = (
                chunk.astype(o_ref.dtype).reshape(1, hc, 1, wc, 2 * cxp))


def upconv_add(xb, sk, w8, b8):
    # xb: (N, Dc, Hc, Wc, Cbp) bf16
    # sk: (N, 2*Dc, Hc, 2, Wc, 2*Cxp) bf16 (factorised fine-resolution skip)
    # w8: (Cbp, 8*Cxp) bf16, b8: (1, 8*Cxp) f32
    n, dc, hc, wc, cbp = xb.shape
    cxp = w8.shape[-1] // 8
    kern = functools.partial(_upconv_add_kernel, hc=hc, wc=wc, cxp=cxp)
    flops = 2 * n * dc * hc * wc * cbp * 8 * cxp
    bytes_acc = 2 * (xb.size + 2 * sk.size) + 2 * w8.size + 4 * b8.size
    return pl.pallas_call(
        kern,
        out_shape=jax.ShapeDtypeStruct((n, 2 * dc, hc, 2, wc, 2 * cxp), jnp.bfloat16),
        grid=(n, dc),
        in_specs=[
            pl.BlockSpec((None, None, hc, wc, cbp), lambda ni, d: (ni, d, 0, 0, 0)),
            pl.BlockSpec((None, 2, hc, 2, wc, 2 * cxp),
                         lambda ni, d: (ni, d, 0, 0, 0, 0)),
            pl.BlockSpec((cbp, 8 * cxp), lambda ni, d: (0, 0)),
            pl.BlockSpec((1, 8 * cxp), lambda ni, d: (0, 0)),
        ],
        out_specs=pl.BlockSpec((None, 2, hc, 2, wc, 2 * cxp),
                               lambda ni, d: (ni, d, 0, 0, 0, 0)),
        compiler_params=pltpu.CompilerParams(
            dimension_semantics=("parallel", "parallel"),
            vmem_limit_bytes=VMEM_LIMIT),
        cost_estimate=pl.CostEstimate(flops=int(flops), transcendentals=0,
                                      bytes_accessed=int(bytes_acc)),
    )(xb, sk, w8, b8)


# ---------------------------------------------------------------------------
# Kernel 2: [fused InstanceNorm(prev) + LeakyReLU] -> Conv3d(3,3,3, pad=1)
#           -> pre-norm output + per-(sample, D-slice) sum / sumsq
# ---------------------------------------------------------------------------
def _conv3d_block_kernel(x_ref, sc_ref, sh_ref, w_ref, o_ref, ps_ref, pq_ref,
                         acc_ref, *, hf, wf, cinp, apply_act):
    # x    : (Hf, Wf, Cinp)      bf16   UNPADDED pre-norm input D-slice (clamped index d+kd-1)
    # sc/sh: (1, Cinp)           f32    previous block's InstanceNorm scale/shift (identity for block 0)
    # w    : (9, 3*Cinp, Coutp)  bf16   leading index = kd*3 + kh, K packs (kw, cin)
    # o    : (Hf, Wf, Coutp)     bf16   pre-norm conv output for output D-slice d
    # ps/pq: (1, Coutp)          f32    per-(sample, D-slice) sum / sum of squares
    # acc  : (Hf*Wf, Coutp)      f32    scratch, accumulated across the kd grid axis
    d = pl.program_id(1)
    kd = pl.program_id(2)
    nd = pl.num_programs(1)
    coutp = o_ref.shape[-1]

    @pl.when(kd == 0)
    def _():
        acc_ref[...] = jnp.zeros_like(acc_ref)

    din = d + kd - 1
    valid = jnp.logical_and(din >= 0, din <= nd - 1)

    @pl.when(valid)
    def _():
        # fused InstanceNorm (of the previous block) + LeakyReLU on the input slice
        xn = x_ref[...].astype(jnp.float32) * sc_ref[...] + sh_ref[...]
        if apply_act:
            xn = jnp.where(xn >= 0, xn, LRELU_SLOPE * xn)
        xn = xn.astype(jnp.bfloat16)                                     # (hf, wf, cinp)

        # Build the H-padded, kw-concatenated operand (hf+2, wf, 3*cinp); lanes pack (kw, cin).
        zrow = jnp.zeros((1, wf, cinp), jnp.bfloat16)
        xh = jnp.concatenate([zrow, xn, zrow], axis=0)                   # (hf+2, wf, cinp)
        zcol = jnp.zeros((hf + 2, 1, cinp), jnp.bfloat16)
        x_m = jnp.concatenate([zcol, xh[:, :wf - 1, :]], axis=1)         # kw = 0 tap
        x_p = jnp.concatenate([xh[:, 1:, :], zcol], axis=1)              # kw = 2 tap
        xcat = jnp.concatenate([x_m, xh, x_p], axis=-1)                  # (hf+2, wf, 3*cinp)

        for kh in range(3):
            xs = xcat[kh:kh + hf].reshape(hf * wf, 3 * cinp)
            acc_ref[...] += jnp.dot(xs, w_ref[kd * 3 + kh],
                                    preferred_element_type=jnp.float32)

    @pl.when(kd == 2)
    def _():
        total = acc_ref[...]
        o_ref[...] = total.reshape(hf, wf, coutp).astype(o_ref.dtype)
        ps_ref[...] = jnp.sum(total, axis=0, keepdims=True)
        pq_ref[...] = jnp.sum(total * total, axis=0, keepdims=True)


def conv3d_block(y, scale, shift, wmat, apply_act):
    # y: (N, Df, Hf, Wf, Cinp) bf16 (UNPADDED pre-norm activation)
    # scale/shift: (N, 1, Cinp) f32; wmat: (9, 3*Cinp, Coutp) bf16
    n, df, hf, wf, cinp = y.shape
    coutp = wmat.shape[-1]
    assert wmat.shape == (9, 3 * cinp, coutp)
    kern = functools.partial(_conv3d_block_kernel, hf=hf, wf=wf, cinp=cinp,
                             apply_act=apply_act)
    flops = 2 * 27 * n * df * hf * wf * cinp * coutp
    bytes_acc = 2 * (3 * y.size + wmat.size + n * df * hf * wf * coutp)

    def x_map(ni, d, kd):
        # D halo handled here: clamp the input slice index, mask the contribution in-kernel.
        return (ni, jnp.minimum(jnp.maximum(d + kd - 1, 0), df - 1), 0, 0, 0)

    return pl.pallas_call(
        kern,
        out_shape=(
            jax.ShapeDtypeStruct((n, df, hf, wf, coutp), jnp.bfloat16),
            jax.ShapeDtypeStruct((n, df, 1, coutp), jnp.float32),
            jax.ShapeDtypeStruct((n, df, 1, coutp), jnp.float32),
        ),
        grid=(n, df, 3),
        in_specs=[
            pl.BlockSpec((None, None, hf, wf, cinp), x_map),
            pl.BlockSpec((None, 1, cinp), lambda ni, d, kd: (ni, 0, 0)),
            pl.BlockSpec((None, 1, cinp), lambda ni, d, kd: (ni, 0, 0)),
            pl.BlockSpec((9, 3 * cinp, coutp), lambda ni, d, kd: (0, 0, 0)),
        ],
        out_specs=(
            pl.BlockSpec((None, None, hf, wf, coutp), lambda ni, d, kd: (ni, d, 0, 0, 0)),
            pl.BlockSpec((None, None, 1, coutp), lambda ni, d, kd: (ni, d, 0, 0)),
            pl.BlockSpec((None, None, 1, coutp), lambda ni, d, kd: (ni, d, 0, 0)),
        ),
        scratch_shapes=[pltpu.VMEM((hf * wf, coutp), jnp.float32)],
        compiler_params=pltpu.CompilerParams(
            dimension_semantics=("parallel", "parallel", "arbitrary"),
            vmem_limit_bytes=VMEM_LIMIT),
        cost_estimate=pl.CostEstimate(flops=int(flops), transcendentals=0,
                                      bytes_accessed=int(bytes_acc)),
    )(y, scale, shift, wmat)


# ---------------------------------------------------------------------------
# Kernel 3: fused InstanceNorm (apply) + LeakyReLU   (final block only)
# ---------------------------------------------------------------------------
def _instnorm_lrelu_kernel(x_ref, sc_ref, sh_ref, o_ref):
    # x: (Hf, Wf, Coutp) bf16; sc/sh: (1, Coutp) f32
    y = x_ref[...].astype(jnp.float32) * sc_ref[...] + sh_ref[...]
    y = jnp.where(y >= 0, y, LRELU_SLOPE * y)
    o_ref[...] = y.astype(o_ref.dtype)


def instnorm_lrelu(x, scale, shift, out_dtype):
    # x: (N, Df, Hf, Wf, Coutp) bf16; scale/shift: (N, 1, Coutp) f32
    n, df, hf, wf, coutp = x.shape
    flops = 4 * x.size
    bytes_acc = 2 * x.size + jnp.dtype(out_dtype).itemsize * x.size
    return pl.pallas_call(
        _instnorm_lrelu_kernel,
        out_shape=jax.ShapeDtypeStruct((n, df, hf, wf, coutp), out_dtype),
        grid=(n, df),
        in_specs=[
            pl.BlockSpec((None, None, hf, wf, coutp), lambda ni, d: (ni, d, 0, 0, 0)),
            pl.BlockSpec((None, 1, coutp), lambda ni, d: (ni, 0, 0)),
            pl.BlockSpec((None, 1, coutp), lambda ni, d: (ni, 0, 0)),
        ],
        out_specs=pl.BlockSpec((None, None, hf, wf, coutp), lambda ni, d: (ni, d, 0, 0, 0)),
        compiler_params=pltpu.CompilerParams(
            dimension_semantics=("parallel", "parallel"),
            vmem_limit_bytes=VMEM_LIMIT),
        cost_estimate=pl.CostEstimate(flops=int(flops), transcendentals=0,
                                      bytes_accessed=int(bytes_acc)),
    )(x, scale, shift)


# ---------------------------------------------------------------------------
# StackDecoder (up_mode='upconv', dropout_p=0)
# ---------------------------------------------------------------------------
class StackDecoderPallas:
    def __init__(self, x_big_channels, x_channels, y_channels, n_blocks, key):
        assert n_blocks >= 1
        self.cb, self.cx, self.cy = x_big_channels, x_channels, y_channels
        self.cbp = _round_up(x_big_channels)
        self.cxp = _round_up(x_channels)
        self.cyp = _round_up(y_channels)
        keys = jax.random.split(key, 2 + 4 * n_blocks)
        s = 0.1

        # ConvTranspose3d(x_big_channels, x_channels, kernel=2, stride=2, bias=True)
        up_w = s * jax.random.normal(keys[0], (x_big_channels, x_channels, 2, 2, 2), jnp.float32)
        up_b = s * jax.random.normal(keys[1], (x_channels,), jnp.float32)
        # (Cin, Cout, kd, kh, kw) -> (Cin, kd, kh, kw, Cout) -> pad channels ->
        # (Cbp, 8*Cxp) with lane index ((kd*2+kh)*2+kw)*Cxp + co
        wt = jnp.transpose(up_w, (0, 2, 3, 4, 1))
        wt = jnp.pad(wt, ((0, self.cbp - x_big_channels), (0, 0), (0, 0), (0, 0),
                          (0, self.cxp - x_channels)))
        self.up_w8 = wt.reshape(self.cbp, 8 * self.cxp).astype(jnp.bfloat16)
        b_pad = jnp.pad(up_b, (0, self.cxp - x_channels))
        self.up_b8 = jnp.tile(b_pad, 8).reshape(1, 8 * self.cxp)

        # decode: Conv3d(3,3,3, pad=1) -> InstanceNorm3d(affine=True) -> LeakyReLU, x n_blocks
        self.blocks = []
        cin, cinp = x_channels, self.cxp
        for i in range(n_blocks):
            k = keys[2 + 4 * i: 2 + 4 * (i + 1)]
            w = s * jax.random.normal(k[0], (y_channels, cin, 3, 3, 3), jnp.float32)
            _unused_conv_bias = s * jax.random.normal(k[1], (y_channels,), jnp.float32)
            # ^ the Conv3d bias is exactly cancelled by the following InstanceNorm mean
            #   subtraction, so it is not applied (dead work removed, same semantics).
            gamma = 1.0 + 0.05 * jax.random.normal(k[2], (y_channels,), jnp.float32)
            beta = 0.05 * jax.random.normal(k[3], (y_channels,), jnp.float32)
            # (Cout, Cin, kd, kh, kw) -> (kd, kh, kw, Cin, Cout) -> pad -> (9, 3*Cinp, Cyp)
            wt = jnp.transpose(w, (2, 3, 4, 1, 0))
            wt = jnp.pad(wt, ((0, 0), (0, 0), (0, 0),
                              (0, cinp - cin), (0, self.cyp - y_channels)))
            wmat = wt.reshape(9, 3 * cinp, self.cyp).astype(jnp.bfloat16)
            gamma_p = jnp.pad(gamma, (0, self.cyp - y_channels))  # pad 0: padded chans stay 0
            beta_p = jnp.pad(beta, (0, self.cyp - y_channels))
            self.blocks.append((wmat, gamma_p, beta_p))
            cin, cinp = y_channels, self.cyp

    def __call__(self, x_big, x):
        # x_big: (N, Cbig, D, H, W), x: (N, Cx, 2D, 2H, 2W)  (PyTorch NCDHW, f32)
        n, _, dc, hc, wc = x_big.shape
        df, hf, wf = 2 * dc, 2 * hc, 2 * wc
        cbp, cxp = self.cbp, self.cxp

        # --- boundary layout: cast bf16 FIRST, NCDHW -> channels-last, pad channels to 128 ---
        xb = jnp.transpose(x_big.astype(jnp.bfloat16), (0, 2, 3, 4, 1))
        xb = jnp.pad(xb, ((0, 0),) * 4 + ((0, cbp - self.cb),))
        sk = jnp.transpose(x.astype(jnp.bfloat16), (0, 2, 3, 4, 1))
        sk = jnp.pad(sk, ((0, 0),) * 4 + ((0, cxp - self.cx),))
        # factorise fine H/W so the 2x2x2 up-conv interleave is pure BlockSpec indexing:
        # (N, 2D, Hc, 2, Wc, 2*Cxp), lanes = (kw, c).  Adjacent-dim reshape -> free.
        sk = sk.reshape(n, df, hc, 2, wc, 2 * cxp)

        # --- ConvTranspose3d(k=2, s=2) + bias + skip add (one wide matmul per (n, d)) ---
        up = upconv_add(xb, sk, self.up_w8, self.up_b8)
        y = up.reshape(n, df, hf, wf, cxp)              # free adjacent-dim reshape

        # --- decode blocks: each conv fuses the previous block's norm+act and the halo pad ---
        count = float(df * hf * wf)
        in_scale = jnp.ones((n, 1, cxp), jnp.float32)
        in_shift = jnp.zeros((n, 1, cxp), jnp.float32)
        apply_act = False
        for (wmat, gamma_p, beta_p) in self.blocks:
            conv_out, psum, pssq = conv3d_block(y, in_scale, in_shift, wmat, apply_act)
            s1 = jnp.sum(psum, axis=1)[:, 0, :]                       # (N, Cyp) f32
            s2 = jnp.sum(pssq, axis=1)[:, 0, :]
            mean = s1 / count
            # TODO(synk): switch to a shifted/Welford merge of per-slice stats if f32
            #             cancellation ever matters at very large D*H*W.
            var = jnp.maximum(s2 / count - mean * mean, 0.0)          # biased variance
            sc = gamma_p[None, :] * jax.lax.rsqrt(var + IN_EPS)
            sh = beta_p[None, :] - mean * sc
            y = conv_out
            in_scale, in_shift = sc[:, None, :], sh[:, None, :]
            apply_act = True

        # final block's InstanceNorm + LeakyReLU (standalone, f32 output)
        out = instnorm_lrelu(y, in_scale, in_shift, jnp.float32)

        # back to NCDHW, drop channel padding
        return jnp.transpose(out[..., :self.cy], (0, 4, 1, 2, 3))


if __name__ == "__main__":
    key = jax.random.PRNGKey(0)
    k_param, k_big, k_skip = jax.random.split(key, 3)

    x_big_channels, x_channels, y_channels, n_blocks = 8, 4, 4, 2
    n, dc, hc, wc = 2, 4, 8, 8

    decoder = StackDecoderPallas(x_big_channels, x_channels, y_channels, n_blocks, k_param)

    x_big = jax.random.normal(k_big, (n, x_big_channels, dc, hc, wc), jnp.float32)
    x = jax.random.normal(k_skip, (n, x_channels, 2 * dc, 2 * hc, 2 * wc), jnp.float32)

    fwd = jax.jit(decoder)
    out = jax.block_until_ready(fwd(x_big, x))
    assert out.shape == (n, y_channels, 2 * dc, 2 * hc, 2 * wc), out.shape
    assert bool(jnp.all(jnp.isfinite(out)))
    print("KERNEL_OK")
</pallas_src>

<mosaic_0001>
module attributes {stable_mosaic.version = 11 : i64} {
  func.func @_upconv_add_kernel(%arg0: i32, %arg1: i32, %arg2: memref<1x1x8x8x128xbf16, #tpu.memory_space<vmem>>, %arg3: memref<1x2x8x2x8x256xbf16, #tpu.memory_space<vmem>>, %arg4: memref<128x1024xbf16, #tpu.memory_space<vmem>>, %arg5: memref<1x1024xf32, #tpu.memory_space<vmem>>, %arg6: memref<1x2x8x2x8x256xbf16, #tpu.memory_space<vmem>>) attributes {dimension_semantics = [#tpu.dimension_semantics<parallel>, #tpu.dimension_semantics<parallel>], iteration_bounds = array<i64: 2, 4>, scalar_prefetch = 0 : i64, scratch_operands = 0 : i64, tpu.core_type = #tpu.core_type<tc>, window_params = [{transform_indices = @transform_0, window_bounds = array<i64: 1, 1, 8, 8, 128>}, {transform_indices = @transform_1, window_bounds = array<i64: 1, 2, 8, 2, 8, 256>}, {pipeline_mode = #tpu.pipeline_mode<synchronous>, transform_indices = @transform_2, window_bounds = array<i64: 128, 1024>}, {pipeline_mode = #tpu.pipeline_mode<synchronous>, transform_indices = @transform_3, window_bounds = array<i64: 1, 1024>}, {transform_indices = @transform_4, window_bounds = array<i64: 1, 2, 8, 2, 8, 256>}]} {
    %c0 = arith.constant 0 : index
    %c0_0 = arith.constant 0 : index
    %c0_1 = arith.constant 0 : index
    %c0_2 = arith.constant 0 : index
    %c0_3 = arith.constant 0 : index
    %0 = vector.load %arg2[%c0, %c0_0, %c0_1, %c0_2, %c0_3] : memref<1x1x8x8x128xbf16, #tpu.memory_space<vmem>>, vector<1x1x8x8x128xbf16>
    %1 = vector.shape_cast %0 : vector<1x1x8x8x128xbf16> to vector<8x8x128xbf16>
    %2 = vector.shape_cast %1 : vector<8x8x128xbf16> to vector<64x128xbf16>
    %c0_4 = arith.constant 0 : index
    %c0_5 = arith.constant 0 : index
    %3 = vector.load %arg4[%c0_4, %c0_5] : memref<128x1024xbf16, #tpu.memory_space<vmem>>, vector<128x1024xbf16>
    %cst = arith.constant dense<0.000000e+00> : vector<64x1024xf32>
    %4 = tpu.matmul %2, %3, %cst {dimension_numbers = #tpu.dot_dimension_numbers<[1], [0], [0], [1], [0, 0, 1, 1], [], []>} : vector<64x128xbf16>, vector<128x1024xbf16>, vector<64x1024xf32> -> vector<64x1024xf32>
    %c0_6 = arith.constant 0 : index
    %c0_7 = arith.constant 0 : index
    %5 = vector.load %arg5[%c0_6, %c0_7] : memref<1x1024xf32, #tpu.memory_space<vmem>>, vector<1x1024xf32>
    %6 = vector.broadcast %5 : vector<1x1024xf32> to vector<64x1024xf32>
    %7 = arith.addf %4, %6 : vector<64x1024xf32>
    %8 = vector.extract_strided_slice %7 {offsets = [0, 0], sizes = [64, 256], strides = [1, 1]} : vector<64x1024xf32> to vector<64x256xf32>
    %c0_8 = arith.constant 0 : index
    %c0_9 = arith.constant 0 : index
    %c0_10 = arith.constant 0 : index
    %c0_11 = arith.constant 0 : index
    %c0_12 = arith.constant 0 : index
    %c0_13 = arith.constant 0 : index
    %9 = vector.load %arg3[%c0_8, %c0_9, %c0_10, %c0_11, %c0_12, %c0_13] : memref<1x2x8x2x8x256xbf16, #tpu.memory_space<vmem>>, vector<1x1x8x1x8x256xbf16>
    %10 = vector.shape_cast %9 : vector<1x1x8x1x8x256xbf16> to vector<1x8x1x8x256xbf16>
    %11 = vector.shape_cast %10 : vector<1x8x1x8x256xbf16> to vector<64x256xbf16>
    %12 = arith.extf %11 : vector<64x256xbf16> to vector<64x256xf32>
    %13 = arith.addf %8, %12 : vector<64x256xf32>
    %14 = arith.truncf %13 : vector<64x256xf32> to vector<64x256xbf16>
    %15 = vector.shape_cast %14 : vector<64x256xbf16> to vector<1x8x1x8x256xbf16>
    %c0_14 = arith.constant 0 : index
    %c0_15 = arith.constant 0 : index
    %c0_16 = arith.constant 0 : index
    %c0_17 = arith.constant 0 : index
    %c0_18 = arith.constant 0 : index
    %c0_19 = arith.constant 0 : index
    %16 = vector.load %arg6[%c0_14, %c0_15, %c0_16, %c0_17, %c0_18, %c0_19] : memref<1x2x8x2x8x256xbf16, #tpu.memory_space<vmem>>, vector<1x1x8x1x8x256xbf16>
    %17 = vector.shape_cast %16 : vector<1x1x8x1x8x256xbf16> to vector<1x8x1x8x256xbf16>
    %18 = vector.shape_cast %15 : vector<1x8x1x8x256xbf16> to vector<1x1x8x1x8x256xbf16>
    tpu.vector_store %arg6[%c0_14, %c0_15, %c0_16, %c0_17, %c0_18, %c0_19], %18 {strides = array<i32>} : memref<1x2x8x2x8x256xbf16, #tpu.memory_space<vmem>>, vector<1x1x8x1x8x256xbf16>,
    %19 = vector.extract_strided_slice %7 {offsets = [0, 256], sizes = [64, 256], strides = [1, 1]} : vector<64x1024xf32> to vector<64x256xf32>
    %c0_20 = arith.constant 0 : index
    %c0_21 = arith.constant 0 : index
    %c0_22 = arith.constant 0 : index
    %c1 = arith.constant 1 : index
    %c0_23 = arith.constant 0 : index
    %c0_24 = arith.constant 0 : index
    %20 = vector.load %arg3[%c0_20, %c0_21, %c0_22, %c1, %c0_23, %c0_24] : memref<1x2x8x2x8x256xbf16, #tpu.memory_space<vmem>>, vector<1x1x8x1x8x256xbf16>
    %21 = vector.shape_cast %20 : vector<1x1x8x1x8x256xbf16> to vector<1x8x1x8x256xbf16>
    %22 = vector.shape_cast %21 : vector<1x8x1x8x256xbf16> to vector<64x256xbf16>
    %23 = arith.extf %22 : vector<64x256xbf16> to vector<64x256xf32>
    %24 = arith.addf %19, %23 : vector<64x256xf32>
    %25 = arith.truncf %24 : vector<64x256xf32> to vector<64x256xbf16>
    %26 = vector.shape_cast %25 : vector<64x256xbf16> to vector<1x8x1x8x256xbf16>
    %c0_25 = arith.constant 0 : index
    %c0_26 = arith.constant 0 : index
    %c0_27 = arith.constant 0 : index
    %c1_28 = arith.constant 1 : index
    %c0_29 = arith.constant 0 : index
    %c0_30 = arith.constant 0 : index
    %27 = vector.load %arg6[%c0_25, %c0_26, %c0_27, %c1_28, %c0_29, %c0_30] : memref<1x2x8x2x8x256xbf16, #tpu.memory_space<vmem>>, vector<1x1x8x1x8x256xbf16>
    %28 = vector.shape_cast %27 : vector<1x1x8x1x8x256xbf16> to vector<1x8x1x8x256xbf16>
    %29 = vector.shape_cast %26 : vector<1x8x1x8x256xbf16> to vector<1x1x8x1x8x256xbf16>
    tpu.vector_store %arg6[%c0_25, %c0_26, %c0_27, %c1_28, %c0_29, %c0_30], %29 {strides = array<i32>} : memref<1x2x8x2x8x256xbf16, #tpu.memory_space<vmem>>, vector<1x1x8x1x8x256xbf16>,
    %30 = vector.extract_strided_slice %7 {offsets = [0, 512], sizes = [64, 256], strides = [1, 1]} : vector<64x1024xf32> to vector<64x256xf32>
    %c0_31 = arith.constant 0 : index
    %c1_32 = arith.constant 1 : index
    %c0_33 = arith.constant 0 : index
    %c0_34 = arith.constant 0 : index
    %c0_35 = arith.constant 0 : index
    %c0_36 = arith.constant 0 : index
    %31 = vector.load %arg3[%c0_31, %c1_32, %c0_33, %c0_34, %c0_35, %c0_36] : memref<1x2x8x2x8x256xbf16, #tpu.memory_space<vmem>>, vector<1x1x8x1x8x256xbf16>
    %32 = vector.shape_cast %31 : vector<1x1x8x1x8x256xbf16> to vector<1x8x1x8x256xbf16>
    %33 = vector.shape_cast %32 : vector<1x8x1x8x256xbf16> to vector<64x256xbf16>
    %34 = arith.extf %33 : vector<64x256xbf16> to vector<64x256xf32>
    %35 = arith.addf %30, %34 : vector<64x256xf32>
    %36 = arith.truncf %35 : vector<64x256xf32> to vector<64x256xbf16>
    %37 = vector.shape_cast %36 : vector<64x256xbf16> to vector<1x8x1x8x256xbf16>
    %c0_37 = arith.constant 0 : index
    %c1_38 = arith.constant 1 : index
    %c0_39 = arith.constant 0 : index
    %c0_40 = arith.constant 0 : index
    %c0_41 = arith.constant 0 : index
    %c0_42 = arith.constant 0 : index
    %38 = vector.load %arg6[%c0_37, %c1_38, %c0_39, %c0_40, %c0_41, %c0_42] : memref<1x2x8x2x8x256xbf16, #tpu.memory_space<vmem>>, vector<1x1x8x1x8x256xbf16>
    %39 = vector.shape_cast %38 : vector<1x1x8x1x8x256xbf16> to vector<1x8x1x8x256xbf16>
    %40 = vector.shape_cast %37 : vector<1x8x1x8x256xbf16> to vector<1x1x8x1x8x256xbf16>
    tpu.vector_store %arg6[%c0_37, %c1_38, %c0_39, %c0_40, %c0_41, %c0_42], %40 {strides = array<i32>} : memref<1x2x8x2x8x256xbf16, #tpu.memory_space<vmem>>, vector<1x1x8x1x8x256xbf16>,
    %41 = vector.extract_strided_slice %7 {offsets = [0, 768], sizes = [64, 256], strides = [1, 1]} : vector<64x1024xf32> to vector<64x256xf32>
    %c0_43 = arith.constant 0 : index
    %c1_44 = arith.constant 1 : index
    %c0_45 = arith.constant 0 : index
    %c1_46 = arith.constant 1 : index
    %c0_47 = arith.constant 0 : index
    %c0_48 = arith.constant 0 : index
    %42 = vector.load %arg3[%c0_43, %c1_44, %c0_45, %c1_46, %c0_47, %c0_48] : memref<1x2x8x2x8x256xbf16, #tpu.memory_space<vmem>>, vector<1x1x8x1x8x256xbf16>
    %43 = vector.shape_cast %42 : vector<1x1x8x1x8x256xbf16> to vector<1x8x1x8x256xbf16>
    %44 = vector.shape_cast %43 : vector<1x8x1x8x256xbf16> to vector<64x256xbf16>
    %45 = arith.extf %44 : vector<64x256xbf16> to vector<64x256xf32>
    %46 = arith.addf %41, %45 : vector<64x256xf32>
    %47 = arith.truncf %46 : vector<64x256xf32> to vector<64x256xbf16>
    %48 = vector.shape_cast %47 : vector<64x256xbf16> to vector<1x8x1x8x256xbf16>
    %c0_49 = arith.constant 0 : index
    %c1_50 = arith.constant 1 : index
    %c0_51 = arith.constant 0 : index
    %c1_52 = arith.constant 1 : index
    %c0_53 = arith.constant 0 : index
    %c0_54 = arith.constant 0 : index
    %49 = vector.load %arg6[%c0_49, %c1_50, %c0_51, %c1_52, %c0_53, %c0_54] : memref<1x2x8x2x8x256xbf16, #tpu.memory_space<vmem>>, vector<1x1x8x1x8x256xbf16>
    %50 = vector.shape_cast %49 : vector<1x1x8x1x8x256xbf16> to vector<1x8x1x8x256xbf16>
    %51 = vector.shape_cast %48 : vector<1x8x1x8x256xbf16> to vector<1x1x8x1x8x256xbf16>
    tpu.vector_store %arg6[%c0_49, %c1_50, %c0_51, %c1_52, %c0_53, %c0_54], %51 {strides = array<i32>} : memref<1x2x8x2x8x256xbf16, #tpu.memory_space<vmem>>, vector<1x1x8x1x8x256xbf16>,
    return
  }
  func.func @transform_0(%arg0: i32, %arg1: i32) -> (i32, i32, i32, i32, i32) {
    %c0_i32 = arith.constant 0 : i32
    %c0_i32_0 = arith.constant 0 : i32
    %c0_i32_1 = arith.constant 0 : i32
    %c0_i32_2 = arith.constant 0 : i32
    return %arg0, %arg1, %c0_i32, %c0_i32_0, %c0_i32_1 : i32, i32, i32, i32, i32
  }
  func.func @transform_1(%arg0: i32, %arg1: i32) -> (i32, i32, i32, i32, i32, i32) {
    %c0_i32 = arith.constant 0 : i32
    %c0_i32_0 = arith.constant 0 : i32
    %c0_i32_1 = arith.constant 0 : i32
    %c0_i32_2 = arith.constant 0 : i32
    %c0_i32_3 = arith.constant 0 : i32
    return %arg0, %arg1, %c0_i32, %c0_i32_0, %c0_i32_1, %c0_i32_2 : i32, i32, i32, i32, i32, i32
  }
  func.func @transform_2(%arg0: i32, %arg1: i32) -> (i32, i32) {
    %c0_i32 = arith.constant 0 : i32
    %c0_i32_0 = arith.constant 0 : i32
    %c0_i32_1 = arith.constant 0 : i32
    return %c0_i32, %c0_i32_0 : i32, i32
  }
  func.func @transform_3(%arg0: i32, %arg1: i32) -> (i32, i32) {
    %c0_i32 = arith.constant 0 : i32
    %c0_i32_0 = arith.constant 0 : i32
    %c0_i32_1 = arith.constant 0 : i32
    return %c0_i32, %c0_i32_0 : i32, i32
  }
  func.func @transform_4(%arg0: i32, %arg1: i32) -> (i32, i32, i32, i32, i32, i32) {
    %c0_i32 = arith.constant 0 : i32
    %c0_i32_0 = arith.constant 0 : i32
    %c0_i32_1 = arith.constant 0 : i32
    %c0_i32_2 = arith.constant 0 : i32
    %c0_i32_3 = arith.constant 0 : i32
    return %arg0, %arg1, %c0_i32, %c0_i32_0, %c0_i32_1, %c0_i32_2 : i32, i32, i32, i32, i32, i32
  }
}

module attributes {stable_mosaic.version = 11 : i64} {
  func.func @_conv3d_block_kernel(%arg0: i32, %arg1: i32, %arg2: i32, %arg3: memref<1x1x16x16x128xbf16, #tpu.memory_space<vmem>>, %arg4: memref<1x1x128xf32, #tpu.memory_space<vmem>>, %arg5: memref<1x1x128xf32, #tpu.memory_space<vmem>>, %arg6: memref<9x384x128xbf16, #tpu.memory_space<vmem>>, %arg7: memref<1x1x16x16x128xbf16, #tpu.memory_space<vmem>>, %arg8: memref<1x1x1x128xf32, #tpu.memory_space<vmem>>, %arg9: memref<1x1x1x128xf32, #tpu.memory_space<vmem>>, %arg10: memref<256x128xf32, #tpu.memory_space<vmem>>) attributes {dimension_semantics = [#tpu.dimension_semantics<parallel>, #tpu.dimension_semantics<parallel>, #tpu.dimension_semantics<arbitrary>], iteration_bounds = array<i64: 2, 8, 3>, scalar_prefetch = 0 : i64, scratch_operands = 1 : i64, tpu.core_type = #tpu.core_type<tc>, window_params = [{transform_indices = @transform_0, window_bounds = array<i64: 1, 1, 16, 16, 128>}, {transform_indices = @transform_1, window_bounds = array<i64: 1, 1, 128>}, {transform_indices = @transform_2, window_bounds = array<i64: 1, 1, 128>}, {pipeline_mode = #tpu.pipeline_mode<synchronous>, transform_indices = @transform_3, window_bounds = array<i64: 9, 384, 128>}, {transform_indices = @transform_4, window_bounds = array<i64: 1, 1, 16, 16, 128>}, {transform_indices = @transform_5, window_bounds = array<i64: 1, 1, 1, 128>}, {transform_indices = @transform_6, window_bounds = array<i64: 1, 1, 1, 128>}]} {
    %c0_i32 = arith.constant 0 : i32
    %0 = arith.cmpi eq, %arg2, %c0_i32 : i32
    %1 = arith.extui %0 : i1 to i32
    %c0_i32_0 = arith.constant 0 : i32
    %2 = arith.cmpi ne, %1, %c0_i32_0 : i32
    scf.if %2 {
      %cst = arith.constant 0.000000e+00 : f32
      %13 = vector.broadcast %cst : f32 to vector<256x128xf32>
      %c0 = arith.constant 0 : index
      %c0_4 = arith.constant 0 : index
      %14 = vector.load %arg10[%c0, %c0_4] : memref<256x128xf32, #tpu.memory_space<vmem>>, vector<256x128xf32>
      tpu.vector_store %arg10[%c0, %c0_4], %13 {strides = array<i32>} : memref<256x128xf32, #tpu.memory_space<vmem>>, vector<256x128xf32>,
    } else {
    }
    %3 = arith.addi %arg1, %arg2 : i32
    %c1_i32 = arith.constant 1 : i32
    %4 = arith.subi %3, %c1_i32 : i32
    %c0_i32_1 = arith.constant 0 : i32
    %5 = arith.cmpi sge, %4, %c0_i32_1 : i32
    %c7_i32 = arith.constant 7 : i32
    %6 = arith.cmpi sle, %4, %c7_i32 : i32
    %7 = arith.andi %5, %6 : i1
    %8 = arith.extui %7 : i1 to i32
    %c0_i32_2 = arith.constant 0 : i32
    %9 = arith.cmpi ne, %8, %c0_i32_2 : i32
    scf.if %9 {
      %c0 = arith.constant 0 : index
      %c0_4 = arith.constant 0 : index
      %c0_5 = arith.constant 0 : index
      %c0_6 = arith.constant 0 : index
      %c0_7 = arith.constant 0 : index
      %13 = vector.load %arg3[%c0, %c0_4, %c0_5, %c0_6, %c0_7] : memref<1x1x16x16x128xbf16, #tpu.memory_space<vmem>>, vector<1x1x16x16x128xbf16>
      %14 = vector.shape_cast %13 : vector<1x1x16x16x128xbf16> to vector<16x16x128xbf16>
      %15 = arith.extf %14 : vector<16x16x128xbf16> to vector<16x16x128xf32>
      %c0_8 = arith.constant 0 : index
      %c0_9 = arith.constant 0 : index
      %c0_10 = arith.constant 0 : index
      %16 = vector.load %arg4[%c0_8, %c0_9, %c0_10] : memref<1x1x128xf32, #tpu.memory_space<vmem>>, vector<1x1x128xf32>
      %17 = vector.shape_cast %16 : vector<1x1x128xf32> to vector<1x128xf32>
      %18 = vector.shape_cast %17 : vector<1x128xf32> to vector<1x1x128xf32>
      %19 = vector.broadcast %18 : vector<1x1x128xf32> to vector<16x16x128xf32>
      %20 = arith.mulf %15, %19 : vector<16x16x128xf32>
      %c0_11 = arith.constant 0 : index
      %c0_12 = arith.constant 0 : index
      %c0_13 = arith.constant 0 : index
      %21 = vector.load %arg5[%c0_11, %c0_12, %c0_13] : memref<1x1x128xf32, #tpu.memory_space<vmem>>, vector<1x1x128xf32>
      %22 = vector.shape_cast %21 : vector<1x1x128xf32> to vector<1x128xf32>
      %23 = vector.shape_cast %22 : vector<1x128xf32> to vector<1x1x128xf32>
      %24 = vector.broadcast %23 : vector<1x1x128xf32> to vector<16x16x128xf32>
      %25 = arith.addf %20, %24 : vector<16x16x128xf32>
      %26 = arith.truncf %25 : vector<16x16x128xf32> to vector<16x16x128xbf16>
      %cst = arith.constant 0.000000e+00 : bf16
      %27 = vector.broadcast %cst : bf16 to vector<1x16x128xbf16>
      %28 = tpu.concatenate %27, %26, %27 in 0 : vector<1x16x128xbf16>, vector<16x16x128xbf16>, vector<1x16x128xbf16> -> vector<18x16x128xbf16>
      %cst_14 = arith.constant 0.000000e+00 : bf16
      %29 = vector.broadcast %cst_14 : bf16 to vector<18x1x128xbf16>
      %30 = vector.extract_strided_slice %28 {offsets = [0, 0, 0], sizes = [18, 15, 128], strides = [1, 1, 1]} : vector<18x16x128xbf16> to vector<18x15x128xbf16>
      %31 = tpu.concatenate %29, %30 in 1 : vector<18x1x128xbf16>, vector<18x15x128xbf16> -> vector<18x16x128xbf16>
      %32 = vector.extract_strided_slice %28 {offsets = [0, 1, 0], sizes = [18, 15, 128], strides = [1, 1, 1]} : vector<18x16x128xbf16> to vector<18x15x128xbf16>
      %33 = tpu.concatenate %32, %29 in 1 : vector<18x15x128xbf16>, vector<18x1x128xbf16> -> vector<18x16x128xbf16>
      %34 = tpu.concatenate %31, %28, %33 in 2 : vector<18x16x128xbf16>, vector<18x16x128xbf16>, vector<18x16x128xbf16> -> vector<18x16x384xbf16>
      %35 = vector.extract_strided_slice %34 {offsets = [0, 0, 0], sizes = [16, 16, 384], strides = [1, 1, 1]} : vector<18x16x384xbf16> to vector<16x16x384xbf16>
      %36 = vector.shape_cast %35 : vector<16x16x384xbf16> to vector<256x384xbf16>
      %c0_15 = arith.constant 0 : index
      %c0_16 = arith.constant 0 : index
      %37 = vector.load %arg10[%c0_15, %c0_16] : memref<256x128xf32, #tpu.memory_space<vmem>>, vector<256x128xf32>
      %c3_i32 = arith.constant 3 : i32
      %38 = arith.muli %arg2, %c3_i32 : i32
      %c0_i32_17 = arith.constant 0 : i32
      %39 = arith.addi %38, %c0_i32_17 : i32
      %40 = arith.index_cast %39 : i32 to index
      %c0_18 = arith.constant 0 : index
      %c0_19 = arith.constant 0 : index
      %41 = vector.load %arg6[%40, %c0_18, %c0_19] : memref<9x384x128xbf16, #tpu.memory_space<vmem>>, vector<1x384x128xbf16>
      %42 = vector.shape_cast %41 : vector<1x384x128xbf16> to vector<384x128xbf16>
      %cst_20 = arith.constant dense<0.000000e+00> : vector<256x128xf32>
      %43 = tpu.matmul %36, %42, %cst_20 {dimension_numbers = #tpu.dot_dimension_numbers<[1], [0], [0], [1], [0, 0, 1, 1], [], []>} : vector<256x384xbf16>, vector<384x128xbf16>, vector<256x128xf32> -> vector<256x128xf32>
      %44 = arith.addf %37, %43 : vector<256x128xf32>
      %c0_21 = arith.constant 0 : index
      %c0_22 = arith.constant 0 : index
      %45 = vector.load %arg10[%c0_21, %c0_22] : memref<256x128xf32, #tpu.memory_space<vmem>>, vector<256x128xf32>
      tpu.vector_store %arg10[%c0_21, %c0_22], %44 {strides = array<i32>} : memref<256x128xf32, #tpu.memory_space<vmem>>, vector<256x128xf32>,
      %46 = vector.extract_strided_slice %34 {offsets = [1, 0, 0], sizes = [16, 16, 384], strides = [1, 1, 1]} : vector<18x16x384xbf16> to vector<16x16x384xbf16>
      %47 = vector.shape_cast %46 : vector<16x16x384xbf16> to vector<256x384xbf16>
      %c0_23 = arith.constant 0 : index
      %c0_24 = arith.constant 0 : index
      %48 = vector.load %arg10[%c0_23, %c0_24] : memref<256x128xf32, #tpu.memory_space<vmem>>, vector<256x128xf32>
      %c3_i32_25 = arith.constant 3 : i32
      %49 = arith.muli %arg2, %c3_i32_25 : i32
      %c1_i32_26 = arith.constant 1 : i32
      %50 = arith.addi %49, %c1_i32_26 : i32
      %51 = arith.index_cast %50 : i32 to index
      %c0_27 = arith.constant 0 : index
      %c0_28 = arith.constant 0 : index
      %52 = vector.load %arg6[%51, %c0_27, %c0_28] : memref<9x384x128xbf16, #tpu.memory_space<vmem>>, vector<1x384x128xbf16>
      %53 = vector.shape_cast %52 : vector<1x384x128xbf16> to vector<384x128xbf16>
      %cst_29 = arith.constant dense<0.000000e+00> : vector<256x128xf32>
      %54 = tpu.matmul %47, %53, %cst_29 {dimension_numbers = #tpu.dot_dimension_numbers<[1], [0], [0], [1], [0, 0, 1, 1], [], []>} : vector<256x384xbf16>, vector<384x128xbf16>, vector<256x128xf32> -> vector<256x128xf32>
      %55 = arith.addf %48, %54 : vector<256x128xf32>
      %c0_30 = arith.constant 0 : index
      %c0_31 = arith.constant 0 : index
      %56 = vector.load %arg10[%c0_30, %c0_31] : memref<256x128xf32, #tpu.memory_space<vmem>>, vector<256x128xf32>
      tpu.vector_store %arg10[%c0_30, %c0_31], %55 {strides = array<i32>} : memref<256x128xf32, #tpu.memory_space<vmem>>, vector<256x128xf32>,
      %57 = vector.extract_strided_slice %34 {offsets = [2, 0, 0], sizes = [16, 16, 384], strides = [1, 1, 1]} : vector<18x16x384xbf16> to vector<16x16x384xbf16>
      %58 = vector.shape_cast %57 : vector<16x16x384xbf16> to vector<256x384xbf16>
      %c0_32 = arith.constant 0 : index
      %c0_33 = arith.constant 0 : index
      %59 = vector.load %arg10[%c0_32, %c0_33] : memref<256x128xf32, #tpu.memory_space<vmem>>, vector<256x128xf32>
      %c3_i32_34 = arith.constant 3 : i32
      %60 = arith.muli %arg2, %c3_i32_34 : i32
      %c2_i32_35 = arith.constant 2 : i32
      %61 = arith.addi %60, %c2_i32_35 : i32
      %62 = arith.index_cast %61 : i32 to index
      %c0_36 = arith.constant 0 : index
      %c0_37 = arith.constant 0 : index
      %63 = vector.load %arg6[%62, %c0_36, %c0_37] : memref<9x384x128xbf16, #tpu.memory_space<vmem>>, vector<1x384x128xbf16>
      %64 = vector.shape_cast %63 : vector<1x384x128xbf16> to vector<384x128xbf16>
      %cst_38 = arith.constant dense<0.000000e+00> : vector<256x128xf32>
      %65 = tpu.matmul %58, %64, %cst_38 {dimension_numbers = #tpu.dot_dimension_numbers<[1], [0], [0], [1], [0, 0, 1, 1], [], []>} : vector<256x384xbf16>, vector<384x128xbf16>, vector<256x128xf32> -> vector<256x128xf32>
      %66 = arith.addf %59, %65 : vector<256x128xf32>
      %c0_39 = arith.constant 0 : index
      %c0_40 = arith.constant 0 : index
      %67 = vector.load %arg10[%c0_39, %c0_40] : memref<256x128xf32, #tpu.memory_space<vmem>>, vector<256x128xf32>
      tpu.vector_store %arg10[%c0_39, %c0_40], %66 {strides = array<i32>} : memref<256x128xf32, #tpu.memory_space<vmem>>, vector<256x128xf32>,
    } else {
    }
    %c2_i32 = arith.constant 2 : i32
    %10 = arith.cmpi eq, %arg2, %c2_i32 : i32
    %11 = arith.extui %10 : i1 to i32
    %c0_i32_3 = arith.constant 0 : i32
    %12 = arith.cmpi ne, %11, %c0_i32_3 : i32
    scf.if %12 {
      %c0 = arith.constant 0 : index
      %c0_4 = arith.constant 0 : index
      %13 = vector.load %arg10[%c0, %c0_4] : memref<256x128xf32, #tpu.memory_space<vmem>>, vector<256x128xf32>
      %14 = vector.shape_cast %13 : vector<256x128xf32> to vector<16x16x128xf32>
      %15 = arith.truncf %14 : vector<16x16x128xf32> to vector<16x16x128xbf16>
      %c0_5 = arith.constant 0 : index
      %c0_6 = arith.constant 0 : index
      %c0_7 = arith.constant 0 : index
      %c0_8 = arith.constant 0 : index
      %c0_9 = arith.constant 0 : index
      %16 = vector.load %arg7[%c0_5, %c0_6, %c0_7, %c0_8, %c0_9] : memref<1x1x16x16x128xbf16, #tpu.memory_space<vmem>>, vector<1x1x16x16x128xbf16>
      %17 = vector.shape_cast %16 : vector<1x1x16x16x128xbf16> to vector<16x16x128xbf16>
      %18 = vector.shape_cast %15 : vector<16x16x128xbf16> to vector<1x1x16x16x128xbf16>
      tpu.vector_store %arg7[%c0_5, %c0_6, %c0_7, %c0_8, %c0_9], %18 {strides = array<i32>} : memref<1x1x16x16x128xbf16, #tpu.memory_space<vmem>>, vector<1x1x16x16x128xbf16>,
      %cst = arith.constant dense<0.000000e+00> : vector<128xf32>
      %19 = vector.multi_reduction <add>, %13, %cst [0] : vector<256x128xf32> to vector<128xf32>
      %20 = vector.shape_cast %19 : vector<128xf32> to vector<1x128xf32>
      %c0_10 = arith.constant 0 : index
      %c0_11 = arith.constant 0 : index
      %c0_12 = arith.constant 0 : index
      %c0_13 = arith.constant 0 : index
      %21 = vector.load %arg8[%c0_10, %c0_11, %c0_12, %c0_13] : memref<1x1x1x128xf32, #tpu.memory_space<vmem>>, vector<1x1x1x128xf32>
      %22 = vector.shape_cast %21 : vector<1x1x1x128xf32> to vector<1x128xf32>
      %23 = vector.shape_cast %20 : vector<1x128xf32> to vector<1x1x1x128xf32>
      tpu.vector_store %arg8[%c0_10, %c0_11, %c0_12, %c0_13], %23 {strides = array<i32>} : memref<1x1x1x128xf32, #tpu.memory_space<vmem>>, vector<1x1x1x128xf32>,
      %24 = arith.mulf %13, %13 : vector<256x128xf32>
      %cst_14 = arith.constant dense<0.000000e+00> : vector<128xf32>
      %25 = vector.multi_reduction <add>, %24, %cst_14 [0] : vector<256x128xf32> to vector<128xf32>
      %26 = vector.shape_cast %25 : vector<128xf32> to vector<1x128xf32>
      %c0_15 = arith.constant 0 : index
      %c0_16 = arith.constant 0 : index
      %c0_17 = arith.constant 0 : index
      %c0_18 = arith.constant 0 : index
      %27 = vector.load %arg9[%c0_15, %c0_16, %c0_17, %c0_18] : memref<1x1x1x128xf32, #tpu.memory_space<vmem>>, vector<1x1x1x128xf32>
      %28 = vector.shape_cast %27 : vector<1x1x1x128xf32> to vector<1x128xf32>
      %29 = vector.shape_cast %26 : vector<1x128xf32> to vector<1x1x1x128xf32>
      tpu.vector_store %arg9[%c0_15, %c0_16, %c0_17, %c0_18], %29 {strides = array<i32>} : memref<1x1x1x128xf32, #tpu.memory_space<vmem>>, vector<1x1x1x128xf32>,
    } else {
    }
    return
  }
  func.func @transform_0(%arg0: i32, %arg1: i32, %arg2: i32) -> (i32, i32, i32, i32, i32) {
    %0 = arith.addi %arg1, %arg2 : i32
    %c1_i32 = arith.constant 1 : i32
    %1 = arith.subi %0, %c1_i32 : i32
    %c0_i32 = arith.constant 0 : i32
    %2 = arith.maxsi %1, %c0_i32 : i32
    %c7_i32 = arith.constant 7 : i32
    %3 = arith.minsi %2, %c7_i32 : i32
    %c0_i32_0 = arith.constant 0 : i32
    %c0_i32_1 = arith.constant 0 : i32
    %c0_i32_2 = arith.constant 0 : i32
    %c0_i32_3 = arith.constant 0 : i32
    return %arg0, %3, %c0_i32_0, %c0_i32_1, %c0_i32_2 : i32, i32, i32, i32, i32
  }
  func.func @transform_1(%arg0: i32, %arg1: i32, %arg2: i32) -> (i32, i32, i32) {
    %c0_i32 = arith.constant 0 : i32
    %c0_i32_0 = arith.constant 0 : i32
    %c0_i32_1 = arith.constant 0 : i32
    return %arg0, %c0_i32, %c0_i32_0 : i32, i32, i32
  }
  func.func @transform_2(%arg0: i32, %arg1: i32, %arg2: i32) -> (i32, i32, i32) {
    %c0_i32 = arith.constant 0 : i32
    %c0_i32_0 = arith.constant 0 : i32
    %c0_i32_1 = arith.constant 0 : i32
    return %arg0, %c0_i32, %c0_i32_0 : i32, i32, i32
  }
  func.func @transform_3(%arg0: i32, %arg1: i32, %arg2: i32) -> (i32, i32, i32) {
    %c0_i32 = arith.constant 0 : i32
    %c0_i32_0 = arith.constant 0 : i32
    %c0_i32_1 = arith.constant 0 : i32
    %c0_i32_2 = arith.constant 0 : i32
    return %c0_i32, %c0_i32_0, %c0_i32_1 : i32, i32, i32
  }
  func.func @transform_4(%arg0: i32, %arg1: i32, %arg2: i32) -> (i32, i32, i32, i32, i32) {
    %c0_i32 = arith.constant 0 : i32
    %c0_i32_0 = arith.constant 0 : i32
    %c0_i32_1 = arith.constant 0 : i32
    %c0_i32_2 = arith.constant 0 : i32
    return %arg0, %arg1, %c0_i32, %c0_i32_0, %c0_i32_1 : i32, i32, i32, i32, i32
  }
  func.func @transform_5(%arg0: i32, %arg1: i32, %arg2: i32) -> (i32, i32, i32, i32) {
    %c0_i32 = arith.constant 0 : i32
    %c0_i32_0 = arith.constant 0 : i32
    %c0_i32_1 = arith.constant 0 : i32
    return %arg0, %arg1, %c0_i32, %c0_i32_0 : i32, i32, i32, i32
  }
  func.func @transform_6(%arg0: i32, %arg1: i32, %arg2: i32) -> (i32, i32, i32, i32) {
    %c0_i32 = arith.constant 0 : i32
    %c0_i32_0 = arith.constant 0 : i32
    %c0_i32_1 = arith.constant 0 : i32
    return %arg0, %arg1, %c0_i32, %c0_i32_0 : i32, i32, i32, i32
  }
}

module attributes {stable_mosaic.version = 11 : i64} {
  func.func @_conv3d_block_kernel(%arg0: i32, %arg1: i32, %arg2: i32, %arg3: memref<1x1x16x16x128xbf16, #tpu.memory_space<vmem>>, %arg4: memref<1x1x128xf32, #tpu.memory_space<vmem>>, %arg5: memref<1x1x128xf32, #tpu.memory_space<vmem>>, %arg6: memref<9x384x128xbf16, #tpu.memory_space<vmem>>, %arg7: memref<1x1x16x16x128xbf16, #tpu.memory_space<vmem>>, %arg8: memref<1x1x1x128xf32, #tpu.memory_space<vmem>>, %arg9: memref<1x1x1x128xf32, #tpu.memory_space<vmem>>, %arg10: memref<256x128xf32, #tpu.memory_space<vmem>>) attributes {dimension_semantics = [#tpu.dimension_semantics<parallel>, #tpu.dimension_semantics<parallel>, #tpu.dimension_semantics<arbitrary>], iteration_bounds = array<i64: 2, 8, 3>, scalar_prefetch = 0 : i64, scratch_operands = 1 : i64, tpu.core_type = #tpu.core_type<tc>, window_params = [{transform_indices = @transform_0, window_bounds = array<i64: 1, 1, 16, 16, 128>}, {transform_indices = @transform_1, window_bounds = array<i64: 1, 1, 128>}, {transform_indices = @transform_2, window_bounds = array<i64: 1, 1, 128>}, {pipeline_mode = #tpu.pipeline_mode<synchronous>, transform_indices = @transform_3, window_bounds = array<i64: 9, 384, 128>}, {transform_indices = @transform_4, window_bounds = array<i64: 1, 1, 16, 16, 128>}, {transform_indices = @transform_5, window_bounds = array<i64: 1, 1, 1, 128>}, {transform_indices = @transform_6, window_bounds = array<i64: 1, 1, 1, 128>}]} {
    %c0_i32 = arith.constant 0 : i32
    %0 = arith.cmpi eq, %arg2, %c0_i32 : i32
    %1 = arith.extui %0 : i1 to i32
    %c0_i32_0 = arith.constant 0 : i32
    %2 = arith.cmpi ne, %1, %c0_i32_0 : i32
    scf.if %2 {
      %cst = arith.constant 0.000000e+00 : f32
      %13 = vector.broadcast %cst : f32 to vector<256x128xf32>
      %c0 = arith.constant 0 : index
      %c0_4 = arith.constant 0 : index
      %14 = vector.load %arg10[%c0, %c0_4] : memref<256x128xf32, #tpu.memory_space<vmem>>, vector<256x128xf32>
      tpu.vector_store %arg10[%c0, %c0_4], %13 {strides = array<i32>} : memref<256x128xf32, #tpu.memory_space<vmem>>, vector<256x128xf32>,
    } else {
    }
    %3 = arith.addi %arg1, %arg2 : i32
    %c1_i32 = arith.constant 1 : i32
    %4 = arith.subi %3, %c1_i32 : i32
    %c0_i32_1 = arith.constant 0 : i32
    %5 = arith.cmpi sge, %4, %c0_i32_1 : i32
    %c7_i32 = arith.constant 7 : i32
    %6 = arith.cmpi sle, %4, %c7_i32 : i32
    %7 = arith.andi %5, %6 : i1
    %8 = arith.extui %7 : i1 to i32
    %c0_i32_2 = arith.constant 0 : i32
    %9 = arith.cmpi ne, %8, %c0_i32_2 : i32
    scf.if %9 {
      %c0 = arith.constant 0 : index
      %c0_4 = arith.constant 0 : index
      %c0_5 = arith.constant 0 : index
      %c0_6 = arith.constant 0 : index
      %c0_7 = arith.constant 0 : index
      %13 = vector.load %arg3[%c0, %c0_4, %c0_5, %c0_6, %c0_7] : memref<1x1x16x16x128xbf16, #tpu.memory_space<vmem>>, vector<1x1x16x16x128xbf16>
      %14 = vector.shape_cast %13 : vector<1x1x16x16x128xbf16> to vector<16x16x128xbf16>
      %15 = arith.extf %14 : vector<16x16x128xbf16> to vector<16x16x128xf32>
      %c0_8 = arith.constant 0 : index
      %c0_9 = arith.constant 0 : index
      %c0_10 = arith.constant 0 : index
      %16 = vector.load %arg4[%c0_8, %c0_9, %c0_10] : memref<1x1x128xf32, #tpu.memory_space<vmem>>, vector<1x1x128xf32>
      %17 = vector.shape_cast %16 : vector<1x1x128xf32> to vector<1x128xf32>
      %18 = vector.shape_cast %17 : vector<1x128xf32> to vector<1x1x128xf32>
      %19 = vector.broadcast %18 : vector<1x1x128xf32> to vector<16x16x128xf32>
      %20 = arith.mulf %15, %19 : vector<16x16x128xf32>
      %c0_11 = arith.constant 0 : index
      %c0_12 = arith.constant 0 : index
      %c0_13 = arith.constant 0 : index
      %21 = vector.load %arg5[%c0_11, %c0_12, %c0_13] : memref<1x1x128xf32, #tpu.memory_space<vmem>>, vector<1x1x128xf32>
      %22 = vector.shape_cast %21 : vector<1x1x128xf32> to vector<1x128xf32>
      %23 = vector.shape_cast %22 : vector<1x128xf32> to vector<1x1x128xf32>
      %24 = vector.broadcast %23 : vector<1x1x128xf32> to vector<16x16x128xf32>
      %25 = arith.addf %20, %24 : vector<16x16x128xf32>
      %cst = arith.constant 0.000000e+00 : f32
      %26 = vector.broadcast %cst : f32 to vector<16x16x128xf32>
      %27 = arith.cmpf oge, %25, %26 : vector<16x16x128xf32>
      %cst_14 = arith.constant 0.00999999977 : f32
      %28 = vector.broadcast %cst_14 : f32 to vector<16x16x128xf32>
      %29 = arith.mulf %28, %25 : vector<16x16x128xf32>
      %30 = arith.select %27, %25, %29 : vector<16x16x128xi1>, vector<16x16x128xf32>
      %31 = arith.truncf %30 : vector<16x16x128xf32> to vector<16x16x128xbf16>
      %cst_15 = arith.constant 0.000000e+00 : bf16
      %32 = vector.broadcast %cst_15 : bf16 to vector<1x16x128xbf16>
      %33 = tpu.concatenate %32, %31, %32 in 0 : vector<1x16x128xbf16>, vector<16x16x128xbf16>, vector<1x16x128xbf16> -> vector<18x16x128xbf16>
      %cst_16 = arith.constant 0.000000e+00 : bf16
      %34 = vector.broadcast %cst_16 : bf16 to vector<18x1x128xbf16>
      %35 = vector.extract_strided_slice %33 {offsets = [0, 0, 0], sizes = [18, 15, 128], strides = [1, 1, 1]} : vector<18x16x128xbf16> to vector<18x15x128xbf16>
      %36 = tpu.concatenate %34, %35 in 1 : vector<18x1x128xbf16>, vector<18x15x128xbf16> -> vector<18x16x128xbf16>
      %37 = vector.extract_strided_slice %33 {offsets = [0, 1, 0], sizes = [18, 15, 128], strides = [1, 1, 1]} : vector<18x16x128xbf16> to vector<18x15x128xbf16>
      %38 = tpu.concatenate %37, %34 in 1 : vector<18x15x128xbf16>, vector<18x1x128xbf16> -> vector<18x16x128xbf16>
      %39 = tpu.concatenate %36, %33, %38 in 2 : vector<18x16x128xbf16>, vector<18x16x128xbf16>, vector<18x16x128xbf16> -> vector<18x16x384xbf16>
      %40 = vector.extract_strided_slice %39 {offsets = [0, 0, 0], sizes = [16, 16, 384], strides = [1, 1, 1]} : vector<18x16x384xbf16> to vector<16x16x384xbf16>
      %41 = vector.shape_cast %40 : vector<16x16x384xbf16> to vector<256x384xbf16>
      %c0_17 = arith.constant 0 : index
      %c0_18 = arith.constant 0 : index
      %42 = vector.load %arg10[%c0_17, %c0_18] : memref<256x128xf32, #tpu.memory_space<vmem>>, vector<256x128xf32>
      %c3_i32 = arith.constant 3 : i32
      %43 = arith.muli %arg2, %c3_i32 : i32
      %c0_i32_19 = arith.constant 0 : i32
      %44 = arith.addi %43, %c0_i32_19 : i32
      %45 = arith.index_cast %44 : i32 to index
      %c0_20 = arith.constant 0 : index
      %c0_21 = arith.constant 0 : index
      %46 = vector.load %arg6[%45, %c0_20, %c0_21] : memref<9x384x128xbf16, #tpu.memory_space<vmem>>, vector<1x384x128xbf16>
      %47 = vector.shape_cast %46 : vector<1x384x128xbf16> to vector<384x128xbf16>
      %cst_22 = arith.constant dense<0.000000e+00> : vector<256x128xf32>
      %48 = tpu.matmul %41, %47, %cst_22 {dimension_numbers = #tpu.dot_dimension_numbers<[1], [0], [0], [1], [0, 0, 1, 1], [], []>} : vector<256x384xbf16>, vector<384x128xbf16>, vector<256x128xf32> -> vector<256x128xf32>
      %49 = arith.addf %42, %48 : vector<256x128xf32>
      %c0_23 = arith.constant 0 : index
      %c0_24 = arith.constant 0 : index
      %50 = vector.load %arg10[%c0_23, %c0_24] : memref<256x128xf32, #tpu.memory_space<vmem>>, vector<256x128xf32>
      tpu.vector_store %arg10[%c0_23, %c0_24], %49 {strides = array<i32>} : memref<256x128xf32, #tpu.memory_space<vmem>>, vector<256x128xf32>,
      %51 = vector.extract_strided_slice %39 {offsets = [1, 0, 0], sizes = [16, 16, 384], strides = [1, 1, 1]} : vector<18x16x384xbf16> to vector<16x16x384xbf16>
      %52 = vector.shape_cast %51 : vector<16x16x384xbf16> to vector<256x384xbf16>
      %c0_25 = arith.constant 0 : index
      %c0_26 = arith.constant 0 : index
      %53 = vector.load %arg10[%c0_25, %c0_26] : memref<256x128xf32, #tpu.memory_space<vmem>>, vector<256x128xf32>
      %c3_i32_27 = arith.constant 3 : i32
      %54 = arith.muli %arg2, %c3_i32_27 : i32
      %c1_i32_28 = arith.constant 1 : i32
      %55 = arith.addi %54, %c1_i32_28 : i32
      %56 = arith.index_cast %55 : i32 to index
      %c0_29 = arith.constant 0 : index
      %c0_30 = arith.constant 0 : index
      %57 = vector.load %arg6[%56, %c0_29, %c0_30] : memref<9x384x128xbf16, #tpu.memory_space<vmem>>, vector<1x384x128xbf16>
      %58 = vector.shape_cast %57 : vector<1x384x128xbf16> to vector<384x128xbf16>
      %cst_31 = arith.constant dense<0.000000e+00> : vector<256x128xf32>
      %59 = tpu.matmul %52, %58, %cst_31 {dimension_numbers = #tpu.dot_dimension_numbers<[1], [0], [0], [1], [0, 0, 1, 1], [], []>} : vector<256x384xbf16>, vector<384x128xbf16>, vector<256x128xf32> -> vector<256x128xf32>
      %60 = arith.addf %53, %59 : vector<256x128xf32>
      %c0_32 = arith.constant 0 : index
      %c0_33 = arith.constant 0 : index
      %61 = vector.load %arg10[%c0_32, %c0_33] : memref<256x128xf32, #tpu.memory_space<vmem>>, vector<256x128xf32>
      tpu.vector_store %arg10[%c0_32, %c0_33], %60 {strides = array<i32>} : memref<256x128xf32, #tpu.memory_space<vmem>>, vector<256x128xf32>,
      %62 = vector.extract_strided_slice %39 {offsets = [2, 0, 0], sizes = [16, 16, 384], strides = [1, 1, 1]} : vector<18x16x384xbf16> to vector<16x16x384xbf16>
      %63 = vector.shape_cast %62 : vector<16x16x384xbf16> to vector<256x384xbf16>
      %c0_34 = arith.constant 0 : index
      %c0_35 = arith.constant 0 : index
      %64 = vector.load %arg10[%c0_34, %c0_35] : memref<256x128xf32, #tpu.memory_space<vmem>>, vector<256x128xf32>
      %c3_i32_36 = arith.constant 3 : i32
      %65 = arith.muli %arg2, %c3_i32_36 : i32
      %c2_i32_37 = arith.constant 2 : i32
      %66 = arith.addi %65, %c2_i32_37 : i32
      %67 = arith.index_cast %66 : i32 to index
      %c0_38 = arith.constant 0 : index
      %c0_39 = arith.constant 0 : index
      %68 = vector.load %arg6[%67, %c0_38, %c0_39] : memref<9x384x128xbf16, #tpu.memory_space<vmem>>, vector<1x384x128xbf16>
      %69 = vector.shape_cast %68 : vector<1x384x128xbf16> to vector<384x128xbf16>
      %cst_40 = arith.constant dense<0.000000e+00> : vector<256x128xf32>
      %70 = tpu.matmul %63, %69, %cst_40 {dimension_numbers = #tpu.dot_dimension_numbers<[1], [0], [0], [1], [0, 0, 1, 1], [], []>} : vector<256x384xbf16>, vector<384x128xbf16>, vector<256x128xf32> -> vector<256x128xf32>
      %71 = arith.addf %64, %70 : vector<256x128xf32>
      %c0_41 = arith.constant 0 : index
      %c0_42 = arith.constant 0 : index
      %72 = vector.load %arg10[%c0_41, %c0_42] : memref<256x128xf32, #tpu.memory_space<vmem>>, vector<256x128xf32>
      tpu.vector_store %arg10[%c0_41, %c0_42], %71 {strides = array<i32>} : memref<256x128xf32, #tpu.memory_space<vmem>>, vector<256x128xf32>,
    } else {
    }
    %c2_i32 = arith.constant 2 : i32
    %10 = arith.cmpi eq, %arg2, %c2_i32 : i32
    %11 = arith.extui %10 : i1 to i32
    %c0_i32_3 = arith.constant 0 : i32
    %12 = arith.cmpi ne, %11, %c0_i32_3 : i32
    scf.if %12 {
      %c0 = arith.constant 0 : index
      %c0_4 = arith.constant 0 : index
      %13 = vector.load %arg10[%c0, %c0_4] : memref<256x128xf32, #tpu.memory_space<vmem>>, vector<256x128xf32>
      %14 = vector.shape_cast %13 : vector<256x128xf32> to vector<16x16x128xf32>
      %15 = arith.truncf %14 : vector<16x16x128xf32> to vector<16x16x128xbf16>
      %c0_5 = arith.constant 0 : index
      %c0_6 = arith.constant 0 : index
      %c0_7 = arith.constant 0 : index
      %c0_8 = arith.constant 0 : index
      %c0_9 = arith.constant 0 : index
      %16 = vector.load %arg7[%c0_5, %c0_6, %c0_7, %c0_8, %c0_9] : memref<1x1x16x16x128xbf16, #tpu.memory_space<vmem>>, vector<1x1x16x16x128xbf16>
      %17 = vector.shape_cast %16 : vector<1x1x16x16x128xbf16> to vector<16x16x128xbf16>
      %18 = vector.shape_cast %15 : vector<16x16x128xbf16> to vector<1x1x16x16x128xbf16>
      tpu.vector_store %arg7[%c0_5, %c0_6, %c0_7, %c0_8, %c0_9], %18 {strides = array<i32>} : memref<1x1x16x16x128xbf16, #tpu.memory_space<vmem>>, vector<1x1x16x16x128xbf16>,
      %cst = arith.constant dense<0.000000e+00> : vector<128xf32>
      %19 = vector.multi_reduction <add>, %13, %cst [0] : vector<256x128xf32> to vector<128xf32>
      %20 = vector.shape_cast %19 : vector<128xf32> to vector<1x128xf32>
      %c0_10 = arith.constant 0 : index
      %c0_11 = arith.constant 0 : index
      %c0_12 = arith.constant 0 : index
      %c0_13 = arith.constant 0 : index
      %21 = vector.load %arg8[%c0_10, %c0_11, %c0_12, %c0_13] : memref<1x1x1x128xf32, #tpu.memory_space<vmem>>, vector<1x1x1x128xf32>
      %22 = vector.shape_cast %21 : vector<1x1x1x128xf32> to vector<1x128xf32>
      %23 = vector.shape_cast %20 : vector<1x128xf32> to vector<1x1x1x128xf32>
      tpu.vector_store %arg8[%c0_10, %c0_11, %c0_12, %c0_13], %23 {strides = array<i32>} : memref<1x1x1x128xf32, #tpu.memory_space<vmem>>, vector<1x1x1x128xf32>,
      %24 = arith.mulf %13, %13 : vector<256x128xf32>
      %cst_14 = arith.constant dense<0.000000e+00> : vector<128xf32>
      %25 = vector.multi_reduction <add>, %24, %cst_14 [0] : vector<256x128xf32> to vector<128xf32>
      %26 = vector.shape_cast %25 : vector<128xf32> to vector<1x128xf32>
      %c0_15 = arith.constant 0 : index
      %c0_16 = arith.constant 0 : index
      %c0_17 = arith.constant 0 : index
      %c0_18 = arith.constant 0 : index
      %27 = vector.load %arg9[%c0_15, %c0_16, %c0_17, %c0_18] : memref<1x1x1x128xf32, #tpu.memory_space<vmem>>, vector<1x1x1x128xf32>
      %28 = vector.shape_cast %27 : vector<1x1x1x128xf32> to vector<1x128xf32>
      %29 = vector.shape_cast %26 : vector<1x128xf32> to vector<1x1x1x128xf32>
      tpu.vector_store %arg9[%c0_15, %c0_16, %c0_17, %c0_18], %29 {strides = array<i32>} : memref<1x1x1x128xf32, #tpu.memory_space<vmem>>, vector<1x1x1x128xf32>,
    } else {
    }
    return
  }
  func.func @transform_0(%arg0: i32, %arg1: i32, %arg2: i32) -> (i32, i32, i32, i32, i32) {
    %0 = arith.addi %arg1, %arg2 : i32
    %c1_i32 = arith.constant 1 : i32
    %1 = arith.subi %0, %c1_i32 : i32
    %c0_i32 = arith.constant 0 : i32
    %2 = arith.maxsi %1, %c0_i32 : i32
    %c7_i32 = arith.constant 7 : i32
    %3 = arith.minsi %2, %c7_i32 : i32
    %c0_i32_0 = arith.constant 0 : i32
    %c0_i32_1 = arith.constant 0 : i32
    %c0_i32_2 = arith.constant 0 : i32
    %c0_i32_3 = arith.constant 0 : i32
    return %arg0, %3, %c0_i32_0, %c0_i32_1, %c0_i32_2 : i32, i32, i32, i32, i32
  }
  func.func @transform_1(%arg0: i32, %arg1: i32, %arg2: i32) -> (i32, i32, i32) {
    %c0_i32 = arith.constant 0 : i32
    %c0_i32_0 = arith.constant 0 : i32
    %c0_i32_1 = arith.constant 0 : i32
    return %arg0, %c0_i32, %c0_i32_0 : i32, i32, i32
  }
  func.func @transform_2(%arg0: i32, %arg1: i32, %arg2: i32) -> (i32, i32, i32) {
    %c0_i32 = arith.constant 0 : i32
    %c0_i32_0 = arith.constant 0 : i32
    %c0_i32_1 = arith.constant 0 : i32
    return %arg0, %c0_i32, %c0_i32_0 : i32, i32, i32
  }
  func.func @transform_3(%arg0: i32, %arg1: i32, %arg2: i32) -> (i32, i32, i32) {
    %c0_i32 = arith.constant 0 : i32
    %c0_i32_0 = arith.constant 0 : i32
    %c0_i32_1 = arith.constant 0 : i32
    %c0_i32_2 = arith.constant 0 : i32
    return %c0_i32, %c0_i32_0, %c0_i32_1 : i32, i32, i32
  }
  func.func @transform_4(%arg0: i32, %arg1: i32, %arg2: i32) -> (i32, i32, i32, i32, i32) {
    %c0_i32 = arith.constant 0 : i32
    %c0_i32_0 = arith.constant 0 : i32
    %c0_i32_1 = arith.constant 0 : i32
    %c0_i32_2 = arith.constant 0 : i32
    return %arg0, %arg1, %c0_i32, %c0_i32_0, %c0_i32_1 : i32, i32, i32, i32, i32
  }
  func.func @transform_5(%arg0: i32, %arg1: i32, %arg2: i32) -> (i32, i32, i32, i32) {
    %c0_i32 = arith.constant 0 : i32
    %c0_i32_0 = arith.constant 0 : i32
    %c0_i32_1 = arith.constant 0 : i32
    return %arg0, %arg1, %c0_i32, %c0_i32_0 : i32, i32, i32, i32
  }
  func.func @transform_6(%arg0: i32, %arg1: i32, %arg2: i32) -> (i32, i32, i32, i32) {
    %c0_i32 = arith.constant 0 : i32
    %c0_i32_0 = arith.constant 0 : i32
    %c0_i32_1 = arith.constant 0 : i32
    return %arg0, %arg1, %c0_i32, %c0_i32_0 : i32, i32, i32, i32
  }
}

module attributes {stable_mosaic.version = 11 : i64} {
  func.func @_instnorm_lrelu_kernel(%arg0: i32, %arg1: i32, %arg2: memref<1x1x16x16x128xbf16, #tpu.memory_space<vmem>>, %arg3: memref<1x1x128xf32, #tpu.memory_space<vmem>>, %arg4: memref<1x1x128xf32, #tpu.memory_space<vmem>>, %arg5: memref<1x1x16x16x128xf32, #tpu.memory_space<vmem>>) attributes {dimension_semantics = [#tpu.dimension_semantics<parallel>, #tpu.dimension_semantics<parallel>], iteration_bounds = array<i64: 2, 8>, scalar_prefetch = 0 : i64, scratch_operands = 0 : i64, tpu.core_type = #tpu.core_type<tc>, window_params = [{transform_indices = @transform_0, window_bounds = array<i64: 1, 1, 16, 16, 128>}, {transform_indices = @transform_1, window_bounds = array<i64: 1, 1, 128>}, {transform_indices = @transform_2, window_bounds = array<i64: 1, 1, 128>}, {transform_indices = @transform_3, window_bounds = array<i64: 1, 1, 16, 16, 128>}]} {
    %c0 = arith.constant 0 : index
    %c0_0 = arith.constant 0 : index
    %c0_1 = arith.constant 0 : index
    %c0_2 = arith.constant 0 : index
    %c0_3 = arith.constant 0 : index
    %0 = vector.load %arg2[%c0, %c0_0, %c0_1, %c0_2, %c0_3] : memref<1x1x16x16x128xbf16, #tpu.memory_space<vmem>>, vector<1x1x16x16x128xbf16>
    %1 = vector.shape_cast %0 : vector<1x1x16x16x128xbf16> to vector<16x16x128xbf16>
    %2 = arith.extf %1 : vector<16x16x128xbf16> to vector<16x16x128xf32>
    %c0_4 = arith.constant 0 : index
    %c0_5 = arith.constant 0 : index
    %c0_6 = arith.constant 0 : index
    %3 = vector.load %arg3[%c0_4, %c0_5, %c0_6] : memref<1x1x128xf32, #tpu.memory_space<vmem>>, vector<1x1x128xf32>
    %4 = vector.shape_cast %3 : vector<1x1x128xf32> to vector<1x128xf32>
    %5 = vector.shape_cast %4 : vector<1x128xf32> to vector<1x1x128xf32>
    %6 = vector.broadcast %5 : vector<1x1x128xf32> to vector<16x16x128xf32>
    %7 = arith.mulf %2, %6 : vector<16x16x128xf32>
    %c0_7 = arith.constant 0 : index
    %c0_8 = arith.constant 0 : index
    %c0_9 = arith.constant 0 : index
    %8 = vector.load %arg4[%c0_7, %c0_8, %c0_9] : memref<1x1x128xf32, #tpu.memory_space<vmem>>, vector<1x1x128xf32>
    %9 = vector.shape_cast %8 : vector<1x1x128xf32> to vector<1x128xf32>
    %10 = vector.shape_cast %9 : vector<1x128xf32> to vector<1x1x128xf32>
    %11 = vector.broadcast %10 : vector<1x1x128xf32> to vector<16x16x128xf32>
    %12 = arith.addf %7, %11 : vector<16x16x128xf32>
    %cst = arith.constant 0.000000e+00 : f32
    %13 = vector.broadcast %cst : f32 to vector<16x16x128xf32>
    %14 = arith.cmpf oge, %12, %13 : vector<16x16x128xf32>
    %cst_10 = arith.constant 0.00999999977 : f32
    %15 = vector.broadcast %cst_10 : f32 to vector<16x16x128xf32>
    %16 = arith.mulf %15, %12 : vector<16x16x128xf32>
    %17 = arith.select %14, %12, %16 : vector<16x16x128xi1>, vector<16x16x128xf32>
    %c0_11 = arith.constant 0 : index
    %c0_12 = arith.constant 0 : index
    %c0_13 = arith.constant 0 : index
    %c0_14 = arith.constant 0 : index
    %c0_15 = arith.constant 0 : index
    %18 = vector.load %arg5[%c0_11, %c0_12, %c0_13, %c0_14, %c0_15] : memref<1x1x16x16x128xf32, #tpu.memory_space<vmem>>, vector<1x1x16x16x128xf32>
    %19 = vector.shape_cast %18 : vector<1x1x16x16x128xf32> to vector<16x16x128xf32>
    %20 = vector.shape_cast %17 : vector<16x16x128xf32> to vector<1x1x16x16x128xf32>
    tpu.vector_store %arg5[%c0_11, %c0_12, %c0_13, %c0_14, %c0_15], %20 {strides = array<i32>} : memref<1x1x16x16x128xf32, #tpu.memory_space<vmem>>, vector<1x1x16x16x128xf32>,
    return
  }
  func.func @transform_0(%arg0: i32, %arg1: i32) -> (i32, i32, i32, i32, i32) {
    %c0_i32 = arith.constant 0 : i32
    %c0_i32_0 = arith.constant 0 : i32
    %c0_i32_1 = arith.constant 0 : i32
    %c0_i32_2 = arith.constant 0 : i32
    return %arg0, %arg1, %c0_i32, %c0_i32_0, %c0_i32_1 : i32, i32, i32, i32, i32
  }
  func.func @transform_1(%arg0: i32, %arg1: i32) -> (i32, i32, i32) {
    %c0_i32 = arith.constant 0 : i32
    %c0_i32_0 = arith.constant 0 : i32
    %c0_i32_1 = arith.constant 0 : i32
    return %arg0, %c0_i32, %c0_i32_0 : i32, i32, i32
  }
  func.func @transform_2(%arg0: i32, %arg1: i32) -> (i32, i32, i32) {
    %c0_i32 = arith.constant 0 : i32
    %c0_i32_0 = arith.constant 0 : i32
    %c0_i32_1 = arith.constant 0 : i32
    return %arg0, %c0_i32, %c0_i32_0 : i32, i32, i32
  }
  func.func @transform_3(%arg0: i32, %arg1: i32) -> (i32, i32, i32, i32, i32) {
    %c0_i32 = arith.constant 0 : i32
    %c0_i32_0 = arith.constant 0 : i32
    %c0_i32_1 = arith.constant 0 : i32
    %c0_i32_2 = arith.constant 0 : i32
    return %arg0, %arg1, %c0_i32, %c0_i32_0, %c0_i32_1 : i32, i32, i32, i32, i32
  }
}

</mosaic_0001>

<bundles_post_ra>
// kernel: _unnamed_function_.4
= control target key start
LH: loop header
LB: loop body
LE: loop exit
PB: predicated region body
PF: predicated region fallthrough
CT: control target
= control target key end

     0   :  { %s1846_s15 = smov 0   ;;  %s1848_s16 = smov 0   ;;  %s2333_s0 = inlined_call_operand.vmem [shape: bf16[2,4,8,8,128], index: 0, kind: input, shape index: {}]   ;;  %s2334_s1 = inlined_call_operand.vmem [shape: bf16[2,8,8,2,8,256], index: 1, kind: input, shape index: {}]   ;;  %s2335_s2 = inlined_call_operand.vmem [shape: bf16[128,1024], index: 2, kind: input, shape index: {}]   ;;  %s2336_s3 = inlined_call_operand.vmem [shape: f32[1,1024], index: 3, kind: input, shape index: {}]   ;;  %s2337_s4 = inlined_call_operand.vmem [shape: bf16[2,8,8,2,8,256], index: 4, kind: output, shape index: {}]  }
   0x1   :  { %s1850_s17 = smov 0   ;;  %s1852_s18 = smov 0  }
   0x2   :  { %s1854_s19 = smov 0  }
   0x3 LB: > { %s23_s20 = sadd.s32 1, %s1810_s17  ;;  %s26_s21 = sadd.s32 1, %s1814_s18  ;;  %s1818_s19 = sphi %s1854_s19, %s14_s19   ;;  %s1814_s18 = sphi %s1852_s18, %s2341_s18   ;;  %s1810_s17 = sphi %s1850_s17, %s2340_s17   ;;  %s1806_s16 = sphi %s1848_s16, %s2339_s16   ;;  %s1802_s15 = sphi %s1846_s15, %s2338_s15  }
   0x4   : > { %p24_p0 = scmp.ge.s32.totalorder %s23_s20, 4  ;;  %p1541_p1 = scmp.ge.s32.totalorder %s1818_s19, 1 }
   0x5   : > { %p200_p2 = scmp.lt.s32.totalorder %s1818_s19, 9 }
   0x6   : > { %s2343_s20 = smov (%p24_p0, %s23_s20), 0  ;;  %s2345_s21 = smov (!%p24_p0, %s26_s21), %s1814_s18 }
   0x7   : > { %p201_p3 = pnand %p1541_p1, %p200_p2  ;;  %p28_p4 = scmp.ge.s32.totalorder %s2345_s21, 2 }
   0x8   : > { %p245_p5 = scmp.lt.s32.totalorder (!%p201_p3), %s1806_s16, 1  ;;  %p247_p6 = scmp.lt.s32.totalorder (!%p201_p3), %s1802_s15, 3 }
   0x9   : > { %s2347_s21 = smov (%p28_p4, %s2345_s21), 0  ;;  %204 = sbr.rel (%p201_p3) target bundleno = 312 (0x138), region = 36 }
   0xe   : > { %v341_v0 = vld [vmem:[%s2335_s2 + $0x1c0] sm:$0xff]  ;;  %v342_v2 = vld [vmem:[%s2335_s2 + $0x1c8] sm:$0xff]  ;;  %v1820_v8 = vmov 0   ;;  %s2349_s16 = smov (!%p245_p5, %s1806_s16), 1  ;;  %v343_v63 = vld [vmem:[%s2335_s2 + $0x1d0] sm:$0xff] }
   0xf   : > { %v345_v1 = vld [vmem:[%s2335_s2 + $0x1e0] sm:$0xff]  ;;  %v346_v4 = vld [vmem:[%s2335_s2 + $0x1e8] sm:$0xff]  ;;  %767 = vmatprep.mubr.bf16.mxu0 %v1820_v8  ;;  %840 = vmatprep.mubr.bf16.mxu1 %v1820_v8  ;;  %s248_s27 = scalar_select %p247_p6, %s1802_s15, 3 }
  0x10   : > { %v1614_v3 = vcombine.high %v341_v0, %v345_v1  ;;  %v1613_v5 = vcombine.low %v341_v0, %v345_v1  ;;  %v333_v6 = vld [vmem:[%s2335_s2 + $0x180] sm:$0xff]  ;;  %v1616_v9 = vcombine.high %v342_v2, %v346_v4  ;;  %v1615_v10 = vcombine.low %v342_v2, %v346_v4  ;;  %v334_v12 = vld [vmem:[%s2335_s2 + $0x188] sm:$0xff]  ;;  %s1543_s28 = sshll.u32 %s2349_s16, 5  ;;  %v347_v0 = vld [vmem:[%s2335_s2 + $0x1f0] sm:$0xff]  ;;  %s1547_s5 = sshll.u32 %s2349_s16, 8 }
  0x11   : > { %v337_v7 = vld [vmem:[%s2335_s2 + $0x1a0] sm:$0xff]  ;;  %v338_v13 = vld [vmem:[%s2335_s2 + $0x1a8] sm:$0xff]  ;;  %s1542_s29 = sshll.u32 %s248_s27, 3  ;;  %v344_v1 = vld [vmem:[%s2335_s2 + $0x1d8] sm:$0xff] }
  0x12   : > { %v1606_v11 = vcombine.high %v333_v6, %v337_v7  ;;  %v325_v14 = vld [vmem:[%s2335_s2 + $0x140] sm:$0xff]  ;;  %735 = vmatprep.subr.bf16.mxu0 %v1614_v3  ;;  %v1608_v15 = vcombine.high %v334_v12, %v338_v13  ;;  %v326_v17 = vld [vmem:[%s2335_s2 + $0x148] sm:$0xff]  ;;  %808 = vmatprep.subr.bf16.mxu1 %v1616_v9  ;;  %v1605_v19 = vcombine.low %v333_v6, %v337_v7  ;;  %s251_s8 = sadd.s32 %s1543_s28, %s1542_s29  ;;  %v348_v2 = vld [vmem:[%s2335_s2 + $0x1f8] sm:$0xff] }
  0x13   : > { %v329_v16 = vld [vmem:[%s2335_s2 + $0x160] sm:$0xff]  ;;  %v330_v18 = vld [vmem:[%s2335_s2 + $0x168] sm:$0xff]  ;;  %736 = vmatpush1.bf16.msra.mxu0 %v1613_v5  ;;  %809 = vmatpush1.bf16.msra.mxu1 %v1615_v10  ;;  %v1607_v20 = vcombine.low %v334_v12, %v338_v13  ;;  %s1544_s13 = sshll.u32 %s251_s8, 2  ;;  %v1618_v5 = vcombine.high %v343_v63, %v347_v0  ;;  %v1620_v6 = vcombine.high %v344_v1, %v348_v2  ;;  %v335_v7 = vld [vmem:[%s2335_s2 + $0x190] sm:$0xff] }
  0x14   : > { %737 = vmatprep.subr.bf16.mxu0 %v1606_v11  ;;  %v1598_v21 = vcombine.high %v325_v14, %v329_v16  ;;  %810 = vmatprep.subr.bf16.mxu1 %v1608_v15  ;;  %v1600_v22 = vcombine.high %v326_v17, %v330_v18  ;;  %v317_v23 = vld [vmem:[%s2335_s2 + $0x100] sm:$0xff]  ;;  %v318_v25 = vld [vmem:[%s2335_s2 + $0x108] sm:$0xff]  ;;  %v1597_v27 = vcombine.low %v325_v14, %v329_v16  ;;  %s1944_s23 = scalar_lea.vmem %s2333_s0, %s1544_s13  ;;  %v339_v9 = vld [vmem:[%s2335_s2 + $0x1b0] sm:$0xff] }
  0x15   : > { %v321_v24 = vld [vmem:[%s2335_s2 + $0x120] sm:$0xff]  ;;  %v322_v26 = vld [vmem:[%s2335_s2 + $0x128] sm:$0xff]  ;;  %v1599_v28 = vcombine.low %v326_v17, %v330_v18  ;;  %v336_v11 = vld [vmem:[%s2335_s2 + $0x198] sm:$0xff]  ;;  %v1617_v13 = vcombine.low %v343_v63, %v347_v0  ;;  %v1619_v14 = vcombine.low %v344_v1, %v348_v2  ;;  %v1610_v15 = vcombine.high %v335_v7, %v339_v9 }
  0x16   : > { %v1590_v29 = vcombine.high %v317_v23, %v321_v24  ;;  %v1592_v30 = vcombine.high %v318_v25, %v322_v26  ;;  %v309_v31 = vld [vmem:[%s2335_s2 + $0xc0] sm:$0xff]  ;;  %v310_v33 = vld [vmem:[%s2335_s2 + $0xc8] sm:$0xff]  ;;  %v1589_v35 = vcombine.low %v317_v23, %v321_v24  ;;  %v1591_v36 = vcombine.low %v318_v25, %v322_v26  ;;  %v340_v12 = vld [vmem:[%s2335_s2 + $0x1b8] sm:$0xff] }
  0x17   : > { %738 = vmatpush1.bf16.msra.mxu0 %v1605_v19  ;;  %811 = vmatpush1.bf16.msra.mxu1 %v1607_v20  ;;  %v313_v32 = vld [vmem:[%s2335_s2 + $0xe0] sm:$0xff]  ;;  %v314_v34 = vld [vmem:[%s2335_s2 + $0xe8] sm:$0xff]  ;;  %v1612_v16 = vcombine.high %v336_v11, %v340_v12  ;;  %v327_v17 = vld [vmem:[%s2335_s2 + $0x150] sm:$0xff] }
  0x18   : > { %739 = vmatprep.subr.bf16.mxu0 %v1598_v21  ;;  %812 = vmatprep.subr.bf16.mxu1 %v1600_v22  ;;  %v1582_v37 = vcombine.high %v309_v31, %v313_v32  ;;  %v301_v38 = vld [vmem:[%s2335_s2 + $0x80] sm:$0xff]  ;;  %v1584_v39 = vcombine.high %v310_v33, %v314_v34  ;;  %v302_v41 = vld [vmem:[%s2335_s2 + $0x88] sm:$0xff]  ;;  %v1581_v43 = vcombine.low %v309_v31, %v313_v32  ;;  %v331_v18 = vld [vmem:[%s2335_s2 + $0x170] sm:$0xff] }
  0x19   : > { %v305_v40 = vld [vmem:[%s2335_s2 + $0xa0] sm:$0xff]  ;;  %v306_v42 = vld [vmem:[%s2335_s2 + $0xa8] sm:$0xff]  ;;  %v1583_v44 = vcombine.low %v310_v33, %v314_v34  ;;  %v328_v19 = vld [vmem:[%s2335_s2 + $0x158] sm:$0xff]  ;;  %v1609_v21 = vcombine.low %v335_v7, %v339_v9  ;;  %v1611_v22 = vcombine.low %v336_v11, %v340_v12  ;;  %v1602_v23 = vcombine.high %v327_v17, %v331_v18 }
  0x1a   : > { %v1574_v45 = vcombine.high %v301_v38, %v305_v40  ;;  %v293_v46 = vld [vmem:[%s2335_s2 + $0x40] sm:$0xff]  ;;  %v1576_v47 = vcombine.high %v302_v41, %v306_v42  ;;  %v294_v49 = vld [vmem:[%s2335_s2 + $0x48] sm:$0xff]  ;;  %v1573_v51 = vcombine.low %v301_v38, %v305_v40  ;;  %v1575_v52 = vcombine.low %v302_v41, %v306_v42  ;;  %v332_v20 = vld [vmem:[%s2335_s2 + $0x178] sm:$0xff] }
  0x1b   : > { %740 = vmatpush1.bf16.msra.mxu0 %v1597_v27  ;;  %813 = vmatpush1.bf16.msra.mxu1 %v1599_v28  ;;  %v297_v48 = vld [vmem:[%s2335_s2 + $0x60] sm:$0xff]  ;;  %v298_v50 = vld [vmem:[%s2335_s2 + $0x68] sm:$0xff]  ;;  %v1604_v24 = vcombine.high %v328_v19, %v332_v20  ;;  %v319_v25 = vld [vmem:[%s2335_s2 + $0x110] sm:$0xff]  ;;  %v1603_v31 = vcombine.low %v328_v19, %v332_v20 }
  0x1c   : > { %741 = vmatprep.subr.bf16.mxu0 %v1590_v29  ;;  %814 = vmatprep.subr.bf16.mxu1 %v1592_v30  ;;  %v1566_v53 = vcombine.high %v293_v46, %v297_v48  ;;  %v1568_v54 = vcombine.high %v294_v49, %v298_v50  ;;  %v285_v55 = vld [vmem:[%s2335_s2] sm:$0xff]  ;;  %v286_v57 = vld [vmem:[%s2335_s2 + $0x8] sm:$0xff]  ;;  %v1565_v59 = vcombine.low %v293_v46, %v297_v48  ;;  %v323_v26 = vld [vmem:[%s2335_s2 + $0x130] sm:$0xff] }
  0x1d   : > { %v289_v56 = vld [vmem:[%s2335_s2 + $0x20] sm:$0xff]  ;;  %v290_v58 = vld [vmem:[%s2335_s2 + $0x28] sm:$0xff]  ;;  %v1567_v60 = vcombine.low %v294_v49, %v298_v50  ;;  %v320_v28 = vld [vmem:[%s2335_s2 + $0x118] sm:$0xff]  ;;  %v1601_v30 = vcombine.low %v327_v17, %v331_v18  ;;  %v1594_v32 = vcombine.high %v319_v25, %v323_v26  ;;  %v1593_v38 = vcombine.low %v319_v25, %v323_v26 }
  0x1e   : > { %v1558_v61 = vcombine.high %v285_v55, %v289_v56  ;;  %v1560_v62 = vcombine.high %v286_v57, %v290_v58  ;;  %v1557_v3 = vcombine.low %v285_v55, %v289_v56  ;;  %v1559_v4 = vcombine.low %v286_v57, %v290_v58  ;;  %v2013_v10 = vld [vmem:[%s1944_s23] sm:$0xff]   ;;  %v2044_v27 = vld [vmem:[%s1944_s23 + $0x8] sm:$0xff]   ;;  %v324_v29 = vld [vmem:[%s2335_s2 + $0x138] sm:$0xff] }
  0x1f   : > { %742 = vmatpush1.bf16.msra.mxu0 %v1589_v35  ;;  %815 = vmatpush1.bf16.msra.mxu1 %v1591_v36  ;;  %v1596_v33 = vcombine.high %v320_v28, %v324_v29  ;;  %v311_v34 = vld [vmem:[%s2335_s2 + $0xd0] sm:$0xff]  ;;  %v312_v36 = vld [vmem:[%s2335_s2 + $0xd8] sm:$0xff] }
  0x20   : > { %743 = vmatprep.subr.bf16.mxu0 %v1582_v37  ;;  %816 = vmatprep.subr.bf16.mxu1 %v1584_v39  ;;  %v315_v35 = vld [vmem:[%s2335_s2 + $0xf0] sm:$0xff]  ;;  %v316_v37 = vld [vmem:[%s2335_s2 + $0xf8] sm:$0xff]  ;;  %v1595_v39 = vcombine.low %v320_v28, %v324_v29 }
  0x21   : > { %v1586_v40 = vcombine.high %v311_v34, %v315_v35  ;;  %v1588_v41 = vcombine.high %v312_v36, %v316_v37  ;;  %v303_v42 = vld [vmem:[%s2335_s2 + $0x90] sm:$0xff]  ;;  %v308_v46 = vld [vmem:[%s2335_s2 + $0xb8] sm:$0xff]  ;;  %v1587_v48 = vcombine.low %v312_v36, %v316_v37 }
  0x22   : > { %v292_v63 = vld [vmem:[%s2335_s2 + $0x38] sm:$0xff] }
  0x23   : > { %744 = vmatpush1.bf16.msra.mxu0 %v1581_v43  ;;  %817 = vmatpush1.bf16.msra.mxu1 %v1583_v44  ;;  %v307_v43 = vld [vmem:[%s2335_s2 + $0xb0] sm:$0xff] }
  0x24   : > { %745 = vmatprep.subr.bf16.mxu0 %v1574_v45  ;;  %818 = vmatprep.subr.bf16.mxu1 %v1576_v47  ;;  %v1778_v44 = vld [vmem:[%s1944_s23 + $0x10] sm:$0xff]   ;;  %v304_v45 = vld [vmem:[%s2335_s2 + $0x98] sm:$0xff]  ;;  %v1585_v47 = vcombine.low %v311_v34, %v315_v35  ;;  %v1578_v49 = vcombine.high %v303_v42, %v307_v43  ;;  %v1577_v55 = vcombine.low %v303_v42, %v307_v43 }
  0x25   : > { %v1580_v50 = vcombine.high %v304_v45, %v308_v46  ;;  %v1579_v56 = vcombine.low %v304_v45, %v308_v46 }
  0x27   : > { %746 = vmatpush1.bf16.msra.mxu0 %v1573_v51  ;;  %819 = vmatpush1.bf16.msra.mxu1 %v1575_v52  ;;  %v295_v51 = vld [vmem:[%s2335_s2 + $0x50] sm:$0xff] }
  0x28   : > { %747 = vmatprep.subr.bf16.mxu0 %v1566_v53  ;;  %820 = vmatprep.subr.bf16.mxu1 %v1568_v54  ;;  %v299_v52 = vld [vmem:[%s2335_s2 + $0x70] sm:$0xff]  ;;  %v296_v53 = vld [vmem:[%s2335_s2 + $0x58] sm:$0xff] }
  0x29   : > { %v300_v54 = vld [vmem:[%s2335_s2 + $0x78] sm:$0xff]  ;;  %v1570_v57 = vcombine.high %v295_v51, %v299_v52  ;;  %v1569_v0 = vcombine.low %v295_v51, %v299_v52 }
  0x2a   : > { %v1572_v58 = vcombine.high %v296_v53, %v300_v54  ;;  %v1571_v1 = vcombine.low %v296_v53, %v300_v54 }
  0x2b   : > { %748 = vmatpush1.bf16.msra.mxu0 %v1565_v59  ;;  %821 = vmatpush1.bf16.msra.mxu1 %v1567_v60  ;;  %v287_v59 = vld [vmem:[%s2335_s2 + $0x10] sm:$0xff] }
  0x2c   : > { %749 = vmatprep.subr.bf16.mxu0 %v1558_v61  ;;  %822 = vmatprep.subr.bf16.mxu1 %v1560_v62  ;;  %v291_v60 = vld [vmem:[%s2335_s2 + $0x30] sm:$0xff]  ;;  %v1779_v61 = vld [vmem:[%s1944_s23 + $0x18] sm:$0xff]   ;;  %s1545_s23 = sshll.u32 %s1802_s15, 1 }
  0x2d   : > { %v288_v62 = vld [vmem:[%s2335_s2 + $0x18] sm:$0xff]  ;;  %v1562_v2 = vcombine.high %v287_v59, %v291_v60  ;;  %p257_p7 = scmp.lt.s32.totalorder %s1545_s23, 7 }
  0x2f   : > { %750 = vmatpush1.bf16.msra.mxu0 %v1557_v3  ;;  %823 = vmatpush1.bf16.msra.mxu1 %v1559_v4  ;;  %v1564_v3 = vcombine.high %v288_v62, %v292_v63  ;;  %v1561_v4 = vcombine.low %v287_v59, %v291_v60  ;;  %s2351_s23 = smov (!%p257_p7, %s1545_s23), 7 }
  0x30   : > { %881 = vmatprep.subr.bf16.mxu0 %v1618_v5  ;;  %954 = vmatprep.subr.bf16.mxu1 %v1620_v6  ;;  %v1563_v5 = vcombine.low %v288_v62, %v292_v63  ;;  %v351_v6 = vlaneseq  ;;  %s1546_s30 = sshll.u32 %s2351_s23, 5 }
  0x31   : > { %s2122_s6 = sadd.s32 %s1547_s5, %s1546_s30 }
  0x32   : > { %768 = vmatmul.mubr.bf16.vlgmr.msra.gmra.mxu0 %v2013_v10  ;;  %841 = vmatmul.mubr.bf16.vlgmr.msra.gmra.mxu1 %v2013_v10  ;;  %v2124_v7 = vshrl.u32 %v351_v6, 7  ;;  %s1548_s7 = sshll.u32 %s2122_s6, 2 }
  0x33   : > { %882 = vmatpush1.bf16.msra.mxu0 %v1617_v13  ;;  %955 = vmatpush1.bf16.msra.mxu1 %v1619_v14  ;;  %s2139_s16 = scalar_lea.vmem %s2334_s1, %s1548_s7  ;;  %s2171_s13 = scalar_lea.vmem %s2337_s4, %s1548_s7 }
  0x34   : > { %883 = vmatprep.subr.bf16.mxu0 %v1610_v15  ;;  %956 = vmatprep.subr.bf16.mxu1 %v1612_v16  ;;  %v353_v9 = vsub.s32 0, %v2124_v7  ;;  %v357_v11 = vsub.s32 1, %v2124_v7  ;;  %v365_v12 = vsub.s32 3, %v2124_v7  ;;  %v1027_v14 = vld [vmem:[%s2139_s16] sm:$0xff]  ;;  %v1629_v16 = vld [vmem:[%s2139_s16 + $0x8] sm:$0xff]  ;;  %v1630_v25 = vld [vmem:[%s2139_s16 + $0x18] sm:$0xff] }
  0x35   : > { %777 = vmatprep.mubr.bf16.mxu0 %v1820_v8  ;;  %850 = vmatprep.mubr.bf16.mxu1 %v1820_v8  ;;  %v1133_v29 = vunpack.c.h.bf16 %v1629_v16  ;;  %v1134_v35 = vunpack.c.l.bf16 %v1630_v25  ;;  %v1631_v42 = vld [vmem:[%s2139_s16 + $0x28] sm:$0xff]  ;;  %v1632_v62 = vld [vmem:[%s2139_s16 + $0x38] sm:$0xff] }
  0x37   : > { %884 = vmatpush1.bf16.msra.mxu0 %v1609_v21  ;;  %957 = vmatpush1.bf16.msra.mxu1 %v1611_v22  ;;  %v1035_v21 = vunpack.c.l.bf16 %v1027_v14 }
  0x38   : > { %885 = vmatprep.subr.bf16.mxu0 %v1602_v23  ;;  %958 = vmatprep.subr.bf16.mxu1 %v1604_v24  ;;  %v1036_v23 = vunpack.c.h.bf16 %v1027_v14  ;;  %v1028_v24 = vld [vmem:[%s2139_s16 + $0x10] sm:$0xff]  ;;  %v1138_v14 = vunpack.c.l.bf16 %v1632_v62 }
  0x39   : > { %v1037_v34 = vunpack.c.l.bf16 %v1028_v24 }
  0x3a   : > { %778 = vmatmul.mubr.bf16.gmra.mxu0 %v2044_v27  ;;  %851 = vmatmul.mubr.bf16.gmra.mxu1 %v2044_v27 }
  0x3b   : > { %886 = vmatpush1.bf16.msra.mxu0 %v1601_v30  ;;  %959 = vmatpush1.bf16.msra.mxu1 %v1603_v31 }
  0x3c   : > { %887 = vmatprep.subr.bf16.mxu0 %v1594_v32  ;;  %960 = vmatprep.subr.bf16.mxu1 %v1596_v33 }
  0x3d   : > { %787 = vmatprep.mubr.bf16.mxu0 %v1820_v8  ;;  %860 = vmatprep.mubr.bf16.mxu1 %v1820_v8 }
  0x3f   : > { %888 = vmatpush1.bf16.msra.mxu0 %v1593_v38  ;;  %961 = vmatpush1.bf16.msra.mxu1 %v1595_v39 }
  0x40   : > { %889 = vmatprep.subr.bf16.mxu0 %v1586_v40  ;;  %962 = vmatprep.subr.bf16.mxu1 %v1588_v41  ;;  %v1038_v40 = vunpack.c.h.bf16 %v1028_v24  ;;  %v1029_v41 = vld [vmem:[%s2139_s16 + $0x20] sm:$0xff]  ;;  %v1633_v24 = vld [vmem:[%s2139_s16 + $0x48] sm:$0xff] }
  0x41   : > { %v1039_v54 = vunpack.c.l.bf16 %v1029_v41  ;;  %v1040_v60 = vunpack.c.h.bf16 %v1029_v41 }
  0x42   : > { %788 = vmatmul.mubr.bf16.gmra.mxu0 %v1778_v44  ;;  %861 = vmatmul.mubr.bf16.gmra.mxu1 %v1778_v44 }
  0x43   : > { %890 = vmatpush1.bf16.msra.mxu0 %v1585_v47  ;;  %963 = vmatpush1.bf16.msra.mxu1 %v1587_v48  ;;  %v1135_v47 = vunpack.c.h.bf16 %v1630_v25 }
  0x44   : > { %891 = vmatprep.subr.bf16.mxu0 %v1578_v49  ;;  %964 = vmatprep.subr.bf16.mxu1 %v1580_v50 }
  0x45   : > { %797 = vmatprep.mubr.bf16.mxu0 %v1820_v8  ;;  %870 = vmatprep.mubr.bf16.mxu1 %v1820_v8 }
  0x47   : > { %892 = vmatpush1.bf16.msra.mxu0 %v1577_v55  ;;  %965 = vmatpush1.bf16.msra.mxu1 %v1579_v56  ;;  %v1136_v55 = vunpack.c.l.bf16 %v1631_v42 }
  0x48   : > { %893 = vmatprep.subr.bf16.mxu0 %v1570_v57  ;;  %966 = vmatprep.subr.bf16.mxu1 %v1572_v58 }
  0x4a   : > { %798 = vmatmul.mubr.bf16.gmra.mxu0 %v1779_v61  ;;  %871 = vmatmul.mubr.bf16.gmra.mxu1 %v1779_v61 }
  0x4b   : > { %894 = vmatpush1.bf16.msra.mxu0 %v1569_v0  ;;  %967 = vmatpush1.bf16.msra.mxu1 %v1571_v1 }
  0x4c   : > { %895 = vmatprep.subr.bf16.mxu0 %v1562_v2  ;;  %968 = vmatprep.subr.bf16.mxu1 %v1564_v3  ;;  %v1137_v3 = vunpack.c.h.bf16 %v1631_v42 }
  0x4d   : > { %913 = vmatprep.mubr.bf16.mxu0 %v1820_v8  ;;  %986 = vmatprep.mubr.bf16.mxu1 %v1820_v8 }
  0x4f   : > { %896 = vmatpush1.bf16.msra.mxu0 %v1561_v4  ;;  %969 = vmatpush1.bf16.msra.mxu1 %v1563_v5 }
  0x52   : > { %914 = vmatmul.mubr.bf16.vlgmr.msra.gmra.mxu0 %v2013_v10  ;;  %987 = vmatmul.mubr.bf16.vlgmr.msra.gmra.mxu1 %v2013_v10  ;;  %v361_v10 = vsub.s32 2, %v2124_v7 }
  0x53   : > { %923 = vmatprep.mubr.bf16.mxu0 %v1820_v8  ;;  %996 = vmatprep.mubr.bf16.mxu1 %v1820_v8 }
  0x5a   : > { %924 = vmatmul.mubr.bf16.gmra.mxu0 %v2044_v27  ;;  %997 = vmatmul.mubr.bf16.gmra.mxu1 %v2044_v27  ;;  %v1132_v27 = vunpack.c.l.bf16 %v1629_v16 }
  0x5b   : > { %933 = vmatprep.mubr.bf16.mxu0 %v1820_v8  ;;  %1006 = vmatprep.mubr.bf16.mxu1 %v1820_v8 }
  0x62   : > { %934 = vmatmul.mubr.bf16.gmra.mxu0 %v1778_v44  ;;  %1007 = vmatmul.mubr.bf16.gmra.mxu1 %v1778_v44 }
  0x63   : > { %943 = vmatprep.mubr.bf16.mxu0 %v1820_v8  ;;  %1016 = vmatprep.mubr.bf16.mxu1 %v1820_v8  ;;  %v2131_v8 = vld [vmem:[%s2336_s3] sm:$0xff] }
  0x64   : > { %v2144_v13 = vrot.slane %v2131_v8, %v353_v9  ;;  %v2148_v15 = vrot.slane %v2131_v8, %v361_v10  ;;  %v2152_v17 = vrot.slane %v2131_v8, %v357_v11  ;;  %v2155_v19 = vrot.slane %v2131_v8, %v365_v12 }
  0x6a   : > { %944 = vmatmul.mubr.bf16.gmra.mxu0 %v1779_v61  ;;  %1017 = vmatmul.mubr.bf16.gmra.mxu1 %v1779_v61  ;;  %v1030_v61 = vld [vmem:[%s2139_s16 + $0x30] sm:$0xff] }
  0x6b   : > { %v1041_v12 = vunpack.c.l.bf16 %v1030_v61 }
  0xf2   : > { %v769_v18 = vpop.f32.mrf.mxu0  ;;  %v842_v22 = vpop.f32.mrf.mxu1 }
  0xf3   : > { %v770_v20 = vadd.f32 %v769_v18, %v2144_v13  ;;  %v843_v26 = vadd.f32 %v842_v22, %v2148_v15  ;;  %v1042_v22 = vunpack.c.h.bf16 %v1030_v61 }
  0xf4   : > { %v771_v28 = vpop.f32.mrf.mxu0  ;;  %v844_v31 = vpop.f32.mrf.mxu1 }
  0xf5   : > { %v772_v30 = vadd.f32 %v771_v28, %v2152_v17  ;;  %v845_v32 = vadd.f32 %v844_v31, %v2155_v19  ;;  %v1051_v36 = vadd.f32 %v1035_v21, %v770_v20  ;;  %v1148_v43 = vadd.f32 %v1132_v27, %v843_v26 }
  0xf6   : > { %v773_v33 = vpop.f32.mrf.mxu0  ;;  %v846_v39 = vpop.f32.mrf.mxu1 }
  0xf7   : > { %v1052_v37 = vadd.f32 %v1036_v23, %v772_v30  ;;  %v774_v38 = vadd.f32 %v773_v33, %v2144_v13  ;;  %v1149_v44 = vadd.f32 %v1133_v29, %v845_v32  ;;  %v847_v45 = vadd.f32 %v846_v39, %v2148_v15  ;;  %v1031_v23 = vld [vmem:[%s2139_s16 + $0x40] sm:$0xff]  ;;  %v1634_v39 = vld [vmem:[%s2139_s16 + $0x58] sm:$0xff] }
  0xf8   : > { %v775_v46 = vpop.f32.mrf.mxu0  ;;  %v848_v50 = vpop.f32.mrf.mxu1  ;;  %v1139_v29 = vunpack.c.h.bf16 %v1632_v62  ;;  %v1143_v61 = vunpack.c.h.bf16 %v1634_v39 }
  0xf9   : > { %v1703_v48 = vpack.c.bf16 %v1052_v37, %v1051_v36  ;;  %v776_v49 = vadd.f32 %v775_v46, %v2152_v17  ;;  %v1711_v51 = vpack.c.bf16 %v1149_v44, %v1148_v43  ;;  %v849_v52 = vadd.f32 %v848_v50, %v2155_v19  ;;  %v1033_v50 = vld [vmem:[%s2139_s16 + $0x60] sm:$0xff] }
  0xfa   : > { %v779_v53 = vpop.f32.mrf.mxu0  ;;  %v1053_v56 = vadd.f32 %v1037_v34, %v774_v38  ;;  %v852_v59 = vpop.f32.mrf.mxu1  ;;  %v1150_v63 = vadd.f32 %v1134_v35, %v847_v45  ;;  %v1043_v36 = vunpack.c.l.bf16 %v1031_v23  ;;  %v1140_v37 = vunpack.c.l.bf16 %v1633_v24  ;;  %v1032_v38 = vld [vmem:[%s2139_s16 + $0x50] sm:$0xff] }
  0xfb   : > { %1115 = vst [vmem:[%s2171_s13] sm:$0xff] %v1703_v48  ;;  %v1054_v57 = vadd.f32 %v1038_v40, %v776_v49  ;;  %v780_v58 = vadd.f32 %v779_v53, %v2144_v13  ;;  %1645 = vst [vmem:[%s2171_s13 + $0x8] sm:$0xff] %v1711_v51  ;;  %v1151_v0 = vadd.f32 %v1135_v47, %v849_v52  ;;  %v1044_v44 = vunpack.c.h.bf16 %v1031_v23 }
  0xfc   : > { %v853_v1 = vadd.f32 %v852_v59, %v2148_v15  ;;  %v781_v2 = vpop.f32.mrf.mxu0  ;;  %v854_v6 = vpop.f32.mrf.mxu1  ;;  %v1141_v49 = vunpack.c.h.bf16 %v1633_v24 }
  0xfd   : > { %v1704_v4 = vpack.c.bf16 %v1054_v57, %v1053_v56  ;;  %v782_v5 = vadd.f32 %v781_v2, %v2152_v17  ;;  %v1712_v9 = vpack.c.bf16 %v1151_v0, %v1150_v63  ;;  %v855_v10 = vadd.f32 %v854_v6, %v2155_v19  ;;  %v2201_v56 = vld [vmem:[%s2139_s16 + $0x68] sm:$0xff] }
  0xfe   : > { %v783_v11 = vpop.f32.mrf.mxu0  ;;  %v1055_v16 = vadd.f32 %v1039_v54, %v780_v58  ;;  %v856_v21 = vpop.f32.mrf.mxu1  ;;  %v1152_v25 = vadd.f32 %v1136_v55, %v853_v1  ;;  %v1045_v54 = vunpack.c.l.bf16 %v1032_v38  ;;  %v1142_v55 = vunpack.c.l.bf16 %v1634_v39 }
  0xff   : > { %1116 = vst [vmem:[%s2171_s13 + $0x10] sm:$0xff] %v1704_v4  ;;  %v1056_v18 = vadd.f32 %v1040_v60, %v782_v5  ;;  %v784_v20 = vadd.f32 %v783_v11, %v2144_v13  ;;  %1646 = vst [vmem:[%s2171_s13 + $0x18] sm:$0xff] %v1712_v9  ;;  %v1153_v26 = vadd.f32 %v1137_v3, %v855_v10  ;;  %v1046_v60 = vunpack.c.h.bf16 %v1032_v38  ;;  %v2207_v3 = vld [vmem:[%s2139_s16 + $0x70] sm:$0xff]  ;;  %v2210_v4 = vld [vmem:[%s2139_s16 + $0x78] sm:$0xff] }
 0x100   : > { %v857_v27 = vadd.f32 %v856_v21, %v2148_v15  ;;  %v785_v28 = vpop.f32.mrf.mxu0  ;;  %v858_v32 = vpop.f32.mrf.mxu1  ;;  %v1047_v2 = vunpack.c.l.bf16 %v1033_v50  ;;  %v1144_v11 = vunpack.c.l.bf16 %v2201_v56  ;;  %v1049_v24 = vunpack.c.l.bf16 %v2207_v3 }
 0x101   : > { %v1705_v30 = vpack.c.bf16 %v1056_v18, %v1055_v16  ;;  %v786_v31 = vadd.f32 %v785_v28, %v2152_v17  ;;  %v1713_v33 = vpack.c.bf16 %v1153_v26, %v1152_v25  ;;  %v859_v34 = vadd.f32 %v858_v32, %v2155_v19 }
 0x102   : > { %v789_v35 = vpop.f32.mrf.mxu0  ;;  %v1057_v40 = vadd.f32 %v1041_v12, %v784_v20  ;;  %v862_v43 = vpop.f32.mrf.mxu1  ;;  %v1154_v45 = vadd.f32 %v1138_v14, %v857_v27  ;;  %v1048_v18 = vunpack.c.h.bf16 %v1033_v50  ;;  %v1145_v20 = vunpack.c.h.bf16 %v2201_v56 }
 0x103   : > { %1117 = vst [vmem:[%s2171_s13 + $0x20] sm:$0xff] %v1705_v30  ;;  %v1058_v41 = vadd.f32 %v1042_v22, %v786_v31  ;;  %v790_v42 = vadd.f32 %v789_v35, %v2144_v13  ;;  %1647 = vst [vmem:[%s2171_s13 + $0x28] sm:$0xff] %v1713_v33  ;;  %v1155_v46 = vadd.f32 %v1139_v29, %v859_v34  ;;  %v1146_v25 = vunpack.c.l.bf16 %v2210_v4 }
 0x104   : > { %v863_v47 = vadd.f32 %v862_v43, %v2148_v15  ;;  %v791_v48 = vpop.f32.mrf.mxu0  ;;  %v864_v53 = vpop.f32.mrf.mxu1  ;;  %v369_v30 = vsub.s32 4, %v2124_v7  ;;  %v377_v35 = vsub.s32 6, %v2124_v7  ;;  %v1050_v39 = vunpack.c.h.bf16 %v2207_v3 }
 0x105   : > { %v1706_v51 = vpack.c.bf16 %v1058_v41, %v1057_v40  ;;  %v792_v52 = vadd.f32 %v791_v48, %v2152_v17  ;;  %v1714_v57 = vpack.c.bf16 %v1155_v46, %v1154_v45  ;;  %v865_v58 = vadd.f32 %v864_v53, %v2155_v19  ;;  %v1653_v45 = vld [vmem:[%s2139_s16 + $0x80] sm:$0xff] }
 0x106   : > { %v793_v59 = vpop.f32.mrf.mxu0  ;;  %v1059_v62 = vadd.f32 %v1043_v36, %v790_v42  ;;  %v866_v1 = vpop.f32.mrf.mxu1  ;;  %v1156_v5 = vadd.f32 %v1140_v37, %v863_v47  ;;  %v373_v40 = vsub.s32 5, %v2124_v7  ;;  %v381_v46 = vsub.s32 7, %v2124_v7 }
 0x107   : > { %1118 = vst [vmem:[%s2171_s13 + $0x30] sm:$0xff] %v1706_v51  ;;  %v1060_v63 = vadd.f32 %v1044_v44, %v792_v52  ;;  %v794_v0 = vadd.f32 %v793_v59, %v2144_v13  ;;  %1648 = vst [vmem:[%s2171_s13 + $0x38] sm:$0xff] %v1714_v57  ;;  %v1157_v6 = vadd.f32 %v1141_v49, %v865_v58  ;;  %v1147_v44 = vunpack.c.h.bf16 %v2210_v4  ;;  %v1677_v52 = vld [vmem:[%s2139_s16 + $0x88] sm:$0xff] }
 0x108   : > { %v867_v9 = vadd.f32 %v866_v1, %v2148_v15  ;;  %v795_v10 = vpop.f32.mrf.mxu0  ;;  %v868_v16 = vpop.f32.mrf.mxu1  ;;  %v2236_v51 = vrot.slane %v2131_v8, %v369_v30  ;;  %v2242_v57 = vrot.slane %v2131_v8, %v377_v35  ;;  %v1230_v59 = vunpack.c.l.bf16 %v1653_v45  ;;  %v1679_v30 = vld [vmem:[%s2139_s16 + $0xa8] sm:$0xff] }
 0x109   : > { %v1707_v12 = vpack.c.bf16 %v1060_v63, %v1059_v62  ;;  %v796_v14 = vadd.f32 %v795_v10, %v2152_v17  ;;  %v1715_v21 = vpack.c.bf16 %v1157_v6, %v1156_v5  ;;  %v869_v22 = vadd.f32 %v868_v16, %v2155_v19  ;;  %v1654_v5 = vld [vmem:[%s2139_s16 + $0x90] sm:$0xff]  ;;  %v1678_v6 = vld [vmem:[%s2139_s16 + $0x98] sm:$0xff] }
 0x10a   : > { %v799_v23 = vpop.f32.mrf.mxu0  ;;  %v1061_v26 = vadd.f32 %v1045_v54, %v794_v0  ;;  %v872_v29 = vpop.f32.mrf.mxu1  ;;  %v1158_v31 = vadd.f32 %v1142_v55, %v867_v9  ;;  %v2250_v0 = vrot.slane %v2131_v8, %v381_v46  ;;  %v1231_v4 = vunpack.c.h.bf16 %v1653_v45 }
 0x10b   : > { %1119 = vst [vmem:[%s2171_s13 + $0x40] sm:$0xff] %v1707_v12  ;;  %v1062_v27 = vadd.f32 %v1046_v60, %v796_v14  ;;  %v800_v28 = vadd.f32 %v799_v23, %v2144_v13  ;;  %1649 = vst [vmem:[%s2171_s13 + $0x48] sm:$0xff] %v1715_v21  ;;  %v1159_v32 = vadd.f32 %v1143_v61, %v869_v22  ;;  %v1329_v12 = vunpack.c.h.bf16 %v1677_v52 }
 0x10c   : > { %v873_v33 = vadd.f32 %v872_v29, %v2148_v15  ;;  %v801_v34 = vpop.f32.mrf.mxu0  ;;  %v874_v38 = vpop.f32.mrf.mxu1  ;;  %v2246_v60 = vrot.slane %v2131_v8, %v373_v40  ;;  %v1232_v22 = vunpack.c.l.bf16 %v1654_v5  ;;  %v1330_v23 = vunpack.c.l.bf16 %v1678_v6  ;;  %v1655_v29 = vld [vmem:[%s2139_s16 + $0xa0] sm:$0xff] }
 0x10d   : > { %v1708_v36 = vpack.c.bf16 %v1062_v27, %v1061_v26  ;;  %v802_v37 = vadd.f32 %v801_v34, %v2152_v17  ;;  %v1716_v41 = vpack.c.bf16 %v1159_v32, %v1158_v31  ;;  %v875_v42 = vadd.f32 %v874_v38, %v2155_v19 }
 0x10e   : > { %v803_v43 = vpop.f32.mrf.mxu0  ;;  %v1063_v47 = vadd.f32 %v1047_v2, %v800_v28  ;;  %v876_v50 = vpop.f32.mrf.mxu1  ;;  %v1160_v53 = vadd.f32 %v1144_v11, %v873_v33  ;;  %v1233_v28 = vunpack.c.h.bf16 %v1654_v5  ;;  %v1331_v35 = vunpack.c.h.bf16 %v1678_v6  ;;  %v1657_v5 = vld [vmem:[%s2139_s16 + $0xc0] sm:$0xff]  ;;  %v1681_v6 = vld [vmem:[%s2139_s16 + $0xc8] sm:$0xff] }
 0x10f   : > { %1120 = vst [vmem:[%s2171_s13 + $0x50] sm:$0xff] %v1708_v36  ;;  %v1064_v48 = vadd.f32 %v1048_v18, %v802_v37  ;;  %v804_v49 = vadd.f32 %v803_v43, %v2144_v13  ;;  %1650 = vst [vmem:[%s2171_s13 + $0x58] sm:$0xff] %v1716_v41  ;;  %v1161_v54 = vadd.f32 %v1145_v20, %v875_v42  ;;  %v1234_v42 = vunpack.c.l.bf16 %v1655_v29 }
 0x110   : > { %v877_v55 = vadd.f32 %v876_v50, %v2148_v15  ;;  %v805_v56 = vpop.f32.mrf.mxu0  ;;  %v878_v13 = vpop.f32.mrf.mxu1  ;;  %v1328_v15 = vunpack.c.l.bf16 %v1677_v52  ;;  %v1332_v43 = vunpack.c.l.bf16 %v1679_v30  ;;  %v1680_v50 = vld [vmem:[%s2139_s16 + $0xb8] sm:$0xff] }
 0x111   : > { %v1709_v7 = vpack.c.bf16 %v1064_v48, %v1063_v47  ;;  %v806_v58 = vadd.f32 %v805_v56, %v2152_v17  ;;  %v1717_v61 = vpack.c.bf16 %v1161_v54, %v1160_v53  ;;  %v879_v62 = vadd.f32 %v878_v13, %v2155_v19 }
 0x112   : > { %v915_v63 = vpop.f32.mrf.mxu0  ;;  %v1065_v1 = vadd.f32 %v1049_v24, %v804_v49  ;;  %v988_v3 = vpop.f32.mrf.mxu1  ;;  %v1162_v9 = vadd.f32 %v1146_v25, %v877_v55  ;;  %v1235_v48 = vunpack.c.h.bf16 %v1655_v29  ;;  %v1656_v49 = vld [vmem:[%s2139_s16 + $0xb0] sm:$0xff]  ;;  %v1333_v56 = vunpack.c.h.bf16 %v1679_v30  ;;  %v1682_v30 = vld [vmem:[%s2139_s16 + $0xd8] sm:$0xff] }
 0x113   : > { %1121 = vst [vmem:[%s2171_s13 + $0x60] sm:$0xff] %v1709_v7  ;;  %v1066_v2 = vadd.f32 %v1050_v39, %v806_v58  ;;  %v916_v17 = vadd.f32 %v915_v63, %v2236_v51  ;;  %1651 = vst [vmem:[%s2171_s13 + $0x68] sm:$0xff] %v1717_v61  ;;  %v1163_v10 = vadd.f32 %v1147_v44, %v879_v62  ;;  %v1236_v63 = vunpack.c.l.bf16 %v1656_v49  ;;  %v1658_v29 = vld [vmem:[%s2139_s16 + $0xd0] sm:$0xff] }
 0x114   : > { %v989_v19 = vadd.f32 %v988_v3, %v2242_v57  ;;  %v917_v11 = vpop.f32.mrf.mxu0  ;;  %v990_v16 = vpop.f32.mrf.mxu1 }
 0x115   : > { %v1710_v8 = vpack.c.bf16 %v1066_v2, %v1065_v1  ;;  %v918_v14 = vadd.f32 %v917_v11, %v2246_v60  ;;  %v1718_v18 = vpack.c.bf16 %v1163_v10, %v1162_v9  ;;  %v991_v20 = vadd.f32 %v990_v16, %v2250_v0 }
 0x116   : > { %v919_v21 = vpop.f32.mrf.mxu0  ;;  %v1246_v24 = vadd.f32 %v1230_v59, %v916_v17  ;;  %v992_v27 = vpop.f32.mrf.mxu1  ;;  %v1344_v31 = vadd.f32 %v1328_v15, %v989_v19  ;;  %v1334_v15 = vunpack.c.l.bf16 %v1680_v50 }
 0x117   : > { %1122 = vst [vmem:[%s2171_s13 + $0x70] sm:$0xff] %v1710_v8  ;;  %v1247_v25 = vadd.f32 %v1231_v4, %v918_v14  ;;  %v920_v26 = vadd.f32 %v919_v21, %v2236_v51  ;;  %1652 = vst [vmem:[%s2171_s13 + $0x78] sm:$0xff] %v1718_v18  ;;  %v1345_v32 = vadd.f32 %v1329_v12, %v991_v20  ;;  %v1237_v4 = vunpack.c.h.bf16 %v1656_v49  ;;  %v1659_v49 = vld [vmem:[%s2139_s16 + $0xe0] sm:$0xff] }
 0x118   : > { %v993_v33 = vadd.f32 %v992_v27, %v2242_v57  ;;  %v921_v34 = vpop.f32.mrf.mxu0  ;;  %v994_v38 = vpop.f32.mrf.mxu1  ;;  %v1335_v12 = vunpack.c.h.bf16 %v1680_v50  ;;  %v1683_v50 = vld [vmem:[%s2139_s16 + $0xe8] sm:$0xff] }
 0x119   : > { %v1719_v36 = vpack.c.bf16 %v1247_v25, %v1246_v24  ;;  %v922_v37 = vadd.f32 %v921_v34, %v2246_v60  ;;  %v1727_v39 = vpack.c.bf16 %v1345_v32, %v1344_v31  ;;  %v995_v40 = vadd.f32 %v994_v38, %v2250_v0 }
 0x11a   : > { %v925_v41 = vpop.f32.mrf.mxu0  ;;  %v1248_v44 = vadd.f32 %v1232_v22, %v920_v26  ;;  %v998_v47 = vpop.f32.mrf.mxu1  ;;  %v1346_v52 = vadd.f32 %v1330_v23, %v993_v33  ;;  %v1238_v22 = vunpack.c.l.bf16 %v1657_v5  ;;  %v1336_v23 = vunpack.c.l.bf16 %v1681_v6 }
 0x11b   : > { %1669 = vst [vmem:[%s2171_s13 + $0x80] sm:$0xff] %v1719_v36  ;;  %v1249_v45 = vadd.f32 %v1233_v28, %v922_v37  ;;  %v926_v46 = vadd.f32 %v925_v41, %v2236_v51  ;;  %1693 = vst [vmem:[%s2171_s13 + $0x88] sm:$0xff] %v1727_v39  ;;  %v1347_v53 = vadd.f32 %v1331_v35, %v995_v40  ;;  %v1239_v28 = vunpack.c.h.bf16 %v1657_v5  ;;  %v1660_v5 = vld [vmem:[%s2139_s16 + $0xf0] sm:$0xff] }
 0x11c   : > { %v999_v54 = vadd.f32 %v998_v47, %v2242_v57  ;;  %v927_v55 = vpop.f32.mrf.mxu0  ;;  %v1000_v13 = vpop.f32.mrf.mxu1  ;;  %v1337_v35 = vunpack.c.h.bf16 %v1681_v6  ;;  %v1684_v6 = vld [vmem:[%s2139_s16 + $0xf8] sm:$0xff] }
 0x11d   : > { %v1720_v7 = vpack.c.bf16 %v1249_v45, %v1248_v44  ;;  %v928_v58 = vadd.f32 %v927_v55, %v2246_v60  ;;  %v1728_v59 = vpack.c.bf16 %v1347_v53, %v1346_v52  ;;  %v1001_v61 = vadd.f32 %v1000_v13, %v2250_v0 }
 0x11e   : > { %v929_v62 = vpop.f32.mrf.mxu0  ;;  %v1250_v1 = vadd.f32 %v1234_v42, %v926_v46  ;;  %v1002_v3 = vpop.f32.mrf.mxu1  ;;  %v1348_v9 = vadd.f32 %v1332_v43, %v999_v54  ;;  %v1240_v42 = vunpack.c.l.bf16 %v1658_v29  ;;  %v1338_v43 = vunpack.c.l.bf16 %v1682_v30 }
 0x11f   : > { %1670 = vst [vmem:[%s2171_s13 + $0x90] sm:$0xff] %v1720_v7  ;;  %v1251_v2 = vadd.f32 %v1235_v48, %v928_v58  ;;  %v930_v17 = vadd.f32 %v929_v62, %v2236_v51  ;;  %1694 = vst [vmem:[%s2171_s13 + $0x98] sm:$0xff] %v1728_v59  ;;  %v1349_v10 = vadd.f32 %v1333_v56, %v1001_v61  ;;  %v1241_v48 = vunpack.c.h.bf16 %v1658_v29 }
 0x120   : > { %v1003_v19 = vadd.f32 %v1002_v3, %v2242_v57  ;;  %v931_v11 = vpop.f32.mrf.mxu0  ;;  %v1004_v16 = vpop.f32.mrf.mxu1  ;;  %v1339_v56 = vunpack.c.h.bf16 %v1682_v30 }
 0x121   : > { %v1721_v8 = vpack.c.bf16 %v1251_v2, %v1250_v1  ;;  %v932_v14 = vadd.f32 %v931_v11, %v2246_v60  ;;  %v1729_v18 = vpack.c.bf16 %v1349_v10, %v1348_v9  ;;  %v1005_v20 = vadd.f32 %v1004_v16, %v2250_v0 }
 0x122   : > { %v935_v21 = vpop.f32.mrf.mxu0  ;;  %v1252_v24 = vadd.f32 %v1236_v63, %v930_v17  ;;  %v1008_v27 = vpop.f32.mrf.mxu1  ;;  %v1350_v31 = vadd.f32 %v1334_v15, %v1003_v19  ;;  %v1242_v63 = vunpack.c.l.bf16 %v1659_v49  ;;  %v1340_v15 = vunpack.c.l.bf16 %v1683_v50 }
 0x123   : > { %1671 = vst [vmem:[%s2171_s13 + $0xa0] sm:$0xff] %v1721_v8  ;;  %v1253_v25 = vadd.f32 %v1237_v4, %v932_v14  ;;  %v936_v26 = vadd.f32 %v935_v21, %v2236_v51  ;;  %1695 = vst [vmem:[%s2171_s13 + $0xa8] sm:$0xff] %v1729_v18  ;;  %v1351_v32 = vadd.f32 %v1335_v12, %v1005_v20  ;;  %v1243_v4 = vunpack.c.h.bf16 %v1659_v49 }
 0x124   : > { %v1009_v33 = vadd.f32 %v1008_v27, %v2242_v57  ;;  %v937_v34 = vpop.f32.mrf.mxu0  ;;  %v1010_v38 = vpop.f32.mrf.mxu1  ;;  %v1341_v12 = vunpack.c.h.bf16 %v1683_v50 }
 0x125   : > { %v1722_v36 = vpack.c.bf16 %v1253_v25, %v1252_v24  ;;  %v938_v37 = vadd.f32 %v937_v34, %v2246_v60  ;;  %v1730_v39 = vpack.c.bf16 %v1351_v32, %v1350_v31  ;;  %v1011_v40 = vadd.f32 %v1010_v38, %v2250_v0 }
 0x126   : > { %v939_v41 = vpop.f32.mrf.mxu0  ;;  %v1254_v44 = vadd.f32 %v1238_v22, %v936_v26  ;;  %v1012_v47 = vpop.f32.mrf.mxu1  ;;  %v1352_v52 = vadd.f32 %v1336_v23, %v1009_v33  ;;  %v1244_v22 = vunpack.c.l.bf16 %v1660_v5  ;;  %v1342_v23 = vunpack.c.l.bf16 %v1684_v6 }
 0x127   : > { %1672 = vst [vmem:[%s2171_s13 + $0xb0] sm:$0xff] %v1722_v36  ;;  %v1255_v45 = vadd.f32 %v1239_v28, %v938_v37  ;;  %v940_v46 = vadd.f32 %v939_v41, %v2236_v51  ;;  %1696 = vst [vmem:[%s2171_s13 + $0xb8] sm:$0xff] %v1730_v39  ;;  %v1353_v53 = vadd.f32 %v1337_v35, %v1011_v40  ;;  %v1245_v28 = vunpack.c.h.bf16 %v1660_v5 }
 0x128   : > { %v1013_v54 = vadd.f32 %v1012_v47, %v2242_v57  ;;  %v941_v55 = vpop.f32.mrf.mxu0  ;;  %v1014_v13 = vpop.f32.mrf.mxu1  ;;  %v1343_v33 = vunpack.c.h.bf16 %v1684_v6 }
 0x129   : > { %v1723_v7 = vpack.c.bf16 %v1255_v45, %v1254_v44  ;;  %v942_v58 = vadd.f32 %v941_v55, %v2246_v60  ;;  %v1731_v59 = vpack.c.bf16 %v1353_v53, %v1352_v52  ;;  %v1015_v61 = vadd.f32 %v1014_v13, %v2250_v0 }
 0x12a   : > { %v945_v62 = vpop.f32.mrf.mxu0  ;;  %v1256_v1 = vadd.f32 %v1240_v42, %v940_v46  ;;  %v1018_v3 = vpop.f32.mrf.mxu1  ;;  %v1354_v9 = vadd.f32 %v1338_v43, %v1013_v54 }
 0x12b   : > { %1673 = vst [vmem:[%s2171_s13 + $0xc0] sm:$0xff] %v1723_v7  ;;  %v1257_v2 = vadd.f32 %v1241_v48, %v942_v58  ;;  %v946_v17 = vadd.f32 %v945_v62, %v2236_v51  ;;  %1697 = vst [vmem:[%s2171_s13 + $0xc8] sm:$0xff] %v1731_v59  ;;  %v1355_v10 = vadd.f32 %v1339_v56, %v1015_v61 }
 0x12c   : > { %v1019_v19 = vadd.f32 %v1018_v3, %v2242_v57  ;;  %v947_v11 = vpop.f32.mrf.mxu0  ;;  %v1020_v16 = vpop.f32.mrf.mxu1 }
 0x12d   : > { %v1724_v8 = vpack.c.bf16 %v1257_v2, %v1256_v1  ;;  %v948_v14 = vadd.f32 %v947_v11, %v2246_v60  ;;  %v1732_v18 = vpack.c.bf16 %v1355_v10, %v1354_v9  ;;  %v1021_v20 = vadd.f32 %v1020_v16, %v2250_v0 }
 0x12e   : > { %v949_v21 = vpop.f32.mrf.mxu0  ;;  %v1258_v24 = vadd.f32 %v1242_v63, %v946_v17  ;;  %v1022_v27 = vpop.f32.mrf.mxu1  ;;  %v1356_v29 = vadd.f32 %v1340_v15, %v1019_v19 }
 0x12f   : > { %1674 = vst [vmem:[%s2171_s13 + $0xd0] sm:$0xff] %v1724_v8  ;;  %v1259_v25 = vadd.f32 %v1243_v4, %v948_v14  ;;  %v950_v26 = vadd.f32 %v949_v21, %v2236_v51  ;;  %1698 = vst [vmem:[%s2171_s13 + $0xd8] sm:$0xff] %v1732_v18  ;;  %v1357_v30 = vadd.f32 %v1341_v12, %v1021_v20 }
 0x130   : > { %v1023_v31 = vadd.f32 %v1022_v27, %v2242_v57  ;;  %v951_v32 = vpop.f32.mrf.mxu0  ;;  %v1024_v36 = vpop.f32.mrf.mxu1 }
 0x131   : > { %v1725_v34 = vpack.c.bf16 %v1259_v25, %v1258_v24  ;;  %v952_v35 = vadd.f32 %v951_v32, %v2246_v60  ;;  %v1733_v37 = vpack.c.bf16 %v1357_v30, %v1356_v29  ;;  %v1025_v38 = vadd.f32 %v1024_v36, %v2250_v0 }
 0x132   : > { %v1260_v51 = vadd.f32 %v1244_v22, %v950_v26  ;;  %v1358_v40 = vadd.f32 %v1342_v23, %v1023_v31 }
 0x133   : > { %1675 = vst [vmem:[%s2171_s13 + $0xe0] sm:$0xff] %v1725_v34  ;;  %v1261_v39 = vadd.f32 %v1245_v28, %v952_v35  ;;  %1699 = vst [vmem:[%s2171_s13 + $0xe8] sm:$0xff] %v1733_v37  ;;  %v1359_v41 = vadd.f32 %v1343_v33, %v1025_v38 }
 0x135   : > { %v1726_v42 = vpack.c.bf16 %v1261_v39, %v1260_v51  ;;  %v1734_v43 = vpack.c.bf16 %v1359_v41, %v1358_v40 }
 0x137   : > { %1676 = vst [vmem:[%s2171_s13 + $0xf0] sm:$0xff] %v1726_v42  ;;  %1700 = vst [vmem:[%s2171_s13 + $0xf8] sm:$0xff] %v1734_v43 }
 0x138 PF: > { %s14_s19 = sadd.s32 1, %s1818_s19   ;;  %s2338_s15 = smov %s1810_s17 }
 0x139   : > { %p11_p8 = scmp.ge.s32.totalorder %s14_s19, 10   ;;  %s2339_s16 = smov %s1814_s18 }
 0x13a   : > { %s2340_s17 = smov %s2343_s20  ;;  %s2341_s18 = smov %s2347_s21 }
 0x13b   :  { %13 = sbr.rel (!%p11_p8) target bundleno = 3 (0x3), region = 75 }

// kernel: _unnamed_function_.7
= control target key start
LH: loop header
LB: loop body
LE: loop exit
PB: predicated region body
PF: predicated region fallthrough
CT: control target
= control target key end

     0   :  { %s812_s12 = smov 0   ;;  %s814_s13 = smov 0   ;;  %s993_s0 = inlined_call_operand.vmem [shape: bf16[2,8,16,16,128], index: 0, kind: input, shape index: {}]   ;;  %s994_s1 = inlined_call_operand.vmem [shape: f32[2,1,128], index: 1, kind: input, shape index: {}]   ;;  %s995_s2 = inlined_call_operand.vmem [shape: f32[2,1,128], index: 2, kind: input, shape index: {}]   ;;  %s996_s3 = inlined_call_operand.vmem [shape: f32[2,8,16,16,128], index: 3, kind: output, shape index: {}]  }
   0x1   :  { %s816_s14 = smov 0   ;;  %s818_s15 = smov 0  }
   0x2   :  { %s820_s16 = smov 0  }
   0x3 LB: > { %s22_s17 = sadd.s32 1, %s782_s14  ;;  %s25_s18 = sadd.s32 1, %s786_s15  ;;  %s790_s16 = sphi %s820_s16, %s13_s16   ;;  %s786_s15 = sphi %s818_s15, %s1000_s15   ;;  %s782_s14 = sphi %s816_s14, %s999_s14   ;;  %s778_s13 = sphi %s814_s13, %s998_s13   ;;  %s774_s12 = sphi %s812_s12, %s997_s12  }
   0x4   : > { %p23_p0 = scmp.ge.s32.totalorder %s22_s17, 8  ;;  %p622_p1 = scmp.ge.s32.totalorder %s790_s16, 1 }
   0x5   : > { %p173_p2 = scmp.lt.s32.totalorder %s790_s16, 17 }
   0x6   : > { %s1002_s17 = smov (%p23_p0, %s22_s17), 0  ;;  %s1004_s18 = smov (!%p23_p0, %s25_s18), %s786_s15 }
   0x7   : > { %p174_p3 = pnand %p622_p1, %p173_p2  ;;  %p27_p4 = scmp.ge.s32.totalorder %s1004_s18, 2 }
   0x8   : > { %p211_p5 = scmp.lt.s32.totalorder (!%p174_p3), %s778_s13, 1  ;;  %p213_p6 = scmp.lt.s32.totalorder (!%p174_p3), %s774_s12, 7 }
   0x9   : > { %s1006_s18 = smov (%p27_p4, %s1004_s18), 0  ;;  %177 = sbr.rel (%p174_p3) target bundleno = 74 (0x4a), region = 32 }
   0xe   : > { %s1008_s13 = smov (!%p211_p5, %s778_s13), 1  ;;  %s1010_s12 = smov (!%p213_p6, %s774_s12), 7 }
   0xf   : > { %s624_s19 = sshll.u32 %s1008_s13, 8  ;;  %s623_s20 = sshll.u32 %s1010_s12, 5 }
  0x10   : > { %s222_s23 = scalar_lea.vmem %s994_s1, %s1008_s13  ;;  %s845_s24 = sadd.s32 %s624_s19, %s623_s20 }
  0x11   : > { %s625_s25 = sshll.u32 %s845_s24, 2  ;;  %s225_s4 = scalar_lea.vmem %s995_s2, %s1008_s13  ;;  %v856_v0 = vld [vmem:[%s222_s23] ss:$0 sm:$0xff] }
  0x12   : > { %s851_s28 = scalar_lea.vmem %s993_s0, %s625_s25  ;;  %v862_v9 = vld [vmem:[%s225_s4] ss:$0 sm:$0xff]  ;;  %s628_s5 = sshll.u32 %s845_s24, 3 }
  0x13   : > { %v634_v1 = vld [vmem:[%s851_s28] sm:$0xff]   ;;  %v697_v2 = vld [vmem:[%s851_s28 + $0x8] sm:$0xff]   ;;  %v698_v3 = vld [vmem:[%s851_s28 + $0x10] sm:$0xff]   ;;  %s884_s8 = scalar_lea.vmem %s996_s3, %s628_s5 }
  0x14   : > { %v635_v4 = vunpack.c.l.bf16 %v634_v1  ;;  %v636_v5 = vunpack.c.h.bf16 %v634_v1  ;;  %v639_v6 = vunpack.c.l.bf16 %v697_v2  ;;  %v640_v7 = vunpack.c.h.bf16 %v697_v2  ;;  %v699_v8 = vld [vmem:[%s851_s28 + $0x18] sm:$0xff]   ;;  %v700_v37 = vld [vmem:[%s851_s28 + $0x20] sm:$0xff]   ;;  %v701_v41 = vld [vmem:[%s851_s28 + $0x28] sm:$0xff]  }
  0x15   : > { %v643_v10 = vunpack.c.l.bf16 %v698_v3  ;;  %v644_v11 = vunpack.c.h.bf16 %v698_v3  ;;  %v647_v12 = vunpack.c.l.bf16 %v699_v8  ;;  %v648_v13 = vunpack.c.h.bf16 %v699_v8  ;;  %v702_v42 = vld [vmem:[%s851_s28 + $0x30] sm:$0xff]   ;;  %v703_v49 = vld [vmem:[%s851_s28 + $0x38] sm:$0xff]  }
  0x16   : > { %v306_v14 = vmul.f32 %v635_v4, %v856_v0  ;;  %v307_v15 = vmul.f32 %v636_v5, %v856_v0  ;;  %v308_v16 = vmul.f32 %v639_v6, %v856_v0  ;;  %v309_v17 = vmul.f32 %v640_v7, %v856_v0  ;;  %v704_v7 = vld [vmem:[%s851_s28 + $0x40] sm:$0xff]  }
  0x17   : > { %v310_v18 = vmul.f32 %v643_v10, %v856_v0  ;;  %v311_v19 = vmul.f32 %v644_v11, %v856_v0  ;;  %v312_v20 = vmul.f32 %v647_v12, %v856_v0  ;;  %v313_v21 = vmul.f32 %v648_v13, %v856_v0 }
  0x18   : > { %v345_v22 = vadd.f32 %v862_v9, %v306_v14  ;;  %v346_v23 = vadd.f32 %v862_v9, %v307_v15  ;;  %v347_v24 = vadd.f32 %v862_v9, %v308_v16  ;;  %v348_v25 = vadd.f32 %v862_v9, %v309_v17 }
  0x19   : > { %v349_v26 = vadd.f32 %v862_v9, %v310_v18  ;;  %v350_v27 = vadd.f32 %v862_v9, %v311_v19  ;;  %v351_v28 = vadd.f32 %v862_v9, %v312_v20  ;;  %v352_v29 = vadd.f32 %v862_v9, %v313_v21  ;;  %v705_v20 = vld [vmem:[%s851_s28 + $0x48] sm:$0xff]  }
  0x1a   : > { %vm377_vm0 = vcmp.ge.f32.partialorder %v345_v22, 0.0  ;;  %v409_v30 = vmul.f32 0.01, %v345_v22  ;;  %vm378_vm1 = vcmp.ge.f32.partialorder %v346_v23, 0.0  ;;  %v410_v31 = vmul.f32 0.01, %v346_v23 }
  0x1b   : > { %vm379_vm2 = vcmp.ge.f32.partialorder %v347_v24, 0.0  ;;  %v411_v32 = vmul.f32 0.01, %v347_v24  ;;  %vm380_vm3 = vcmp.ge.f32.partialorder %v348_v25, 0.0  ;;  %v412_v33 = vmul.f32 0.01, %v348_v25 }
  0x1c   : > { %v441_v34 = vsel %vm377_vm0, %v345_v22, %v409_v30  ;;  %v442_v35 = vsel %vm378_vm1, %v346_v23, %v410_v31  ;;  %vm381_vm4 = vcmp.ge.f32.partialorder %v349_v26, 0.0  ;;  %v413_v36 = vmul.f32 0.01, %v349_v26 }
  0x1d   : > { %473 = vst [vmem:[%s884_s8] sm:$0xff] %v441_v34  ;;  %474 = vst [vmem:[%s884_s8 + $0x8] sm:$0xff] %v442_v35  ;;  %v443_v38 = vsel %vm379_vm2, %v347_v24, %v411_v32  ;;  %v444_v39 = vsel %vm380_vm3, %v348_v25, %v412_v33  ;;  %vm382_vm5 = vcmp.ge.f32.partialorder %v350_v27, 0.0  ;;  %v414_v40 = vmul.f32 0.01, %v350_v27  ;;  %v706_v25 = vld [vmem:[%s851_s28 + $0x50] sm:$0xff]  }
  0x1e   : > { %475 = vst [vmem:[%s884_s8 + $0x10] sm:$0xff] %v443_v38  ;;  %476 = vst [vmem:[%s884_s8 + $0x18] sm:$0xff] %v444_v39  ;;  %v445_v43 = vsel %vm381_vm4, %v349_v26, %v413_v36  ;;  %vm383_vm6 = vcmp.ge.f32.partialorder %v351_v28, 0.0  ;;  %v415_v44 = vmul.f32 0.01, %v351_v28  ;;  %vm384_vm7 = vcmp.ge.f32.partialorder %v352_v29, 0.0 }
  0x1f   : > { %477 = vst [vmem:[%s884_s8 + $0x20] sm:$0xff] %v445_v43  ;;  %v446_v45 = vsel %vm382_vm5, %v350_v27, %v414_v40  ;;  %v416_v46 = vmul.f32 0.01, %v352_v29  ;;  %v651_v47 = vunpack.c.l.bf16 %v700_v37  ;;  %v652_v48 = vunpack.c.h.bf16 %v700_v37  ;;  %v707_v43 = vld [vmem:[%s851_s28 + $0x58] sm:$0xff]  }
  0x20   : > { %478 = vst [vmem:[%s884_s8 + $0x28] sm:$0xff] %v446_v45  ;;  %v447_v50 = vsel %vm383_vm6, %v351_v28, %v415_v44  ;;  %v655_v51 = vunpack.c.l.bf16 %v701_v41  ;;  %v656_v52 = vunpack.c.h.bf16 %v701_v41  ;;  %v659_v53 = vunpack.c.l.bf16 %v702_v42 }
  0x21   : > { %479 = vst [vmem:[%s884_s8 + $0x30] sm:$0xff] %v447_v50  ;;  %v448_v54 = vsel %vm384_vm7, %v352_v29, %v416_v46  ;;  %v314_v55 = vmul.f32 %v651_v47, %v856_v0  ;;  %v315_v56 = vmul.f32 %v652_v48, %v856_v0  ;;  %v660_v57 = vunpack.c.h.bf16 %v702_v42 }
  0x22   : > { %480 = vst [vmem:[%s884_s8 + $0x38] sm:$0xff] %v448_v54  ;;  %v316_v58 = vmul.f32 %v655_v51, %v856_v0  ;;  %v317_v59 = vmul.f32 %v656_v52, %v856_v0  ;;  %v318_v60 = vmul.f32 %v659_v53, %v856_v0  ;;  %v663_v61 = vunpack.c.l.bf16 %v703_v49  ;;  %v708_v54 = vld [vmem:[%s851_s28 + $0x60] sm:$0xff]  }
  0x23   : > { %v353_v62 = vadd.f32 %v862_v9, %v314_v55  ;;  %v354_v63 = vadd.f32 %v862_v9, %v315_v56  ;;  %v319_v1 = vmul.f32 %v660_v57, %v856_v0  ;;  %v664_v2 = vunpack.c.h.bf16 %v703_v49 }
  0x24   : > { %v355_v3 = vadd.f32 %v862_v9, %v316_v58  ;;  %v356_v4 = vadd.f32 %v862_v9, %v317_v59  ;;  %v357_v5 = vadd.f32 %v862_v9, %v318_v60  ;;  %v320_v6 = vmul.f32 %v663_v61, %v856_v0 }
  0x25   : > { %vm385_vm8 = vcmp.ge.f32.partialorder %v353_v62, 0.0  ;;  %v417_v8 = vmul.f32 0.01, %v353_v62  ;;  %vm386_vm9 = vcmp.ge.f32.partialorder %v354_v63, 0.0  ;;  %v418_v10 = vmul.f32 0.01, %v354_v63 }
  0x26   : > { %vm387_vm10 = vcmp.ge.f32.partialorder %v355_v3, 0.0  ;;  %v419_v11 = vmul.f32 0.01, %v355_v3  ;;  %vm388_vm11 = vcmp.ge.f32.partialorder %v356_v4, 0.0  ;;  %v420_v12 = vmul.f32 0.01, %v356_v4 }
  0x27   : > { %v449_v13 = vsel %vm385_vm8, %v353_v62, %v417_v8  ;;  %v450_v14 = vsel %vm386_vm9, %v354_v63, %v418_v10  ;;  %vm389_vm12 = vcmp.ge.f32.partialorder %v357_v5, 0.0  ;;  %v421_v15 = vmul.f32 0.01, %v357_v5 }
  0x28   : > { %481 = vst [vmem:[%s884_s8 + $0x40] sm:$0xff] %v449_v13  ;;  %482 = vst [vmem:[%s884_s8 + $0x48] sm:$0xff] %v450_v14  ;;  %v451_v16 = vsel %vm387_vm10, %v355_v3, %v419_v11  ;;  %v452_v17 = vsel %vm388_vm11, %v356_v4, %v420_v12  ;;  %v358_v18 = vadd.f32 %v862_v9, %v319_v1  ;;  %v667_v23 = vunpack.c.l.bf16 %v704_v7  ;;  %v709_v1 = vld [vmem:[%s851_s28 + $0x68] sm:$0xff]  }
  0x29   : > { %v359_v19 = vadd.f32 %v862_v9, %v320_v6  ;;  %483 = vst [vmem:[%s884_s8 + $0x50] sm:$0xff] %v451_v16  ;;  %484 = vst [vmem:[%s884_s8 + $0x58] sm:$0xff] %v452_v17  ;;  %v453_v21 = vsel %vm389_vm12, %v357_v5, %v421_v15  ;;  %v321_v22 = vmul.f32 %v664_v2, %v856_v0  ;;  %v668_v24 = vunpack.c.h.bf16 %v704_v7  ;;  %v710_v2 = vld [vmem:[%s851_s28 + $0x70] sm:$0xff]  }
  0x2a   : > { %485 = vst [vmem:[%s884_s8 + $0x60] sm:$0xff] %v453_v21  ;;  %vm390_vm13 = vcmp.ge.f32.partialorder %v358_v18, 0.0  ;;  %v422_v26 = vmul.f32 0.01, %v358_v18  ;;  %v322_v29 = vmul.f32 %v667_v23, %v856_v0  ;;  %v671_v31 = vunpack.c.l.bf16 %v705_v20  ;;  %v711_v21 = vld [vmem:[%s851_s28 + $0x78] sm:$0xff]  }
  0x2b   : > { %vm391_vm14 = vcmp.ge.f32.partialorder %v359_v19, 0.0  ;;  %v423_v27 = vmul.f32 0.01, %v359_v19  ;;  %v360_v28 = vadd.f32 %v862_v9, %v321_v22  ;;  %v323_v30 = vmul.f32 %v668_v24, %v856_v0 }
  0x2c   : > { %v454_v32 = vsel %vm390_vm13, %v358_v18, %v422_v26  ;;  %v672_v34 = vunpack.c.h.bf16 %v705_v20  ;;  %v675_v35 = vunpack.c.l.bf16 %v706_v25  ;;  %v361_v37 = vadd.f32 %v862_v9, %v322_v29 }
  0x2d   : > { %v455_v33 = vsel %vm391_vm14, %v359_v19, %v423_v27  ;;  %486 = vst [vmem:[%s884_s8 + $0x68] sm:$0xff] %v454_v32  ;;  %vm392_vm15 = vcmp.ge.f32.partialorder %v360_v28, 0.0  ;;  %v424_v36 = vmul.f32 0.01, %v360_v28  ;;  %v362_v38 = vadd.f32 %v862_v9, %v323_v30 }
  0x2e   : > { %487 = vst [vmem:[%s884_s8 + $0x70] sm:$0xff] %v455_v33  ;;  %v324_v39 = vmul.f32 %v671_v31, %v856_v0  ;;  %v325_v40 = vmul.f32 %v672_v34, %v856_v0  ;;  %v326_v41 = vmul.f32 %v675_v35, %v856_v0  ;;  %v676_v42 = vunpack.c.h.bf16 %v706_v25 }
  0x2f   : > { %v456_v44 = vsel %vm392_vm15, %v360_v28, %v424_v36  ;;  %vm393_vm0 = vcmp.ge.f32.partialorder %v361_v37, 0.0  ;;  %v425_v45 = vmul.f32 0.01, %v361_v37  ;;  %vm394_vm1 = vcmp.ge.f32.partialorder %v362_v38, 0.0 }
  0x30   : > { %488 = vst [vmem:[%s884_s8 + $0x78] sm:$0xff] %v456_v44  ;;  %v426_v46 = vmul.f32 0.01, %v362_v38  ;;  %v363_v47 = vadd.f32 %v862_v9, %v324_v39  ;;  %v364_v48 = vadd.f32 %v862_v9, %v325_v40  ;;  %v365_v49 = vadd.f32 %v862_v9, %v326_v41 }
  0x31   : > { %v457_v50 = vsel %vm393_vm0, %v361_v37, %v425_v45  ;;  %v327_v51 = vmul.f32 %v676_v42, %v856_v0  ;;  %v679_v52 = vunpack.c.l.bf16 %v707_v43  ;;  %v680_v53 = vunpack.c.h.bf16 %v707_v43 }
  0x32   : > { %489 = vst [vmem:[%s884_s8 + $0x80] sm:$0xff] %v457_v50  ;;  %v458_v55 = vsel %vm394_vm1, %v362_v38, %v426_v46  ;;  %vm395_vm2 = vcmp.ge.f32.partialorder %v363_v47, 0.0  ;;  %v427_v56 = vmul.f32 0.01, %v363_v47  ;;  %vm396_vm3 = vcmp.ge.f32.partialorder %v364_v48, 0.0 }
  0x33   : > { %490 = vst [vmem:[%s884_s8 + $0x88] sm:$0xff] %v458_v55  ;;  %v428_v57 = vmul.f32 0.01, %v364_v48  ;;  %vm397_vm4 = vcmp.ge.f32.partialorder %v365_v49, 0.0  ;;  %v429_v58 = vmul.f32 0.01, %v365_v49  ;;  %v366_v59 = vadd.f32 %v862_v9, %v327_v51 }
  0x34   : > { %v459_v60 = vsel %vm395_vm2, %v363_v47, %v427_v56  ;;  %v328_v61 = vmul.f32 %v679_v52, %v856_v0  ;;  %v329_v62 = vmul.f32 %v680_v53, %v856_v0  ;;  %v683_v63 = vunpack.c.l.bf16 %v708_v54 }
  0x35   : > { %491 = vst [vmem:[%s884_s8 + $0x90] sm:$0xff] %v459_v60  ;;  %v460_v3 = vsel %vm396_vm3, %v364_v48, %v428_v57  ;;  %v461_v4 = vsel %vm397_vm4, %v365_v49, %v429_v58  ;;  %vm398_vm5 = vcmp.ge.f32.partialorder %v366_v59, 0.0  ;;  %v430_v5 = vmul.f32 0.01, %v366_v59 }
  0x36   : > { %492 = vst [vmem:[%s884_s8 + $0x98] sm:$0xff] %v460_v3  ;;  %493 = vst [vmem:[%s884_s8 + $0xa0] sm:$0xff] %v461_v4  ;;  %v367_v6 = vadd.f32 %v862_v9, %v328_v61  ;;  %v368_v7 = vadd.f32 %v862_v9, %v329_v62  ;;  %v330_v8 = vmul.f32 %v683_v63, %v856_v0  ;;  %v684_v10 = vunpack.c.h.bf16 %v708_v54 }
  0x37   : > { %v462_v11 = vsel %vm398_vm5, %v366_v59, %v430_v5  ;;  %v687_v12 = vunpack.c.l.bf16 %v709_v1  ;;  %v688_v13 = vunpack.c.h.bf16 %v709_v1  ;;  %v691_v14 = vunpack.c.l.bf16 %v710_v2 }
  0x38   : > { %494 = vst [vmem:[%s884_s8 + $0xa8] sm:$0xff] %v462_v11  ;;  %vm399_vm6 = vcmp.ge.f32.partialorder %v367_v6, 0.0  ;;  %v431_v15 = vmul.f32 0.01, %v367_v6  ;;  %vm400_vm7 = vcmp.ge.f32.partialorder %v368_v7, 0.0  ;;  %v369_v17 = vadd.f32 %v862_v9, %v330_v8 }
  0x39   : > { %v432_v16 = vmul.f32 0.01, %v368_v7  ;;  %v331_v18 = vmul.f32 %v684_v10, %v856_v0  ;;  %v332_v19 = vmul.f32 %v687_v12, %v856_v0  ;;  %v333_v20 = vmul.f32 %v688_v13, %v856_v0 }
  0x3a   : > { %v463_v22 = vsel %vm399_vm6, %v367_v6, %v431_v15  ;;  %v334_v24 = vmul.f32 %v691_v14, %v856_v0  ;;  %v692_v25 = vunpack.c.h.bf16 %v710_v2  ;;  %vm401_vm8 = vcmp.ge.f32.partialorder %v369_v17, 0.0 }
  0x3b   : > { %v464_v23 = vsel %vm400_vm7, %v368_v7, %v432_v16  ;;  %495 = vst [vmem:[%s884_s8 + $0xb0] sm:$0xff] %v463_v22  ;;  %v433_v26 = vmul.f32 0.01, %v369_v17  ;;  %v370_v27 = vadd.f32 %v862_v9, %v331_v18  ;;  %v371_v28 = vadd.f32 %v862_v9, %v332_v19 }
  0x3c   : > { %496 = vst [vmem:[%s884_s8 + $0xb8] sm:$0xff] %v464_v23  ;;  %v372_v29 = vadd.f32 %v862_v9, %v333_v20  ;;  %v373_v30 = vadd.f32 %v862_v9, %v334_v24  ;;  %v335_v31 = vmul.f32 %v692_v25, %v856_v0  ;;  %v695_v32 = vunpack.c.l.bf16 %v711_v21 }
  0x3d   : > { %v465_v33 = vsel %vm401_vm8, %v369_v17, %v433_v26  ;;  %vm402_vm9 = vcmp.ge.f32.partialorder %v370_v27, 0.0  ;;  %v434_v34 = vmul.f32 0.01, %v370_v27  ;;  %vm403_vm10 = vcmp.ge.f32.partialorder %v371_v28, 0.0 }
  0x3e   : > { %497 = vst [vmem:[%s884_s8 + $0xc0] sm:$0xff] %v465_v33  ;;  %v435_v35 = vmul.f32 0.01, %v371_v28  ;;  %vm404_vm11 = vcmp.ge.f32.partialorder %v372_v29, 0.0  ;;  %v436_v36 = vmul.f32 0.01, %v372_v29  ;;  %v374_v39 = vadd.f32 %v862_v9, %v335_v31 }
  0x3f   : > { %vm405_vm12 = vcmp.ge.f32.partialorder %v373_v30, 0.0  ;;  %v466_v37 = vsel %vm402_vm9, %v370_v27, %v434_v34  ;;  %v437_v38 = vmul.f32 0.01, %v373_v30  ;;  %v336_v40 = vmul.f32 %v695_v32, %v856_v0 }
  0x40   : > { %498 = vst [vmem:[%s884_s8 + $0xc8] sm:$0xff] %v466_v37  ;;  %v467_v41 = vsel %vm403_vm10, %v371_v28, %v435_v35  ;;  %v468_v42 = vsel %vm404_vm11, %v372_v29, %v436_v36  ;;  %v696_v43 = vunpack.c.h.bf16 %v711_v21  ;;  %vm406_vm13 = vcmp.ge.f32.partialorder %v374_v39, 0.0 }
  0x41   : > { %499 = vst [vmem:[%s884_s8 + $0xd0] sm:$0xff] %v467_v41  ;;  %500 = vst [vmem:[%s884_s8 + $0xd8] sm:$0xff] %v468_v42  ;;  %v469_v44 = vsel %vm405_vm12, %v373_v30, %v437_v38  ;;  %v438_v45 = vmul.f32 0.01, %v374_v39  ;;  %v375_v46 = vadd.f32 %v862_v9, %v336_v40 }
  0x42   : > { %501 = vst [vmem:[%s884_s8 + $0xe0] sm:$0xff] %v469_v44  ;;  %v337_v47 = vmul.f32 %v696_v43, %v856_v0 }
  0x43   : > { %v470_v48 = vsel %vm406_vm13, %v374_v39, %v438_v45  ;;  %vm407_vm14 = vcmp.ge.f32.partialorder %v375_v46, 0.0  ;;  %v439_v49 = vmul.f32 0.01, %v375_v46 }
  0x44   : > { %502 = vst [vmem:[%s884_s8 + $0xe8] sm:$0xff] %v470_v48  ;;  %v376_v50 = vadd.f32 %v862_v9, %v337_v47 }
  0x45   : > { %v471_v51 = vsel %vm407_vm14, %v375_v46, %v439_v49 }
  0x46   : > { %503 = vst [vmem:[%s884_s8 + $0xf0] sm:$0xff] %v471_v51  ;;  %vm408_vm15 = vcmp.ge.f32.partialorder %v376_v50, 0.0  ;;  %v440_v52 = vmul.f32 0.01, %v376_v50 }
  0x48   : > { %v472_v53 = vsel %vm408_vm15, %v376_v50, %v440_v52 }
  0x49   : > { %504 = vst [vmem:[%s884_s8 + $0xf8] sm:$0xff] %v472_v53 }
  0x4a PF: > { %s13_s16 = sadd.s32 1, %s790_s16   ;;  %s997_s12 = smov %s782_s14 }
  0x4b   : > { %p10_p7 = scmp.ge.s32.totalorder %s13_s16, 18   ;;  %s998_s13 = smov %s786_s15 }
  0x4c   : > { %s999_s14 = smov %s1002_s17  ;;  %s1000_s15 = smov %s1006_s18 }
  0x4d   :  { %12 = sbr.rel (!%p10_p7) target bundleno = 3 (0x3), region = 68 }

// kernel: _unnamed_function_.5
= control target key start
LH: loop header
LB: loop body
LE: loop exit
PB: predicated region body
PF: predicated region fallthrough
CT: control target
= control target key end

     0   :  { %s4437_s21 = smov 0   ;;  %s4439_s22 = smov 0   ;;  %s5703_s0 = inlined_call_operand.vmem [shape: bf16[2,8,16,16,128], index: 0, kind: input, shape index: {}]   ;;  %s5704_s1 = inlined_call_operand.vmem [shape: f32[2,1,128], index: 1, kind: input, shape index: {}]   ;;  %s5705_s2 = inlined_call_operand.vmem [shape: f32[2,1,128], index: 2, kind: input, shape index: {}]   ;;  %s5706_s3 = inlined_call_operand.vmem [shape: bf16[9,384,128], index: 3, kind: input, shape index: {}]   ;;  %s5707_s4 = inlined_call_operand.vmem [shape: bf16[2,8,16,16,128], index: 4, kind: output, shape index: {0}]   ;;  %s5708_s5 = inlined_call_operand.vmem [shape: f32[2,8,1,128], index: 5, kind: output, shape index: {1}]   ;;  %s5709_s6 = inlined_call_operand.vmem [shape: f32[2,8,1,128], index: 6, kind: output, shape index: {2}]  }
   0x1   :  { %5711 = sst [smem:[#allocation24_spill]] %s5704_s1  ;;  %s4441_s23 = smov 0  }
   0x2   :  { %5712 = sst [smem:[#allocation25_spill]] %s5705_s2  ;;  %s4443_s24 = smov 0  }
   0x3   :  { %s4445_s25 = smov 0   ;;  %s4447_s26 = smov 0  }
   0x4   :  { %s4449_s27 = smov 0  }
   0x5 LB: > { %5713 = sst [smem:[#allocation3_spill]] %s4394_s26  ;;  %s29_s28 = sadd.s32 1, %s4386_s24  ;;  %s4398_s27 = sphi %s4449_s27, %s17_s27   ;;  %s4394_s26 = sphi %s4447_s26, %s5760_s26   ;;  %s4390_s25 = sphi %s4445_s25, %s5764_s25   ;;  %s4386_s24 = sphi %s4443_s24, %s5763_s24   ;;  %s4382_s23 = sphi %s4441_s23, %s5757_s23   ;;  %s4378_s22 = sphi %s4439_s22, %s5762_s22   ;;  %s4374_s21 = sphi %s4437_s21, %s5761_s21  }
   0x6   : > { %p30_p0 = scmp.ge.s32.totalorder %s29_s28, 3  ;;  %s32_s29 = sadd.s32 1, %s4390_s25 }
   0x7   : > { %p3205_p1 = scmp.ge.s32.totalorder %s4398_s27, 1  ;;  %p288_p2 = scmp.lt.s32.totalorder %s4398_s27, 49 }
   0x8   : > { %s5766_s28 = smov (%p30_p0, %s29_s28), 0  ;;  %s5768_s29 = smov (!%p30_p0, %s32_s29), %s4390_s25 }
   0x9   : > { %5714 = sst [smem:[#allocation4_spill]] %s5766_s28  ;;  %p289_p3 = pnand %p3205_p1, %p288_p2 }
   0xa   : > { %p34_p4 = scmp.ge.s32.totalorder %s5768_s29, 8  ;;  %s36_s30 = sadd.s32 1, %s4394_s26 }
   0xb   : > { %s352_s7 = sadd.s32 (!%p289_p3), %s4374_s21, %s4378_s22  ;;  %p358_p6 = scmp.lt.s32.totalorder (!%p289_p3), %s4382_s23, 1 }
   0xc   : > { %s5770_s29 = smov (%p34_p4, %s5768_s29), 0  ;;  %s5772_s30 = smov (!%p34_p4, %s36_s30), %s4394_s26 }
   0xd   : > { %5715 = sst [smem:[#allocation5_spill]] %s5770_s29  ;;  %p38_p5 = scmp.ge.s32.totalorder %s5772_s30, 2 }
   0xe   : > { %292 = sbr.rel (%p289_p3) target bundleno = 668 (0x29c), region = 36  ;;  %s4485_s8 = sadd.s32 (!%p289_p3), 4294967295, %s352_s7 }
   0xf   : > { %s5774_s30 = smov (%p38_p5, %s5772_s30), 0  ;;  %p354_p7 = scmp.gt.s32.totalorder (!%p289_p3), %s4485_s8, 0 }
  0x10   : > { %5716 = sst [smem:[#allocation6_spill]] %s5774_s30  ;;  %p3207_p8 = scmp.lt.s32.totalorder (!%p289_p3), %s4485_s8, 7 }
  0x11   : > { %s5717_s1 = sld [smem:[#allocation24_spill]] (!%p289_p3)  ;;  %p381_p9 = scmp.lt.s32.totalorder (!%p289_p3), %s4378_s22, 7 }
  0x12   : > { %s5718_s2 = sld [smem:[#allocation25_spill]] (!%p289_p3)  ;;  %p3220_p11 = scmp.ne.s32.totalorder (!%p289_p3), %s4374_s21, 0 }
  0x13   : > { %s5776_s23 = smov (!%p358_p6, %s4382_s23), 1  ;;  %s5780_s22 = smov (!%p381_p9, %s4378_s22), 7 }
  0x14   : > { %s355_s9 = scalar_select %p354_p7, %s4485_s8, 0 }
  0x15   : > { %s3213_s13 = sshll.u32 %s5776_s23, 8  ;;  %s3218_s17 = sshll.u32 %s5776_s23, 3 }
  0x16   : > { %s5778_s9 = smov (!%p3207_p8, %s355_s9), 7  ;;  %s3215_s18 = sshll.u32 %s5780_s22, 5 }
  0x17   : > { %s4493_s12 = scalar_lea.vmem %s5717_s1, %s5776_s23  ;;  %p360_p10 = scmp.lt.s32.totalorder %s5778_s9, 7 }
  0x18   : > { %s4499_s16 = scalar_lea.vmem %s5718_s2, %s5776_s23  ;;  %s4502_s19 = sadd.s32 %s3218_s17, %s5780_s22 }
  0x19   : > { %s5782_s9 = smov (!%p360_p10, %s5778_s9), 7  ;;  %s385_s7 = sadd.s32 %s3215_s18, %s3213_s13 }
  0x1a   : > { %s3212_s20 = sshll.u32 %s5782_s9, 5  ;;  %s3217_s11 = sshll.u32 %s385_s7, 2 }
  0x1b   : > { %s364_s10 = sadd.s32 %s3213_s13, %s3212_s20  ;;  %s4507_s14 = scalar_lea.vmem %s5707_s4, %s3217_s11 }
  0x1c   : > { %s3214_s1 = sshll.u32 %s364_s10, 2  ;;  %s394_s17 = scalar_lea.vmem %s5708_s5, %s4502_s19 }
  0x1d   : > { %s4512_s23 = scalar_lea.vmem %s5703_s0, %s3214_s1  ;;  %s401_s13 = scalar_lea.vmem %s5709_s6, %s4502_s19 }
  0x1e   : > { %406 = sbr.rel (%p3220_p11) target bundleno = 52 (0x34), region = 40 }
  0x23   : > { %v4400_v0 = vmov 0.0  }
  0x24   : > { %407 = vst [vmem:[#allocation2 + $0xb0] sm:$0xff] %v4400_v0  ;;  %408 = vst [vmem:[#allocation2] sm:$0xff] %v4400_v0 }
  0x25   : > { %409 = vst [vmem:[#allocation2 + $0xd8] sm:$0xff] %v4400_v0  ;;  %410 = vst [vmem:[#allocation2 + $0x18] sm:$0xff] %v4400_v0 }
  0x26   : > { %411 = vst [vmem:[#allocation2 + $0x50] sm:$0xff] %v4400_v0  ;;  %412 = vst [vmem:[#allocation2 + $0x68] sm:$0xff] %v4400_v0 }
  0x27   : > { %413 = vst [vmem:[#allocation2 + $0x30] sm:$0xff] %v4400_v0  ;;  %414 = vst [vmem:[#allocation2 + $0x48] sm:$0xff] %v4400_v0 }
  0x28   : > { %415 = vst [vmem:[#allocation2 + $0x80] sm:$0xff] %v4400_v0  ;;  %416 = vst [vmem:[#allocation2 + $0x88] sm:$0xff] %v4400_v0 }
  0x29   : > { %417 = vst [vmem:[#allocation2 + $0xe8] sm:$0xff] %v4400_v0  ;;  %418 = vst [vmem:[#allocation2 + $0xb8] sm:$0xff] %v4400_v0 }
  0x2a   : > { %419 = vst [vmem:[#allocation2 + $0x60] sm:$0xff] %v4400_v0  ;;  %420 = vst [vmem:[#allocation2 + $0xf0] sm:$0xff] %v4400_v0 }
  0x2b   : > { %421 = vst [vmem:[#allocation2 + $0x8] sm:$0xff] %v4400_v0  ;;  %422 = vst [vmem:[#allocation2 + $0x78] sm:$0xff] %v4400_v0 }
  0x2c   : > { %423 = vst [vmem:[#allocation2 + $0x38] sm:$0xff] %v4400_v0  ;;  %424 = vst [vmem:[#allocation2 + $0x58] sm:$0xff] %v4400_v0 }
  0x2d   : > { %425 = vst [vmem:[#allocation2 + $0x40] sm:$0xff] %v4400_v0  ;;  %426 = vst [vmem:[#allocation2 + $0xc8] sm:$0xff] %v4400_v0 }
  0x2e   : > { %427 = vst [vmem:[#allocation2 + $0xe0] sm:$0xff] %v4400_v0  ;;  %428 = vst [vmem:[#allocation2 + $0x90] sm:$0xff] %v4400_v0 }
  0x2f   : > { %429 = vst [vmem:[#allocation2 + $0x70] sm:$0xff] %v4400_v0  ;;  %430 = vst [vmem:[#allocation2 + $0xc0] sm:$0xff] %v4400_v0 }
  0x30   : > { %431 = vst [vmem:[#allocation2 + $0xa8] sm:$0xff] %v4400_v0  ;;  %432 = vst [vmem:[#allocation2 + $0xd0] sm:$0xff] %v4400_v0 }
  0x31   : > { %433 = vst [vmem:[#allocation2 + $0x10] sm:$0xff] %v4400_v0  ;;  %434 = vst [vmem:[#allocation2 + $0x28] sm:$0xff] %v4400_v0 }
  0x32   : > { %435 = vst [vmem:[#allocation2 + $0xa0] sm:$0xff] %v4400_v0  ;;  %436 = vst [vmem:[#allocation2 + $0xf8] sm:$0xff] %v4400_v0 }
  0x33   : > { %437 = vst [vmem:[#allocation2 + $0x20] sm:$0xff] %v4400_v0  ;;  %438 = vst [vmem:[#allocation2 + $0x98] sm:$0xff] %v4400_v0 }
  0x34 PF: > { %p441_p12 = scmp.ge.s32.totalorder %s4485_s8, 0  ;;  %p442_p13 = scmp.le.s32.totalorder %s4485_s8, 7 }
  0x36   : > { %p443_p0 = pnand %p442_p13, %p441_p12 }
  0x38   : > { %446 = sbr.rel (%p443_p0) target bundleno = 583 (0x247), region = 44 }
  0x3d   : > { %s3437_s1 = smul.u32 576, %s4374_s21  ;;  %v3624_v1 = vld [vmem:[%s4512_s23 + $0x58] sm:$0xff]   ;;  %v4528_v2 = vld [vmem:[%s4493_s12] ss:$0 sm:$0xff]  ;;  %v4401_v3 = vmov 0   ;;  %v3614_v29 = vld [vmem:[%s4512_s23 + $0x8] sm:$0xff]  }
  0x3e   : > { %1092 = vmatprep.mubr.bf16.mxu0 %v4401_v3  ;;  %v3516_v4 = vunpack.c.l.bf16 %v3624_v1  ;;  %v3517_v5 = vunpack.c.h.bf16 %v3624_v1  ;;  %v4537_v6 = vld [vmem:[%s4499_s16] ss:$0 sm:$0xff]  ;;  %v3476_v34 = vunpack.c.l.bf16 %v3614_v29  ;;  %v3477_v35 = vunpack.c.h.bf16 %v3614_v29  ;;  %v3626_v49 = vld [vmem:[%s4512_s23 + $0x68] sm:$0xff]   ;;  %v3615_v58 = vld [vmem:[%s4512_s23 + $0x10] sm:$0xff]  }
  0x3f   : > { %s4534_s28 = scalar_lea.vmem %s5706_s3, %s3437_s1  ;;  %v3471_v17 = vld [vmem:[%s4512_s23] sm:$0xff]   ;;  %vm742_vm0 = vsmask.f32 256  ;;  %vm741_vm1 = vcmask 1040384   ;;  %v3524_v51 = vunpack.c.l.bf16 %v3626_v49  ;;  %v3525_v52 = vunpack.c.h.bf16 %v3626_v49  ;;  %v3627_v59 = vld [vmem:[%s4512_s23 + $0x70] sm:$0xff]  }
  0x40   : > { %v4270_v7 = vld [vmem:[%s4534_s28 + $0x78] sm:$0xff]   ;;  %v540_v8 = vmul.f32 %v3516_v4, %v4528_v2  ;;  %v541_v9 = vmul.f32 %v3517_v5, %v4528_v2  ;;  %v4272_v11 = vld [vmem:[%s4534_s28 + $0x70] sm:$0xff]   ;;  %v4274_v15 = vld [vmem:[%s4534_s28 + $0x68] sm:$0xff]   ;;  %v3472_v21 = vunpack.c.l.bf16 %v3471_v17  ;;  %v3473_v22 = vunpack.c.h.bf16 %v3471_v17 }
  0x41   : > { %v4271_v10 = vld [vmem:[%s4534_s28 + $0x38] sm:$0xff]   ;;  %3644 = vmatprep.subr.bf16.mxu0 %v4270_v7  ;;  %4196 = vmatprep.subr.bf16.mxu1 %v4270_v7  ;;  %v4273_v14 = vld [vmem:[%s4534_s28 + $0x30] sm:$0xff]   ;;  %v3625_v18 = vld [vmem:[%s4512_s23 + $0x60] sm:$0xff]   ;;  %v520_v43 = vmul.f32 %v3476_v34, %v4528_v2  ;;  %v521_v44 = vmul.f32 %v3477_v35, %v4528_v2  ;;  %v608_v55 = vrot.slane %v4401_v3, 7  ;;  %v544_v63 = vmul.f32 %v3524_v51, %v4528_v2 }
  0x42   : > { %v579_v12 = vadd.f32 %v4537_v6, %v540_v8  ;;  %v580_v13 = vadd.f32 %v4537_v6, %v541_v9  ;;  %3645 = vmatpush3.bf16.msra.mxu0 %v4271_v10  ;;  %4204 = vmatpush3.bf16.msra.mxu1 %v4271_v10  ;;  %v4275_v19 = vld [vmem:[%s4534_s28 + $0x28] sm:$0xff]   ;;  %v4276_v20 = vld [vmem:[%s4534_s28 + $0x60] sm:$0xff]   ;;  %v3520_v23 = vunpack.c.l.bf16 %v3625_v18  ;;  %v3521_v24 = vunpack.c.h.bf16 %v3625_v18  ;;  %v4278_v26 = vld [vmem:[%s4534_s28 + $0x58] sm:$0xff]  }
  0x43   : > { %3646 = vmatprep.subr.bf16.mxu0 %v4272_v11  ;;  %4197 = vmatprep.subr.bf16.mxu1 %v4272_v11  ;;  %v4277_v25 = vld [vmem:[%s4534_s28 + $0x20] sm:$0xff]   ;;  %v518_v27 = vmul.f32 %v3472_v21, %v4528_v2  ;;  %v519_v28 = vmul.f32 %v3473_v22, %v4528_v2  ;;  %v4279_v32 = vld [vmem:[%s4534_s28 + $0x18] sm:$0xff]   ;;  %v4280_v33 = vld [vmem:[%s4534_s28 + $0x50] sm:$0xff]   ;;  %v559_v56 = vadd.f32 %v4537_v6, %v520_v43  ;;  %v3480_v4 = vunpack.c.l.bf16 %v3615_v58 }
  0x44   : > { %v4548_v16 = vpack.c.bf16 %v580_v13, %v579_v12  ;;  %v542_v30 = vmul.f32 %v3520_v23, %v4528_v2  ;;  %v543_v31 = vmul.f32 %v3521_v24, %v4528_v2  ;;  %v4281_v41 = vld [vmem:[%s4534_s28 + $0x10] sm:$0xff]   ;;  %v4282_v42 = vld [vmem:[%s4534_s28 + $0x48] sm:$0xff]   ;;  %v4284_v54 = vld [vmem:[%s4534_s28 + $0x40] sm:$0xff]   ;;  %v560_v57 = vadd.f32 %v4537_v6, %v521_v44 }
  0x45   : > { %v557_v37 = vadd.f32 %v4537_v6, %v518_v27  ;;  %v558_v38 = vadd.f32 %v4537_v6, %v519_v28  ;;  %v4283_v50 = vld [vmem:[%s4534_s28 + $0x8] sm:$0xff]   ;;  %vm4588_vm2 = vmand %vm741_vm1, %vm742_vm0  ;;  %v545_v0 = vmul.f32 %v3525_v52, %v4528_v2  ;;  %v3481_v5 = vunpack.c.h.bf16 %v3615_v58  ;;  %v4285_v8 = vld [vmem:[%s4534_s28] sm:$0xff]  }
  0x46   : > { %1188 = vmatprep.mubr.bf16.mxu1 %v4548_v16  ;;  %3647 = vmatpush3.bf16.msra.mxu0 %v4273_v14  ;;  %v690_v36 = vshrl.u32 %v4548_v16, 16  ;;  %v581_v39 = vadd.f32 %v4537_v6, %v542_v30  ;;  %v582_v40 = vadd.f32 %v4537_v6, %v543_v31  ;;  %v693_v46 = vshll.u32 %v4548_v16, 16  ;;  %v3616_v28 = vld [vmem:[%s4512_s23 + $0x18] sm:$0xff]   ;;  %v4288_v29 = vld [vmem:[%s4534_s28 + $0xb0] sm:$0xff]  }
  0x47   : > { %4205 = vmatpush3.bf16.msra.mxu1 %v4273_v14  ;;  %3648 = vmatprep.subr.bf16.mxu0 %v4274_v15  ;;  %v4574_v47 = vpack.c.bf16 %v558_v38, %v557_v37  ;;  %v583_v9 = vadd.f32 %v4537_v6, %v544_v63  ;;  %v584_v10 = vadd.f32 %v4537_v6, %v545_v0  ;;  %v3528_v11 = vunpack.c.l.bf16 %v3627_v59  ;;  %v4286_v14 = vld [vmem:[%s4534_s28 + $0xb8] sm:$0xff]   ;;  %v4291_v31 = vld [vmem:[%s4534_s28 + $0x170] sm:$0xff]   ;;  %v4299_v63 = vld [vmem:[%s4534_s28 + $0x160] sm:$0xff]  }
  0x48   : > { %4198 = vmatprep.subr.bf16.mxu1 %v4274_v15  ;;  %v692_v45 = vrot.slane %v690_v36, 7  ;;  %v4576_v48 = vpack.c.bf16 %v582_v40, %v581_v39  ;;  %v785_v53 = vrot.slane %v693_v46, 1  ;;  %v3529_v12 = vunpack.c.h.bf16 %v3627_v59  ;;  %v4287_v15 = vld [vmem:[%s4534_s28 + $0x178] sm:$0xff]  }
  0x49   : > { %v613_v62 = vshrl.u32 %v4574_v47, 16  ;;  %v4603_v13 = vsel %vm4588_vm2, 0, %v608_v55  ;;  %v616_v18 = vshll.u32 %v4574_v47, 16  ;;  %v522_v22 = vmul.f32 %v3480_v4, %v4528_v2  ;;  %v4290_v55 = vld [vmem:[%s4534_s28 + $0xa0] sm:$0xff]  }
  0x4a   : > { %3649 = vmatpush3.bf16.msra.mxu0 %v4275_v19  ;;  %v695_v61 = vor.u32 %v693_v46, %v692_v45  ;;  %v697_v1 = vshrl.u32 %v4576_v48, 16  ;;  %v4596_v7 = vor.u32 %v785_v53, %v690_v36  ;;  %v523_v23 = vmul.f32 %v3481_v5, %v4528_v2 }
  0x4b   : > { %4206 = vmatpush3.bf16.msra.mxu1 %v4275_v19  ;;  %3650 = vmatprep.subr.bf16.mxu0 %v4276_v20  ;;  %v615_v17 = vrot.slane %v613_v62, 7  ;;  %v4610_v19 = vpack.c.bf16 %v560_v57, %v559_v56  ;;  %v700_v24 = vshll.u32 %v4576_v48, 16  ;;  %v547_v27 = vmul.f32 %v3529_v12, %v4528_v2  ;;  %v3617_v56 = vld [vmem:[%s4512_s23 + $0x20] sm:$0xff]  }
  0x4c   : > { %4199 = vmatprep.subr.bf16.mxu1 %v4276_v20  ;;  %v4614_v20 = vsel %vm4588_vm2, 0, %v695_v61  ;;  %v699_v21 = vrot.slane %v697_v1, 7  ;;  %v562_v34 = vadd.f32 %v4537_v6, %v523_v23  ;;  %v3484_v35 = vunpack.c.l.bf16 %v3616_v28 }
  0x4d   : > { %v618_v30 = vor.u32 %v616_v18, %v615_v17  ;;  %v3485_v36 = vunpack.c.h.bf16 %v3616_v28  ;;  %v586_v40 = vadd.f32 %v4537_v6, %v547_v27  ;;  %v623_v45 = vshll.u32 %v4610_v19, 16  ;;  %v3618_v17 = vld [vmem:[%s4512_s23 + $0x28] sm:$0xff]   ;;  %v4293_v27 = vld [vmem:[%s4534_s28 + $0x90] sm:$0xff]  }
  0x4e   : > { %3651 = vmatpush3.bf16.msra.mxu0 %v4277_v25  ;;  %v702_v37 = vor.u32 %v700_v24, %v699_v21  ;;  %v524_v49 = vmul.f32 %v3484_v35, %v4528_v2  ;;  %v3488_v5 = vunpack.c.l.bf16 %v3617_v56  ;;  %vm812_vm3 = vcmask 1047552  }
  0x4f   : > { %4207 = vmatpush3.bf16.msra.mxu1 %v4277_v25  ;;  %3652 = vmatprep.subr.bf16.mxu0 %v4278_v26  ;;  %v4621_v25 = vpack.c.bf16 %v584_v10, %v583_v9  ;;  %v4646_v43 = vsel %vm4588_vm2, 0, %v618_v30  ;;  %v4292_v9 = vld [vmem:[%s4534_s28 + $0x98] sm:$0xff]   ;;  %v3492_v28 = vunpack.c.l.bf16 %v3618_v17  ;;  %vm813_vm4 = vsmask.f32 7424 }
  0x50   : > { %4200 = vmatprep.subr.bf16.mxu1 %v4278_v26  ;;  %v546_v26 = vmul.f32 %v3528_v11, %v4528_v2  ;;  %v4657_v51 = vsel %vm4588_vm2, 0, %v702_v37  ;;  %v563_v59 = vadd.f32 %v4537_v6, %v524_v49  ;;  %v526_v23 = vmul.f32 %v3488_v5, %v4528_v2  ;;  %v4302_v30 = vld [vmem:[%s4534_s28 + $0x158] sm:$0xff]   ;;  %vm4718_vm5 = vmand %vm812_vm3, %vm813_vm4 }
  0x51   : > { %v704_v38 = vshrl.u32 %v4621_v25, 16  ;;  %v707_v53 = vshll.u32 %v4621_v25, 16  ;;  %v765_v49 = vrot.slane %v623_v45, 1 }
  0x52   : > { %3653 = vmatpush3.bf16.msra.mxu0 %v4279_v32  ;;  %v585_v39 = vadd.f32 %v4537_v6, %v546_v26 }
  0x53   : > { %4208 = vmatpush3.bf16.msra.mxu1 %v4279_v32  ;;  %3654 = vmatprep.subr.bf16.mxu0 %v4280_v33  ;;  %v620_v32 = vshrl.u32 %v4610_v19, 16  ;;  %v706_v52 = vrot.slane %v704_v38, 7 }
  0x54   : > { %4201 = vmatprep.subr.bf16.mxu1 %v4280_v33  ;;  %v561_v33 = vadd.f32 %v4537_v6, %v522_v22 }
  0x55   : > { %v622_v44 = vrot.slane %v620_v32, 7  ;;  %v709_v0 = vor.u32 %v707_v53, %v706_v52  ;;  %v3619_v52 = vld [vmem:[%s4512_s23 + $0x30] sm:$0xff]  }
  0x56   : > { %3655 = vmatpush3.bf16.msra.mxu0 %v4281_v41  ;;  %v4651_v46 = vpack.c.bf16 %v562_v34, %v561_v33  ;;  %v4307_v34 = vld [vmem:[%s4534_s28 + $0x150] sm:$0xff]   ;;  %v3497_v5 = vunpack.c.h.bf16 %v3619_v52 }
  0x57   : > { %4209 = vmatpush3.bf16.msra.mxu1 %v4281_v41  ;;  %3656 = vmatprep.subr.bf16.mxu0 %v4282_v42  ;;  %v4289_v41 = vld [vmem:[%s4534_s28 + $0xa8] sm:$0xff]   ;;  %v625_v57 = vor.u32 %v623_v45, %v622_v44  ;;  %v4693_v21 = vsel %vm4588_vm2, 0, %v709_v0  ;;  %v3496_v0 = vunpack.c.l.bf16 %v3619_v52 }
  0x58   : > { %4202 = vmatprep.subr.bf16.mxu1 %v4282_v42  ;;  %v4295_v42 = vld [vmem:[%s4534_s28 + $0x168] sm:$0xff]   ;;  %v627_v58 = vshrl.u32 %v4651_v46, 16  ;;  %v630_v11 = vshll.u32 %v4651_v46, 16 }
  0x59   : > { %v4682_v10 = vsel %vm4588_vm2, 0, %v625_v57 }
  0x5a   : > { %3657 = vmatpush3.bf16.msra.mxu0 %v4283_v50 }
  0x5b   : > { %4210 = vmatpush3.bf16.msra.mxu1 %v4283_v50  ;;  %3658 = vmatprep.subr.bf16.mxu0 %v4284_v54  ;;  %v525_v50 = vmul.f32 %v3485_v36, %v4528_v2  ;;  %v565_v36 = vadd.f32 %v4537_v6, %v526_v23 }
  0x5c   : > { %4203 = vmatprep.subr.bf16.mxu1 %v4284_v54  ;;  %v4662_v54 = vpack.c.bf16 %v586_v40, %v585_v39  ;;  %v763_v39 = vrot.slane %v616_v18, 1  ;;  %v4294_v40 = vld [vmem:[%s4534_s28 + $0x88] sm:$0xff]   ;;  %v528_v18 = vmul.f32 %v3492_v28, %v4528_v2  ;;  %v766_v28 = vor.u32 %v765_v49, %v620_v32 }
  0x5d   : > { %v564_v61 = vadd.f32 %v4537_v6, %v525_v50  ;;  %v767_v32 = vrot.slane %v630_v11, 1 }
  0x5e   : > { %3659 = vmatpush3.bf16.msra.mxu0 %v4285_v8  ;;  %v711_v4 = vshrl.u32 %v4662_v54, 16  ;;  %v714_v12 = vshll.u32 %v4662_v54, 16 }
  0x5f   : > { %4211 = vmatpush3.bf16.msra.mxu1 %v4285_v8  ;;  %4100 = vmatprep.subr.bf16.mxu0 %v4287_v15  ;;  %v3489_v8 = vunpack.c.h.bf16 %v3617_v56 }
  0x60   : > { %4052 = vmatprep.subr.bf16.mxu1 %v4286_v14  ;;  %v713_v22 = vrot.slane %v711_v4, 7 }
  0x61   : > { %1093 = vmatmul.mubr.bf16.vlgmr.msra.gmra.mxu0 %v4603_v13  ;;  %v527_v26 = vmul.f32 %v3489_v8, %v4528_v2  ;;  %v787_v8 = vrot.slane %v700_v24, 1 }
  0x62   : > { %1189 = vmatmul.mubr.bf16.vlgmr.msra.gmra.mxu1 %v4614_v20  ;;  %4101 = vmatpush3.bf16.msra.mxu0 %v4287_v15  ;;  %v4688_v15 = vpack.c.bf16 %v564_v61, %v563_v59  ;;  %v716_v35 = vor.u32 %v714_v12, %v713_v22  ;;  %v3620_v59 = vld [vmem:[%s4512_s23 + $0x38] sm:$0xff]   ;;  %v4296_v61 = vld [vmem:[%s4534_s28 + $0x80] sm:$0xff]  }
  0x63   : > { %4053 = vmatpush3.bf16.msra.mxu1 %v4286_v14  ;;  %1100 = vmatprep.mubr.bf16.mxu0 %v4574_v47  ;;  %v629_v14 = vrot.slane %v627_v58, 7  ;;  %v566_v37 = vadd.f32 %v4537_v6, %v527_v26  ;;  %v3500_v22 = vunpack.c.l.bf16 %v3620_v59  ;;  %v3501_v23 = vunpack.c.h.bf16 %v3620_v59  ;;  %v4310_v26 = vld [vmem:[%s4534_s28 + $0x148] sm:$0xff]   ;;  %v4301_v59 = vld [vmem:[%s4534_s28 + $0xf0] sm:$0xff]  }
  0x64   : > { %4054 = vmatprep.subr.bf16.mxu1 %v4288_v29  ;;  %1196 = vmatprep.mubr.bf16.mxu1 %v4576_v48  ;;  %v634_v33 = vshrl.u32 %v4688_v15, 16  ;;  %v637_v44 = vshll.u32 %v4688_v15, 16  ;;  %v4736_v57 = vsel %vm4588_vm2, 0, %v716_v35 }
  0x65   : > { %4102 = vmatprep.subr.bf16.mxu0 %v4291_v31  ;;  %v4738_v45 = vpack.c.bf16 %v566_v37, %v565_v36  ;;  %v4298_v36 = vld [vmem:[%s4534_s28 + $0xf8] sm:$0xff]  }
  0x66   : > { %4103 = vmatpush3.bf16.msra.mxu0 %v4291_v31  ;;  %v632_v31 = vor.u32 %v630_v11, %v629_v14  ;;  %v636_v56 = vrot.slane %v634_v33, 7  ;;  %v567_v14 = vadd.f32 %v4537_v6, %v528_v18  ;;  %v769_v18 = vrot.slane %v637_v44, 1 }
  0x67   : > { %4055 = vmatpush3.bf16.msra.mxu1 %v4288_v29  ;;  %4104 = vmatprep.subr.bf16.mxu0 %v4295_v42  ;;  %v3493_v29 = vunpack.c.h.bf16 %v3618_v17  ;;  %v644_v11 = vshll.u32 %v4738_v45, 16 }
  0x68   : > { %4056 = vmatprep.subr.bf16.mxu1 %v4289_v41  ;;  %v639_v24 = vor.u32 %v637_v44, %v636_v56  ;;  %v3621_v56 = vld [vmem:[%s4512_s23 + $0x40] sm:$0xff]   ;;  %v768_v44 = vor.u32 %v767_v32, %v627_v58  ;;  %v4303_v58 = vld [vmem:[%s4534_s28 + $0x128] sm:$0xff]  }
  0x69   : > { %1101 = vmatmul.mubr.bf16.gmra.mxu0 %v4646_v43  ;;  %v529_v50 = vmul.f32 %v3493_v29, %v4528_v2  ;;  %v530_v29 = vmul.f32 %v3496_v0, %v4528_v2  ;;  %v771_v0 = vrot.slane %v644_v11, 1 }
  0x6a   : > { %1197 = vmatmul.mubr.bf16.gmra.mxu1 %v4657_v51  ;;  %1108 = vmatprep.mubr.bf16.mxu0 %v4610_v19 }
  0x6b   : > { %4057 = vmatpush3.bf16.msra.mxu1 %v4289_v41  ;;  %1204 = vmatprep.mubr.bf16.mxu1 %v4621_v25  ;;  %v761_v41 = vrot.slane %v4401_v3, 1  ;;  %v568_v17 = vadd.f32 %v4537_v6, %v529_v50  ;;  %v4792_v50 = vsel %vm4718_vm5, %v766_v28, 0  ;;  %v569_v52 = vadd.f32 %v4537_v6, %v530_v29 }
  0x6c   : > { %4058 = vmatprep.subr.bf16.mxu1 %v4290_v55  ;;  %4105 = vmatpush3.bf16.msra.mxu0 %v4295_v42 }
  0x6d   : > { %4106 = vmatprep.subr.bf16.mxu0 %v4299_v63  ;;  %v4770_v37 = vpack.c.bf16 %v568_v17, %v567_v14 }
  0x6f   : > { %4059 = vmatpush3.bf16.msra.mxu1 %v4290_v55  ;;  %v4730_v55 = vsel %vm4588_vm2, 0, %v632_v31  ;;  %v789_v31 = vrot.slane %v707_v53, 1  ;;  %v532_v53 = vmul.f32 %v3500_v22, %v4528_v2  ;;  %v4318_v22 = vld [vmem:[%s4534_s28 + $0x1f8] sm:$0xff]  }
  0x70   : > { %4060 = vmatprep.subr.bf16.mxu1 %v4292_v9  ;;  %4107 = vmatpush3.bf16.msra.mxu0 %v4299_v63  ;;  %v4744_v63 = vsel %vm4718_vm5, %v761_v41, 0  ;;  %v533_v41 = vmul.f32 %v3501_v23, %v4528_v2 }
  0x71   : > { %1109 = vmatmul.mubr.bf16.gmra.mxu0 %v4682_v10  ;;  %4108 = vmatprep.subr.bf16.mxu0 %v4302_v30  ;;  %v4783_v49 = vor.u32 %v789_v31, %v704_v38  ;;  %v571_v14 = vadd.f32 %v4537_v6, %v532_v53 }
  0x72   : > { %1205 = vmatmul.mubr.bf16.gmra.mxu1 %v4693_v21  ;;  %1116 = vmatprep.mubr.bf16.mxu0 %v4651_v46  ;;  %v572_v17 = vadd.f32 %v4537_v6, %v533_v41 }
  0x73   : > { %4061 = vmatpush3.bf16.msra.mxu1 %v4292_v9  ;;  %1212 = vmatprep.mubr.bf16.mxu1 %v4662_v54  ;;  %v764_v9 = vor.u32 %v763_v39, %v613_v62  ;;  %v4297_v62 = vld [vmem:[%s4534_s28 + $0x138] sm:$0xff]   ;;  %v4774_v39 = vor.u32 %v787_v8, %v697_v1  ;;  %v4787_v1 = vsel %vm4588_vm2, 0, %v639_v24  ;;  %v4315_v8 = vld [vmem:[%s4534_s28 + $0x140] sm:$0xff]   ;;  %v3504_v24 = vunpack.c.l.bf16 %v3621_v56 }
  0x74   : > { %4062 = vmatprep.subr.bf16.mxu1 %v4293_v27  ;;  %4109 = vmatpush3.bf16.msra.mxu0 %v4302_v30  ;;  %v531_v30 = vmul.f32 %v3497_v5, %v4528_v2  ;;  %v3622_v5 = vld [vmem:[%s4512_s23 + $0x48] sm:$0xff]   ;;  %v4821_v41 = vpack.c.bf16 %v572_v17, %v571_v14  ;;  %v4306_v17 = vld [vmem:[%s4534_s28 + $0xe0] sm:$0xff]  }
  0x75   : > { %4110 = vmatprep.subr.bf16.mxu0 %v4307_v34  ;;  %v4767_v35 = vsel %vm4718_vm5, %v764_v9, 0  ;;  %v651_v9 = vshll.u32 %v4770_v37, 16  ;;  %v3508_v29 = vunpack.c.l.bf16 %v3622_v5 }
  0x76   : > { %v570_v38 = vadd.f32 %v4537_v6, %v531_v30  ;;  %v3509_v30 = vunpack.c.h.bf16 %v3622_v5  ;;  %v665_v14 = vshll.u32 %v4821_v41, 16 }
  0x77   : > { %4063 = vmatpush3.bf16.msra.mxu1 %v4293_v27  ;;  %v641_v27 = vshrl.u32 %v4738_v45, 16  ;;  %v773_v32 = vrot.slane %v651_v9, 1 }
  0x78   : > { %4064 = vmatprep.subr.bf16.mxu1 %v4294_v40  ;;  %4111 = vmatpush3.bf16.msra.mxu0 %v4307_v34  ;;  %v4814_v28 = vpack.c.bf16 %v570_v38, %v569_v52  ;;  %v4305_v38 = vld [vmem:[%s4534_s28 + $0x120] sm:$0xff]  }
  0x79   : > { %1117 = vmatmul.mubr.bf16.gmra.mxu0 %v4730_v55  ;;  %4112 = vmatprep.subr.bf16.mxu0 %v4310_v26  ;;  %v643_v34 = vrot.slane %v641_v27, 7  ;;  %v772_v53 = vor.u32 %v771_v0, %v641_v27  ;;  %v3623_v0 = vld [vmem:[%s4512_s23 + $0x50] sm:$0xff]  }
  0x7a   : > { %1213 = vmatmul.mubr.bf16.gmra.mxu1 %v4736_v57  ;;  %1124 = vmatprep.mubr.bf16.mxu0 %v4688_v15  ;;  %v655_v27 = vshrl.u32 %v4814_v28, 16  ;;  %v658_v52 = vshll.u32 %v4814_v28, 16 }
  0x7b   : > { %4065 = vmatpush3.bf16.msra.mxu1 %v4294_v40  ;;  %4068 = vmatprep.mubr.bf16.mxu1 %v4744_v63  ;;  %v4300_v40 = vld [vmem:[%s4534_s28 + $0x130] sm:$0xff]   ;;  %v646_v23 = vor.u32 %v644_v11, %v643_v34  ;;  %v534_v11 = vmul.f32 %v3504_v24, %v4528_v2 }
  0x7c   : > { %4066 = vmatprep.subr.bf16.mxu1 %v4296_v61  ;;  %4113 = vmatpush3.bf16.msra.mxu0 %v4310_v26  ;;  %v770_v26 = vor.u32 %v769_v18, %v634_v33  ;;  %v4304_v33 = vld [vmem:[%s4534_s28 + $0xe8] sm:$0xff]   ;;  %v657_v24 = vrot.slane %v655_v27, 7 }
  0x7d   : > { %4114 = vmatprep.subr.bf16.mxu0 %v4315_v8 }
  0x7e   : > { %v4829_v34 = vsel %vm4718_vm5, %v770_v26, 0  ;;  %v3513_v26 = vunpack.c.h.bf16 %v3623_v0 }
  0x7f   : > { %4067 = vmatpush3.bf16.msra.mxu1 %v4296_v61  ;;  %v648_v61 = vshrl.u32 %v4770_v37, 16 }
  0x80   : > { %3780 = vmatprep.subr.bf16.mxu1 %v4297_v62  ;;  %v3505_v62 = vunpack.c.h.bf16 %v3621_v56  ;;  %4115 = vmatpush3.bf16.msra.mxu0 %v4315_v8  ;;  %v536_v56 = vmul.f32 %v3508_v29, %v4528_v2 }
  0x81   : > { %1125 = vmatmul.mubr.bf16.gmra.mxu0 %v4787_v1  ;;  %v650_v31 = vrot.slane %v648_v61, 7  ;;  %3916 = vmatprep.subr.bf16.mxu0 %v4318_v22  ;;  %v774_v8 = vor.u32 %v773_v32, %v648_v61  ;;  %v573_v22 = vadd.f32 %v4537_v6, %v534_v11  ;;  %v662_v32 = vshrl.u32 %v4821_v41, 16 }
  0x82   : > { %4069 = vmatmul.mubr.bf16.vlgmr.msra.gmra.mxu1 %v4767_v35  ;;  %1132 = vmatprep.mubr.bf16.mxu0 %v4738_v45  ;;  %v535_v18 = vmul.f32 %v3505_v62, %v4528_v2  ;;  %v775_v62 = vrot.slane %v658_v52, 1 }
  0x83   : > { %3781 = vmatpush3.bf16.msra.mxu1 %v4298_v36  ;;  %4072 = vmatprep.mubr.bf16.mxu1 %v4792_v50  ;;  %v4818_v36 = vsel %vm4718_vm5, %v768_v44, 0  ;;  %v653_v5 = vor.u32 %v651_v9, %v650_v31  ;;  %v4843_v44 = vsel %vm4718_vm5, %v772_v53, 0  ;;  %v4308_v9 = vld [vmem:[%s4534_s28 + $0x118] sm:$0xff]   ;;  %v4860_v31 = vsel %vm4718_vm5, %v774_v8, 0 }
  0x84   : > { %3782 = vmatprep.subr.bf16.mxu1 %v4300_v40  ;;  %v4825_v40 = vsel %vm4588_vm2, 0, %v646_v23  ;;  %v574_v61 = vadd.f32 %v4537_v6, %v535_v18  ;;  %v3512_v23 = vunpack.c.l.bf16 %v3623_v0  ;;  %v777_v53 = vrot.slane %v665_v14, 1  ;;  %v4311_v0 = vld [vmem:[%s4534_s28 + $0x110] sm:$0xff]  }
  0x86   : > { %v4864_v11 = vpack.c.bf16 %v574_v61, %v573_v22  ;;  %v538_v18 = vmul.f32 %v3512_v23, %v4528_v2  ;;  %v778_v22 = vor.u32 %v777_v53, %v662_v32 }
  0x87   : > { %3783 = vmatpush3.bf16.msra.mxu1 %v4301_v59  ;;  %v537_v59 = vmul.f32 %v3509_v30, %v4528_v2  ;;  %v4856_v30 = vsel %vm4588_vm2, 0, %v653_v5  ;;  %v776_v5 = vor.u32 %v775_v62, %v655_v27  ;;  %v664_v27 = vrot.slane %v662_v32, 7  ;;  %v4314_v32 = vld [vmem:[%s4534_s28 + $0xc8] sm:$0xff]  }
  0x88   : > { %3784 = vmatprep.subr.bf16.mxu1 %v4303_v58  ;;  %v575_v58 = vadd.f32 %v4537_v6, %v536_v56  ;;  %v539_v56 = vmul.f32 %v3513_v26, %v4528_v2  ;;  %v672_v8 = vshll.u32 %v4864_v11, 16  ;;  %v577_v2 = vadd.f32 %v4537_v6, %v538_v18 }
  0x89   : > { %1133 = vmatmul.mubr.bf16.gmra.mxu0 %v4825_v40  ;;  %v576_v29 = vadd.f32 %v4537_v6, %v537_v59  ;;  %v4887_v26 = vsel %vm4718_vm5, %v776_v5, 0  ;;  %v667_v18 = vor.u32 %v665_v14, %v664_v27  ;;  %v4317_v5 = vld [vmem:[%s4534_s28 + $0xc0] sm:$0xff]  }
  0x8a   : > { %4073 = vmatmul.mubr.bf16.gmra.mxu1 %v4818_v36  ;;  %1140 = vmatprep.mubr.bf16.mxu0 %v4770_v37 }
  0x8b   : > { %4076 = vmatprep.mubr.bf16.mxu1 %v4829_v34  ;;  %3785 = vmatpush3.bf16.msra.mxu1 %v4304_v33  ;;  %v4309_v33 = vld [vmem:[%s4534_s28 + $0xd8] sm:$0xff]   ;;  %v4868_v59 = vpack.c.bf16 %v576_v29, %v575_v58  ;;  %v4894_v58 = vsel %vm4718_vm5, %v778_v22, 0  ;;  %v4908_v22 = vsel %vm4588_vm2, 0, %v667_v18  ;;  %v4934_v18 = vsel %vm4718_vm5, %v4596_v7, 0 }
  0x8c   : > { %3786 = vmatprep.subr.bf16.mxu1 %v4305_v38  ;;  %v660_v38 = vor.u32 %v658_v52, %v657_v24  ;;  %v4313_v52 = vld [vmem:[%s4534_s28 + $0x108] sm:$0xff]   ;;  %v779_v24 = vrot.slane %v672_v8, 1 }
  0x8d   : > { %v679_v61 = vshll.u32 %v4868_v59, 16  ;;  %v676_v29 = vshrl.u32 %v4868_v59, 16 }
  0x8e   : > { %v4883_v23 = vsel %vm4588_vm2, 0, %v660_v38 }
  0x8f   : > { %3787 = vmatpush3.bf16.msra.mxu1 %v4306_v17  ;;  %v578_v17 = vadd.f32 %v4537_v6, %v539_v56  ;;  %v669_v6 = vshrl.u32 %v4864_v11, 16  ;;  %v781_v53 = vrot.slane %v679_v61, 1 }
  0x90   : > { %3788 = vmatprep.subr.bf16.mxu1 %v4308_v9  ;;  %v4312_v9 = vld [vmem:[%s4534_s28 + $0xd0] sm:$0xff]  }
  0x91   : > { %1141 = vmatmul.mubr.bf16.gmra.mxu0 %v4856_v30  ;;  %v4890_v62 = vpack.c.bf16 %v578_v17, %v577_v2  ;;  %v780_v56 = vor.u32 %v779_v24, %v669_v6  ;;  %v782_v38 = vor.u32 %v781_v53, %v676_v29  ;;  %v4320_v2 = vld [vmem:[%s4534_s28 + $0x238] sm:$0xff]   ;;  %v671_v17 = vrot.slane %v669_v6, 7 }
  0x92   : > { %4077 = vmatmul.mubr.bf16.gmra.mxu1 %v4843_v44  ;;  %1148 = vmatprep.mubr.bf16.mxu0 %v4814_v28 }
  0x93   : > { %4080 = vmatprep.mubr.bf16.mxu1 %v4860_v31  ;;  %3789 = vmatpush3.bf16.msra.mxu1 %v4309_v33  ;;  %v4316_v33 = vld [vmem:[%s4534_s28 + $0x100] sm:$0xff]   ;;  %v4917_v27 = vsel %vm4718_vm5, %v782_v38, 0  ;;  %v674_v6 = vor.u32 %v672_v8, %v671_v17  ;;  %v791_v38 = vrot.slane %v714_v12, 1  ;;  %v4325_v17 = vld [vmem:[%s4534_s28 + $0x230] sm:$0xff]  }
  0x94   : > { %3790 = vmatprep.subr.bf16.mxu1 %v4311_v0  ;;  %v686_v0 = vshll.u32 %v4890_v62, 16 }
  0x95   : > { %v4925_v53 = vsel %vm4588_vm2, 0, %v674_v6  ;;  %v4327_v6 = vld [vmem:[%s4534_s28 + $0x1a0] sm:$0xff]  }
  0x96   : > { %v783_v14 = vrot.slane %v686_v0, 1 }
  0x97   : > { %3791 = vmatpush3.bf16.msra.mxu1 %v4312_v9  ;;  %v4912_v9 = vsel %vm4718_vm5, %v780_v56, 0 }
  0x98   : > { %3792 = vmatprep.subr.bf16.mxu1 %v4313_v52  ;;  %v683_v52 = vshrl.u32 %v4890_v62, 16 }
  0x99   : > { %1149 = vmatmul.mubr.bf16.gmra.mxu0 %v4883_v23 }
  0x9a   : > { %4081 = vmatmul.mubr.bf16.gmra.mxu1 %v4887_v26  ;;  %1156 = vmatprep.mubr.bf16.mxu0 %v4821_v41  ;;  %v784_v24 = vor.u32 %v783_v14, %v683_v52  ;;  %v685_v7 = vrot.slane %v683_v52, 7  ;;  %v4322_v52 = vld [vmem:[%s4534_s28 + $0x1b0] sm:$0xff]   ;;  %v4326_v14 = vld [vmem:[%s4534_s28 + $0x1e0] sm:$0xff]  }
  0x9b   : > { %4084 = vmatprep.mubr.bf16.mxu1 %v4894_v58  ;;  %3793 = vmatpush3.bf16.msra.mxu1 %v4314_v32 }
  0x9c   : > { %3794 = vmatprep.subr.bf16.mxu1 %v4316_v33  ;;  %v4929_v32 = vsel %vm4718_vm5, %v784_v24, 0  ;;  %v678_v33 = vrot.slane %v676_v29, 7  ;;  %v4947_v29 = vsel %vm4718_vm5, %v4774_v39, 0  ;;  %v688_v39 = vor.u32 %v686_v0, %v685_v7  ;;  %v4319_v0 = vld [vmem:[%s4534_s28 + $0x1b8] sm:$0xff]   ;;  %v4331_v7 = vld [vmem:[%s4534_s28 + $0x1d0] sm:$0xff]  }
  0x9d   : > { %v4328_v24 = vld [vmem:[%s4534_s28 + $0x1d8] sm:$0xff]  }
  0x9e   : > { %v681_v8 = vor.u32 %v679_v61, %v678_v33  ;;  %v4954_v61 = vsel %vm4718_vm5, %v4783_v49, 0  ;;  %v4964_v12 = vsel %vm4588_vm2, 0, %v688_v39  ;;  %v4338_v33 = vld [vmem:[%s4534_s28 + $0x218] sm:$0xff]   ;;  %v4332_v39 = vld [vmem:[%s4534_s28 + $0x190] sm:$0xff]  }
  0x9f   : > { %3795 = vmatpush3.bf16.msra.mxu1 %v4317_v5  ;;  %v792_v5 = vor.u32 %v791_v38, %v711_v4  ;;  %v4321_v4 = vld [vmem:[%s4534_s28 + $0x1f0] sm:$0xff]  }
  0xa0   : > { %4148 = vmatprep.subr.bf16.mxu1 %v4320_v2  ;;  %v4942_v56 = vsel %vm4588_vm2, 0, %v681_v8  ;;  %v4329_v8 = vld [vmem:[%s4534_s28 + $0x198] sm:$0xff]   ;;  %v4339_v38 = vld [vmem:[%s4534_s28 + $0x210] sm:$0xff]  }
  0xa1   : > { %1157 = vmatmul.mubr.bf16.gmra.mxu0 %v4908_v22  ;;  %v4968_v49 = vsel %vm4718_vm5, %v792_v5, 0  ;;  %v4333_v5 = vld [vmem:[%s4534_s28 + $0x1c8] sm:$0xff]  }
  0xa2   : > { %4085 = vmatmul.mubr.bf16.gmra.mxu1 %v4912_v9  ;;  %1164 = vmatprep.mubr.bf16.mxu0 %v4864_v11 }
  0xa3   : > { %4088 = vmatprep.mubr.bf16.mxu1 %v4917_v27 }
  0xa9   : > { %1165 = vmatmul.mubr.bf16.gmra.mxu0 %v4925_v53 }
  0xaa   : > { %4089 = vmatmul.mubr.bf16.gmra.mxu1 %v4929_v32  ;;  %1172 = vmatprep.mubr.bf16.mxu0 %v4868_v59 }
  0xab   : > { %4092 = vmatprep.mubr.bf16.mxu1 %v4934_v18 }
  0xb1   : > { %1173 = vmatmul.mubr.bf16.gmra.mxu0 %v4942_v56 }
  0xb2   : > { %4093 = vmatmul.mubr.bf16.gmra.mxu1 %v4947_v29  ;;  %1180 = vmatprep.mubr.bf16.mxu0 %v4890_v62 }
  0xb3   : > { %4096 = vmatprep.mubr.bf16.mxu1 %v4954_v61 }
  0xb9   : > { %1181 = vmatmul.mubr.bf16.gmra.mxu0 %v4964_v12 }
  0xba   : > { %4097 = vmatmul.mubr.bf16.gmra.mxu1 %v4968_v49  ;;  %4116 = vmatprep.mubr.bf16.mxu0 %v4767_v35  ;;  %v4330_v35 = vld [vmem:[%s4534_s28 + $0x228] sm:$0xff]  }
  0xbb   : > { %1706 = vmatprep.mubr.bf16.mxu1 %v4574_v47  ;;  %v4323_v47 = vld [vmem:[%s4534_s28 + $0x1e8] sm:$0xff]  }
  0xc1   : > { %4117 = vmatmul.mubr.bf16.vlgmr.msra.gmra.mxu0 %v4792_v50 }
  0xc2   : > { %1707 = vmatmul.mubr.bf16.vlgmr.msra.gmra.mxu1 %v4646_v43  ;;  %3917 = vmatpush3.bf16.msra.mxu0 %v4319_v0  ;;  %v4324_v43 = vld [vmem:[%s4534_s28 + $0x1a8] sm:$0xff]  }
  0xc3   : > { %4149 = vmatpush3.bf16.msra.mxu1 %v4320_v2  ;;  %1714 = vmatprep.mubr.bf16.mxu1 %v4610_v19  ;;  %v4335_v2 = vld [vmem:[%s4534_s28 + $0x220] sm:$0xff]   ;;  %v4340_v0 = vld [vmem:[%s4534_s28 + $0x208] sm:$0xff]  }
  0xc4   : > { %4120 = vmatprep.mubr.bf16.mxu0 %v4818_v36  ;;  %3918 = vmatprep.subr.bf16.mxu0 %v4321_v4  ;;  %v4334_v4 = vld [vmem:[%s4534_s28 + $0x188] sm:$0xff]  }
  0xc5   : > { %4150 = vmatprep.subr.bf16.mxu1 %v4325_v17 }
  0xc6   : > { %3919 = vmatpush3.bf16.msra.mxu0 %v4322_v52  ;;  %v4336_v52 = vld [vmem:[%s4534_s28 + $0x1c0] sm:$0xff]  }
  0xc7   : > { %4151 = vmatpush3.bf16.msra.mxu1 %v4325_v17  ;;  %3920 = vmatprep.subr.bf16.mxu0 %v4323_v47  ;;  %v3628_v17 = vld [vmem:[%s4512_s23 + $0x78] sm:$0xff]   ;;  %v4341_v47 = vld [vmem:[%s4534_s28 + $0x200] sm:$0xff]  }
  0xc8   : > { %4152 = vmatprep.subr.bf16.mxu1 %v4330_v35 }
  0xc9   : > { %4121 = vmatmul.mubr.bf16.gmra.mxu0 %v4829_v34 }
  0xca   : > { %1715 = vmatmul.mubr.bf16.gmra.mxu1 %v4682_v10  ;;  %4124 = vmatprep.mubr.bf16.mxu0 %v4843_v44 }
  0xcb   : > { %1722 = vmatprep.mubr.bf16.mxu1 %v4651_v46  ;;  %3921 = vmatpush3.bf16.msra.mxu0 %v4324_v43  ;;  %v3533_v43 = vunpack.c.h.bf16 %v3628_v17 }
  0xcc   : > { %4153 = vmatpush3.bf16.msra.mxu1 %v4330_v35  ;;  %3922 = vmatprep.subr.bf16.mxu0 %v4326_v14  ;;  %v3532_v35 = vunpack.c.l.bf16 %v3628_v17  ;;  %v4337_v14 = vld [vmem:[%s4534_s28 + $0x180] sm:$0xff]  }
  0xcd   : > { %4154 = vmatprep.subr.bf16.mxu1 %v4335_v2 }
  0xcf   : > { %3923 = vmatpush3.bf16.msra.mxu0 %v4327_v6 }
  0xd0   : > { %4155 = vmatpush3.bf16.msra.mxu1 %v4335_v2  ;;  %3924 = vmatprep.subr.bf16.mxu0 %v4328_v24  ;;  %v4342_v2 = vld [vmem:[%s4493_s12] ss:$0 sm:$0xff] }
  0xd1   : > { %4156 = vmatprep.subr.bf16.mxu1 %v4338_v33  ;;  %4125 = vmatmul.mubr.bf16.gmra.mxu0 %v4860_v31  ;;  %v548_v6 = vmul.f32 %v4342_v2, %v3532_v35  ;;  %v549_v24 = vmul.f32 %v4342_v2, %v3533_v43 }
  0xd2   : > { %1723 = vmatmul.mubr.bf16.gmra.mxu1 %v4730_v55  ;;  %4128 = vmatprep.mubr.bf16.mxu0 %v4887_v26 }
  0xd3   : > { %1730 = vmatprep.mubr.bf16.mxu1 %v4688_v15  ;;  %3925 = vmatpush3.bf16.msra.mxu0 %v4329_v8 }
  0xd4   : > { %4157 = vmatpush3.bf16.msra.mxu1 %v4338_v33  ;;  %3926 = vmatprep.subr.bf16.mxu0 %v4331_v7  ;;  %v4343_v33 = vld [vmem:[%s4499_s16] ss:$0 sm:$0xff] }
  0xd5   : > { %4158 = vmatprep.subr.bf16.mxu1 %v4339_v38  ;;  %v587_v8 = vadd.f32 %v4343_v33, %v548_v6  ;;  %v588_v7 = vadd.f32 %v4343_v33, %v549_v24 }
  0xd7   : > { %3927 = vmatpush3.bf16.msra.mxu0 %v4332_v39 }
  0xd8   : > { %4159 = vmatpush3.bf16.msra.mxu1 %v4339_v38  ;;  %3928 = vmatprep.subr.bf16.mxu0 %v4333_v5  ;;  %v5019_v38 = vpack.c.bf16 %v588_v7, %v587_v8 }
  0xd9   : > { %4160 = vmatprep.subr.bf16.mxu1 %v4340_v0  ;;  %4129 = vmatmul.mubr.bf16.gmra.mxu0 %v4894_v58 }
  0xda   : > { %1731 = vmatmul.mubr.bf16.gmra.mxu1 %v4787_v1  ;;  %4132 = vmatprep.mubr.bf16.mxu0 %v4912_v9  ;;  %v721_v39 = vshll.u32 %v5019_v38, 16  ;;  %v718_v5 = vshrl.u32 %v5019_v38, 16 }
  0xdb   : > { %1738 = vmatprep.mubr.bf16.mxu1 %v4738_v45  ;;  %3929 = vmatpush3.bf16.msra.mxu0 %v4334_v4 }
  0xdc   : > { %4161 = vmatpush3.bf16.msra.mxu1 %v4340_v0  ;;  %3930 = vmatprep.subr.bf16.mxu0 %v4336_v52  ;;  %v793_v0 = vrot.slane %v721_v39, 1  ;;  %v720_v33 = vrot.slane %v718_v5, 7 }
  0xdd   : > { %4162 = vmatprep.subr.bf16.mxu1 %v4341_v47 }
  0xde   : > { %v794_v4 = vor.u32 %v793_v0, %v718_v5 }
  0xdf   : > { %3931 = vmatpush3.bf16.msra.mxu0 %v4337_v14 }
  0xe0   : > { %4163 = vmatpush3.bf16.msra.mxu1 %v4341_v47  ;;  %v5035_v17 = vsel %vm4718_vm5, %v794_v4, 0 }
  0xe1   : > { %4133 = vmatmul.mubr.bf16.gmra.mxu0 %v4917_v27 }
  0xe2   : > { %1739 = vmatmul.mubr.bf16.gmra.mxu1 %v4825_v40  ;;  %4136 = vmatprep.mubr.bf16.mxu0 %v4929_v32 }
  0xe3   : > { %1746 = vmatprep.mubr.bf16.mxu1 %v4770_v37 }
  0xe9   : > { %4137 = vmatmul.mubr.bf16.gmra.mxu0 %v4934_v18 }
  0xea   : > { %1747 = vmatmul.mubr.bf16.gmra.mxu1 %v4856_v30  ;;  %4140 = vmatprep.mubr.bf16.mxu0 %v4947_v29 }
  0xeb   : > { %1754 = vmatprep.mubr.bf16.mxu1 %v4814_v28 }
  0xf1   : > { %4141 = vmatmul.mubr.bf16.gmra.mxu0 %v4954_v61 }
  0xf2   : > { %1755 = vmatmul.mubr.bf16.gmra.mxu1 %v4883_v23  ;;  %4144 = vmatprep.mubr.bf16.mxu0 %v4968_v49 }
  0xf3   : > { %1762 = vmatprep.mubr.bf16.mxu1 %v4821_v41 }
  0xf9   : > { %4145 = vmatmul.mubr.bf16.gmra.mxu0 %v5035_v17 }
  0xfa   : > { %1763 = vmatmul.mubr.bf16.gmra.mxu1 %v4908_v22  ;;  %2320 = vmatprep.mubr.bf16.mxu0 %v4610_v19 }
  0xfb   : > { %1770 = vmatprep.mubr.bf16.mxu1 %v4864_v11 }
 0x101   : > { %2321 = vmatmul.mubr.bf16.vlgmr.msra.gmra.mxu0 %v4682_v10 }
 0x102   : > { %1771 = vmatmul.mubr.bf16.gmra.mxu1 %v4925_v53  ;;  %2328 = vmatprep.mubr.bf16.mxu0 %v4651_v46 }
 0x103   : > { %1778 = vmatprep.mubr.bf16.mxu1 %v4868_v59 }
 0x109   : > { %2329 = vmatmul.mubr.bf16.gmra.mxu0 %v4730_v55 }
 0x10a   : > { %1779 = vmatmul.mubr.bf16.gmra.mxu1 %v4942_v56  ;;  %2336 = vmatprep.mubr.bf16.mxu0 %v4688_v15 }
 0x10b   : > { %1786 = vmatprep.mubr.bf16.mxu1 %v4890_v62 }
 0x111   : > { %2337 = vmatmul.mubr.bf16.gmra.mxu0 %v4787_v1 }
 0x112   : > { %1787 = vmatmul.mubr.bf16.gmra.mxu1 %v4964_v12  ;;  %2344 = vmatprep.mubr.bf16.mxu0 %v4738_v45 }
 0x113   : > { %1794 = vmatprep.mubr.bf16.mxu1 %v4548_v16 }
 0x119   : > { %2345 = vmatmul.mubr.bf16.gmra.mxu0 %v4825_v40 }
 0x11a   : > { %1795 = vmatmul.mubr.bf16.gmra.mxu1 %v4614_v20  ;;  %2352 = vmatprep.mubr.bf16.mxu0 %v4770_v37 }
 0x11b   : > { %1802 = vmatprep.mubr.bf16.mxu1 %v4576_v48 }
 0x121   : > { %v3660_v19 = vpop.f32.mrf.mxu0  ;;  %2353 = vmatmul.mubr.bf16.gmra.mxu0 %v4856_v30 }
 0x122   : > { %v3732_v46 = vpop.f32.mrf.mxu1  ;;  %1803 = vmatmul.mubr.bf16.gmra.mxu1 %v4657_v51  ;;  %2360 = vmatprep.mubr.bf16.mxu0 %v4814_v28 }
 0x123   : > { %1810 = vmatprep.mubr.bf16.mxu1 %v4621_v25  ;;  %v3661_v10 = vpop.f32.mrf.mxu0 }
 0x124   : > { %v3733_v15 = vpop.f32.mrf.mxu1  ;;  %v5061_v42 = vadd.f32 %v3661_v10, %v3660_v19 }
 0x125   : > { %v5063_v55 = vadd.f32 %v3733_v15, %v3732_v46  ;;  %v3663_v45 = vpop.f32.mrf.mxu0 }
 0x126   : > { %v3735_v1 = vpop.f32.mrf.mxu1 }
 0x127   : > { %v3664_v40 = vpop.f32.mrf.mxu0 }
 0x128   : > { %v3736_v37 = vpop.f32.mrf.mxu1  ;;  %v5065_v52 = vadd.f32 %v3664_v40, %v3663_v45 }
 0x129   : > { %v5067_v47 = vadd.f32 %v3736_v37, %v3735_v1  ;;  %v3666_v35 = vpop.f32.mrf.mxu0  ;;  %2361 = vmatmul.mubr.bf16.gmra.mxu0 %v4883_v23 }
 0x12a   : > { %v3738_v30 = vpop.f32.mrf.mxu1  ;;  %1811 = vmatmul.mubr.bf16.gmra.mxu1 %v4693_v21  ;;  %2368 = vmatprep.mubr.bf16.mxu0 %v4821_v41  ;;  %v723_v41 = vor.u32 %v721_v39, %v720_v33 }
 0x12b   : > { %1818 = vmatprep.mubr.bf16.mxu1 %v4662_v54  ;;  %v3667_v28 = vpop.f32.mrf.mxu0 }
 0x12c   : > { %v3739_v43 = vpop.f32.mrf.mxu1  ;;  %v3668_v14 = vadd.f32 %v3667_v28, %v3666_v35  ;;  %v5087_v40 = vsel %vm4588_vm2, 0, %v723_v41 }
 0x12d   : > { %v5073_v2 = vadd.f32 %v3739_v43, %v3738_v30  ;;  %v3669_v6 = vpop.f32.mrf.mxu0 }
 0x12e   : > { %v3741_v24 = vpop.f32.mrf.mxu1 }
 0x12f   : > { %v3670_v8 = vpop.f32.mrf.mxu0 }
 0x130   : > { %v3742_v7 = vpop.f32.mrf.mxu1  ;;  %v3671_v0 = vadd.f32 %v3670_v8, %v3669_v6 }
 0x131   : > { %v5075_v4 = vadd.f32 %v3742_v7, %v3741_v24  ;;  %v3672_v19 = vpop.f32.mrf.mxu0  ;;  %2369 = vmatmul.mubr.bf16.gmra.mxu0 %v4908_v22 }
 0x132   : > { %v3744_v46 = vpop.f32.mrf.mxu1  ;;  %1819 = vmatmul.mubr.bf16.gmra.mxu1 %v4736_v57  ;;  %2376 = vmatprep.mubr.bf16.mxu0 %v4864_v11 }
 0x133   : > { %1826 = vmatprep.mubr.bf16.mxu1 %v5019_v38  ;;  %v3673_v23 = vpop.f32.mrf.mxu0 }
 0x134   : > { %v3745_v5 = vpop.f32.mrf.mxu1  ;;  %v3674_v10 = vadd.f32 %v3673_v23, %v3672_v19 }
 0x135   : > { %v5083_v15 = vadd.f32 %v3745_v5, %v3744_v46  ;;  %v3675_v45 = vpop.f32.mrf.mxu0 }
 0x136   : > { %v3747_v1 = vpop.f32.mrf.mxu1 }
 0x137   : > { %v3676_v37 = vpop.f32.mrf.mxu0 }
 0x138   : > { %v3748_v22 = vpop.f32.mrf.mxu1  ;;  %v3677_v35 = vadd.f32 %v3676_v37, %v3675_v45 }
 0x139   : > { %v5089_v30 = vadd.f32 %v3748_v22, %v3747_v1  ;;  %v3678_v11 = vpop.f32.mrf.mxu0  ;;  %2377 = vmatmul.mubr.bf16.gmra.mxu0 %v4925_v53 }
 0x13a   : > { %v3750_v28 = vpop.f32.mrf.mxu1  ;;  %1827 = vmatmul.mubr.bf16.gmra.mxu1 %v5087_v40  ;;  %2384 = vmatprep.mubr.bf16.mxu0 %v4868_v59 }
 0x13b   : > { %4164 = vmatprep.mubr.bf16.mxu1 %v4792_v50  ;;  %v3679_v39 = vpop.f32.mrf.mxu0 }
 0x13c   : > { %v3751_v43 = vpop.f32.mrf.mxu1  ;;  %v3680_v60 = vadd.f32 %v3679_v39, %v3678_v11 }
 0x13d   : > { %v5095_v6 = vadd.f32 %v3751_v43, %v3750_v28  ;;  %v3681_v24 = vpop.f32.mrf.mxu0 }
 0x13e   : > { %v3753_v33 = vpop.f32.mrf.mxu1 }
 0x13f   : > { %v3682_v8 = vpop.f32.mrf.mxu0 }
 0x140   : > { %v3754_v7 = vpop.f32.mrf.mxu1  ;;  %v3683_v19 = vadd.f32 %v3682_v8, %v3681_v24 }
 0x141   : > { %v5097_v46 = vadd.f32 %v3754_v7, %v3753_v33  ;;  %v3684_v41 = vpop.f32.mrf.mxu0  ;;  %2385 = vmatmul.mubr.bf16.gmra.mxu0 %v4942_v56 }
 0x142   : > { %v4070_v23 = vpop.f32.mrf.mxu1  ;;  %4165 = vmatmul.mubr.bf16.vlgmr.msra.gmra.mxu1 %v4818_v36  ;;  %2392 = vmatprep.mubr.bf16.mxu0 %v4890_v62 }
 0x143   : > { %v5101_v59 = vadd.f32 %v4070_v23, %v3668_v14  ;;  %4168 = vmatprep.mubr.bf16.mxu1 %v4829_v34  ;;  %v3685_v50 = vpop.f32.mrf.mxu0 }
 0x144   : > { %v1255_v53 = vpop.f32.mrf.mxu1  ;;  %v3686_v5 = vadd.f32 %v3685_v50, %v3684_v41 }
 0x145   : > { %v5106_v45 = vadd.f32 %v5061_v42, %v1255_v53  ;;  %v3687_v1 = vpop.f32.mrf.mxu0 }
 0x146   : > { %v4071_v37 = vpop.f32.mrf.mxu1 }
 0x147   : > { %v5108_v22 = vadd.f32 %v4071_v37, %v3671_v0  ;;  %v3688_v11 = vpop.f32.mrf.mxu0 }
 0x148   : > { %v1258_v56 = vpop.f32.mrf.mxu1  ;;  %v3689_v28 = vadd.f32 %v3688_v11, %v3687_v1 }
 0x149   : > { %v5111_v36 = vadd.f32 %v5065_v52, %v1258_v56  ;;  %v3690_v14 = vpop.f32.mrf.mxu0  ;;  %2393 = vmatmul.mubr.bf16.gmra.mxu0 %v4964_v12 }
 0x14a   : > { %v4074_v62 = vpop.f32.mrf.mxu1  ;;  %4169 = vmatmul.mubr.bf16.gmra.mxu1 %v4843_v44  ;;  %2400 = vmatprep.mubr.bf16.mxu0 %v4548_v16 }
 0x14b   : > { %v5115_v34 = vadd.f32 %v4074_v62, %v3680_v60  ;;  %4172 = vmatprep.mubr.bf16.mxu1 %v4860_v31  ;;  %v3691_v42 = vpop.f32.mrf.mxu0 }
 0x14c   : > { %v1271_v0 = vpop.f32.mrf.mxu1  ;;  %v3692_v39 = vadd.f32 %v3691_v42, %v3690_v14 }
 0x14d   : > { %v5119_v43 = vadd.f32 %v3674_v10, %v1271_v0  ;;  %v3693_v24 = vpop.f32.mrf.mxu0 }
 0x14e   : > { %v4075_v52 = vpop.f32.mrf.mxu1 }
 0x14f   : > { %v5121_v33 = vadd.f32 %v4075_v52, %v3683_v19  ;;  %v3694_v8 = vpop.f32.mrf.mxu0 }
 0x150   : > { %v1274_v7 = vpop.f32.mrf.mxu1  ;;  %v3695_v12 = vadd.f32 %v3694_v8, %v3693_v24 }
 0x151   : > { %v5123_v41 = vadd.f32 %v3677_v35, %v1274_v7  ;;  %v3696_v44 = vpop.f32.mrf.mxu0  ;;  %2401 = vmatmul.mubr.bf16.gmra.mxu0 %v4614_v20 }
 0x152   : > { %v4078_v60 = vpop.f32.mrf.mxu1  ;;  %4173 = vmatmul.mubr.bf16.gmra.mxu1 %v4887_v26  ;;  %2408 = vmatprep.mubr.bf16.mxu0 %v4576_v48 }
 0x153   : > { %v5127_v16 = vadd.f32 %v4078_v60, %v3692_v39  ;;  %4176 = vmatprep.mubr.bf16.mxu1 %v4894_v58  ;;  %v3697_v31 = vpop.f32.mrf.mxu0 }
 0x154   : > { %v1287_v10 = vpop.f32.mrf.mxu1  ;;  %v3698_v19 = vadd.f32 %v3697_v31, %v3696_v44 }
 0x155   : > { %v5131_v23 = vadd.f32 %v3686_v5, %v1287_v10  ;;  %v3699_v50 = vpop.f32.mrf.mxu0 }
 0x156   : > { %v4079_v35 = vpop.f32.mrf.mxu1 }
 0x157   : > { %v5133_v53 = vadd.f32 %v4079_v35, %v3695_v12  ;;  %v3700_v1 = vpop.f32.mrf.mxu0 }
 0x158   : > { %v1290_v37 = vpop.f32.mrf.mxu1  ;;  %v3701_v20 = vadd.f32 %v3700_v1, %v3699_v50 }
 0x159   : > { %v5135_v11 = vadd.f32 %v3689_v28, %v1290_v37  ;;  %v3702_v26 = vpop.f32.mrf.mxu0  ;;  %2409 = vmatmul.mubr.bf16.gmra.mxu0 %v4657_v51 }
 0x15a   : > { %v4082_v56 = vpop.f32.mrf.mxu1  ;;  %4177 = vmatmul.mubr.bf16.gmra.mxu1 %v4912_v9  ;;  %2416 = vmatprep.mubr.bf16.mxu0 %v4621_v25 }
 0x15b   : > { %4180 = vmatprep.mubr.bf16.mxu1 %v4917_v27  ;;  %v3703_v48 = vpop.f32.mrf.mxu0 }
 0x15c   : > { %v1303_v58 = vpop.f32.mrf.mxu1  ;;  %v3704_v5 = vadd.f32 %v3703_v48, %v3702_v26 }
 0x15d   : > { %v5141_v14 = vadd.f32 %v3698_v19, %v1303_v58  ;;  %v3705_v62 = vpop.f32.mrf.mxu0 }
 0x15e   : > { %v4083_v42 = vpop.f32.mrf.mxu1  ;;  %v5143_v0 = vadd.f32 %v4082_v56, %v3704_v5 }
 0x15f   : > { %v3706_v28 = vpop.f32.mrf.mxu0 }
 0x160   : > { %v1306_v39 = vpop.f32.mrf.mxu1  ;;  %v3707_v24 = vadd.f32 %v3706_v28, %v3705_v62 }
 0x161   : > { %v5145_v52 = vadd.f32 %v3701_v20, %v1306_v39  ;;  %v3708_v51 = vpop.f32.mrf.mxu0  ;;  %2417 = vmatmul.mubr.bf16.gmra.mxu0 %v4693_v21 }
 0x162   : > { %v4086_v9 = vpop.f32.mrf.mxu1  ;;  %4181 = vmatmul.mubr.bf16.gmra.mxu1 %v4929_v32  ;;  %v5149_v25 = vadd.f32 %v4083_v42, %v3707_v24  ;;  %2424 = vmatprep.mubr.bf16.mxu0 %v4662_v54 }
 0x163   : > { %4184 = vmatprep.mubr.bf16.mxu1 %v4934_v18  ;;  %v3709_v27 = vpop.f32.mrf.mxu0 }
 0x164   : > { %v1319_v8 = vpop.f32.mrf.mxu1  ;;  %v3710_v7 = vadd.f32 %v3709_v27, %v3708_v51 }
 0x165   : > { %v3711_v12 = vpop.f32.mrf.mxu0 }
 0x166   : > { %v4087_v44 = vpop.f32.mrf.mxu1  ;;  %v5153_v60 = vadd.f32 %v3710_v7, %v1319_v8 }
 0x167   : > { %v3712_v31 = vpop.f32.mrf.mxu0 }
 0x168   : > { %v1322_v10 = vpop.f32.mrf.mxu1  ;;  %v3713_v19 = vadd.f32 %v3712_v31, %v3711_v12 }
 0x169   : > { %v3714_v50 = vpop.f32.mrf.mxu0  ;;  %2425 = vmatmul.mubr.bf16.gmra.mxu0 %v4736_v57 }
 0x16a   : > { %v4090_v21 = vpop.f32.mrf.mxu1  ;;  %4185 = vmatmul.mubr.bf16.gmra.mxu1 %v4947_v29  ;;  %v5157_v32 = vadd.f32 %v3713_v19, %v1322_v10  ;;  %2432 = vmatprep.mubr.bf16.mxu0 %v5019_v38 }
 0x16b   : > { %4188 = vmatprep.mubr.bf16.mxu1 %v4954_v61  ;;  %v3715_v54 = vpop.f32.mrf.mxu0 }
 0x16c   : > { %v1335_v18 = vpop.f32.mrf.mxu1  ;;  %v3716_v35 = vadd.f32 %v3715_v54, %v3714_v50 }
 0x16d   : > { %v3717_v1 = vpop.f32.mrf.mxu0 }
 0x16e   : > { %v4091_v37 = vpop.f32.mrf.mxu1  ;;  %v5161_v20 = vadd.f32 %v4086_v9, %v3716_v35  ;;  %v832_v35 = vld [vmem:[#allocation2 + $0xb0] sm:$0xff] }
 0x16f   : > { %v3718_v26 = vpop.f32.mrf.mxu0 }
 0x170   : > { %v1338_v56 = vpop.f32.mrf.mxu1  ;;  %v3719_v48 = vadd.f32 %v3718_v26, %v3717_v1 }
 0x171   : > { %v3720_v58 = vpop.f32.mrf.mxu0  ;;  %2433 = vmatmul.mubr.bf16.gmra.mxu0 %v5087_v40 }
 0x172   : > { %v4094_v57 = vpop.f32.mrf.mxu1  ;;  %4189 = vmatmul.mubr.bf16.gmra.mxu1 %v4968_v49  ;;  %v5165_v29 = vadd.f32 %v4087_v44, %v3719_v48  ;;  %2440 = vmatprep.mubr.bf16.mxu0 %v4401_v3  ;;  %v1382_v48 = vadd.f32 %v5106_v45, %v832_v35 }
 0x173   : > { %v5168_v61 = vadd.f32 %v4094_v57, %v5073_v2  ;;  %4192 = vmatprep.mubr.bf16.mxu1 %v5035_v17  ;;  %v3721_v38 = vpop.f32.mrf.mxu0 }
 0x174   : > { %v1351_v5 = vpop.f32.mrf.mxu1  ;;  %v3722_v62 = vadd.f32 %v3721_v38, %v3720_v58  ;;  %v833_v58 = vld [vmem:[#allocation2] sm:$0xff] }
 0x175   : > { %v5173_v42 = vadd.f32 %v5063_v55, %v1351_v5  ;;  %v3723_v28 = vpop.f32.mrf.mxu0 }
 0x176   : > { %v4095_v39 = vpop.f32.mrf.mxu1  ;;  %v5175_v40 = vadd.f32 %v3722_v62, %v1335_v18 }
 0x177   : > { %v5178_v49 = vadd.f32 %v4095_v39, %v5075_v4  ;;  %v3724_v24 = vpop.f32.mrf.mxu0 }
 0x178   : > { %v1354_v2 = vpop.f32.mrf.mxu1  ;;  %v3725_v51 = vadd.f32 %v3724_v24, %v3723_v28  ;;  %v834_v24 = vld [vmem:[#allocation2 + $0xd8] sm:$0xff] }
 0x179   : > { %v5181_v3 = vadd.f32 %v5067_v47, %v1354_v2  ;;  %v3726_v17 = vpop.f32.mrf.mxu0  ;;  %2441 = vmatmul.mubr.bf16.gmra.mxu0 %v4603_v13 }
 0x17a   : > { %v4098_v9 = vpop.f32.mrf.mxu1  ;;  %4193 = vmatmul.mubr.bf16.gmra.mxu1 %v4744_v63  ;;  %v5185_v55 = vadd.f32 %v3725_v51, %v1338_v56 }
 0x17b   : > { %v5188_v27 = vadd.f32 %v4098_v9, %v5095_v6  ;;  %v3727_v8 = vpop.f32.mrf.mxu0 }
 0x17c   : > { %v1367_v4 = vpop.f32.mrf.mxu1  ;;  %v3728_v7 = vadd.f32 %v3727_v8, %v3726_v17 }
 0x17d   : > { %v5191_v12 = vadd.f32 %v5083_v15, %v1367_v4  ;;  %v3729_v44 = vpop.f32.mrf.mxu0  ;;  %v1384_v4 = vadd.f32 %v5101_v59, %v834_v24 }
 0x17e   : > { %v4099_v47 = vpop.f32.mrf.mxu1  ;;  %v5193_v31 = vadd.f32 %v4090_v21, %v3728_v7 }
 0x17f   : > { %v5196_v10 = vadd.f32 %v4099_v47, %v5097_v46  ;;  %v3730_v13 = vpop.f32.mrf.mxu0 }
 0x180   : > { %v1370_v63 = vpop.f32.mrf.mxu1  ;;  %v3731_v19 = vadd.f32 %v3730_v13, %v3729_v44  ;;  %v835_v44 = vld [vmem:[#allocation2 + $0x18] sm:$0xff] }
 0x181   : > { %v5199_v50 = vadd.f32 %v5089_v30, %v1370_v63  ;;  %v4118_v54 = vpop.f32.mrf.mxu0  ;;  %v1385_v35 = vadd.f32 %v5108_v22, %v835_v44 }
 0x182   : > { %v3796_v6 = vpop.f32.mrf.mxu1  ;;  %v5201_v18 = vadd.f32 %v4091_v37, %v3731_v19  ;;  %v1383_v37 = vadd.f32 %v5111_v36, %v833_v58 }
 0x183   : > { %v1869_v1 = vpop.f32.mrf.mxu0 }
 0x184   : > { %v3797_v15 = vpop.f32.mrf.mxu1 }
 0x185   : > { %v3798_v26 = vadd.f32 %v3797_v15, %v3796_v6  ;;  %v4119_v21 = vpop.f32.mrf.mxu0 }
 0x186   : > { %v3799_v56 = vpop.f32.mrf.mxu1 }
 0x187   : > { %v1870_v46 = vadd.f32 %v3798_v26, %v1869_v1  ;;  %v1872_v38 = vpop.f32.mrf.mxu0  ;;  %v836_v1 = vld [vmem:[#allocation2 + $0x50] sm:$0xff] }
 0x188   : > { %v3800_v57 = vpop.f32.mrf.mxu1  ;;  %v1386_v58 = vadd.f32 %v5119_v43, %v836_v1 }
 0x189   : > { %v5204_v5 = vadd.f32 %v1870_v46, %v1382_v48  ;;  %v3801_v30 = vadd.f32 %v3800_v57, %v3799_v56  ;;  %v4122_v28 = vpop.f32.mrf.mxu0 }
 0x18a   : > { %v3802_v62 = vpop.f32.mrf.mxu1 }
 0x18b   : > { %v1873_v39 = vadd.f32 %v3801_v30, %v1872_v38  ;;  %v1885_v51 = vpop.f32.mrf.mxu0  ;;  %v837_v38 = vld [vmem:[#allocation2 + $0x68] sm:$0xff] }
 0x18c   : > { %v3803_v2 = vpop.f32.mrf.mxu1  ;;  %v1387_v24 = vadd.f32 %v5123_v41, %v837_v38 }
 0x18d   : > { %v5207_v17 = vadd.f32 %v1873_v39, %v1383_v37  ;;  %v3804_v9 = vadd.f32 %v3803_v2, %v3802_v62  ;;  %v4123_v45 = vpop.f32.mrf.mxu0 }
 0x18e   : > { %v3805_v8 = vpop.f32.mrf.mxu1 }
 0x18f   : > { %v1878_v7 = vadd.f32 %v4118_v54, %v3804_v9  ;;  %v1888_v13 = vpop.f32.mrf.mxu0  ;;  %v838_v9 = vld [vmem:[#allocation2 + $0x30] sm:$0xff] }
 0x190   : > { %v3806_v47 = vpop.f32.mrf.mxu1 }
 0x191   : > { %v5210_v63 = vadd.f32 %v1878_v7, %v1384_v4  ;;  %v3807_v19 = vadd.f32 %v3806_v47, %v3805_v8  ;;  %v5212_v36 = vpop.f32.mrf.mxu0  ;;  %v1388_v47 = vadd.f32 %v5115_v34, %v838_v9 }
 0x192   : > { %v3808_v6 = vpop.f32.mrf.mxu1 }
 0x193   : > { %v1881_v15 = vadd.f32 %v4119_v21, %v3807_v19  ;;  %v1901_v56 = vpop.f32.mrf.mxu0 }
 0x194   : > { %v3809_v26 = vpop.f32.mrf.mxu1 }
 0x195   : > { %v5215_v48 = vadd.f32 %v1881_v15, %v1385_v35  ;;  %v3810_v46 = vadd.f32 %v3809_v26, %v3808_v6  ;;  %v5217_v54 = vpop.f32.mrf.mxu0  ;;  %v839_v6 = vld [vmem:[#allocation2 + $0x48] sm:$0xff] }
 0x196   : > { %v3811_v59 = vpop.f32.mrf.mxu1 }
 0x197   : > { %v1886_v57 = vadd.f32 %v3810_v46, %v1885_v51  ;;  %v1904_v62 = vpop.f32.mrf.mxu0  ;;  %v1389_v46 = vadd.f32 %v5121_v33, %v839_v6  ;;  %v842_v6 = vld [vmem:[#allocation2 + $0xe8] sm:$0xff] }
 0x198   : > { %v3812_v30 = vpop.f32.mrf.mxu1 }
 0x199   : > { %v5220_v37 = vadd.f32 %v1886_v57, %v1386_v58  ;;  %v3813_v39 = vadd.f32 %v3812_v30, %v3811_v59  ;;  %v5222_v21 = vpop.f32.mrf.mxu0  ;;  %v840_v58 = vld [vmem:[#allocation2 + $0x80] sm:$0xff] }
 0x19a   : > { %v3814_v22 = vpop.f32.mrf.mxu1 }
 0x19b   : > { %v1889_v2 = vadd.f32 %v3813_v39, %v1888_v13  ;;  %v1917_v4 = vpop.f32.mrf.mxu0 }
 0x19c   : > { %v3815_v8 = vpop.f32.mrf.mxu1 }
 0x19d   : > { %v5225_v7 = vadd.f32 %v1889_v2, %v1387_v24  ;;  %v3816_v44 = vadd.f32 %v3815_v8, %v3814_v22  ;;  %v5227_v51 = vpop.f32.mrf.mxu0  ;;  %v1390_v22 = vadd.f32 %v5131_v23, %v840_v58  ;;  %v841_v2 = vld [vmem:[#allocation2 + $0x88] sm:$0xff] }
 0x19e   : > { %v3817_v43 = vpop.f32.mrf.mxu1 }
 0x19f   : > { %v1894_v19 = vadd.f32 %v4122_v28, %v3816_v44  ;;  %v1920_v15 = vpop.f32.mrf.mxu0 }
 0x1a0   : > { %v3818_v35 = vpop.f32.mrf.mxu1 }
 0x1a1   : > { %v5230_v1 = vadd.f32 %v1894_v19, %v1388_v47  ;;  %v3819_v26 = vadd.f32 %v3818_v35, %v3817_v43  ;;  %v5232_v13 = vpop.f32.mrf.mxu0  ;;  %v1391_v47 = vadd.f32 %v5135_v11, %v841_v2 }
 0x1a2   : > { %v3820_v41 = vpop.f32.mrf.mxu1 }
 0x1a3   : > { %v1897_v59 = vadd.f32 %v4123_v45, %v3819_v26  ;;  %v5235_v38 = vpop.f32.mrf.mxu0 }
 0x1a4   : > { %v3821_v57 = vpop.f32.mrf.mxu1 }
 0x1a5   : > { %v5237_v30 = vadd.f32 %v1897_v59, %v1389_v46  ;;  %v3822_v34 = vadd.f32 %v3821_v57, %v3820_v41  ;;  %v5239_v39 = vpop.f32.mrf.mxu0  ;;  %v1392_v59 = vadd.f32 %v5127_v16, %v842_v6  ;;  %v843_v57 = vld [vmem:[#allocation2 + $0xb8] sm:$0xff] }
 0x1a6   : > { %v3823_v28 = vpop.f32.mrf.mxu1  ;;  %v1393_v2 = vadd.f32 %v5133_v53, %v843_v57 }
 0x1a7   : > { %v1902_v24 = vadd.f32 %v3822_v34, %v1901_v56  ;;  %v5242_v8 = vpop.f32.mrf.mxu0 }
 0x1a8   : > { %v3824_v9 = vpop.f32.mrf.mxu1 }
 0x1a9   : > { %v5244_v44 = vadd.f32 %v1902_v24, %v1390_v22  ;;  %v3825_v33 = vadd.f32 %v3824_v9, %v3823_v28  ;;  %v5246_v43 = vpop.f32.mrf.mxu0 }
 0x1aa   : > { %v3826_v45 = vpop.f32.mrf.mxu1 }
 0x1ab   : > { %v1905_v19 = vadd.f32 %v3825_v33, %v1904_v62  ;;  %v5249_v26 = vpop.f32.mrf.mxu0  ;;  %v844_v33 = vld [vmem:[#allocation2 + $0x60] sm:$0xff] }
 0x1ac   : > { %v3827_v35 = vpop.f32.mrf.mxu1 }
 0x1ad   : > { %v5251_v41 = vadd.f32 %v1905_v19, %v1391_v47  ;;  %v3828_v23 = vadd.f32 %v3827_v35, %v3826_v45  ;;  %v5253_v46 = vpop.f32.mrf.mxu0  ;;  %v1394_v35 = vadd.f32 %v5141_v14, %v844_v33 }
 0x1ae   : > { %v3829_v56 = vpop.f32.mrf.mxu1 }
 0x1af   : > { %5723 = vst [vmem:[#allocation7_spill] sm:$0xff] %v5251_v41  ;;  %v1910_v58 = vadd.f32 %v5212_v36, %v3828_v23  ;;  %v5257_v28 = vpop.f32.mrf.mxu0 }
 0x1b0   : > { %v3830_v34 = vpop.f32.mrf.mxu1 }
 0x1b1   : > { %v5259_v11 = vadd.f32 %v1910_v58, %v1392_v59  ;;  %v3831_v62 = vadd.f32 %v3830_v34, %v3829_v56  ;;  %v5261_v24 = vpop.f32.mrf.mxu0  ;;  %v845_v56 = vld [vmem:[#allocation2 + $0xf0] sm:$0xff] }
 0x1b2   : > { %v3832_v22 = vpop.f32.mrf.mxu1 }
 0x1b3   : > { %v1913_v9 = vadd.f32 %v5217_v54, %v3831_v62  ;;  %v5265_v47 = vpop.f32.mrf.mxu0  ;;  %v1395_v62 = vadd.f32 %v5145_v52, %v845_v56 }
 0x1b4   : > { %v3833_v45 = vpop.f32.mrf.mxu1 }
 0x1b5   : > { %v5267_v16 = vadd.f32 %v1913_v9, %v1393_v2  ;;  %v3834_v36 = vadd.f32 %v3833_v45, %v3832_v22  ;;  %v5269_v6 = vpop.f32.mrf.mxu0  ;;  %v846_v22 = vld [vmem:[#allocation2 + $0x8] sm:$0xff] }
 0x1b6   : > { %v3835_v19 = vpop.f32.mrf.mxu1 }
 0x1b7   : > { %v1918_v23 = vadd.f32 %v3834_v36, %v1917_v4  ;;  %v5272_v58 = vpop.f32.mrf.mxu0  ;;  %v1396_v36 = vadd.f32 %v5143_v0, %v846_v22 }
 0x1b8   : > { %v3836_v59 = vpop.f32.mrf.mxu1 }
 0x1b9   : > { %v5274_v53 = vadd.f32 %v1918_v23, %v1394_v35  ;;  %v3837_v54 = vadd.f32 %v3836_v59, %v3835_v19  ;;  %v5276_v34 = vpop.f32.mrf.mxu0  ;;  %v847_v35 = vld [vmem:[#allocation2 + $0x78] sm:$0xff] }
 0x1ba   : > { %v3838_v57 = vpop.f32.mrf.mxu1 }
 0x1bb   : > { %5724 = vst [vmem:[#allocation8_spill] sm:$0xff] %v5274_v53  ;;  %v1921_v2 = vadd.f32 %v3837_v54, %v1920_v15  ;;  %v5279_v45 = vpop.f32.mrf.mxu0 }
 0x1bc   : > { %v3839_v9 = vpop.f32.mrf.mxu1 }
 0x1bd   : > { %v5281_v41 = vadd.f32 %v1921_v2, %v1395_v62  ;;  %v3840_v14 = vadd.f32 %v3839_v9, %v3838_v57  ;;  %v5283_v33 = vpop.f32.mrf.mxu0  ;;  %v1397_v62 = vadd.f32 %v5149_v25, %v847_v35  ;;  %v848_v2 = vld [vmem:[#allocation2 + $0x38] sm:$0xff] }
 0x1be   : > { %v3841_v4 = vpop.f32.mrf.mxu1 }
 0x1bf   : > { %5725 = vst [vmem:[#allocation9_spill] sm:$0xff] %v5281_v41  ;;  %v1926_v19 = vadd.f32 %v5222_v21, %v3840_v14  ;;  %v5287_v59 = vpop.f32.mrf.mxu0 }
 0x1c0   : > { %v3842_v23 = vpop.f32.mrf.mxu1 }
 0x1c1   : > { %v5289_v52 = vadd.f32 %v1926_v19, %v1396_v36  ;;  %v3843_v15 = vadd.f32 %v3842_v23, %v3841_v4  ;;  %v5291_v54 = vpop.f32.mrf.mxu0  ;;  %v1398_v36 = vadd.f32 %v5153_v60, %v848_v2  ;;  %v849_v19 = vld [vmem:[#allocation2 + $0x58] sm:$0xff] }
 0x1c2   : > { %v3844_v56 = vpop.f32.mrf.mxu1 }
 0x1c3   : > { %v1929_v57 = vadd.f32 %v5227_v51, %v3843_v15  ;;  %v5295_v41 = vpop.f32.mrf.mxu0 }
 0x1c4   : > { %v3845_v9 = vpop.f32.mrf.mxu1 }
 0x1c5   : > { %v5297_v0 = vadd.f32 %v1929_v57, %v1397_v62  ;;  %v3846_v21 = vadd.f32 %v3845_v9, %v3844_v56  ;;  %v5299_v14 = vpop.f32.mrf.mxu0  ;;  %v1399_v62 = vadd.f32 %v5157_v32, %v849_v19  ;;  %v850_v57 = vld [vmem:[#allocation2 + $0x40] sm:$0xff] }
 0x1c6   : > { %v3847_v22 = vpop.f32.mrf.mxu1 }
 0x1c7   : > { %5726 = vst [vmem:[#allocation10_spill] sm:$0xff] %v5297_v0  ;;  %v1934_v4 = vadd.f32 %v3846_v21, %v5235_v38  ;;  %v5303_v53 = vpop.f32.mrf.mxu0 }
 0x1c8   : > { %v3848_v23 = vpop.f32.mrf.mxu1 }
 0x1c9   : > { %v5305_v25 = vadd.f32 %v1934_v4, %v1398_v36  ;;  %v3849_v51 = vadd.f32 %v3848_v23, %v3847_v22  ;;  %v5307_v15 = vpop.f32.mrf.mxu0  ;;  %v1400_v36 = vadd.f32 %v5161_v20, %v850_v57  ;;  %v851_v4 = vld [vmem:[#allocation2 + $0xc8] sm:$0xff] }
 0x1ca   : > { %v3850_v35 = vpop.f32.mrf.mxu1 }
 0x1cb   : > { %5727 = vst [vmem:[#allocation11_spill] sm:$0xff] %v5305_v25  ;;  %v1937_v56 = vadd.f32 %v3849_v51, %v5242_v8  ;;  %v5311_v0 = vpop.f32.mrf.mxu0 }
 0x1cc   : > { %v3851_v9 = vpop.f32.mrf.mxu1 }
 0x1cd   : > { %v5313_v60 = vadd.f32 %v1937_v56, %v1399_v62  ;;  %v3852_v38 = vadd.f32 %v3851_v9, %v3850_v35  ;;  %v5315_v21 = vpop.f32.mrf.mxu0  ;;  %v1401_v62 = vadd.f32 %v5165_v29, %v851_v4  ;;  %v852_v56 = vld [vmem:[#allocation2 + $0xe0] sm:$0xff] }
 0x1ce   : > { %v3853_v2 = vpop.f32.mrf.mxu1 }
 0x1cf   : > { %5728 = vst [vmem:[#allocation12_spill] sm:$0xff] %v5313_v60  ;;  %v1942_v22 = vadd.f32 %v5232_v13, %v3852_v38  ;;  %v5319_v25 = vpop.f32.mrf.mxu0 }
 0x1d0   : > { %v3854_v23 = vpop.f32.mrf.mxu1 }
 0x1d1   : > { %v5321_v32 = vadd.f32 %v1942_v22, %v1400_v36  ;;  %v3855_v8 = vadd.f32 %v3854_v23, %v3853_v2  ;;  %v5323_v51 = vpop.f32.mrf.mxu0  ;;  %v1402_v36 = vadd.f32 %v5175_v40, %v852_v56  ;;  %v853_v22 = vld [vmem:[#allocation2 + $0x90] sm:$0xff] }
 0x1d2   : > { %v3856_v19 = vpop.f32.mrf.mxu1 }
 0x1d3   : > { %5729 = vst [vmem:[#allocation13_spill] sm:$0xff] %v5321_v32  ;;  %v1945_v35 = vadd.f32 %v5239_v39, %v3855_v8  ;;  %v5327_v60 = vpop.f32.mrf.mxu0 }
 0x1d4   : > { %v3857_v9 = vpop.f32.mrf.mxu1 }
 0x1d5   : > { %v5329_v20 = vadd.f32 %v1945_v35, %v1401_v62  ;;  %v3858_v13 = vadd.f32 %v3857_v9, %v3856_v19  ;;  %v5331_v38 = vpop.f32.mrf.mxu0  ;;  %v1403_v62 = vadd.f32 %v5185_v55, %v853_v22  ;;  %v854_v35 = vld [vmem:[#allocation2 + $0x70] sm:$0xff] }
 0x1d6   : > { %v3859_v57 = vpop.f32.mrf.mxu1 }
 0x1d7   : > { %5730 = vst [vmem:[#allocation14_spill] sm:$0xff] %v5329_v20  ;;  %v1950_v2 = vadd.f32 %v3858_v13, %v5249_v26  ;;  %v5335_v32 = vpop.f32.mrf.mxu0 }
 0x1d8   : > { %v3860_v23 = vpop.f32.mrf.mxu1 }
 0x1d9   : > { %v5337_v29 = vadd.f32 %v1950_v2, %v1402_v36  ;;  %v3861_v39 = vadd.f32 %v3860_v23, %v3859_v57  ;;  %v5339_v8 = vpop.f32.mrf.mxu0  ;;  %v1404_v36 = vadd.f32 %v5193_v31, %v854_v35  ;;  %v855_v2 = vld [vmem:[#allocation2 + $0xc0] sm:$0xff] }
 0x1da   : > { %v3862_v4 = vpop.f32.mrf.mxu1 }
 0x1db   : > { %5731 = vst [vmem:[#allocation15_spill] sm:$0xff] %v5337_v29  ;;  %v1953_v19 = vadd.f32 %v3861_v39, %v5257_v28  ;;  %v5343_v20 = vpop.f32.mrf.mxu0 }
 0x1dc   : > { %v3863_v9 = vpop.f32.mrf.mxu1 }
 0x1dd   : > { %v5345_v40 = vadd.f32 %v1953_v19, %v1403_v62  ;;  %v3864_v26 = vadd.f32 %v3863_v9, %v3862_v4  ;;  %v5347_v13 = vpop.f32.mrf.mxu0  ;;  %v1405_v62 = vadd.f32 %v5201_v18, %v855_v2  ;;  %v856_v19 = vld [vmem:[#allocation2 + $0xa8] sm:$0xff] }
 0x1de   : > { %v3865_v56 = vpop.f32.mrf.mxu1 }
 0x1df   : > { %5732 = vst [vmem:[#allocation16_spill] sm:$0xff] %v5345_v40  ;;  %v1958_v57 = vadd.f32 %v5246_v43, %v3864_v26  ;;  %v5351_v29 = vpop.f32.mrf.mxu0 }
 0x1e0   : > { %v3866_v23 = vpop.f32.mrf.mxu1 }
 0x1e1   : > { %v5353_v55 = vadd.f32 %v1958_v57, %v1404_v36  ;;  %v3867_v28 = vadd.f32 %v3866_v23, %v3865_v56  ;;  %v5355_v39 = vpop.f32.mrf.mxu0  ;;  %v1406_v36 = vadd.f32 %v5173_v42, %v856_v19  ;;  %v857_v57 = vld [vmem:[#allocation2 + $0xd0] sm:$0xff] }
 0x1e2   : > { %v3868_v22 = vpop.f32.mrf.mxu1 }
 0x1e3   : > { %5733 = vst [vmem:[#allocation17_spill] sm:$0xff] %v5353_v55  ;;  %v1961_v4 = vadd.f32 %v5253_v46, %v3867_v28  ;;  %v5359_v40 = vpop.f32.mrf.mxu0 }
 0x1e4   : > { %v3869_v9 = vpop.f32.mrf.mxu1 }
 0x1e5   : > { %v5361_v31 = vadd.f32 %v1961_v4, %v1405_v62  ;;  %v3870_v43 = vadd.f32 %v3869_v9, %v3868_v22  ;;  %v5363_v26 = vpop.f32.mrf.mxu0  ;;  %v1407_v62 = vadd.f32 %v5181_v3, %v857_v57  ;;  %v858_v4 = vld [vmem:[#allocation2 + $0x10] sm:$0xff] }
 0x1e6   : > { %v3871_v35 = vpop.f32.mrf.mxu1 }
 0x1e7   : > { %5734 = vst [vmem:[#allocation18_spill] sm:$0xff] %v5361_v31  ;;  %v1966_v56 = vadd.f32 %v3870_v43, %v5265_v47  ;;  %v5367_v55 = vpop.f32.mrf.mxu0 }
 0x1e8   : > { %v3872_v23 = vpop.f32.mrf.mxu1 }
 0x1e9   : > { %v5369_v18 = vadd.f32 %v1966_v56, %v1406_v36  ;;  %v3873_v46 = vadd.f32 %v3872_v23, %v3871_v35  ;;  %v5371_v28 = vpop.f32.mrf.mxu0  ;;  %v1408_v36 = vadd.f32 %v5168_v61, %v858_v4  ;;  %v859_v56 = vld [vmem:[#allocation2 + $0x28] sm:$0xff] }
 0x1ea   : > { %v3874_v2 = vpop.f32.mrf.mxu1 }
 0x1eb   : > { %5735 = vst [vmem:[#allocation19_spill] sm:$0xff] %v5369_v18  ;;  %v1969_v22 = vadd.f32 %v3873_v46, %v5272_v58  ;;  %v5375_v31 = vpop.f32.mrf.mxu0 }
 0x1ec   : > { %v3875_v9 = vpop.f32.mrf.mxu1 }
 0x1ed   : > { %v5377_v42 = vadd.f32 %v1969_v22, %v1407_v62  ;;  %v3876_v47 = vadd.f32 %v3875_v9, %v3874_v2  ;;  %v5379_v43 = vpop.f32.mrf.mxu0  ;;  %v1409_v62 = vadd.f32 %v5178_v49, %v859_v56  ;;  %v860_v22 = vld [vmem:[#allocation2 + $0xa0] sm:$0xff] }
 0x1ee   : > { %v3877_v19 = vpop.f32.mrf.mxu1 }
 0x1ef   : > { %5736 = vst [vmem:[#allocation20_spill] sm:$0xff] %v5377_v42  ;;  %v1974_v35 = vadd.f32 %v5261_v24, %v3876_v47  ;;  %v5383_v18 = vpop.f32.mrf.mxu0 }
 0x1f0   : > { %v3878_v23 = vpop.f32.mrf.mxu1 }
 0x1f1   : > { %v5385_v3 = vadd.f32 %v1974_v35, %v1408_v36  ;;  %v3879_v58 = vadd.f32 %v3878_v23, %v3877_v19  ;;  %v5387_v46 = vpop.f32.mrf.mxu0  ;;  %v1410_v36 = vadd.f32 %v5191_v12, %v860_v22  ;;  %v861_v35 = vld [vmem:[#allocation2 + $0xf8] sm:$0xff] }
 0x1f2   : > { %v3880_v57 = vpop.f32.mrf.mxu1 }
 0x1f3   : > { %5737 = vst [vmem:[#allocation21_spill] sm:$0xff] %v5385_v3  ;;  %v1977_v2 = vadd.f32 %v5269_v6, %v3879_v58  ;;  %v5391_v42 = vpop.f32.mrf.mxu0 }
 0x1f4   : > { %v3881_v9 = vpop.f32.mrf.mxu1 }
 0x1f5   : > { %v5393_v61 = vadd.f32 %v1977_v2, %v1409_v62  ;;  %v3882_v24 = vadd.f32 %v3881_v9, %v3880_v57  ;;  %v5395_v47 = vpop.f32.mrf.mxu0  ;;  %v1411_v62 = vadd.f32 %v5199_v50, %v861_v35  ;;  %v862_v2 = vld [vmem:[#allocation2 + $0x20] sm:$0xff]  ;;  %v3940_v50 = vadd.f32 %v5311_v0, %v5307_v15 }
 0x1f6   : > { %v3883_v4 = vpop.f32.mrf.mxu1  ;;  %v3943_v0 = vadd.f32 %v5319_v25, %v5315_v21  ;;  %v3952_v25 = vadd.f32 %v5343_v20, %v5339_v8 }
 0x1f7   : > { %5738 = vst [vmem:[#allocation22_spill] sm:$0xff] %v5393_v61  ;;  %v1982_v19 = vadd.f32 %v3882_v24, %v5279_v45  ;;  %v5399_v3 = vpop.f32.mrf.mxu0 }
 0x1f8   : > { %v3884_v23 = vpop.f32.mrf.mxu1 }
 0x1f9   : > { %v5401_v49 = vadd.f32 %v1982_v19, %v1410_v36  ;;  %v3885_v6 = vadd.f32 %v3884_v23, %v3883_v4  ;;  %v5403_v58 = vpop.f32.mrf.mxu0  ;;  %v1412_v36 = vadd.f32 %v5188_v27, %v862_v2  ;;  %v863_v19 = vld [vmem:[#allocation2 + $0x98] sm:$0xff]  ;;  %v3934_v27 = vadd.f32 %v5295_v41, %v5291_v54 }
 0x1fa   : > { %v3886_v56 = vpop.f32.mrf.mxu1  ;;  %v3937_v41 = vadd.f32 %v5303_v53, %v5299_v14  ;;  %v3946_v53 = vadd.f32 %v5327_v60, %v5323_v51 }
 0x1fb   : > { %5739 = vst [vmem:[#allocation23_spill] sm:$0xff] %v5401_v49  ;;  %v1985_v57 = vadd.f32 %v3885_v6, %v5287_v59  ;;  %v5407_v61 = vpop.f32.mrf.mxu0 }
 0x1fc   : > { %v3887_v9 = vpop.f32.mrf.mxu1 }
 0x1fd   : > { %v5409_v12 = vadd.f32 %v1985_v57, %v1411_v62  ;;  %v3888_v45 = vadd.f32 %v3887_v9, %v3886_v56  ;;  %v5411_v24 = vpop.f32.mrf.mxu0  ;;  %v1413_v62 = vadd.f32 %v5196_v10, %v863_v19 }
 0x1fe   : > { %v3889_v22 = vpop.f32.mrf.mxu1 }
 0x1ff   : > { %v1990_v4 = vadd.f32 %v5276_v34, %v3888_v45  ;;  %v5415_v49 = vpop.f32.mrf.mxu0 }
 0x200   : > { %v3890_v23 = vpop.f32.mrf.mxu1 }
 0x201   : > { %v5419_v59 = vadd.f32 %v1990_v4, %v1412_v36  ;;  %v3891_v35 = vadd.f32 %v3890_v23, %v3889_v22  ;;  %v5421_v6 = vpop.f32.mrf.mxu0 }
 0x202   : > { %v4166_v56 = vpop.f32.mrf.mxu1 }
 0x203   : > { %v1993_v34 = vadd.f32 %v5283_v33, %v3891_v35  ;;  %v2492_v57 = vadd.f32 %v4166_v56, %v3940_v50  ;;  %v5427_v2 = vpop.f32.mrf.mxu0 }
 0x204   : > { %v2483_v9 = vpop.f32.mrf.mxu1 }
 0x205   : > { %v5431_v15 = vadd.f32 %v1993_v34, %v1413_v62  ;;  %v2612_v45 = vadd.f32 %v2492_v57, %v5210_v63  ;;  %v2484_v22 = vadd.f32 %v3934_v27, %v2483_v9  ;;  %v5434_v36 = vpop.f32.mrf.mxu0  ;;  %v3955_v62 = vadd.f32 %v5351_v29, %v5347_v13 }
 0x206   : > { %v4167_v10 = vpop.f32.mrf.mxu1  ;;  %v3949_v34 = vadd.f32 %v5335_v32, %v5331_v38  ;;  %v3964_v9 = vadd.f32 %v5375_v31, %v5371_v28  ;;  %v3967_v31 = vadd.f32 %v5383_v18, %v5379_v43  ;;  %v3976_v18 = vadd.f32 %v5407_v61, %v5403_v58 }
 0x207   : > { %2644 = vst [vmem:[#allocation2 + $0xd8] sm:$0xff] %v2612_v45  ;;  %v2610_v33 = vadd.f32 %v2484_v22, %v5204_v5  ;;  %v2495_v54 = vadd.f32 %v4167_v10, %v3943_v0  ;;  %v5439_v4 = vpop.f32.mrf.mxu0  ;;  %v3958_v45 = vadd.f32 %v5359_v40, %v5355_v39  ;;  %v3961_v40 = vadd.f32 %v5367_v55, %v5363_v26  ;;  %v5740_v55 = vld [vmem:[#allocation7_spill] sm:$0xff] }
 0x208   : > { %v2486_v19 = vpop.f32.mrf.mxu1 }
 0x209   : > { %2642 = vst [vmem:[#allocation2 + $0xb0] sm:$0xff] %v2610_v33  ;;  %v2613_v63 = vadd.f32 %v2495_v54, %v5215_v48  ;;  %v2487_v21 = vadd.f32 %v3937_v41, %v2486_v19  ;;  %v5444_v23 = vpop.f32.mrf.mxu0 }
 0x20a   : > { %v4170_v50 = vpop.f32.mrf.mxu1 }
 0x20b   : > { %2645 = vst [vmem:[#allocation2 + $0x18] sm:$0xff] %v2613_v63  ;;  %v2611_v5 = vadd.f32 %v2487_v21, %v5207_v17  ;;  %v2508_v14 = vadd.f32 %v4170_v50, %v3952_v25  ;;  %v3987_v35 = vpop.f32.mrf.mxu0  ;;  %v3970_v63 = vadd.f32 %v5391_v42, %v5387_v46  ;;  %v5741_v42 = vld [vmem:[#allocation8_spill] sm:$0xff] }
 0x20c   : > { %v2499_v56 = vpop.f32.mrf.mxu1 }
 0x20d   : > { %2643 = vst [vmem:[#allocation2] sm:$0xff] %v2611_v5  ;;  %v2616_v20 = vadd.f32 %v2508_v14, %v5230_v1  ;;  %v2500_v48 = vadd.f32 %v3946_v53, %v2499_v56  ;;  %v5452_v8 = vpop.f32.mrf.mxu0  ;;  %v3979_v53 = vadd.f32 %v5415_v49, %v5411_v24  ;;  %v3973_v14 = vadd.f32 %v5399_v3, %v5395_v47 }
 0x20e   : > { %v4171_v27 = vpop.f32.mrf.mxu1 }
 0x20f   : > { %2648 = vst [vmem:[#allocation2 + $0x30] sm:$0xff] %v2616_v20  ;;  %v2614_v60 = vadd.f32 %v2500_v48, %v5220_v37  ;;  %v2511_v17 = vadd.f32 %v4171_v27, %v3955_v62  ;;  %v3990_v51 = vpop.f32.mrf.mxu0  ;;  %v3988_v48 = vadd.f32 %v3987_v35, %v5444_v23  ;;  %v5742_v27 = vld [vmem:[#allocation10_spill] sm:$0xff] }
 0x210   : > { %v2502_v57 = vpop.f32.mrf.mxu1 }
 0x211   : > { %2646 = vst [vmem:[#allocation2 + $0x50] sm:$0xff] %v2614_v60  ;;  %v2617_v29 = vadd.f32 %v2511_v17, %v5237_v30  ;;  %v2503_v1 = vadd.f32 %v3949_v34, %v2502_v57  ;;  %v5460_v13 = vpop.f32.mrf.mxu0  ;;  %v3982_v60 = vadd.f32 %v5427_v2, %v5421_v6  ;;  %v5743_v17 = vld [vmem:[#allocation9_spill] sm:$0xff] }
 0x212   : > { %v4174_v0 = vpop.f32.mrf.mxu1 }
 0x213   : > { %2649 = vst [vmem:[#allocation2 + $0x48] sm:$0xff] %v2617_v29  ;;  %v2615_v32 = vadd.f32 %v2503_v1, %v5225_v7  ;;  %v2524_v37 = vadd.f32 %v4174_v0, %v3964_v9  ;;  %v5465_v38 = vpop.f32.mrf.mxu0  ;;  %v3991_v29 = vadd.f32 %v3990_v51, %v5452_v8  ;;  %v5744_v1 = vld [vmem:[#allocation13_spill] sm:$0xff] }
 0x214   : > { %v2515_v22 = vpop.f32.mrf.mxu1 }
 0x215   : > { %2647 = vst [vmem:[#allocation2 + $0x68] sm:$0xff] %v2615_v32  ;;  %v2620_v30 = vadd.f32 %v2524_v37, %v5259_v11  ;;  %v2516_v28 = vadd.f32 %v3958_v45, %v2515_v22  ;;  %v5470_v10 = vpop.f32.mrf.mxu0  ;;  %v3985_v32 = vadd.f32 %v5439_v4, %v5434_v36  ;;  %v5745_v37 = vld [vmem:[#allocation11_spill] sm:$0xff] }
 0x216   : > { %v4175_v41 = vpop.f32.mrf.mxu1 }
 0x217   : > { %2652 = vst [vmem:[#allocation2 + $0xe8] sm:$0xff] %v2620_v30  ;;  %v2618_v7 = vadd.f32 %v2516_v28, %v5244_v44  ;;  %v2527_v39 = vadd.f32 %v4175_v41, %v3967_v31  ;;  %v5475_v33 = vpop.f32.mrf.mxu0  ;;  %v5746_v28 = vld [vmem:[#allocation14_spill] sm:$0xff] }
 0x218   : > { %v2518_v54 = vpop.f32.mrf.mxu1 }
 0x219   : > { %2650 = vst [vmem:[#allocation2 + $0x80] sm:$0xff] %v2618_v7  ;;  %v2621_v11 = vadd.f32 %v2527_v39, %v5267_v16  ;;  %v2519_v43 = vadd.f32 %v3961_v40, %v2518_v54  ;;  %v3998_v19 = vpop.f32.mrf.mxu0  ;;  %v3994_v7 = vadd.f32 %v5465_v38, %v5460_v13  ;;  %v5747_v39 = vld [vmem:[#allocation12_spill] sm:$0xff] }
 0x21a   : > { %v4178_v25 = vpop.f32.mrf.mxu1 }
 0x21b   : > { %2653 = vst [vmem:[#allocation2 + $0xb8] sm:$0xff] %v2621_v11  ;;  %v2619_v26 = vadd.f32 %v2519_v43, %v5740_v55  ;;  %v2540_v44 = vadd.f32 %v4178_v25, %v3976_v18  ;;  %v3999_v21 = vpop.f32.mrf.mxu0  ;;  %v5748_v43 = vld [vmem:[#allocation17_spill] sm:$0xff] }
 0x21c   : > { %v2531_v50 = vpop.f32.mrf.mxu1  ;;  %v4000_v30 = vadd.f32 %v3999_v21, %v3998_v19 }
 0x21d   : > { %2651 = vst [vmem:[#allocation2 + $0x88] sm:$0xff] %v2619_v26  ;;  %v2624_v61 = vadd.f32 %v2540_v44, %v5289_v52  ;;  %v2532_v58 = vadd.f32 %v3970_v63, %v2531_v50  ;;  %v4001_v16 = vpop.f32.mrf.mxu0  ;;  %v3997_v26 = vadd.f32 %v5475_v33, %v5470_v10  ;;  %v5749_v44 = vld [vmem:[#allocation15_spill] sm:$0xff] }
 0x21e   : > { %v4179_v5 = vpop.f32.mrf.mxu1 }
 0x21f   : > { %2656 = vst [vmem:[#allocation2 + $0x8] sm:$0xff] %v2624_v61  ;;  %v2622_v46 = vadd.f32 %v2532_v58, %v5741_v42  ;;  %v2543_v56 = vadd.f32 %v4179_v5, %v3979_v53  ;;  %v4002_v62 = vpop.f32.mrf.mxu0  ;;  %v5750_v61 = vld [vmem:[#allocation18_spill] sm:$0xff] }
 0x220   : > { %v2534_v20 = vpop.f32.mrf.mxu1  ;;  %v4003_v11 = vadd.f32 %v4002_v62, %v4001_v16 }
 0x221   : > { %2654 = vst [vmem:[#allocation2 + $0x60] sm:$0xff] %v2622_v46  ;;  %v2625_v49 = vadd.f32 %v2543_v56, %v5742_v27  ;;  %v2535_v24 = vadd.f32 %v3973_v14, %v2534_v20  ;;  %v4004_v34 = vpop.f32.mrf.mxu0  ;;  %v5751_v46 = vld [vmem:[#allocation16_spill] sm:$0xff] }
 0x222   : > { %v4182_v52 = vpop.f32.mrf.mxu1 }
 0x223   : > { %2657 = vst [vmem:[#allocation2 + $0x78] sm:$0xff] %v2625_v49  ;;  %v2623_v3 = vadd.f32 %v2535_v24, %v5743_v17  ;;  %v2556_v47 = vadd.f32 %v4182_v52, %v3988_v48  ;;  %v4005_v57 = vpop.f32.mrf.mxu0  ;;  %v5752_v48 = vld [vmem:[#allocation21_spill] sm:$0xff]  ;;  %v5753_v17 = vld [vmem:[#allocation19_spill] sm:$0xff] }
 0x224   : > { %v2547_v9 = vpop.f32.mrf.mxu1  ;;  %v4006_v42 = vadd.f32 %v4005_v57, %v4004_v34  ;;  %v5754_v57 = vld [vmem:[#allocation22_spill] sm:$0xff] }
 0x225   : > { %2655 = vst [vmem:[#allocation2 + $0xf0] sm:$0xff] %v2623_v3  ;;  %v2628_v23 = vadd.f32 %v2556_v47, %v5744_v1  ;;  %v2548_v35 = vadd.f32 %v3982_v60, %v2547_v9  ;;  %v4007_v0 = vpop.f32.mrf.mxu0 }
 0x226   : > { %v4183_v45 = vpop.f32.mrf.mxu1 }
 0x227   : > { %2660 = vst [vmem:[#allocation2 + $0x40] sm:$0xff] %v2628_v23  ;;  %v2626_v6 = vadd.f32 %v2548_v35, %v5745_v37  ;;  %v2559_v2 = vadd.f32 %v4183_v45, %v3991_v29  ;;  %v4008_v22 = vpop.f32.mrf.mxu0 }
 0x228   : > { %v2550_v31 = vpop.f32.mrf.mxu1  ;;  %v4009_v60 = vadd.f32 %v4008_v22, %v4007_v0 }
 0x229   : > { %2658 = vst [vmem:[#allocation2 + $0x38] sm:$0xff] %v2626_v6  ;;  %v2629_v41 = vadd.f32 %v2559_v2, %v5746_v28  ;;  %v2551_v8 = vadd.f32 %v3985_v32, %v2550_v31  ;;  %v4010_v51 = vpop.f32.mrf.mxu0  ;;  %v5755_v32 = vld [vmem:[#allocation20_spill] sm:$0xff] }
 0x22a   : > { %v4186_v40 = vpop.f32.mrf.mxu1 }
 0x22b   : > { %2661 = vst [vmem:[#allocation2 + $0xc8] sm:$0xff] %v2629_v41  ;;  %v2627_v54 = vadd.f32 %v2551_v8, %v5747_v39  ;;  %v2572_v36 = vadd.f32 %v4186_v40, %v4000_v30  ;;  %v4011_v4 = vpop.f32.mrf.mxu0  ;;  %v5756_v8 = vld [vmem:[#allocation23_spill] sm:$0xff] }
 0x22c   : > { %v2563_v18 = vpop.f32.mrf.mxu1  ;;  %v4012_v53 = vadd.f32 %v4011_v4, %v4010_v51 }
 0x22d   : > { %2659 = vst [vmem:[#allocation2 + $0x58] sm:$0xff] %v2627_v54  ;;  %v2632_v25 = vadd.f32 %v2572_v36, %v5748_v43  ;;  %v2564_v19 = vadd.f32 %v3994_v7, %v2563_v18  ;;  %v4013_v63 = vpop.f32.mrf.mxu0 }
 0x22e   : > { %v4187_v55 = vpop.f32.mrf.mxu1 }
 0x22f   : > { %2664 = vst [vmem:[#allocation2 + $0x70] sm:$0xff] %v2632_v25  ;;  %v2630_v21 = vadd.f32 %v2564_v19, %v5749_v44  ;;  %v2575_v13 = vadd.f32 %v4187_v55, %v4003_v11  ;;  %v4014_v38 = vpop.f32.mrf.mxu0 }
 0x230   : > { %v2566_v50 = vpop.f32.mrf.mxu1  ;;  %v4015_v33 = vadd.f32 %v4014_v38, %v4013_v63 }
 0x231   : > { %2662 = vst [vmem:[#allocation2 + $0xe0] sm:$0xff] %v2630_v21  ;;  %v2633_v58 = vadd.f32 %v2575_v13, %v5750_v61  ;;  %v2567_v16 = vadd.f32 %v3997_v26, %v2566_v50  ;;  %v4016_v5 = vpop.f32.mrf.mxu0 }
 0x232   : > { %v4190_v14 = vpop.f32.mrf.mxu1 }
 0x233   : > { %2665 = vst [vmem:[#allocation2 + $0xc0] sm:$0xff] %v2633_v58  ;;  %v2631_v56 = vadd.f32 %v2567_v16, %v5751_v46  ;;  %v2588_v62 = vadd.f32 %v4190_v14, %v4012_v53  ;;  %v4017_v20 = vpop.f32.mrf.mxu0 }
 0x234   : > { %v2579_v10 = vpop.f32.mrf.mxu1  ;;  %v4018_v45 = vadd.f32 %v4017_v20, %v4016_v5 }
 0x235   : > { %2663 = vst [vmem:[#allocation2 + $0x90] sm:$0xff] %v2631_v56  ;;  %v2636_v27 = vadd.f32 %v2588_v62, %v5752_v48  ;;  %v2580_v49 = vadd.f32 %v4006_v42, %v2579_v10  ;;  %v4019_v24 = vpop.f32.mrf.mxu0 }
 0x236   : > { %v4191_v52 = vpop.f32.mrf.mxu1 }
 0x237   : > { %2668 = vst [vmem:[#allocation2 + $0x10] sm:$0xff] %v2636_v27  ;;  %v2634_v3 = vadd.f32 %v2580_v49, %v5753_v17  ;;  %v2591_v47 = vadd.f32 %v4191_v52, %v4015_v33  ;;  %v4020_v9 = vpop.f32.mrf.mxu0 }
 0x238   : > { %v2582_v34 = vpop.f32.mrf.mxu1  ;;  %v4021_v28 = vadd.f32 %v4020_v9, %v4019_v24 }
 0x239   : > { %2666 = vst [vmem:[#allocation2 + $0xa8] sm:$0xff] %v2634_v3  ;;  %v2637_v29 = vadd.f32 %v2591_v47, %v5754_v57  ;;  %v2583_v1 = vadd.f32 %v4009_v60, %v2582_v34  ;;  %v4022_v23 = vpop.f32.mrf.mxu0 }
 0x23a   : > { %v4194_v35 = vpop.f32.mrf.mxu1 }
 0x23b   : > { %2669 = vst [vmem:[#allocation2 + $0x28] sm:$0xff] %v2637_v29  ;;  %v2635_v37 = vadd.f32 %v2583_v1, %v5755_v32  ;;  %v4023_v6 = vpop.f32.mrf.mxu0 }
 0x23c   : > { %v2595_v2 = vpop.f32.mrf.mxu1  ;;  %v4024_v0 = vadd.f32 %v4023_v6, %v4022_v23 }
 0x23d   : > { %2667 = vst [vmem:[#allocation2 + $0xd0] sm:$0xff] %v2635_v37  ;;  %v2596_v22 = vadd.f32 %v4018_v45, %v2595_v2  ;;  %v4025_v31 = vpop.f32.mrf.mxu0 }
 0x23e   : > { %v4195_v30 = vpop.f32.mrf.mxu1  ;;  %v2604_v41 = vadd.f32 %v4194_v35, %v4024_v0 }
 0x23f   : > { %v2638_v51 = vadd.f32 %v2596_v22, %v5756_v8  ;;  %v4026_v40 = vpop.f32.mrf.mxu0 }
 0x240   : > { %v2598_v7 = vpop.f32.mrf.mxu1  ;;  %v2640_v39 = vadd.f32 %v2604_v41, %v5419_v59  ;;  %v4027_v54 = vadd.f32 %v4026_v40, %v4025_v31 }
 0x241   : > { %2670 = vst [vmem:[#allocation2 + $0xa0] sm:$0xff] %v2638_v51  ;;  %v2599_v36 = vadd.f32 %v4021_v28, %v2598_v7 }
 0x242   : > { %2672 = vst [vmem:[#allocation2 + $0x20] sm:$0xff] %v2640_v39  ;;  %v2607_v4 = vadd.f32 %v4195_v30, %v4027_v54 }
 0x243   : > { %v2639_v18 = vadd.f32 %v2599_v36, %v5409_v12 }
 0x244   : > { %v2641_v11 = vadd.f32 %v2607_v4, %v5431_v15 }
 0x245   : > { %2671 = vst [vmem:[#allocation2 + $0xf8] sm:$0xff] %v2639_v18 }
 0x246   : > { %2673 = vst [vmem:[#allocation2 + $0x98] sm:$0xff] %v2641_v11 }
 0x247 PF: > { %p3396_p1 = scmp.ne.s32.totalorder %s4374_s21, 2 }
 0x249   : > { %2677 = sbr.rel (%p3396_p1) target bundleno = 668 (0x29c), region = 48 }
 0x24e   : > { %v2678_v43 = vld [vmem:[#allocation2 + $0xb0] sm:$0xff]  ;;  %v2679_v25 = vld [vmem:[#allocation2] sm:$0xff]  ;;  %v2680_v19 = vld [vmem:[#allocation2 + $0xd8] sm:$0xff] }
 0x24f   : > { %v3537_v59 = vpack.c.bf16 %v2679_v25, %v2678_v43  ;;  %v2870_v63 = vadd.f32 %v2679_v25, %v2678_v43  ;;  %v2908_v55 = vmul.f32 %v2678_v43, %v2678_v43  ;;  %v2909_v26 = vmul.f32 %v2679_v25, %v2679_v25  ;;  %v2681_v44 = vld [vmem:[#allocation2 + $0x18] sm:$0xff]  ;;  %v2682_v12 = vld [vmem:[#allocation2 + $0x50] sm:$0xff]  ;;  %v2683_v21 = vld [vmem:[#allocation2 + $0x68] sm:$0xff] }
 0x250   : > { %v3542_v15 = vpack.c.bf16 %v2681_v44, %v2680_v19  ;;  %v2910_v13 = vmul.f32 %v2680_v19, %v2680_v19  ;;  %v3547_v38 = vpack.c.bf16 %v2683_v21, %v2682_v12  ;;  %v2684_v50 = vld [vmem:[#allocation2 + $0x30] sm:$0xff]  ;;  %v2911_v58 = vmul.f32 %v2681_v44, %v2681_v44  ;;  %v2685_v16 = vld [vmem:[#allocation2 + $0x48] sm:$0xff]  ;;  %v2686_v5 = vld [vmem:[#allocation2 + $0x80] sm:$0xff] }
 0x251   : > { %3538 = vst [vmem:[%s4507_s14] sm:$0xff] %v3537_v59   ;;  %v2940_v53 = vadd.f32 %v2909_v26, %v2908_v55  ;;  %v2871_v61 = vadd.f32 %v2870_v63, %v2680_v19  ;;  %v5519_v14 = vld [vmem:[#allocation2 + $0x88] sm:$0xff]  ;;  %v3552_v42 = vpack.c.bf16 %v2685_v16, %v2684_v50  ;;  %v2912_v10 = vmul.f32 %v2682_v12, %v2682_v12  ;;  %v5526_v33 = vld [vmem:[#allocation2 + $0xb8] sm:$0xff]  ;;  %v5528_v48 = vld [vmem:[#allocation2 + $0x60] sm:$0xff] }
 0x252   : > { %3629 = vst [vmem:[%s4507_s14 + $0x8] sm:$0xff] %v3542_v15   ;;  %3630 = vst [vmem:[%s4507_s14 + $0x10] sm:$0xff] %v3547_v38   ;;  %v3557_v46 = vpack.c.bf16 %v5519_v14, %v2686_v5  ;;  %v5524_v56 = vld [vmem:[#allocation2 + $0xe8] sm:$0xff]  ;;  %v5530_v27 = vld [vmem:[#allocation2 + $0xf0] sm:$0xff]  ;;  %v2913_v3 = vmul.f32 %v2683_v21, %v2683_v21  ;;  %v2914_v45 = vmul.f32 %v2684_v50, %v2684_v50 }
 0x253   : > { %v2872_v62 = vadd.f32 %v2871_v61, %v2681_v44  ;;  %v2941_v20 = vadd.f32 %v2940_v53, %v2910_v13  ;;  %3631 = vst [vmem:[%s4507_s14 + $0x18] sm:$0xff] %v3552_v42   ;;  %v3562_v49 = vpack.c.bf16 %v5526_v33, %v5524_v56  ;;  %v3567_v24 = vpack.c.bf16 %v5530_v27, %v5528_v48  ;;  %v5538_v52 = vld [vmem:[#allocation2 + $0x8] sm:$0xff]  ;;  %v5540_v47 = vld [vmem:[#allocation2 + $0x78] sm:$0xff]  ;;  %v5552_v1 = vld [vmem:[#allocation2 + $0x40] sm:$0xff] }
 0x254   : > { %3632 = vst [vmem:[%s4507_s14 + $0x20] sm:$0xff] %v3557_v46   ;;  %v5542_v9 = vld [vmem:[#allocation2 + $0x38] sm:$0xff]  ;;  %v3572_v57 = vpack.c.bf16 %v5540_v47, %v5538_v52  ;;  %v5554_v32 = vld [vmem:[#allocation2 + $0xc8] sm:$0xff]  ;;  %v5556_v37 = vld [vmem:[#allocation2 + $0xe0] sm:$0xff]  ;;  %v2915_v28 = vmul.f32 %v2685_v16, %v2685_v16  ;;  %v2916_v4 = vmul.f32 %v2686_v5, %v2686_v5  ;;  %v2917_v55 = vmul.f32 %v5519_v14, %v5519_v14 }
 0x255   : > { %v2942_v60 = vadd.f32 %v2941_v20, %v2911_v58  ;;  %v2873_v17 = vadd.f32 %v2872_v62, %v2682_v12  ;;  %v5544_v34 = vld [vmem:[#allocation2 + $0x58] sm:$0xff]  ;;  %3633 = vst [vmem:[%s4507_s14 + $0x28] sm:$0xff] %v3562_v49   ;;  %3634 = vst [vmem:[%s4507_s14 + $0x30] sm:$0xff] %v3567_v24   ;;  %v5558_v6 = vld [vmem:[#allocation2 + $0x90] sm:$0xff]  ;;  %v3582_v2 = vpack.c.bf16 %v5554_v32, %v5552_v1 }
 0x256   : > { %v3577_v29 = vpack.c.bf16 %v5544_v34, %v5542_v9  ;;  %3635 = vst [vmem:[%s4507_s14 + $0x38] sm:$0xff] %v3572_v57   ;;  %v3587_v0 = vpack.c.bf16 %v5558_v6, %v5556_v37  ;;  %v5566_v22 = vld [vmem:[#allocation2 + $0x70] sm:$0xff]  ;;  %v5568_v41 = vld [vmem:[#allocation2 + $0xc0] sm:$0xff]  ;;  %v5570_v8 = vld [vmem:[#allocation2 + $0xa8] sm:$0xff]  ;;  %v2918_v13 = vmul.f32 %v5524_v56, %v5524_v56  ;;  %v2919_v53 = vmul.f32 %v5526_v33, %v5526_v33 }
 0x257   : > { %v2874_v23 = vadd.f32 %v2873_v17, %v2683_v21  ;;  %v2943_v35 = vadd.f32 %v2942_v60, %v2912_v10  ;;  %v5572_v51 = vld [vmem:[#allocation2 + $0xd0] sm:$0xff]  ;;  %3637 = vst [vmem:[%s4507_s14 + $0x48] sm:$0xff] %v3582_v2   ;;  %v3592_v40 = vpack.c.bf16 %v5568_v41, %v5566_v22  ;;  %v5582_v18 = vld [vmem:[#allocation2 + $0x28] sm:$0xff]  ;;  %v5584_v11 = vld [vmem:[#allocation2 + $0xa0] sm:$0xff]  ;;  %v2921_v42 = vmul.f32 %v5530_v27, %v5530_v27 }
 0x258   : > { %3636 = vst [vmem:[%s4507_s14 + $0x40] sm:$0xff] %v3577_v29   ;;  %3638 = vst [vmem:[%s4507_s14 + $0x50] sm:$0xff] %v3587_v0   ;;  %v3597_v7 = vpack.c.bf16 %v5572_v51, %v5570_v8  ;;  %v5580_v39 = vld [vmem:[#allocation2 + $0x10] sm:$0xff]  ;;  %v5586_v43 = vld [vmem:[#allocation2 + $0xf8] sm:$0xff] }
 0x259   : > { %v2944_v31 = vadd.f32 %v2943_v35, %v2913_v3  ;;  %v2875_v30 = vadd.f32 %v2874_v23, %v2684_v50  ;;  %3639 = vst [vmem:[%s4507_s14 + $0x58] sm:$0xff] %v3592_v40   ;;  %v3602_v25 = vpack.c.bf16 %v5582_v18, %v5580_v39  ;;  %v3607_v19 = vpack.c.bf16 %v5586_v43, %v5584_v11  ;;  %v5596_v26 = vld [vmem:[#allocation2 + $0x20] sm:$0xff]  ;;  %v5598_v44 = vld [vmem:[#allocation2 + $0x98] sm:$0xff] }
 0x25a   : > { %3640 = vst [vmem:[%s4507_s14 + $0x60] sm:$0xff] %v3597_v7   ;;  %v3612_v12 = vpack.c.bf16 %v5598_v44, %v5596_v26 }
 0x25b   : > { %v2876_v54 = vadd.f32 %v2875_v30, %v2685_v16  ;;  %v2945_v36 = vadd.f32 %v2944_v31, %v2914_v45  ;;  %3641 = vst [vmem:[%s4507_s14 + $0x68] sm:$0xff] %v3602_v25   ;;  %3642 = vst [vmem:[%s4507_s14 + $0x70] sm:$0xff] %v3607_v19   ;;  %v2920_v16 = vmul.f32 %v5528_v48, %v5528_v48 }
 0x25c   : > { %3643 = vst [vmem:[%s4507_s14 + $0x78] sm:$0xff] %v3612_v12  }
 0x25d   : > { %v2946_v59 = vadd.f32 %v2945_v36, %v2915_v28  ;;  %v2877_v63 = vadd.f32 %v2876_v54, %v2686_v5 }
 0x25f   : > { %v2878_v21 = vadd.f32 %v2877_v63, %v5519_v14  ;;  %v2947_v15 = vadd.f32 %v2946_v59, %v2916_v4 }
 0x261   : > { %v2948_v38 = vadd.f32 %v2947_v15, %v2917_v55  ;;  %v2879_v50 = vadd.f32 %v2878_v21, %v5524_v56  ;;  %v2922_v56 = vmul.f32 %v5538_v52, %v5538_v52 }
 0x263   : > { %v2880_v61 = vadd.f32 %v2879_v50, %v5526_v33  ;;  %v2949_v58 = vadd.f32 %v2948_v38, %v2918_v13  ;;  %v2923_v33 = vmul.f32 %v5540_v47, %v5540_v47 }
 0x265   : > { %v2950_v5 = vadd.f32 %v2949_v58, %v2919_v53  ;;  %v2881_v14 = vadd.f32 %v2880_v61, %v5528_v48  ;;  %v2924_v48 = vmul.f32 %v5542_v9, %v5542_v9 }
 0x267   : > { %v2882_v46 = vadd.f32 %v2881_v14, %v5530_v27  ;;  %v2951_v62 = vadd.f32 %v2950_v5, %v2920_v16  ;;  %v2925_v27 = vmul.f32 %v5544_v34, %v5544_v34 }
 0x269   : > { %v2952_v20 = vadd.f32 %v2951_v62, %v2921_v42  ;;  %v2883_v10 = vadd.f32 %v2882_v46, %v5538_v52  ;;  %v2926_v52 = vmul.f32 %v5552_v1, %v5552_v1 }
 0x26b   : > { %v2884_v49 = vadd.f32 %v2883_v10, %v5540_v47  ;;  %v2953_v24 = vadd.f32 %v2952_v20, %v2922_v56  ;;  %v2927_v47 = vmul.f32 %v5554_v32, %v5554_v32 }
 0x26d   : > { %v2954_v60 = vadd.f32 %v2953_v24, %v2923_v33  ;;  %v2885_v17 = vadd.f32 %v2884_v49, %v5542_v9  ;;  %v2928_v9 = vmul.f32 %v5556_v37, %v5556_v37 }
 0x26f   : > { %v2886_v3 = vadd.f32 %v2885_v17, %v5544_v34  ;;  %v2955_v57 = vadd.f32 %v2954_v60, %v2924_v48  ;;  %v2929_v34 = vmul.f32 %v5558_v6, %v5558_v6 }
 0x271   : > { %v2956_v29 = vadd.f32 %v2955_v57, %v2925_v27  ;;  %v2887_v23 = vadd.f32 %v2886_v3, %v5552_v1  ;;  %v2930_v1 = vmul.f32 %v5566_v22, %v5566_v22 }
 0x273   : > { %v2888_v35 = vadd.f32 %v2887_v23, %v5554_v32  ;;  %v2957_v45 = vadd.f32 %v2956_v29, %v2926_v52  ;;  %v2931_v32 = vmul.f32 %v5568_v41, %v5568_v41 }
 0x275   : > { %v2958_v2 = vadd.f32 %v2957_v45, %v2927_v47  ;;  %v2889_v0 = vadd.f32 %v2888_v35, %v5556_v37  ;;  %v2932_v37 = vmul.f32 %v5570_v8, %v5570_v8 }
 0x277   : > { %v2890_v31 = vadd.f32 %v2889_v0, %v5558_v6  ;;  %v2959_v30 = vadd.f32 %v2958_v2, %v2928_v9  ;;  %v2933_v6 = vmul.f32 %v5572_v51, %v5572_v51 }
 0x279   : > { %v2960_v28 = vadd.f32 %v2959_v30, %v2929_v34  ;;  %v2891_v40 = vadd.f32 %v2890_v31, %v5566_v22  ;;  %v2934_v22 = vmul.f32 %v5580_v39, %v5580_v39 }
 0x27b   : > { %v2892_v7 = vadd.f32 %v2891_v40, %v5568_v41  ;;  %v2961_v54 = vadd.f32 %v2960_v28, %v2930_v1  ;;  %v2935_v41 = vmul.f32 %v5582_v18, %v5582_v18 }
 0x27d   : > { %v2962_v36 = vadd.f32 %v2961_v54, %v2931_v32  ;;  %v2893_v4 = vadd.f32 %v2892_v7, %v5570_v8  ;;  %v2936_v8 = vmul.f32 %v5584_v11, %v5584_v11 }
 0x27f   : > { %v2894_v25 = vadd.f32 %v2893_v4, %v5572_v51  ;;  %v2963_v19 = vadd.f32 %v2962_v36, %v2932_v37  ;;  %v2937_v51 = vmul.f32 %v5586_v43, %v5586_v43 }
 0x281   : > { %v2964_v59 = vadd.f32 %v2963_v19, %v2933_v6  ;;  %v2895_v63 = vadd.f32 %v2894_v25, %v5580_v39  ;;  %v2938_v39 = vmul.f32 %v5596_v26, %v5596_v26 }
 0x283   : > { %v2896_v55 = vadd.f32 %v2895_v63, %v5582_v18  ;;  %v2965_v12 = vadd.f32 %v2964_v59, %v2934_v22  ;;  %v2939_v18 = vmul.f32 %v5598_v44, %v5598_v44 }
 0x285   : > { %v2966_v21 = vadd.f32 %v2965_v12, %v2935_v41  ;;  %v2897_v15 = vadd.f32 %v2896_v55, %v5584_v11 }
 0x287   : > { %v2898_v13 = vadd.f32 %v2897_v15, %v5586_v43  ;;  %v2967_v38 = vadd.f32 %v2966_v21, %v2936_v8 }
 0x289   : > { %v2968_v50 = vadd.f32 %v2967_v38, %v2937_v51  ;;  %v2899_v53 = vadd.f32 %v2898_v13, %v5596_v26 }
 0x28b   : > { %v2900_v61 = vadd.f32 %v2899_v53, %v5598_v44  ;;  %v2969_v11 = vadd.f32 %v2968_v50, %v2938_v39 }
 0x28d   : > { %v2901_v58 = vrot.slane %v2900_v61, 4  ;;  %v2970_v16 = vadd.f32 %v2969_v11, %v2939_v18 }
 0x28f   : > { %v2902_v5 = vadd.f32 %v2901_v58, %v2900_v61  ;;  %v2971_v14 = vrot.slane %v2970_v16, 4 }
 0x291   : > { %v2903_v43 = vrot.slane %v2902_v5, 2  ;;  %v2972_v42 = vadd.f32 %v2971_v14, %v2970_v16 }
 0x293   : > { %v2904_v46 = vadd.f32 %v2903_v43, %v2902_v5  ;;  %v2973_v62 = vrot.slane %v2972_v42, 2 }
 0x295   : > { %v2905_v56 = vrot.slane %v2904_v46, 1  ;;  %v2974_v20 = vadd.f32 %v2973_v62, %v2972_v42 }
 0x297   : > { %v2906_v10 = vadd.f32 %v2905_v56, %v2904_v46  ;;  %v2975_v26 = vrot.slane %v2974_v20, 1 }
 0x299   : > { %2907 = vst [vmem:[%s394_s17] sm:$0x1] %v2906_v10  ;;  %v2976_v44 = vadd.f32 %v2975_v26, %v2974_v20 }
 0x29b   : > { %2977 = vst [vmem:[%s401_s13] sm:$0x1] %v2976_v44 }
 0x29c PF: > { %s17_s27 = sadd.s32 1, %s4398_s27   ;;  %s5757_s23 = sld [smem:[#allocation3_spill]] }
 0x29d   : > { %p14_p2 = scmp.ge.s32.totalorder %s17_s27, 50   ;;  %s5758_s12 = sld [smem:[#allocation4_spill]] }
 0x29e   : > { %s5759_s16 = sld [smem:[#allocation5_spill]]  ;;  %s5761_s21 = smov %s4386_s24 }
 0x29f   : > { %s5760_s26 = sld [smem:[#allocation6_spill]]  ;;  %s5762_s22 = smov %s4390_s25 }
 0x2a0   :  { %16 = sbr.rel (!%p14_p2) target bundleno = 5 (0x5), region = 111 }
 0x2a3   : > { %s5763_s24 = smov %s5758_s12 }
 0x2a4   : > { %s5764_s25 = smov %s5759_s16 }

// kernel: _unnamed_function_.6
= control target key start
LH: loop header
LB: loop body
LE: loop exit
PB: predicated region body
PF: predicated region fallthrough
CT: control target
= control target key end

     0   :  { %s4533_s21 = smov 0   ;;  %s4535_s22 = smov 0   ;;  %s5827_s0 = inlined_call_operand.vmem [shape: bf16[2,8,16,16,128], index: 0, kind: input, shape index: {}]   ;;  %s5828_s1 = inlined_call_operand.vmem [shape: f32[2,1,128], index: 1, kind: input, shape index: {}]   ;;  %s5829_s2 = inlined_call_operand.vmem [shape: f32[2,1,128], index: 2, kind: input, shape index: {}]   ;;  %s5830_s3 = inlined_call_operand.vmem [shape: bf16[9,384,128], index: 3, kind: input, shape index: {}]   ;;  %s5831_s4 = inlined_call_operand.vmem [shape: bf16[2,8,16,16,128], index: 4, kind: output, shape index: {0}]   ;;  %s5832_s5 = inlined_call_operand.vmem [shape: f32[2,8,1,128], index: 5, kind: output, shape index: {1}]   ;;  %s5833_s6 = inlined_call_operand.vmem [shape: f32[2,8,1,128], index: 6, kind: output, shape index: {2}]  }
   0x1   :  { %5839 = sst [smem:[#allocation24_spill]] %s5828_s1  ;;  %s4537_s23 = smov 0  }
   0x2   :  { %5840 = sst [smem:[#allocation25_spill]] %s5829_s2  ;;  %s4539_s24 = smov 0  }
   0x3   :  { %s4541_s25 = smov 0   ;;  %s4543_s26 = smov 0  }
   0x4   :  { %s4545_s27 = smov 0  }
   0x5 LB: > { %5841 = sst [smem:[#allocation3_spill]] %s4490_s26  ;;  %s29_s28 = sadd.s32 1, %s4482_s24  ;;  %s4494_s27 = sphi %s4545_s27, %s17_s27   ;;  %s4490_s26 = sphi %s4543_s26, %s5892_s26   ;;  %s4486_s25 = sphi %s4541_s25, %s5896_s25   ;;  %s4482_s24 = sphi %s4539_s24, %s5895_s24   ;;  %s4478_s23 = sphi %s4537_s23, %s5889_s23   ;;  %s4474_s22 = sphi %s4535_s22, %s5894_s22   ;;  %s4470_s21 = sphi %s4533_s21, %s5893_s21  }
   0x6   : > { %p30_p0 = scmp.ge.s32.totalorder %s29_s28, 3  ;;  %s32_s29 = sadd.s32 1, %s4486_s25 }
   0x7   : > { %p3301_p1 = scmp.ge.s32.totalorder %s4494_s27, 1  ;;  %p288_p2 = scmp.lt.s32.totalorder %s4494_s27, 49 }
   0x8   : > { %s5898_s28 = smov (%p30_p0, %s29_s28), 0  ;;  %s5900_s29 = smov (!%p30_p0, %s32_s29), %s4486_s25 }
   0x9   : > { %5842 = sst [smem:[#allocation4_spill]] %s5898_s28  ;;  %p289_p3 = pnand %p3301_p1, %p288_p2 }
   0xa   : > { %p34_p4 = scmp.ge.s32.totalorder %s5900_s29, 8  ;;  %s36_s30 = sadd.s32 1, %s4490_s26 }
   0xb   : > { %s352_s7 = sadd.s32 (!%p289_p3), %s4470_s21, %s4474_s22  ;;  %p358_p6 = scmp.lt.s32.totalorder (!%p289_p3), %s4478_s23, 1 }
   0xc   : > { %s5902_s29 = smov (%p34_p4, %s5900_s29), 0  ;;  %s5904_s30 = smov (!%p34_p4, %s36_s30), %s4490_s26 }
   0xd   : > { %5843 = sst [smem:[#allocation5_spill]] %s5902_s29  ;;  %p38_p5 = scmp.ge.s32.totalorder %s5904_s30, 2 }
   0xe   : > { %292 = sbr.rel (%p289_p3) target bundleno = 668 (0x29c), region = 36  ;;  %s4581_s8 = sadd.s32 (!%p289_p3), 4294967295, %s352_s7 }
   0xf   : > { %s5906_s30 = smov (%p38_p5, %s5904_s30), 0  ;;  %p354_p7 = scmp.gt.s32.totalorder (!%p289_p3), %s4581_s8, 0 }
  0x10   : > { %5844 = sst [smem:[#allocation6_spill]] %s5906_s30  ;;  %p3303_p8 = scmp.lt.s32.totalorder (!%p289_p3), %s4581_s8, 7 }
  0x11   : > { %s5845_s1 = sld [smem:[#allocation24_spill]] (!%p289_p3)  ;;  %p381_p9 = scmp.lt.s32.totalorder (!%p289_p3), %s4474_s22, 7 }
  0x12   : > { %s5846_s2 = sld [smem:[#allocation25_spill]] (!%p289_p3)  ;;  %p3316_p11 = scmp.ne.s32.totalorder (!%p289_p3), %s4470_s21, 0 }
  0x13   : > { %s5908_s23 = smov (!%p358_p6, %s4478_s23), 1  ;;  %s5912_s22 = smov (!%p381_p9, %s4474_s22), 7 }
  0x14   : > { %s355_s9 = scalar_select %p354_p7, %s4581_s8, 0 }
  0x15   : > { %s3309_s13 = sshll.u32 %s5908_s23, 8  ;;  %s3314_s17 = sshll.u32 %s5908_s23, 3 }
  0x16   : > { %s5910_s9 = smov (!%p3303_p8, %s355_s9), 7  ;;  %s3311_s18 = sshll.u32 %s5912_s22, 5 }
  0x17   : > { %s4589_s12 = scalar_lea.vmem %s5845_s1, %s5908_s23  ;;  %p360_p10 = scmp.lt.s32.totalorder %s5910_s9, 7 }
  0x18   : > { %s4595_s16 = scalar_lea.vmem %s5846_s2, %s5908_s23  ;;  %s4598_s19 = sadd.s32 %s3314_s17, %s5912_s22 }
  0x19   : > { %s5914_s9 = smov (!%p360_p10, %s5910_s9), 7  ;;  %s385_s7 = sadd.s32 %s3311_s18, %s3309_s13 }
  0x1a   : > { %s3308_s20 = sshll.u32 %s5914_s9, 5  ;;  %s3313_s11 = sshll.u32 %s385_s7, 2 }
  0x1b   : > { %s364_s10 = sadd.s32 %s3309_s13, %s3308_s20  ;;  %s4603_s14 = scalar_lea.vmem %s5831_s4, %s3313_s11 }
  0x1c   : > { %s3310_s1 = sshll.u32 %s364_s10, 2  ;;  %s394_s17 = scalar_lea.vmem %s5832_s5, %s4598_s19 }
  0x1d   : > { %s4608_s23 = scalar_lea.vmem %s5827_s0, %s3310_s1  ;;  %s401_s13 = scalar_lea.vmem %s5833_s6, %s4598_s19 }
  0x1e   : > { %406 = sbr.rel (%p3316_p11) target bundleno = 52 (0x34), region = 40 }
  0x23   : > { %v4496_v0 = vmov 0.0  }
  0x24   : > { %407 = vst [vmem:[#allocation2 + $0xb0] sm:$0xff] %v4496_v0  ;;  %408 = vst [vmem:[#allocation2] sm:$0xff] %v4496_v0 }
  0x25   : > { %409 = vst [vmem:[#allocation2 + $0xd8] sm:$0xff] %v4496_v0  ;;  %410 = vst [vmem:[#allocation2 + $0x18] sm:$0xff] %v4496_v0 }
  0x26   : > { %411 = vst [vmem:[#allocation2 + $0x50] sm:$0xff] %v4496_v0  ;;  %412 = vst [vmem:[#allocation2 + $0x68] sm:$0xff] %v4496_v0 }
  0x27   : > { %413 = vst [vmem:[#allocation2 + $0x30] sm:$0xff] %v4496_v0  ;;  %414 = vst [vmem:[#allocation2 + $0x48] sm:$0xff] %v4496_v0 }
  0x28   : > { %415 = vst [vmem:[#allocation2 + $0x80] sm:$0xff] %v4496_v0  ;;  %416 = vst [vmem:[#allocation2 + $0x88] sm:$0xff] %v4496_v0 }
  0x29   : > { %417 = vst [vmem:[#allocation2 + $0xe8] sm:$0xff] %v4496_v0  ;;  %418 = vst [vmem:[#allocation2 + $0xb8] sm:$0xff] %v4496_v0 }
  0x2a   : > { %419 = vst [vmem:[#allocation2 + $0x60] sm:$0xff] %v4496_v0  ;;  %420 = vst [vmem:[#allocation2 + $0xf0] sm:$0xff] %v4496_v0 }
  0x2b   : > { %421 = vst [vmem:[#allocation2 + $0x8] sm:$0xff] %v4496_v0  ;;  %422 = vst [vmem:[#allocation2 + $0x78] sm:$0xff] %v4496_v0 }
  0x2c   : > { %423 = vst [vmem:[#allocation2 + $0x38] sm:$0xff] %v4496_v0  ;;  %424 = vst [vmem:[#allocation2 + $0x58] sm:$0xff] %v4496_v0 }
  0x2d   : > { %425 = vst [vmem:[#allocation2 + $0x40] sm:$0xff] %v4496_v0  ;;  %426 = vst [vmem:[#allocation2 + $0xc8] sm:$0xff] %v4496_v0 }
  0x2e   : > { %427 = vst [vmem:[#allocation2 + $0xe0] sm:$0xff] %v4496_v0  ;;  %428 = vst [vmem:[#allocation2 + $0x90] sm:$0xff] %v4496_v0 }
  0x2f   : > { %429 = vst [vmem:[#allocation2 + $0x70] sm:$0xff] %v4496_v0  ;;  %430 = vst [vmem:[#allocation2 + $0xc0] sm:$0xff] %v4496_v0 }
  0x30   : > { %431 = vst [vmem:[#allocation2 + $0xa8] sm:$0xff] %v4496_v0  ;;  %432 = vst [vmem:[#allocation2 + $0xd0] sm:$0xff] %v4496_v0 }
  0x31   : > { %433 = vst [vmem:[#allocation2 + $0x10] sm:$0xff] %v4496_v0  ;;  %434 = vst [vmem:[#allocation2 + $0x28] sm:$0xff] %v4496_v0 }
  0x32   : > { %435 = vst [vmem:[#allocation2 + $0xa0] sm:$0xff] %v4496_v0  ;;  %436 = vst [vmem:[#allocation2 + $0xf8] sm:$0xff] %v4496_v0 }
  0x33   : > { %437 = vst [vmem:[#allocation2 + $0x20] sm:$0xff] %v4496_v0  ;;  %438 = vst [vmem:[#allocation2 + $0x98] sm:$0xff] %v4496_v0 }
  0x34 PF: > { %p441_p12 = scmp.ge.s32.totalorder %s4581_s8, 0  ;;  %p442_p13 = scmp.le.s32.totalorder %s4581_s8, 7 }
  0x36   : > { %p443_p0 = pnand %p442_p13, %p441_p12 }
  0x38   : > { %446 = sbr.rel (%p443_p0) target bundleno = 583 (0x247), region = 44 }
  0x3d   : > { %s3533_s1 = smul.u32 576, %s4470_s21  ;;  %v5835_v1 = vmov 0   ;;  %v3720_v2 = vld [vmem:[%s4608_s23 + $0x58] sm:$0xff]   ;;  %v3567_v3 = vld [vmem:[%s4608_s23] sm:$0xff]   ;;  %v3710_v9 = vld [vmem:[%s4608_s23 + $0x8] sm:$0xff]   ;;  %vm837_vm0 = vcmask 1040384  }
  0x3e   : > { %1188 = vmatprep.mubr.bf16.mxu0 %v5835_v1  ;;  %v4632_v5 = vld [vmem:[%s4589_s12] ss:$0 sm:$0xff]  ;;  %v3612_v8 = vunpack.c.l.bf16 %v3720_v2  ;;  %v3613_v11 = vunpack.c.h.bf16 %v3720_v2  ;;  %v3568_v13 = vunpack.c.l.bf16 %v3567_v3  ;;  %v3569_v17 = vunpack.c.h.bf16 %v3567_v3 }
  0x3f   : > { %s4627_s28 = scalar_lea.vmem %s5830_s3, %s3533_s1  ;;  %v3721_v6 = vld [vmem:[%s4608_s23 + $0x60] sm:$0xff]   ;;  %vm838_vm1 = vsmask.f32 256  ;;  %v3572_v21 = vunpack.c.l.bf16 %v3710_v9  ;;  %v704_v25 = vrot.slane %v5835_v1, 7  ;;  %v3573_v30 = vunpack.c.h.bf16 %v3710_v9 }
  0x40   : > { %v4366_v4 = vld [vmem:[%s4627_s28 + $0x78] sm:$0xff]   ;;  %v4368_v10 = vld [vmem:[%s4627_s28 + $0x70] sm:$0xff]   ;;  %v4370_v14 = vld [vmem:[%s4627_s28 + $0x68] sm:$0xff]   ;;  %v540_v15 = vmul.f32 %v3612_v8, %v4632_v5  ;;  %v3616_v18 = vunpack.c.l.bf16 %v3721_v6  ;;  %v541_v19 = vmul.f32 %v3613_v11, %v4632_v5  ;;  %v3617_v20 = vunpack.c.h.bf16 %v3721_v6 }
  0x41   : > { %v4367_v7 = vld [vmem:[%s4627_s28 + $0x38] sm:$0xff]   ;;  %3740 = vmatprep.subr.bf16.mxu0 %v4366_v4  ;;  %4292 = vmatprep.subr.bf16.mxu1 %v4366_v4  ;;  %v4369_v12 = vld [vmem:[%s4627_s28 + $0x30] sm:$0xff]   ;;  %v4642_v16 = vld [vmem:[%s4595_s16] ss:$0 sm:$0xff]  ;;  %v518_v23 = vmul.f32 %v3568_v13, %v4632_v5  ;;  %v519_v28 = vmul.f32 %v3569_v17, %v4632_v5  ;;  %v520_v33 = vmul.f32 %v3572_v21, %v4632_v5 }
  0x42   : > { %3741 = vmatpush3.bf16.msra.mxu0 %v4367_v7  ;;  %4300 = vmatpush3.bf16.msra.mxu1 %v4367_v7  ;;  %v4371_v22 = vld [vmem:[%s4627_s28 + $0x28] sm:$0xff]   ;;  %v4372_v24 = vld [vmem:[%s4627_s28 + $0x60] sm:$0xff]   ;;  %v579_v26 = vadd.f32 %v4642_v16, %v540_v15  ;;  %vm4651_vm2 = vmand %vm837_vm0, %vm838_vm1  ;;  %v542_v29 = vmul.f32 %v3616_v18, %v4632_v5  ;;  %v580_v31 = vadd.f32 %v4642_v16, %v541_v19 }
  0x43   : > { %3742 = vmatprep.subr.bf16.mxu0 %v4368_v10  ;;  %4293 = vmatprep.subr.bf16.mxu1 %v4368_v10  ;;  %v543_v32 = vmul.f32 %v3617_v20, %v4632_v5  ;;  %v4373_v34 = vld [vmem:[%s4627_s28 + $0x20] sm:$0xff]   ;;  %v557_v35 = vadd.f32 %v4642_v16, %v518_v23  ;;  %v4374_v36 = vld [vmem:[%s4627_s28 + $0x58] sm:$0xff]   ;;  %v4665_v37 = vsel %vm4651_vm2, 0, %v704_v25  ;;  %v558_v38 = vadd.f32 %v4642_v16, %v519_v28  ;;  %v4376_v44 = vld [vmem:[%s4627_s28 + $0x50] sm:$0xff]  }
  0x44   : > { %vm611_vm3 = vcmp.ge.f32.partialorder %v579_v26, 0.0  ;;  %v581_v39 = vadd.f32 %v4642_v16, %v542_v29  ;;  %v521_v40 = vmul.f32 %v3573_v30, %v4632_v5  ;;  %v4375_v41 = vld [vmem:[%s4627_s28 + $0x18] sm:$0xff]   ;;  %vm612_vm4 = vcmp.ge.f32.partialorder %v580_v31, 0.0  ;;  %v4377_v50 = vld [vmem:[%s4627_s28 + $0x10] sm:$0xff]   ;;  %v4378_v51 = vld [vmem:[%s4627_s28 + $0x48] sm:$0xff]  }
  0x45   : > { %v582_v42 = vadd.f32 %v4642_v16, %v543_v32  ;;  %v559_v43 = vadd.f32 %v4642_v16, %v520_v33  ;;  %vm589_vm5 = vcmp.ge.f32.partialorder %v557_v35, 0.0  ;;  %v643_v45 = vmul.f32 0.01, %v579_v26  ;;  %v4379_v63 = vld [vmem:[%s4627_s28 + $0x8] sm:$0xff]   ;;  %v4380_v4 = vld [vmem:[%s4627_s28 + $0x40] sm:$0xff]   ;;  %v3711_v19 = vld [vmem:[%s4608_s23 + $0x10] sm:$0xff]  }
  0x46   : > { %3743 = vmatpush3.bf16.msra.mxu0 %v4369_v12  ;;  %4301 = vmatpush3.bf16.msra.mxu1 %v4369_v12  ;;  %v644_v46 = vmul.f32 0.01, %v580_v31  ;;  %vm590_vm6 = vcmp.ge.f32.partialorder %v558_v38, 0.0  ;;  %vm613_vm7 = vcmp.ge.f32.partialorder %v581_v39, 0.0  ;;  %v560_v47 = vadd.f32 %v4642_v16, %v521_v40  ;;  %v3722_v8 = vld [vmem:[%s4608_s23 + $0x68] sm:$0xff]   ;;  %v4381_v9 = vld [vmem:[%s4627_s28] sm:$0xff]  }
  0x47   : > { %3744 = vmatprep.subr.bf16.mxu0 %v4370_v14  ;;  %4294 = vmatprep.subr.bf16.mxu1 %v4370_v14  ;;  %v675_v48 = vsel %vm611_vm3, %v579_v26, %v643_v45  ;;  %vm614_vm8 = vcmp.ge.f32.partialorder %v582_v42, 0.0  ;;  %vm591_vm9 = vcmp.ge.f32.partialorder %v559_v43, 0.0  ;;  %v621_v53 = vmul.f32 0.01, %v557_v35  ;;  %v4382_v20 = vld [vmem:[%s4627_s28 + $0xb8] sm:$0xff]   ;;  %v3723_v29 = vld [vmem:[%s4608_s23 + $0x70] sm:$0xff]  }
  0x48   : > { %v676_v49 = vsel %vm612_vm4, %v580_v31, %v644_v46  ;;  %v622_v54 = vmul.f32 0.01, %v558_v38  ;;  %v645_v55 = vmul.f32 0.01, %v581_v39  ;;  %v646_v56 = vmul.f32 0.01, %v582_v42 }
  0x49   : > { %v4678_v52 = vpack.c.bf16 %v676_v49, %v675_v48  ;;  %v653_v59 = vsel %vm589_vm5, %v557_v35, %v621_v53  ;;  %vm592_vm10 = vcmp.ge.f32.partialorder %v560_v47, 0.0  ;;  %v623_v6 = vmul.f32 0.01, %v559_v43  ;;  %v4383_v21 = vld [vmem:[%s4627_s28 + $0x178] sm:$0xff]  }
  0x4a   : > { %3745 = vmatpush3.bf16.msra.mxu0 %v4371_v22  ;;  %4302 = vmatpush3.bf16.msra.mxu1 %v4371_v22  ;;  %v654_v60 = vsel %vm590_vm6, %v558_v38, %v622_v54  ;;  %v677_v61 = vsel %vm613_vm7, %v581_v39, %v645_v55  ;;  %v678_v62 = vsel %vm614_vm8, %v582_v42, %v646_v56  ;;  %v624_v7 = vmul.f32 0.01, %v560_v47  ;;  %v4384_v39 = vld [vmem:[%s4627_s28 + $0xb0] sm:$0xff]   ;;  %v3712_v55 = vld [vmem:[%s4608_s23 + $0x18] sm:$0xff]  }
  0x4b   : > { %3746 = vmatprep.subr.bf16.mxu0 %v4372_v24  ;;  %4295 = vmatprep.subr.bf16.mxu1 %v4372_v24  ;;  %v786_v57 = vshrl.u32 %v4678_v52, 16  ;;  %v789_v58 = vshll.u32 %v4678_v52, 16  ;;  %v4690_v2 = vpack.c.bf16 %v654_v60, %v653_v59  ;;  %v4692_v3 = vpack.c.bf16 %v678_v62, %v677_v61  ;;  %v4385_v60 = vld [vmem:[%s4627_s28 + $0xa8] sm:$0xff]  }
  0x4c   : > { %1284 = vmatprep.mubr.bf16.mxu1 %v4678_v52  ;;  %v655_v15 = vsel %vm591_vm9, %v559_v43, %v623_v6  ;;  %v656_v17 = vsel %vm592_vm10, %v560_v47, %v624_v7  ;;  %v3620_v18 = vunpack.c.l.bf16 %v3722_v8  ;;  %v3621_v25 = vunpack.c.h.bf16 %v3722_v8 }
  0x4d   : > { %v788_v0 = vrot.slane %v786_v57, 7  ;;  %v709_v11 = vshrl.u32 %v4690_v2, 16  ;;  %v712_v12 = vshll.u32 %v4690_v2, 16  ;;  %v793_v13 = vshrl.u32 %v4692_v3, 16 }
  0x4e   : > { %3747 = vmatpush3.bf16.msra.mxu0 %v4373_v34  ;;  %4303 = vmatpush3.bf16.msra.mxu1 %v4373_v34  ;;  %v796_v14 = vshll.u32 %v4692_v3, 16  ;;  %v4712_v24 = vpack.c.bf16 %v656_v17, %v655_v15  ;;  %v544_v26 = vmul.f32 %v3620_v18, %v4632_v5  ;;  %v3576_v28 = vunpack.c.l.bf16 %v3711_v19  ;;  %v4386_v18 = vld [vmem:[%s4627_s28 + $0xa0] sm:$0xff]  }
  0x4f   : > { %3748 = vmatprep.subr.bf16.mxu0 %v4374_v36  ;;  %4296 = vmatprep.subr.bf16.mxu1 %v4374_v36  ;;  %v791_v10 = vor.u32 %v789_v58, %v788_v0  ;;  %v711_v22 = vrot.slane %v709_v11, 7  ;;  %v795_v23 = vrot.slane %v793_v13, 7  ;;  %v3577_v32 = vunpack.c.h.bf16 %v3711_v19 }
  0x50   : > { %v3624_v33 = vunpack.c.l.bf16 %v3723_v29  ;;  %v545_v35 = vmul.f32 %v3621_v25, %v4632_v5  ;;  %v583_v36 = vadd.f32 %v4642_v16, %v544_v26  ;;  %v716_v38 = vshrl.u32 %v4712_v24, 16 }
  0x51   : > { %v714_v30 = vor.u32 %v712_v12, %v711_v22  ;;  %v798_v31 = vor.u32 %v796_v14, %v795_v23  ;;  %v4722_v34 = vsel %vm4651_vm2, 0, %v791_v10  ;;  %v719_v42 = vshll.u32 %v4712_v24, 16 }
  0x52   : > { %3749 = vmatpush3.bf16.msra.mxu0 %v4375_v41  ;;  %4304 = vmatpush3.bf16.msra.mxu1 %v4375_v41  ;;  %v4387_v41 = vld [vmem:[%s4627_s28 + $0x170] sm:$0xff]   ;;  %v522_v43 = vmul.f32 %v3576_v28, %v4632_v5  ;;  %v584_v46 = vadd.f32 %v4642_v16, %v545_v35  ;;  %vm615_vm11 = vcmp.ge.f32.partialorder %v583_v36, 0.0  ;;  %v647_v47 = vmul.f32 0.01, %v583_v36 }
  0x53   : > { %3750 = vmatprep.subr.bf16.mxu0 %v4376_v44  ;;  %4297 = vmatprep.subr.bf16.mxu1 %v4376_v44  ;;  %v4730_v40 = vsel %vm4651_vm2, 0, %v714_v30  ;;  %v523_v44 = vmul.f32 %v3577_v32, %v4632_v5  ;;  %v4738_v45 = vsel %vm4651_vm2, 0, %v798_v31  ;;  %v718_v62 = vrot.slane %v716_v38, 7 }
  0x54   : > { %v561_v48 = vadd.f32 %v4642_v16, %v522_v43  ;;  %vm616_vm12 = vcmp.ge.f32.partialorder %v584_v46, 0.0  ;;  %v648_v53 = vmul.f32 0.01, %v584_v46  ;;  %v679_v54 = vsel %vm615_vm11, %v583_v36, %v647_v47  ;;  %v4388_v47 = vld [vmem:[%s4627_s28 + $0x98] sm:$0xff]  }
  0x55   : > { %v562_v49 = vadd.f32 %v4642_v16, %v523_v44  ;;  %v721_v28 = vor.u32 %v719_v42, %v718_v62  ;;  %v857_v36 = vrot.slane %v5835_v1, 1  ;;  %vm908_vm3 = vcmask 1047552   ;;  %v4404_v1 = vld [vmem:[%s4627_s28 + $0x118] sm:$0xff]  }
  0x56   : > { %3751 = vmatpush3.bf16.msra.mxu0 %v4377_v50  ;;  %4305 = vmatpush3.bf16.msra.mxu1 %v4377_v50  ;;  %v3625_v50 = vunpack.c.h.bf16 %v3723_v29  ;;  %vm593_vm13 = vcmp.ge.f32.partialorder %v561_v48, 0.0  ;;  %v625_v56 = vmul.f32 0.01, %v561_v48  ;;  %v680_v61 = vsel %vm616_vm12, %v584_v46, %v648_v53  ;;  %v3713_v46 = vld [vmem:[%s4608_s23 + $0x20] sm:$0xff]   ;;  %v4389_v53 = vld [vmem:[%s4627_s28 + $0x90] sm:$0xff]  }
  0x57   : > { %3752 = vmatprep.subr.bf16.mxu0 %v4378_v51  ;;  %4298 = vmatprep.subr.bf16.mxu1 %v4378_v51  ;;  %v546_v51 = vmul.f32 %v3624_v33, %v4632_v5  ;;  %vm594_vm14 = vcmp.ge.f32.partialorder %v562_v49, 0.0  ;;  %v626_v59 = vmul.f32 0.01, %v562_v49  ;;  %v4755_v6 = vpack.c.bf16 %v680_v61, %v679_v54 }
  0x58   : > { %v657_v7 = vsel %vm593_vm13, %v561_v48, %v625_v56  ;;  %vm909_vm4 = vsmask.f32 7424 }
  0x59   : > { %v585_v0 = vadd.f32 %v4642_v16, %v546_v51  ;;  %v658_v8 = vsel %vm594_vm14, %v562_v49, %v626_v59  ;;  %v5838_v19 = vshrl.u32 %v4755_v6, 16  ;;  %v4789_v49 = vsel %vm4651_vm2, 0, %v721_v28  ;;  %v3714_v51 = vld [vmem:[%s4608_s23 + $0x28] sm:$0xff]   ;;  %vm4804_vm6 = vmand %vm908_vm3, %vm909_vm4 }
  0x5a   : > { %3753 = vmatpush3.bf16.msra.mxu0 %v4379_v63  ;;  %4306 = vmatpush3.bf16.msra.mxu1 %v4379_v63  ;;  %v547_v63 = vmul.f32 %v3625_v50, %v4632_v5  ;;  %v4757_v10 = vpack.c.bf16 %v658_v8, %v657_v7  ;;  %v3584_v59 = vunpack.c.l.bf16 %v3713_v46 }
  0x5b   : > { %3754 = vmatprep.subr.bf16.mxu0 %v4380_v4  ;;  %4299 = vmatprep.subr.bf16.mxu1 %v4380_v4  ;;  %v4391_v4 = vld [vmem:[%s4627_s28 + $0x168] sm:$0xff]   ;;  %vm617_vm15 = vcmp.ge.f32.partialorder %v585_v0, 0.0  ;;  %v649_v17 = vmul.f32 0.01, %v585_v0  ;;  %v802_v29 = vrot.slane %v5838_v19, 7  ;;  %v4407_v19 = vld [vmem:[%s4627_s28 + $0x110] sm:$0xff]  }
  0x5c   : > { %v586_v15 = vadd.f32 %v4642_v16, %v547_v63  ;;  %v723_v26 = vshrl.u32 %v4757_v10, 16  ;;  %v726_v35 = vshll.u32 %v4757_v10, 16  ;;  %v526_v8 = vmul.f32 %v3584_v59, %v4632_v5 }
  0x5d   : > { %v681_v25 = vsel %vm617_vm15, %v585_v0, %v649_v17  ;;  %v3585_v0 = vunpack.c.h.bf16 %v3713_v46 }
  0x5e   : > { %3755 = vmatpush3.bf16.msra.mxu0 %v4381_v9  ;;  %4307 = vmatpush3.bf16.msra.mxu1 %v4381_v9  ;;  %v3580_v9 = vunpack.c.l.bf16 %v3712_v55  ;;  %vm618_vm0 = vcmp.ge.f32.partialorder %v586_v15, 0.0  ;;  %v650_v23 = vmul.f32 0.01, %v586_v15  ;;  %v725_v33 = vrot.slane %v723_v26, 7 }
  0x5f   : > { %4148 = vmatprep.subr.bf16.mxu1 %v4382_v20  ;;  %4196 = vmatprep.subr.bf16.mxu0 %v4383_v21 }
  0x60   : > { %v524_v22 = vmul.f32 %v3580_v9, %v4632_v5  ;;  %v682_v32 = vsel %vm618_vm0, %v586_v15, %v650_v23  ;;  %v728_v54 = vor.u32 %v726_v35, %v725_v33  ;;  %v3588_v9 = vunpack.c.l.bf16 %v3714_v51 }
  0x61   : > { %1189 = vmatmul.mubr.bf16.vlgmr.msra.gmra.mxu0 %v4665_v37  ;;  %1285 = vmatmul.mubr.bf16.vlgmr.msra.gmra.mxu1 %v4722_v34  ;;  %v4781_v43 = vpack.c.bf16 %v682_v32, %v681_v25  ;;  %v859_v15 = vrot.slane %v712_v12, 1  ;;  %v4825_v25 = vsel %vm4804_vm6, %v857_v36, 0  ;;  %v565_v12 = vadd.f32 %v4642_v16, %v526_v8 }
  0x62   : > { %4149 = vmatpush3.bf16.msra.mxu1 %v4382_v20  ;;  %4197 = vmatpush3.bf16.msra.mxu0 %v4383_v21  ;;  %v803_v20 = vshll.u32 %v4755_v6, 16  ;;  %v3581_v21 = vunpack.c.h.bf16 %v3712_v55  ;;  %v563_v31 = vadd.f32 %v4642_v16, %v524_v22  ;;  %v4398_v22 = vld [vmem:[%s4627_s28 + $0x158] sm:$0xff]   ;;  %v4821_v23 = vsel %vm4651_vm2, 0, %v728_v54 }
  0x63   : > { %4150 = vmatprep.subr.bf16.mxu1 %v4384_v39  ;;  %1196 = vmatprep.mubr.bf16.mxu0 %v4690_v2  ;;  %v5836_v50 = vshrl.u32 %v4781_v43, 16  ;;  %v5837_v62 = vshll.u32 %v4781_v43, 16  ;;  %v528_v28 = vmul.f32 %v3588_v9, %v4632_v5  ;;  %vm597_vm7 = vcmp.ge.f32.partialorder %v565_v12, 0.0 }
  0x64   : > { %1292 = vmatprep.mubr.bf16.mxu1 %v4692_v3  ;;  %4198 = vmatprep.subr.bf16.mxu0 %v4387_v41  ;;  %v525_v30 = vmul.f32 %v3581_v21, %v4632_v5  ;;  %vm595_vm1 = vcmp.ge.f32.partialorder %v563_v31, 0.0  ;;  %v627_v48 = vmul.f32 0.01, %v563_v31  ;;  %v3589_v21 = vunpack.c.h.bf16 %v3714_v51 }
  0x65   : > { %v809_v61 = vrot.slane %v5836_v50, 7  ;;  %v629_v36 = vmul.f32 0.01, %v565_v12 }
  0x66   : > { %4151 = vmatpush3.bf16.msra.mxu1 %v4384_v39  ;;  %4199 = vmatpush3.bf16.msra.mxu0 %v4387_v41  ;;  %v4395_v39 = vld [vmem:[%s4627_s28 + $0x160] sm:$0xff]   ;;  %v805_v41 = vor.u32 %v803_v20, %v802_v29  ;;  %v564_v44 = vadd.f32 %v4642_v16, %v525_v30  ;;  %v659_v56 = vsel %vm595_vm1, %v563_v31, %v627_v48  ;;  %v4390_v30 = vld [vmem:[%s4627_s28 + $0x88] sm:$0xff]  }
  0x67   : > { %4152 = vmatprep.subr.bf16.mxu1 %v4385_v60  ;;  %4200 = vmatprep.subr.bf16.mxu0 %v4391_v4  ;;  %v812_v29 = vor.u32 %v5837_v62, %v809_v61  ;;  %v529_v48 = vmul.f32 %v3589_v21, %v4632_v5  ;;  %v661_v54 = vsel %vm597_vm7, %v565_v12, %v629_v36  ;;  %v4974_v62 = vld [vmem:[%s4595_s16] ss:$0 sm:$0xff] }
  0x68   : > { %vm596_vm5 = vcmp.ge.f32.partialorder %v564_v44, 0.0  ;;  %v628_v55 = vmul.f32 0.01, %v564_v44 }
  0x69   : > { %1197 = vmatmul.mubr.bf16.gmra.mxu0 %v4730_v40  ;;  %1293 = vmatmul.mubr.bf16.gmra.mxu1 %v4738_v45  ;;  %v568_v61 = vadd.f32 %v4642_v16, %v529_v48  ;;  %v3717_v48 = vld [vmem:[%s4608_s23 + $0x40] sm:$0xff]  }
  0x6a   : > { %4153 = vmatpush3.bf16.msra.mxu1 %v4385_v60  ;;  %1204 = vmatprep.mubr.bf16.mxu0 %v4712_v24  ;;  %v4797_v60 = vsel %vm4651_vm2, 0, %v805_v41  ;;  %v660_v7 = vsel %vm596_vm5, %v564_v44, %v628_v55  ;;  %v863_v41 = vrot.slane %v726_v35, 1  ;;  %v4403_v44 = vld [vmem:[%s4627_s28 + $0x150] sm:$0xff]   ;;  %v567_v55 = vadd.f32 %v4642_v16, %v528_v28  ;;  %v4392_v35 = vld [vmem:[%s4627_s28 + $0x80] sm:$0xff]   ;;  %v4406_v28 = vld [vmem:[%s4627_s28 + $0x148] sm:$0xff]  }
  0x6b   : > { %4154 = vmatprep.subr.bf16.mxu1 %v4386_v18  ;;  %1300 = vmatprep.mubr.bf16.mxu1 %v4755_v6  ;;  %v4813_v17 = vpack.c.bf16 %v660_v7, %v659_v56  ;;  %v860_v7 = vor.u32 %v859_v15, %v709_v11  ;;  %vm600_vm10 = vcmp.ge.f32.partialorder %v568_v61, 0.0 }
  0x6c   : > { %4201 = vmatpush3.bf16.msra.mxu0 %v4391_v4  ;;  %v3715_v4 = vld [vmem:[%s4608_s23 + $0x30] sm:$0xff]   ;;  %vm599_vm9 = vcmp.ge.f32.partialorder %v567_v55, 0.0 }
  0x6d   : > { %4202 = vmatprep.subr.bf16.mxu0 %v4395_v39  ;;  %v730_v31 = vshrl.u32 %v4813_v17, 16  ;;  %v3592_v33 = vunpack.c.l.bf16 %v3715_v4  ;;  %v733_v46 = vshll.u32 %v4813_v17, 16  ;;  %v3593_v56 = vunpack.c.h.bf16 %v3715_v4 }
  0x6e   : > { %4155 = vmatpush3.bf16.msra.mxu1 %v4386_v18  ;;  %v527_v18 = vmul.f32 %v3585_v0, %v4632_v5  ;;  %v631_v4 = vmul.f32 0.01, %v567_v55  ;;  %v4869_v36 = vsel %vm4804_vm6, %v860_v7, 0 }
  0x6f   : > { %4156 = vmatprep.subr.bf16.mxu1 %v4388_v47  ;;  %v732_v51 = vrot.slane %v730_v31, 7  ;;  %v530_v0 = vmul.f32 %v3592_v33, %v4632_v5  ;;  %v531_v21 = vmul.f32 %v3593_v56, %v4632_v5  ;;  %v865_v12 = vrot.slane %v733_v46, 1 }
  0x70   : > { %4203 = vmatpush3.bf16.msra.mxu0 %v4395_v39  ;;  %v566_v32 = vadd.f32 %v4642_v16, %v527_v18  ;;  %v861_v39 = vrot.slane %v719_v42, 1  ;;  %v4846_v42 = vsel %vm4651_vm2, 0, %v812_v29  ;;  %v632_v18 = vmul.f32 0.01, %v568_v61 }
  0x71   : > { %1205 = vmatmul.mubr.bf16.gmra.mxu0 %v4789_v49  ;;  %1301 = vmatmul.mubr.bf16.gmra.mxu1 %v4797_v60  ;;  %v735_v11 = vor.u32 %v733_v46, %v732_v51  ;;  %v569_v29 = vadd.f32 %v4642_v16, %v530_v0  ;;  %v864_v46 = vor.u32 %v863_v41, %v723_v26  ;;  %v4394_v51 = vld [vmem:[%s4627_s28 + $0xf8] sm:$0xff]  }
  0x72   : > { %4157 = vmatpush3.bf16.msra.mxu1 %v4388_v47  ;;  %1212 = vmatprep.mubr.bf16.mxu0 %v4757_v10  ;;  %vm598_vm8 = vcmp.ge.f32.partialorder %v566_v32, 0.0  ;;  %v630_v47 = vmul.f32 0.01, %v566_v32  ;;  %v862_v9 = vor.u32 %v861_v39, %v716_v38  ;;  %v664_v38 = vsel %vm600_vm10, %v568_v61, %v632_v18  ;;  %v4393_v39 = vld [vmem:[%s4627_s28 + $0x138] sm:$0xff]   ;;  %v4397_v18 = vld [vmem:[%s4627_s28 + $0xf0] sm:$0xff]  }
  0x73   : > { %4158 = vmatprep.subr.bf16.mxu1 %v4389_v53  ;;  %1308 = vmatprep.mubr.bf16.mxu1 %v4781_v43  ;;  %vm601_vm11 = vcmp.ge.f32.partialorder %v569_v29, 0.0  ;;  %v866_v61 = vor.u32 %v865_v12, %v730_v31  ;;  %v4883_v26 = vsel %vm4651_vm2, 0, %v735_v11  ;;  %v4893_v31 = vsel %vm4804_vm6, %v864_v46, 0  ;;  %v3718_v12 = vld [vmem:[%s4608_s23 + $0x48] sm:$0xff]  }
  0x74   : > { %4204 = vmatprep.subr.bf16.mxu0 %v4398_v22  ;;  %v662_v59 = vsel %vm598_vm8, %v566_v32, %v630_v47  ;;  %v570_v32 = vadd.f32 %v4642_v16, %v531_v21  ;;  %v4887_v41 = vsel %vm4804_vm6, %v862_v9, 0 }
  0x75   : > { %4205 = vmatpush3.bf16.msra.mxu0 %v4398_v22  ;;  %v4853_v8 = vpack.c.bf16 %v662_v59, %v661_v54  ;;  %v663_v22 = vsel %vm599_vm9, %v567_v55, %v631_v4  ;;  %v633_v55 = vmul.f32 0.01, %v569_v29 }
  0x76   : > { %4159 = vmatpush3.bf16.msra.mxu1 %v4389_v53  ;;  %4206 = vmatprep.subr.bf16.mxu0 %v4403_v44  ;;  %v3716_v53 = vld [vmem:[%s4608_s23 + $0x38] sm:$0xff]   ;;  %v634_v56 = vmul.f32 0.01, %v570_v32  ;;  %vm602_vm12 = vcmp.ge.f32.partialorder %v570_v32, 0.0 }
  0x77   : > { %4160 = vmatprep.subr.bf16.mxu1 %v4390_v30  ;;  %v737_v15 = vshrl.u32 %v4853_v8, 16  ;;  %v3596_v33 = vunpack.c.l.bf16 %v3716_v53  ;;  %v3597_v47 = vunpack.c.h.bf16 %v3716_v53  ;;  %v740_v54 = vshll.u32 %v4853_v8, 16 }
  0x78   : > { %v665_v53 = vsel %vm601_vm11, %v569_v29, %v633_v55  ;;  %v666_v9 = vsel %vm602_vm12, %v570_v32, %v634_v56  ;;  %v3601_v29 = vunpack.c.h.bf16 %v3717_v48  ;;  %v4414_v32 = vld [vmem:[%s4627_s28 + $0x1f8] sm:$0xff]  }
  0x79   : > { %1213 = vmatmul.mubr.bf16.gmra.mxu0 %v4821_v23  ;;  %1309 = vmatmul.mubr.bf16.gmra.mxu1 %v4846_v42  ;;  %v739_v59 = vrot.slane %v737_v15, 7  ;;  %v533_v0 = vmul.f32 %v3597_v47, %v4632_v5  ;;  %v867_v4 = vrot.slane %v740_v54, 1  ;;  %v4914_v55 = vpack.c.bf16 %v666_v9, %v665_v53  ;;  %v4400_v53 = vld [vmem:[%s4627_s28 + $0xe8] sm:$0xff]  }
  0x7a   : > { %4161 = vmatpush3.bf16.msra.mxu1 %v4390_v30  ;;  %1220 = vmatprep.mubr.bf16.mxu0 %v4813_v17  ;;  %v4874_v30 = vpack.c.bf16 %v664_v38, %v663_v22  ;;  %v3600_v22 = vunpack.c.l.bf16 %v3717_v48  ;;  %v4411_v38 = vld [vmem:[%s4627_s28 + $0x140] sm:$0xff]  }
  0x7b   : > { %4162 = vmatprep.subr.bf16.mxu1 %v4392_v35  ;;  %4164 = vmatprep.mubr.bf16.mxu1 %v4825_v25  ;;  %v572_v11 = vadd.f32 %v4642_v16, %v533_v0  ;;  %v868_v47 = vor.u32 %v867_v4, %v737_v15  ;;  %v3604_v4 = vunpack.c.l.bf16 %v3718_v12 }
  0x7c   : > { %4207 = vmatpush3.bf16.msra.mxu0 %v4403_v44  ;;  %v532_v44 = vmul.f32 %v3596_v33, %v4632_v5  ;;  %v744_v7 = vshrl.u32 %v4874_v30, 16  ;;  %v742_v33 = vor.u32 %v740_v54, %v739_v59  ;;  %v747_v46 = vshll.u32 %v4874_v30, 16  ;;  %v4399_v54 = vld [vmem:[%s4627_s28 + $0x128] sm:$0xff]  }
  0x7d   : > { %4208 = vmatprep.subr.bf16.mxu0 %v4406_v28  ;;  %vm604_vm14 = vcmp.ge.f32.partialorder %v572_v11, 0.0  ;;  %v636_v56 = vmul.f32 0.01, %v572_v11  ;;  %v534_v59 = vmul.f32 %v3600_v22, %v4632_v5 }
  0x7e   : > { %4163 = vmatpush3.bf16.msra.mxu1 %v4392_v35  ;;  %v4396_v35 = vld [vmem:[%s4627_s28 + $0x130] sm:$0xff]   ;;  %v571_v21 = vadd.f32 %v4642_v16, %v532_v44  ;;  %v746_v48 = vrot.slane %v744_v7, 7  ;;  %v4923_v0 = vsel %vm4651_vm2, 0, %v742_v33  ;;  %v869_v15 = vrot.slane %v747_v46, 1 }
  0x7f   : > { %3876 = vmatprep.subr.bf16.mxu1 %v4393_v39  ;;  %v4907_v39 = vsel %vm4804_vm6, %v866_v61, 0  ;;  %v535_v61 = vmul.f32 %v3601_v29, %v4632_v5  ;;  %v3719_v44 = vld [vmem:[%s4608_s23 + $0x50] sm:$0xff]   ;;  %v3605_v29 = vunpack.c.h.bf16 %v3718_v12  ;;  %v4933_v33 = vsel %vm4804_vm6, %v868_v47, 0 }
  0x80   : > { %4209 = vmatpush3.bf16.msra.mxu0 %v4406_v28  ;;  %vm603_vm13 = vcmp.ge.f32.partialorder %v571_v21, 0.0  ;;  %v635_v28 = vmul.f32 0.01, %v571_v21 }
  0x81   : > { %1221 = vmatmul.mubr.bf16.gmra.mxu0 %v4883_v26  ;;  %4165 = vmatmul.mubr.bf16.vlgmr.msra.gmra.mxu1 %v4869_v36  ;;  %v574_v22 = vadd.f32 %v4642_v16, %v535_v61  ;;  %v537_v47 = vmul.f32 %v3605_v29, %v4632_v5  ;;  %v3609_v61 = vunpack.c.h.bf16 %v3719_v44 }
  0x82   : > { %3877 = vmatpush3.bf16.msra.mxu1 %v4394_v51  ;;  %1228 = vmatprep.mubr.bf16.mxu0 %v4853_v8  ;;  %v667_v51 = vsel %vm603_vm13, %v571_v21, %v635_v28  ;;  %v573_v21 = vadd.f32 %v4642_v16, %v534_v59  ;;  %v536_v28 = vmul.f32 %v3604_v4, %v4632_v5 }
  0x83   : > { %4168 = vmatprep.mubr.bf16.mxu1 %v4887_v41  ;;  %3878 = vmatprep.subr.bf16.mxu1 %v4396_v35  ;;  %v668_v35 = vsel %vm604_vm14, %v572_v11, %v636_v56  ;;  %v751_v11 = vshrl.u32 %v4914_v55, 16  ;;  %v754_v56 = vshll.u32 %v4914_v55, 16  ;;  %vm606_vm0 = vcmp.ge.f32.partialorder %v574_v22, 0.0 }
  0x84   : > { %4210 = vmatprep.subr.bf16.mxu0 %v4411_v38  ;;  %v4927_v9 = vpack.c.bf16 %v668_v35, %v667_v51  ;;  %v4401_v51 = vld [vmem:[%s4627_s28 + $0x120] sm:$0xff]   ;;  %vm605_vm15 = vcmp.ge.f32.partialorder %v573_v21, 0.0  ;;  %v637_v12 = vmul.f32 0.01, %v573_v21  ;;  %v576_v50 = vadd.f32 %v4642_v16, %v537_v47 }
  0x85   : > { %4211 = vmatpush3.bf16.msra.mxu0 %v4411_v38  ;;  %v749_v38 = vor.u32 %v747_v46, %v746_v48  ;;  %v870_v46 = vor.u32 %v869_v15, %v744_v7  ;;  %v4402_v48 = vld [vmem:[%s4627_s28 + $0xe0] sm:$0xff]   ;;  %v753_v4 = vrot.slane %v751_v11, 7 }
  0x86   : > { %3879 = vmatpush3.bf16.msra.mxu1 %v4397_v18  ;;  %4012 = vmatprep.subr.bf16.mxu0 %v4414_v32  ;;  %v3608_v18 = vunpack.c.l.bf16 %v3719_v44  ;;  %v638_v32 = vmul.f32 0.01, %v574_v22  ;;  %v761_v59 = vshll.u32 %v4927_v9, 16  ;;  %v669_v29 = vsel %vm605_vm15, %v573_v21, %v637_v12  ;;  %v4962_v21 = vld [vmem:[%s4589_s12] ss:$0 sm:$0xff] }
  0x87   : > { %3880 = vmatprep.subr.bf16.mxu1 %v4399_v54  ;;  %v575_v54 = vadd.f32 %v4642_v16, %v536_v28  ;;  %v4956_v7 = vsel %vm4651_vm2, 0, %v749_v38  ;;  %vm608_vm3 = vcmp.ge.f32.partialorder %v576_v50, 0.0  ;;  %v4968_v38 = vsel %vm4804_vm6, %v870_v46, 0 }
  0x88   : > { %v538_v35 = vmul.f32 %v3608_v18, %v4632_v5  ;;  %v670_v28 = vsel %vm606_vm0, %v574_v22, %v638_v32  ;;  %v4405_v5 = vld [vmem:[%s4627_s28 + $0xd8] sm:$0xff]   ;;  %v539_v22 = vmul.f32 %v4962_v21, %v3609_v61  ;;  %v758_v12 = vshrl.u32 %v4927_v9, 16 }
  0x89   : > { %1229 = vmatmul.mubr.bf16.gmra.mxu0 %v4923_v0  ;;  %4169 = vmatmul.mubr.bf16.gmra.mxu1 %v4893_v31  ;;  %v4958_v15 = vpack.c.bf16 %v670_v28, %v669_v29  ;;  %vm607_vm1 = vcmp.ge.f32.partialorder %v575_v54, 0.0  ;;  %v639_v44 = vmul.f32 0.01, %v575_v54  ;;  %v873_v32 = vrot.slane %v761_v59, 1 }
  0x8a   : > { %1236 = vmatprep.mubr.bf16.mxu0 %v4874_v30  ;;  %4172 = vmatprep.mubr.bf16.mxu1 %v4907_v39  ;;  %v577_v18 = vadd.f32 %v4642_v16, %v538_v35  ;;  %v756_v47 = vor.u32 %v754_v56, %v753_v4  ;;  %v578_v61 = vadd.f32 %v4974_v62, %v539_v22 }
  0x8b   : > { %3881 = vmatpush3.bf16.msra.mxu1 %v4400_v53  ;;  %v640_v53 = vmul.f32 0.01, %v576_v50  ;;  %v671_v29 = vsel %vm607_vm1, %v575_v54, %v639_v44  ;;  %v768_v16 = vshll.u32 %v4958_v15, 16  ;;  %v883_v54 = vrot.slane %v796_v14, 1  ;;  %v4408_v44 = vld [vmem:[%s4627_s28 + $0xd0] sm:$0xff]  }
  0x8c   : > { %3882 = vmatprep.subr.bf16.mxu1 %v4401_v51  ;;  %v871_v51 = vrot.slane %v754_v56, 1  ;;  %vm609_vm4 = vcmp.ge.f32.partialorder %v577_v18, 0.0  ;;  %v641_v35 = vmul.f32 0.01, %v577_v18  ;;  %vm610_vm5 = vcmp.ge.f32.partialorder %v578_v61, 0.0 }
  0x8d   : > { %v672_v28 = vsel %vm608_vm3, %v576_v50, %v640_v53  ;;  %v642_v56 = vmul.f32 0.01, %v578_v61  ;;  %v881_v50 = vrot.slane %v789_v58, 1  ;;  %v884_v14 = vor.u32 %v883_v54, %v793_v13 }
  0x8e   : > { %v4979_v46 = vpack.c.bf16 %v672_v28, %v671_v29  ;;  %v673_v53 = vsel %vm609_vm4, %v577_v18, %v641_v35  ;;  %v760_v29 = vrot.slane %v758_v12, 7  ;;  %v765_v28 = vshrl.u32 %v4958_v15, 16 }
  0x8f   : > { %3883 = vmatpush3.bf16.msra.mxu1 %v4402_v48  ;;  %v874_v48 = vor.u32 %v873_v32, %v758_v12  ;;  %v674_v22 = vsel %vm610_vm5, %v578_v61, %v642_v56  ;;  %v882_v58 = vor.u32 %v881_v50, %v786_v57  ;;  %v885_v18 = vrot.slane %v803_v20, 1  ;;  %v4412_v50 = vld [vmem:[%s4627_s28 + $0x100] sm:$0xff]  }
  0x90   : > { %3884 = vmatprep.subr.bf16.mxu1 %v4404_v1  ;;  %v872_v1 = vor.u32 %v871_v51, %v751_v11  ;;  %v775_v4 = vshll.u32 %v4979_v46, 16  ;;  %v875_v11 = vrot.slane %v768_v16, 1  ;;  %v4409_v51 = vld [vmem:[%s4627_s28 + $0x108] sm:$0xff]   ;;  %v772_v13 = vshrl.u32 %v4979_v46, 16 }
  0x91   : > { %1237 = vmatmul.mubr.bf16.gmra.mxu0 %v4956_v7  ;;  %4173 = vmatmul.mubr.bf16.gmra.mxu1 %v4933_v33  ;;  %v5010_v32 = vpack.c.bf16 %v674_v22, %v673_v53  ;;  %v5851_v61 = vshrl.u32 %v4755_v6, 16  ;;  %v763_v35 = vor.u32 %v761_v59, %v760_v29  ;;  %v767_v22 = vrot.slane %v765_v28, 7 }
  0x92   : > { %1244 = vmatprep.mubr.bf16.mxu0 %v4914_v55  ;;  %4176 = vmatprep.mubr.bf16.mxu1 %v4968_v38  ;;  %v5007_v57 = vsel %vm4804_vm6, %v872_v1, 0  ;;  %v877_v12 = vrot.slane %v775_v4, 1  ;;  %v876_v56 = vor.u32 %v875_v11, %v765_v28 }
  0x93   : > { %3885 = vmatpush3.bf16.msra.mxu1 %v4405_v5  ;;  %v5001_v5 = vsel %vm4651_vm2, 0, %v756_v47  ;;  %v4410_v47 = vld [vmem:[%s4627_s28 + $0xc8] sm:$0xff]   ;;  %v886_v20 = vor.u32 %v885_v18, %v5851_v61  ;;  %v782_v1 = vshll.u32 %v5010_v32, 16  ;;  %v5031_v59 = vsel %vm4651_vm2, 0, %v763_v35 }
  0x94   : > { %3886 = vmatprep.subr.bf16.mxu1 %v4407_v19  ;;  %v5014_v19 = vsel %vm4804_vm6, %v874_v48, 0  ;;  %v878_v54 = vor.u32 %v877_v12, %v772_v13  ;;  %v4413_v48 = vld [vmem:[%s4627_s28 + $0xc0] sm:$0xff]   ;;  %v5035_v53 = vsel %vm4804_vm6, %v876_v56, 0  ;;  %v779_v29 = vshrl.u32 %v5010_v32, 16 }
  0x95   : > { %v770_v28 = vor.u32 %v768_v16, %v767_v22  ;;  %v774_v61 = vrot.slane %v772_v13, 7  ;;  %v5058_v35 = vsel %vm4804_vm6, %v882_v58, 0  ;;  %v5070_v13 = vsel %vm4804_vm6, %v884_v14, 0 }
  0x96   : > { %v5040_v11 = vsel %vm4804_vm6, %v878_v54, 0  ;;  %v781_v58 = vrot.slane %v779_v29, 7  ;;  %v5853_v14 = vshrl.u32 %v4781_v43, 16 }
  0x97   : > { %3887 = vmatpush3.bf16.msra.mxu1 %v4408_v44  ;;  %v4416_v44 = vld [vmem:[%s4627_s28 + $0x238] sm:$0xff]   ;;  %v5050_v12 = vsel %vm4651_vm2, 0, %v770_v28  ;;  %v777_v16 = vor.u32 %v775_v4, %v774_v61  ;;  %v4421_v28 = vld [vmem:[%s4627_s28 + $0x230] sm:$0xff]   ;;  %v4422_v61 = vld [vmem:[%s4627_s28 + $0x1e0] sm:$0xff]  }
  0x98   : > { %3888 = vmatprep.subr.bf16.mxu1 %v4409_v51  ;;  %v879_v51 = vrot.slane %v782_v1, 1  ;;  %v784_v4 = vor.u32 %v782_v1, %v781_v58  ;;  %v4415_v1 = vld [vmem:[%s4627_s28 + $0x1b8] sm:$0xff]  }
  0x99   : > { %1245 = vmatmul.mubr.bf16.gmra.mxu0 %v5001_v5  ;;  %4177 = vmatmul.mubr.bf16.gmra.mxu1 %v5007_v57  ;;  %v5066_v56 = vsel %vm4651_vm2, 0, %v777_v16  ;;  %v4423_v16 = vld [vmem:[%s4627_s28 + $0x1a0] sm:$0xff]   ;;  %v4424_v58 = vld [vmem:[%s4627_s28 + $0x1d8] sm:$0xff]  }
  0x9a   : > { %1252 = vmatprep.mubr.bf16.mxu0 %v4927_v9  ;;  %4180 = vmatprep.mubr.bf16.mxu1 %v5014_v19  ;;  %v880_v18 = vor.u32 %v879_v51, %v779_v29  ;;  %v5086_v29 = vsel %vm4651_vm2, 0, %v784_v4  ;;  %v4417_v51 = vld [vmem:[%s4627_s28 + $0x1f0] sm:$0xff]  }
  0x9b   : > { %3889 = vmatpush3.bf16.msra.mxu1 %v4410_v47  ;;  %v4427_v4 = vld [vmem:[%s4627_s28 + $0x1d0] sm:$0xff]  }
  0x9c   : > { %3890 = vmatprep.subr.bf16.mxu1 %v4412_v50  ;;  %v5054_v47 = vsel %vm4804_vm6, %v880_v18, 0  ;;  %v5852_v50 = vshll.u32 %v4781_v43, 16  ;;  %v4418_v18 = vld [vmem:[%s4627_s28 + $0x1b0] sm:$0xff]  }
  0x9e   : > { %v887_v54 = vrot.slane %v5852_v50, 1  ;;  %v4434_v50 = vld [vmem:[%s4627_s28 + $0x218] sm:$0xff]  }
  0x9f   : > { %3891 = vmatpush3.bf16.msra.mxu1 %v4413_v48  ;;  %v5076_v48 = vsel %vm4804_vm6, %v886_v20, 0 }
  0xa0   : > { %4244 = vmatprep.subr.bf16.mxu1 %v4416_v44  ;;  %v888_v22 = vor.u32 %v887_v54, %v5853_v14  ;;  %v4425_v54 = vld [vmem:[%s4627_s28 + $0x198] sm:$0xff]  }
  0xa1   : > { %1253 = vmatmul.mubr.bf16.gmra.mxu0 %v5031_v59  ;;  %4181 = vmatmul.mubr.bf16.gmra.mxu1 %v5035_v53  ;;  %v3724_v14 = vld [vmem:[%s4608_s23 + $0x78] sm:$0xff]  }
  0xa2   : > { %1260 = vmatprep.mubr.bf16.mxu0 %v4958_v15  ;;  %4184 = vmatprep.mubr.bf16.mxu1 %v5040_v11  ;;  %v5090_v20 = vsel %vm4804_vm6, %v888_v22, 0  ;;  %v4435_v22 = vld [vmem:[%s4627_s28 + $0x210] sm:$0xff]  }
  0xa9   : > { %1261 = vmatmul.mubr.bf16.gmra.mxu0 %v5050_v12  ;;  %4185 = vmatmul.mubr.bf16.gmra.mxu1 %v5054_v47 }
  0xaa   : > { %1268 = vmatprep.mubr.bf16.mxu0 %v4979_v46  ;;  %4188 = vmatprep.mubr.bf16.mxu1 %v5058_v35 }
  0xb1   : > { %1269 = vmatmul.mubr.bf16.gmra.mxu0 %v5066_v56  ;;  %4189 = vmatmul.mubr.bf16.gmra.mxu1 %v5070_v13 }
  0xb2   : > { %1276 = vmatprep.mubr.bf16.mxu0 %v5010_v32  ;;  %4192 = vmatprep.mubr.bf16.mxu1 %v5076_v48 }
  0xb9   : > { %1277 = vmatmul.mubr.bf16.gmra.mxu0 %v5086_v29  ;;  %4193 = vmatmul.mubr.bf16.gmra.mxu1 %v5090_v20 }
  0xba   : > { %1802 = vmatprep.mubr.bf16.mxu1 %v4690_v2  ;;  %4212 = vmatprep.mubr.bf16.mxu0 %v4869_v36  ;;  %v4419_v2 = vld [vmem:[%s4627_s28 + $0x1e8] sm:$0xff]  }
  0xbb   : > { %v4426_v36 = vld [vmem:[%s4627_s28 + $0x228] sm:$0xff]  }
  0xc1   : > { %1803 = vmatmul.mubr.bf16.vlgmr.msra.gmra.mxu1 %v4730_v40  ;;  %4213 = vmatmul.mubr.bf16.vlgmr.msra.gmra.mxu0 %v4887_v41  ;;  %v4420_v40 = vld [vmem:[%s4627_s28 + $0x1a8] sm:$0xff]  }
  0xc2   : > { %4013 = vmatpush3.bf16.msra.mxu0 %v4415_v1  ;;  %4245 = vmatpush3.bf16.msra.mxu1 %v4416_v44  ;;  %v4431_v44 = vld [vmem:[%s4627_s28 + $0x220] sm:$0xff]   ;;  %v4428_v1 = vld [vmem:[%s4627_s28 + $0x190] sm:$0xff]  }
  0xc3   : > { %1810 = vmatprep.mubr.bf16.mxu1 %v4712_v24  ;;  %4216 = vmatprep.mubr.bf16.mxu0 %v4893_v31 }
  0xc4   : > { %4014 = vmatprep.subr.bf16.mxu0 %v4417_v51  ;;  %4246 = vmatprep.subr.bf16.mxu1 %v4421_v28  ;;  %v3628_v51 = vunpack.c.l.bf16 %v3724_v14 }
  0xc6   : > { %4015 = vmatpush3.bf16.msra.mxu0 %v4418_v18  ;;  %4247 = vmatpush3.bf16.msra.mxu1 %v4421_v28  ;;  %v3629_v28 = vunpack.c.h.bf16 %v3724_v14  ;;  %v4429_v18 = vld [vmem:[%s4627_s28 + $0x1c8] sm:$0xff]  }
  0xc7   : > { %4016 = vmatprep.subr.bf16.mxu0 %v4419_v2  ;;  %4248 = vmatprep.subr.bf16.mxu1 %v4426_v36  ;;  %v4436_v2 = vld [vmem:[%s4627_s28 + $0x208] sm:$0xff]  }
  0xc9   : > { %1811 = vmatmul.mubr.bf16.gmra.mxu1 %v4789_v49  ;;  %4217 = vmatmul.mubr.bf16.gmra.mxu0 %v4907_v39 }
  0xca   : > { %1818 = vmatprep.mubr.bf16.mxu1 %v4757_v10  ;;  %4220 = vmatprep.mubr.bf16.mxu0 %v4933_v33 }
  0xcb   : > { %4017 = vmatpush3.bf16.msra.mxu0 %v4420_v40  ;;  %4249 = vmatpush3.bf16.msra.mxu1 %v4426_v36  ;;  %v4430_v36 = vld [vmem:[%s4627_s28 + $0x188] sm:$0xff]   ;;  %v548_v40 = vmul.f32 %v4962_v21, %v3628_v51 }
  0xcc   : > { %4018 = vmatprep.subr.bf16.mxu0 %v4422_v61  ;;  %4250 = vmatprep.subr.bf16.mxu1 %v4431_v44  ;;  %v549_v61 = vmul.f32 %v4962_v21, %v3629_v28 }
  0xcf   : > { %4019 = vmatpush3.bf16.msra.mxu0 %v4423_v16  ;;  %4251 = vmatpush3.bf16.msra.mxu1 %v4431_v44  ;;  %v4432_v44 = vld [vmem:[%s4627_s28 + $0x1c0] sm:$0xff]  }
  0xd0   : > { %4020 = vmatprep.subr.bf16.mxu0 %v4424_v58  ;;  %4252 = vmatprep.subr.bf16.mxu1 %v4434_v50  ;;  %v4437_v16 = vld [vmem:[%s4627_s28 + $0x200] sm:$0xff]   ;;  %v587_v58 = vadd.f32 %v4974_v62, %v548_v40 }
  0xd1   : > { %1819 = vmatmul.mubr.bf16.gmra.mxu1 %v4821_v23  ;;  %4221 = vmatmul.mubr.bf16.gmra.mxu0 %v4968_v38 }
  0xd2   : > { %1826 = vmatprep.mubr.bf16.mxu1 %v4813_v17  ;;  %4224 = vmatprep.mubr.bf16.mxu0 %v5007_v57  ;;  %v651_v21 = vmul.f32 0.01, %v587_v58  ;;  %vm619_vm7 = vcmp.ge.f32.partialorder %v587_v58, 0.0 }
  0xd3   : > { %4021 = vmatpush3.bf16.msra.mxu0 %v4425_v54  ;;  %4253 = vmatpush3.bf16.msra.mxu1 %v4434_v50  ;;  %v588_v50 = vadd.f32 %v4974_v62, %v549_v61  ;;  %v4433_v54 = vld [vmem:[%s4627_s28 + $0x180] sm:$0xff]  }
  0xd4   : > { %4022 = vmatprep.subr.bf16.mxu0 %v4427_v4  ;;  %4254 = vmatprep.subr.bf16.mxu1 %v4435_v22  ;;  %v683_v14 = vsel %vm619_vm7, %v587_v58, %v651_v21 }
  0xd5   : > { %v652_v4 = vmul.f32 0.01, %v588_v50  ;;  %vm620_vm8 = vcmp.ge.f32.partialorder %v588_v50, 0.0 }
  0xd7   : > { %4023 = vmatpush3.bf16.msra.mxu0 %v4428_v1  ;;  %4255 = vmatpush3.bf16.msra.mxu1 %v4435_v22  ;;  %v684_v62 = vsel %vm620_vm8, %v588_v50, %v652_v4 }
  0xd8   : > { %4024 = vmatprep.subr.bf16.mxu0 %v4429_v18  ;;  %4256 = vmatprep.subr.bf16.mxu1 %v4436_v2  ;;  %v5143_v22 = vpack.c.bf16 %v684_v62, %v683_v14 }
  0xd9   : > { %1827 = vmatmul.mubr.bf16.gmra.mxu1 %v4883_v26  ;;  %4225 = vmatmul.mubr.bf16.gmra.mxu0 %v5014_v19 }
  0xda   : > { %1834 = vmatprep.mubr.bf16.mxu1 %v4853_v8  ;;  %4228 = vmatprep.mubr.bf16.mxu0 %v5035_v53  ;;  %v817_v1 = vshll.u32 %v5143_v22, 16  ;;  %v814_v51 = vshrl.u32 %v5143_v22, 16 }
  0xdb   : > { %4025 = vmatpush3.bf16.msra.mxu0 %v4430_v36  ;;  %4257 = vmatpush3.bf16.msra.mxu1 %v4436_v2 }
  0xdc   : > { %4026 = vmatprep.subr.bf16.mxu0 %v4432_v44  ;;  %4258 = vmatprep.subr.bf16.mxu1 %v4437_v16  ;;  %v889_v28 = vrot.slane %v817_v1, 1  ;;  %v816_v21 = vrot.slane %v814_v51, 7 }
  0xde   : > { %v890_v18 = vor.u32 %v889_v28, %v814_v51 }
  0xdf   : > { %4027 = vmatpush3.bf16.msra.mxu0 %v4433_v54  ;;  %4259 = vmatpush3.bf16.msra.mxu1 %v4437_v16 }
  0xe0   : > { %v5159_v2 = vsel %vm4804_vm6, %v890_v18, 0 }
  0xe1   : > { %1835 = vmatmul.mubr.bf16.gmra.mxu1 %v4923_v0  ;;  %4229 = vmatmul.mubr.bf16.gmra.mxu0 %v5040_v11 }
  0xe2   : > { %1842 = vmatprep.mubr.bf16.mxu1 %v4874_v30  ;;  %4232 = vmatprep.mubr.bf16.mxu0 %v5054_v47 }
  0xe9   : > { %1843 = vmatmul.mubr.bf16.gmra.mxu1 %v4956_v7  ;;  %4233 = vmatmul.mubr.bf16.gmra.mxu0 %v5058_v35 }
  0xea   : > { %1850 = vmatprep.mubr.bf16.mxu1 %v4914_v55  ;;  %4236 = vmatprep.mubr.bf16.mxu0 %v5070_v13 }
  0xf1   : > { %1851 = vmatmul.mubr.bf16.gmra.mxu1 %v5001_v5  ;;  %4237 = vmatmul.mubr.bf16.gmra.mxu0 %v5076_v48 }
  0xf2   : > { %1858 = vmatprep.mubr.bf16.mxu1 %v4927_v9  ;;  %4240 = vmatprep.mubr.bf16.mxu0 %v5090_v20 }
  0xf9   : > { %1859 = vmatmul.mubr.bf16.gmra.mxu1 %v5031_v59  ;;  %4241 = vmatmul.mubr.bf16.gmra.mxu0 %v5159_v2 }
  0xfa   : > { %1866 = vmatprep.mubr.bf16.mxu1 %v4958_v15  ;;  %2416 = vmatprep.mubr.bf16.mxu0 %v4712_v24 }
 0x101   : > { %1867 = vmatmul.mubr.bf16.gmra.mxu1 %v5050_v12  ;;  %2417 = vmatmul.mubr.bf16.vlgmr.msra.gmra.mxu0 %v4789_v49 }
 0x102   : > { %1874 = vmatprep.mubr.bf16.mxu1 %v4979_v46  ;;  %2424 = vmatprep.mubr.bf16.mxu0 %v4757_v10 }
 0x109   : > { %1875 = vmatmul.mubr.bf16.gmra.mxu1 %v5066_v56  ;;  %2425 = vmatmul.mubr.bf16.gmra.mxu0 %v4821_v23 }
 0x10a   : > { %1882 = vmatprep.mubr.bf16.mxu1 %v5010_v32  ;;  %2432 = vmatprep.mubr.bf16.mxu0 %v4813_v17 }
 0x111   : > { %1883 = vmatmul.mubr.bf16.gmra.mxu1 %v5086_v29  ;;  %2433 = vmatmul.mubr.bf16.gmra.mxu0 %v4883_v26 }
 0x112   : > { %1890 = vmatprep.mubr.bf16.mxu1 %v4678_v52  ;;  %2440 = vmatprep.mubr.bf16.mxu0 %v4853_v8 }
 0x119   : > { %1891 = vmatmul.mubr.bf16.gmra.mxu1 %v4722_v34  ;;  %2441 = vmatmul.mubr.bf16.gmra.mxu0 %v4923_v0 }
 0x11a   : > { %1898 = vmatprep.mubr.bf16.mxu1 %v4692_v3  ;;  %2448 = vmatprep.mubr.bf16.mxu0 %v4874_v30 }
 0x121   : > { %v3756_v24 = vpop.f32.mrf.mxu0  ;;  %v3828_v10 = vpop.f32.mrf.mxu1  ;;  %1899 = vmatmul.mubr.bf16.gmra.mxu1 %v4738_v45  ;;  %2449 = vmatmul.mubr.bf16.gmra.mxu0 %v4956_v7 }
 0x122   : > { %1906 = vmatprep.mubr.bf16.mxu1 %v4755_v6  ;;  %2456 = vmatprep.mubr.bf16.mxu0 %v4914_v55 }
 0x123   : > { %v3757_v49 = vpop.f32.mrf.mxu0  ;;  %v3829_v63 = vpop.f32.mrf.mxu1 }
 0x124   : > { %v5185_v17 = vadd.f32 %v3757_v49, %v3756_v24  ;;  %v5187_v23 = vadd.f32 %v3829_v63, %v3828_v10 }
 0x125   : > { %v3759_v8 = vpop.f32.mrf.mxu0  ;;  %v3831_v26 = vpop.f32.mrf.mxu1 }
 0x127   : > { %v3760_v0 = vpop.f32.mrf.mxu0  ;;  %v3832_v30 = vpop.f32.mrf.mxu1 }
 0x128   : > { %v5189_v36 = vadd.f32 %v3760_v0, %v3759_v8  ;;  %v5191_v40 = vadd.f32 %v3832_v30, %v3831_v26 }
 0x129   : > { %v3762_v61 = vpop.f32.mrf.mxu0  ;;  %v3834_v7 = vpop.f32.mrf.mxu1  ;;  %1907 = vmatmul.mubr.bf16.gmra.mxu1 %v4797_v60  ;;  %2457 = vmatmul.mubr.bf16.gmra.mxu0 %v5001_v5 }
 0x12a   : > { %1914 = vmatprep.mubr.bf16.mxu1 %v4781_v43  ;;  %2464 = vmatprep.mubr.bf16.mxu0 %v4927_v9  ;;  %v819_v9 = vor.u32 %v817_v1, %v816_v21 }
 0x12b   : > { %v3763_v55 = vpop.f32.mrf.mxu0  ;;  %v3835_v44 = vpop.f32.mrf.mxu1 }
 0x12c   : > { %v3764_v16 = vadd.f32 %v3763_v55, %v3762_v61  ;;  %v5197_v58 = vadd.f32 %v3835_v44, %v3834_v7  ;;  %v5211_v26 = vsel %vm4651_vm2, 0, %v819_v9 }
 0x12d   : > { %v3765_v50 = vpop.f32.mrf.mxu0  ;;  %v3837_v54 = vpop.f32.mrf.mxu1 }
 0x12f   : > { %v3766_v4 = vpop.f32.mrf.mxu0  ;;  %v3838_v14 = vpop.f32.mrf.mxu1 }
 0x130   : > { %v3767_v62 = vadd.f32 %v3766_v4, %v3765_v50  ;;  %v5199_v28 = vadd.f32 %v3838_v14, %v3837_v54 }
 0x131   : > { %v3768_v18 = vpop.f32.mrf.mxu0  ;;  %v3840_v24 = vpop.f32.mrf.mxu1  ;;  %1915 = vmatmul.mubr.bf16.gmra.mxu1 %v4846_v42  ;;  %2465 = vmatmul.mubr.bf16.gmra.mxu0 %v5031_v59 }
 0x132   : > { %1922 = vmatprep.mubr.bf16.mxu1 %v5143_v22  ;;  %2472 = vmatprep.mubr.bf16.mxu0 %v4958_v15 }
 0x133   : > { %v3769_v5 = vpop.f32.mrf.mxu0  ;;  %v3841_v51 = vpop.f32.mrf.mxu1 }
 0x134   : > { %v3770_v10 = vadd.f32 %v3769_v5, %v3768_v18  ;;  %v5207_v49 = vadd.f32 %v3841_v51, %v3840_v24 }
 0x135   : > { %v3771_v63 = vpop.f32.mrf.mxu0  ;;  %v3843_v8 = vpop.f32.mrf.mxu1 }
 0x137   : > { %v3772_v0 = vpop.f32.mrf.mxu0  ;;  %v3844_v59 = vpop.f32.mrf.mxu1 }
 0x138   : > { %v3773_v30 = vadd.f32 %v3772_v0, %v3771_v63  ;;  %v5213_v61 = vadd.f32 %v3844_v59, %v3843_v8 }
 0x139   : > { %v3774_v15 = vpop.f32.mrf.mxu0  ;;  %v3846_v7 = vpop.f32.mrf.mxu1  ;;  %1923 = vmatmul.mubr.bf16.gmra.mxu1 %v5211_v26  ;;  %2473 = vmatmul.mubr.bf16.gmra.mxu0 %v5050_v12 }
 0x13a   : > { %2480 = vmatprep.mubr.bf16.mxu0 %v4979_v46  ;;  %4260 = vmatprep.mubr.bf16.mxu1 %v4887_v41 }
 0x13b   : > { %v3775_v1 = vpop.f32.mrf.mxu0  ;;  %v3847_v55 = vpop.f32.mrf.mxu1 }
 0x13c   : > { %v3776_v27 = vadd.f32 %v3775_v1, %v3774_v15  ;;  %v5219_v44 = vadd.f32 %v3847_v55, %v3846_v7 }
 0x13d   : > { %v3777_v50 = vpop.f32.mrf.mxu0  ;;  %v3849_v54 = vpop.f32.mrf.mxu1 }
 0x13f   : > { %v3778_v21 = vpop.f32.mrf.mxu0  ;;  %v3850_v4 = vpop.f32.mrf.mxu1 }
 0x140   : > { %v3779_v14 = vadd.f32 %v3778_v21, %v3777_v50  ;;  %v5221_v18 = vadd.f32 %v3850_v4, %v3849_v54 }
 0x141   : > { %v3780_v24 = vpop.f32.mrf.mxu0  ;;  %v4166_v9 = vpop.f32.mrf.mxu1  ;;  %2481 = vmatmul.mubr.bf16.gmra.mxu0 %v5066_v56  ;;  %4261 = vmatmul.mubr.bf16.vlgmr.msra.gmra.mxu1 %v4893_v31 }
 0x142   : > { %v5225_v46 = vadd.f32 %v4166_v9, %v3764_v16  ;;  %2488 = vmatprep.mubr.bf16.mxu0 %v5010_v32  ;;  %4264 = vmatprep.mubr.bf16.mxu1 %v4907_v39 }
 0x143   : > { %v3781_v41 = vpop.f32.mrf.mxu0  ;;  %v1351_v12 = vpop.f32.mrf.mxu1 }
 0x144   : > { %v3782_v5 = vadd.f32 %v3781_v41, %v3780_v24  ;;  %v5230_v51 = vadd.f32 %v5185_v17, %v1351_v12 }
 0x145   : > { %v3783_v63 = vpop.f32.mrf.mxu0  ;;  %v4167_v8 = vpop.f32.mrf.mxu1 }
 0x146   : > { %v5232_v0 = vadd.f32 %v4167_v8, %v3767_v62 }
 0x147   : > { %v3784_v59 = vpop.f32.mrf.mxu0  ;;  %v1354_v56 = vpop.f32.mrf.mxu1 }
 0x148   : > { %v3785_v15 = vadd.f32 %v3784_v59, %v3783_v63  ;;  %v5235_v31 = vadd.f32 %v5189_v36, %v1354_v56 }
 0x149   : > { %v3786_v16 = vpop.f32.mrf.mxu0  ;;  %v4170_v32 = vpop.f32.mrf.mxu1  ;;  %2489 = vmatmul.mubr.bf16.gmra.mxu0 %v5086_v29  ;;  %4265 = vmatmul.mubr.bf16.gmra.mxu1 %v4933_v33 }
 0x14a   : > { %v5239_v39 = vadd.f32 %v4170_v32, %v3776_v27  ;;  %2496 = vmatprep.mubr.bf16.mxu0 %v4678_v52  ;;  %4268 = vmatprep.mubr.bf16.mxu1 %v4968_v38 }
 0x14b   : > { %v3787_v17 = vpop.f32.mrf.mxu0  ;;  %v1367_v62 = vpop.f32.mrf.mxu1 }
 0x14c   : > { %v3788_v7 = vadd.f32 %v3787_v17, %v3786_v16  ;;  %v5243_v1 = vadd.f32 %v3770_v10, %v1367_v62 }
 0x14d   : > { %v3789_v55 = vpop.f32.mrf.mxu0  ;;  %v4171_v36 = vpop.f32.mrf.mxu1 }
 0x14e   : > { %v5245_v50 = vadd.f32 %v4171_v36, %v3779_v14 }
 0x14f   : > { %v3790_v54 = vpop.f32.mrf.mxu0  ;;  %v1370_v21 = vpop.f32.mrf.mxu1 }
 0x150   : > { %v3791_v29 = vadd.f32 %v3790_v54, %v3789_v55  ;;  %v5247_v4 = vadd.f32 %v3773_v30, %v1370_v21 }
 0x151   : > { %v3792_v33 = vpop.f32.mrf.mxu0  ;;  %v4174_v27 = vpop.f32.mrf.mxu1  ;;  %2497 = vmatmul.mubr.bf16.gmra.mxu0 %v4722_v34  ;;  %4269 = vmatmul.mubr.bf16.gmra.mxu1 %v5007_v57 }
 0x152   : > { %v5251_v52 = vadd.f32 %v4174_v27, %v3788_v7  ;;  %2504 = vmatprep.mubr.bf16.mxu0 %v4692_v3  ;;  %4272 = vmatprep.mubr.bf16.mxu1 %v5014_v19 }
 0x153   : > { %v3793_v38 = vpop.f32.mrf.mxu0  ;;  %v1383_v10 = vpop.f32.mrf.mxu1 }
 0x154   : > { %v3794_v14 = vadd.f32 %v3793_v38, %v3792_v33  ;;  %v5255_v24 = vadd.f32 %v3782_v5, %v1383_v10 }
 0x155   : > { %v3795_v9 = vpop.f32.mrf.mxu0  ;;  %v4175_v30 = vpop.f32.mrf.mxu1 }
 0x156   : > { %v5257_v41 = vadd.f32 %v4175_v30, %v3791_v29 }
 0x157   : > { %v3796_v12 = vpop.f32.mrf.mxu0  ;;  %v1386_v63 = vpop.f32.mrf.mxu1 }
 0x158   : > { %v3797_v34 = vadd.f32 %v3796_v12, %v3795_v9  ;;  %v5259_v8 = vadd.f32 %v3785_v15, %v1386_v63 }
 0x159   : > { %v3798_v57 = vpop.f32.mrf.mxu0  ;;  %v4178_v59 = vpop.f32.mrf.mxu1  ;;  %2505 = vmatmul.mubr.bf16.gmra.mxu0 %v4738_v45  ;;  %4273 = vmatmul.mubr.bf16.gmra.mxu1 %v5035_v53 }
 0x15a   : > { %2512 = vmatprep.mubr.bf16.mxu0 %v4755_v6  ;;  %4276 = vmatprep.mubr.bf16.mxu1 %v5040_v11 }
 0x15b   : > { %v3799_v3 = vpop.f32.mrf.mxu0  ;;  %v1399_v19 = vpop.f32.mrf.mxu1 }
 0x15c   : > { %v3800_v5 = vadd.f32 %v3799_v3, %v3798_v57  ;;  %v5265_v56 = vadd.f32 %v3794_v14, %v1399_v19 }
 0x15d   : > { %v3801_v16 = vpop.f32.mrf.mxu0  ;;  %v4179_v32 = vpop.f32.mrf.mxu1 }
 0x15e   : > { %v5267_v17 = vadd.f32 %v4178_v59, %v3800_v5 }
 0x15f   : > { %v3802_v15 = vpop.f32.mrf.mxu0  ;;  %v1402_v62 = vpop.f32.mrf.mxu1 }
 0x160   : > { %v3803_v7 = vadd.f32 %v3802_v15, %v3801_v16  ;;  %v5269_v55 = vadd.f32 %v3797_v34, %v1402_v62 }
 0x161   : > { %v3804_v45 = vpop.f32.mrf.mxu0  ;;  %v4182_v53 = vpop.f32.mrf.mxu1  ;;  %2513 = vmatmul.mubr.bf16.gmra.mxu0 %v4797_v60  ;;  %4277 = vmatmul.mubr.bf16.gmra.mxu1 %v5054_v47 }
 0x162   : > { %v5273_v6 = vadd.f32 %v4179_v32, %v3803_v7  ;;  %2520 = vmatprep.mubr.bf16.mxu0 %v4781_v43  ;;  %4280 = vmatprep.mubr.bf16.mxu1 %v5058_v35 }
 0x163   : > { %v3805_v11 = vpop.f32.mrf.mxu0  ;;  %v1415_v36 = vpop.f32.mrf.mxu1 }
 0x164   : > { %v3806_v54 = vadd.f32 %v3805_v11, %v3804_v45 }
 0x165   : > { %v3807_v21 = vpop.f32.mrf.mxu0  ;;  %v4183_v29 = vpop.f32.mrf.mxu1 }
 0x166   : > { %v5277_v33 = vadd.f32 %v3806_v54, %v1415_v36 }
 0x167   : > { %v3808_v27 = vpop.f32.mrf.mxu0  ;;  %v1418_v38 = vpop.f32.mrf.mxu1 }
 0x168   : > { %v3809_v10 = vadd.f32 %v3808_v27, %v3807_v21 }
 0x169   : > { %v3810_v14 = vpop.f32.mrf.mxu0  ;;  %v4186_v60 = vpop.f32.mrf.mxu1  ;;  %2521 = vmatmul.mubr.bf16.gmra.mxu0 %v4846_v42  ;;  %4281 = vmatmul.mubr.bf16.gmra.mxu1 %v5070_v13 }
 0x16a   : > { %v5281_v47 = vadd.f32 %v3809_v10, %v1418_v38  ;;  %2528 = vmatprep.mubr.bf16.mxu0 %v5143_v22  ;;  %4284 = vmatprep.mubr.bf16.mxu1 %v5076_v48  ;;  %v5854_v22 = vmov 0  }
 0x16b   : > { %v3811_v43 = vpop.f32.mrf.mxu0  ;;  %v1431_v35 = vpop.f32.mrf.mxu1 }
 0x16c   : > { %v3812_v9 = vadd.f32 %v3811_v43, %v3810_v14 }
 0x16d   : > { %v3813_v30 = vpop.f32.mrf.mxu0  ;;  %v4187_v12 = vpop.f32.mrf.mxu1 }
 0x16e   : > { %v5285_v63 = vadd.f32 %v4182_v53, %v3812_v9 }
 0x16f   : > { %v3814_v34 = vpop.f32.mrf.mxu0  ;;  %v1434_v57 = vpop.f32.mrf.mxu1 }
 0x170   : > { %v3815_v59 = vadd.f32 %v3814_v34, %v3813_v30  ;;  %v928_v30 = vld [vmem:[#allocation2 + $0xb0] sm:$0xff] }
 0x171   : > { %v3816_v3 = vpop.f32.mrf.mxu0  ;;  %v4190_v42 = vpop.f32.mrf.mxu1  ;;  %2529 = vmatmul.mubr.bf16.gmra.mxu0 %v5211_v26  ;;  %4285 = vmatmul.mubr.bf16.gmra.mxu1 %v5090_v20 }
 0x172   : > { %v5289_v13 = vadd.f32 %v4183_v29, %v3815_v59  ;;  %v5292_v48 = vadd.f32 %v4190_v42, %v5197_v58  ;;  %2536 = vmatprep.mubr.bf16.mxu0 %v5854_v22  ;;  %4288 = vmatprep.mubr.bf16.mxu1 %v5159_v2  ;;  %v929_v42 = vld [vmem:[#allocation2] sm:$0xff] }
 0x173   : > { %v3817_v19 = vpop.f32.mrf.mxu0  ;;  %v1447_v5 = vpop.f32.mrf.mxu1 }
 0x174   : > { %v3818_v16 = vadd.f32 %v3817_v19, %v3816_v3  ;;  %v5297_v32 = vadd.f32 %v5187_v23, %v1447_v5  ;;  %v1478_v3 = vadd.f32 %v5230_v51, %v928_v30 }
 0x175   : > { %v3819_v15 = vpop.f32.mrf.mxu0  ;;  %v4191_v62 = vpop.f32.mrf.mxu1 }
 0x176   : > { %v5299_v26 = vadd.f32 %v3818_v16, %v1431_v35  ;;  %v5302_v20 = vadd.f32 %v4191_v62, %v5199_v28 }
 0x177   : > { %v3820_v7 = vpop.f32.mrf.mxu0  ;;  %v1450_v58 = vpop.f32.mrf.mxu1 }
 0x178   : > { %v3821_v45 = vadd.f32 %v3820_v7, %v3819_v15  ;;  %v5305_v53 = vadd.f32 %v5191_v40, %v1450_v58  ;;  %v930_v7 = vld [vmem:[#allocation2 + $0xd8] sm:$0xff] }
 0x179   : > { %v3822_v2 = vpop.f32.mrf.mxu0  ;;  %v4194_v11 = vpop.f32.mrf.mxu1  ;;  %2537 = vmatmul.mubr.bf16.gmra.mxu0 %v4665_v37  ;;  %4289 = vmatmul.mubr.bf16.gmra.mxu1 %v4825_v25 }
 0x17a   : > { %v5309_v23 = vadd.f32 %v3821_v45, %v1434_v57  ;;  %v5312_v36 = vadd.f32 %v4194_v11, %v5219_v44 }
 0x17b   : > { %v3823_v54 = vpop.f32.mrf.mxu0  ;;  %v1463_v28 = vpop.f32.mrf.mxu1 }
 0x17c   : > { %v3824_v21 = vadd.f32 %v3823_v54, %v3822_v2  ;;  %v5315_v29 = vadd.f32 %v5207_v49, %v1463_v28  ;;  %v1480_v28 = vadd.f32 %v5225_v46, %v930_v7 }
 0x17d   : > { %v3825_v27 = vpop.f32.mrf.mxu0  ;;  %v4195_v40 = vpop.f32.mrf.mxu1 }
 0x17e   : > { %v5317_v38 = vadd.f32 %v4186_v60, %v3824_v21  ;;  %v5320_v10 = vadd.f32 %v4195_v40, %v5221_v18 }
 0x17f   : > { %v3826_v37 = vpop.f32.mrf.mxu0  ;;  %v1466_v25 = vpop.f32.mrf.mxu1 }
 0x180   : > { %v3827_v14 = vadd.f32 %v3826_v37, %v3825_v27  ;;  %v5323_v43 = vadd.f32 %v5213_v61, %v1466_v25  ;;  %v931_v27 = vld [vmem:[#allocation2 + $0x18] sm:$0xff] }
 0x181   : > { %v3892_v44 = vpop.f32.mrf.mxu1  ;;  %v4214_v35 = vpop.f32.mrf.mxu0  ;;  %v1481_v30 = vadd.f32 %v5232_v0, %v931_v27 }
 0x182   : > { %v5325_v9 = vadd.f32 %v4187_v12, %v3827_v14  ;;  %v1479_v12 = vadd.f32 %v5235_v31, %v929_v42 }
 0x183   : > { %v3893_v49 = vpop.f32.mrf.mxu1  ;;  %v1965_v34 = vpop.f32.mrf.mxu0 }
 0x184   : > { %v3894_v57 = vadd.f32 %v3893_v49, %v3892_v44 }
 0x185   : > { %v3895_v59 = vpop.f32.mrf.mxu1  ;;  %v4215_v60 = vpop.f32.mrf.mxu0 }
 0x186   : > { %v1966_v18 = vadd.f32 %v3894_v57, %v1965_v34  ;;  %v932_v34 = vld [vmem:[#allocation2 + $0x50] sm:$0xff] }
 0x187   : > { %v3896_v22 = vpop.f32.mrf.mxu1  ;;  %v1968_v19 = vpop.f32.mrf.mxu0  ;;  %v1482_v42 = vadd.f32 %v5243_v1, %v932_v34 }
 0x188   : > { %v5328_v5 = vadd.f32 %v1966_v18, %v1478_v3  ;;  %v3897_v61 = vadd.f32 %v3896_v22, %v3895_v59 }
 0x189   : > { %v3898_v16 = vpop.f32.mrf.mxu1  ;;  %v4218_v15 = vpop.f32.mrf.mxu0 }
 0x18a   : > { %v1969_v62 = vadd.f32 %v3897_v61, %v1968_v19  ;;  %v933_v19 = vld [vmem:[#allocation2 + $0x68] sm:$0xff] }
 0x18b   : > { %v3899_v58 = vpop.f32.mrf.mxu1  ;;  %v1981_v45 = vpop.f32.mrf.mxu0  ;;  %v1483_v7 = vadd.f32 %v5247_v4, %v933_v19 }
 0x18c   : > { %v5331_v2 = vadd.f32 %v1969_v62, %v1479_v12  ;;  %v3900_v11 = vadd.f32 %v3899_v58, %v3898_v16 }
 0x18d   : > { %v3901_v54 = vpop.f32.mrf.mxu1  ;;  %v4219_v51 = vpop.f32.mrf.mxu0 }
 0x18e   : > { %v1974_v21 = vadd.f32 %v4214_v35, %v3900_v11  ;;  %v934_v11 = vld [vmem:[#allocation2 + $0x30] sm:$0xff] }
 0x18f   : > { %v3902_v40 = vpop.f32.mrf.mxu1  ;;  %v1984_v37 = vpop.f32.mrf.mxu0 }
 0x190   : > { %v5334_v25 = vadd.f32 %v1974_v21, %v1480_v28  ;;  %v3903_v14 = vadd.f32 %v3902_v40, %v3901_v54  ;;  %v1484_v40 = vadd.f32 %v5239_v39, %v934_v11 }
 0x191   : > { %v3904_v44 = vpop.f32.mrf.mxu1  ;;  %v5336_v31 = vpop.f32.mrf.mxu0 }
 0x192   : > { %v1977_v49 = vadd.f32 %v4215_v60, %v3903_v14 }
 0x193   : > { %v3905_v57 = vpop.f32.mrf.mxu1  ;;  %v1997_v59 = vpop.f32.mrf.mxu0 }
 0x194   : > { %v5339_v3 = vadd.f32 %v1977_v49, %v1481_v30  ;;  %v3906_v18 = vadd.f32 %v3905_v57, %v3904_v44  ;;  %v935_v44 = vld [vmem:[#allocation2 + $0x48] sm:$0xff] }
 0x195   : > { %v3907_v46 = vpop.f32.mrf.mxu1  ;;  %v5341_v35 = vpop.f32.mrf.mxu0 }
 0x196   : > { %v1982_v22 = vadd.f32 %v3906_v18, %v1981_v45  ;;  %v1485_v18 = vadd.f32 %v5245_v50, %v935_v44  ;;  %v938_v44 = vld [vmem:[#allocation2 + $0xe8] sm:$0xff] }
 0x197   : > { %v3908_v61 = vpop.f32.mrf.mxu1  ;;  %v2000_v16 = vpop.f32.mrf.mxu0 }
 0x198   : > { %v5344_v12 = vadd.f32 %v1982_v22, %v1482_v42  ;;  %v3909_v62 = vadd.f32 %v3908_v61, %v3907_v46  ;;  %v936_v42 = vld [vmem:[#allocation2 + $0x80] sm:$0xff] }
 0x199   : > { %v3910_v0 = vpop.f32.mrf.mxu1  ;;  %v5346_v60 = vpop.f32.mrf.mxu0 }
 0x19a   : > { %v1985_v58 = vadd.f32 %v3909_v62, %v1984_v37 }
 0x19b   : > { %v3911_v54 = vpop.f32.mrf.mxu1  ;;  %v2013_v28 = vpop.f32.mrf.mxu0 }
 0x19c   : > { %v5349_v21 = vadd.f32 %v1985_v58, %v1483_v7  ;;  %v3912_v27 = vadd.f32 %v3911_v54, %v3910_v0  ;;  %v1486_v0 = vadd.f32 %v5255_v24, %v936_v42  ;;  %v937_v58 = vld [vmem:[#allocation2 + $0x88] sm:$0xff] }
 0x19d   : > { %v3913_v1 = vpop.f32.mrf.mxu1  ;;  %v5351_v45 = vpop.f32.mrf.mxu0 }
 0x19e   : > { %v1990_v14 = vadd.f32 %v4218_v15, %v3912_v27 }
 0x19f   : > { %v3914_v30 = vpop.f32.mrf.mxu1  ;;  %v2016_v49 = vpop.f32.mrf.mxu0 }
 0x1a0   : > { %v5354_v34 = vadd.f32 %v1990_v14, %v1484_v40  ;;  %v3915_v57 = vadd.f32 %v3914_v30, %v3913_v1  ;;  %v1487_v40 = vadd.f32 %v5259_v8, %v937_v58 }
 0x1a1   : > { %v3916_v4 = vpop.f32.mrf.mxu1  ;;  %v5356_v37 = vpop.f32.mrf.mxu0 }
 0x1a2   : > { %v1993_v46 = vadd.f32 %v4219_v51, %v3915_v57 }
 0x1a3   : > { %v3917_v22 = vpop.f32.mrf.mxu1  ;;  %v5359_v19 = vpop.f32.mrf.mxu0 }
 0x1a4   : > { %v5361_v61 = vadd.f32 %v1993_v46, %v1485_v18  ;;  %v3918_v39 = vadd.f32 %v3917_v22, %v3916_v4  ;;  %v1488_v46 = vadd.f32 %v5251_v52, %v938_v44  ;;  %v939_v22 = vld [vmem:[#allocation2 + $0xb8] sm:$0xff] }
 0x1a5   : > { %v3919_v15 = vpop.f32.mrf.mxu1  ;;  %v5363_v62 = vpop.f32.mrf.mxu0  ;;  %v1489_v58 = vadd.f32 %v5257_v41, %v939_v22 }
 0x1a6   : > { %v1998_v7 = vadd.f32 %v3918_v39, %v1997_v59 }
 0x1a7   : > { %v3920_v11 = vpop.f32.mrf.mxu1  ;;  %v5366_v54 = vpop.f32.mrf.mxu0 }
 0x1a8   : > { %v5368_v27 = vadd.f32 %v1998_v7, %v1486_v0  ;;  %v3921_v50 = vadd.f32 %v3920_v11, %v3919_v15 }
 0x1a9   : > { %v3922_v51 = vpop.f32.mrf.mxu1  ;;  %v5370_v1 = vpop.f32.mrf.mxu0 }
 0x1aa   : > { %v2001_v14 = vadd.f32 %v3921_v50, %v2000_v16  ;;  %v940_v50 = vld [vmem:[#allocation2 + $0x60] sm:$0xff] }
 0x1ab   : > { %v3923_v30 = vpop.f32.mrf.mxu1  ;;  %v5373_v57 = vpop.f32.mrf.mxu0 }
 0x1ac   : > { %v5375_v4 = vadd.f32 %v2001_v14, %v1487_v40  ;;  %v3924_v24 = vadd.f32 %v3923_v30, %v3922_v51  ;;  %v1490_v30 = vadd.f32 %v5265_v56, %v940_v50 }
 0x1ad   : > { %v3925_v59 = vpop.f32.mrf.mxu1  ;;  %v5377_v18 = vpop.f32.mrf.mxu0 }
 0x1ae   : > { %5855 = vst [vmem:[#allocation7_spill] sm:$0xff] %v5375_v4  ;;  %v2006_v42 = vadd.f32 %v5336_v31, %v3924_v24 }
 0x1af   : > { %v3926_v39 = vpop.f32.mrf.mxu1  ;;  %v5381_v15 = vpop.f32.mrf.mxu0 }
 0x1b0   : > { %v5383_v8 = vadd.f32 %v2006_v42, %v1488_v46  ;;  %v3927_v16 = vadd.f32 %v3926_v39, %v3925_v59  ;;  %v941_v59 = vld [vmem:[#allocation2 + $0xf0] sm:$0xff] }
 0x1b1   : > { %v3928_v0 = vpop.f32.mrf.mxu1  ;;  %v5385_v7 = vpop.f32.mrf.mxu0 }
 0x1b2   : > { %v2009_v11 = vadd.f32 %v5341_v35, %v3927_v16  ;;  %v1491_v16 = vadd.f32 %v5269_v55, %v941_v59 }
 0x1b3   : > { %v3929_v51 = vpop.f32.mrf.mxu1  ;;  %v5389_v40 = vpop.f32.mrf.mxu0 }
 0x1b4   : > { %v5391_v52 = vadd.f32 %v2009_v11, %v1489_v58  ;;  %v3930_v31 = vadd.f32 %v3929_v51, %v3928_v0  ;;  %v942_v0 = vld [vmem:[#allocation2 + $0x8] sm:$0xff] }
 0x1b5   : > { %v3931_v14 = vpop.f32.mrf.mxu1  ;;  %v5393_v44 = vpop.f32.mrf.mxu0 }
 0x1b6   : > { %v2014_v24 = vadd.f32 %v3930_v31, %v2013_v28  ;;  %v1492_v31 = vadd.f32 %v5267_v17, %v942_v0 }
 0x1b7   : > { %v3932_v46 = vpop.f32.mrf.mxu1  ;;  %v5396_v42 = vpop.f32.mrf.mxu0 }
 0x1b8   : > { %v5398_v41 = vadd.f32 %v2014_v24, %v1490_v30  ;;  %v3933_v35 = vadd.f32 %v3932_v46, %v3931_v14  ;;  %v943_v30 = vld [vmem:[#allocation2 + $0x78] sm:$0xff] }
 0x1b9   : > { %v3934_v22 = vpop.f32.mrf.mxu1  ;;  %v5400_v39 = vpop.f32.mrf.mxu0 }
 0x1ba   : > { %5856 = vst [vmem:[#allocation8_spill] sm:$0xff] %v5398_v41  ;;  %v2017_v58 = vadd.f32 %v3933_v35, %v2016_v49 }
 0x1bb   : > { %v3935_v11 = vpop.f32.mrf.mxu1  ;;  %v5403_v51 = vpop.f32.mrf.mxu0 }
 0x1bc   : > { %v5405_v4 = vadd.f32 %v2017_v58, %v1491_v16  ;;  %v3936_v56 = vadd.f32 %v3935_v11, %v3934_v22  ;;  %v1493_v16 = vadd.f32 %v5273_v6, %v943_v30  ;;  %v944_v58 = vld [vmem:[#allocation2 + $0x38] sm:$0xff] }
 0x1bd   : > { %v3937_v28 = vpop.f32.mrf.mxu1  ;;  %v5407_v50 = vpop.f32.mrf.mxu0 }
 0x1be   : > { %5857 = vst [vmem:[#allocation9_spill] sm:$0xff] %v5405_v4  ;;  %v2022_v14 = vadd.f32 %v5346_v60, %v3936_v56 }
 0x1bf   : > { %v3938_v24 = vpop.f32.mrf.mxu1  ;;  %v5411_v46 = vpop.f32.mrf.mxu0 }
 0x1c0   : > { %v5413_v55 = vadd.f32 %v2022_v14, %v1492_v31  ;;  %v3939_v49 = vadd.f32 %v3938_v24, %v3937_v28  ;;  %v1494_v31 = vadd.f32 %v5277_v33, %v944_v58  ;;  %v945_v14 = vld [vmem:[#allocation2 + $0x58] sm:$0xff] }
 0x1c1   : > { %v3940_v59 = vpop.f32.mrf.mxu1  ;;  %v5415_v35 = vpop.f32.mrf.mxu0 }
 0x1c2   : > { %v2025_v22 = vadd.f32 %v5351_v45, %v3939_v49 }
 0x1c3   : > { %v3941_v11 = vpop.f32.mrf.mxu1  ;;  %v5419_v4 = vpop.f32.mrf.mxu0 }
 0x1c4   : > { %v5421_v17 = vadd.f32 %v2025_v22, %v1493_v16  ;;  %v3942_v60 = vadd.f32 %v3941_v11, %v3940_v59  ;;  %v1495_v16 = vadd.f32 %v5281_v47, %v945_v14  ;;  %v946_v22 = vld [vmem:[#allocation2 + $0x40] sm:$0xff] }
 0x1c5   : > { %v3943_v0 = vpop.f32.mrf.mxu1  ;;  %v5423_v56 = vpop.f32.mrf.mxu0 }
 0x1c6   : > { %5858 = vst [vmem:[#allocation10_spill] sm:$0xff] %v5421_v17  ;;  %v2030_v28 = vadd.f32 %v3942_v60, %v5359_v19 }
 0x1c7   : > { %v3944_v24 = vpop.f32.mrf.mxu1  ;;  %v5427_v41 = vpop.f32.mrf.mxu0 }
 0x1c8   : > { %v5429_v6 = vadd.f32 %v2030_v28, %v1494_v31  ;;  %v3945_v45 = vadd.f32 %v3944_v24, %v3943_v0  ;;  %v1496_v31 = vadd.f32 %v5285_v63, %v946_v22  ;;  %v947_v28 = vld [vmem:[#allocation2 + $0xc8] sm:$0xff] }
 0x1c9   : > { %v3946_v30 = vpop.f32.mrf.mxu1  ;;  %v5431_v49 = vpop.f32.mrf.mxu0 }
 0x1ca   : > { %5859 = vst [vmem:[#allocation11_spill] sm:$0xff] %v5429_v6  ;;  %v2033_v59 = vadd.f32 %v3945_v45, %v5366_v54 }
 0x1cb   : > { %v3947_v11 = vpop.f32.mrf.mxu1  ;;  %v5435_v17 = vpop.f32.mrf.mxu0 }
 0x1cc   : > { %v5437_v33 = vadd.f32 %v2033_v59, %v1495_v16  ;;  %v3948_v19 = vadd.f32 %v3947_v11, %v3946_v30  ;;  %v1497_v16 = vadd.f32 %v5289_v13, %v947_v28  ;;  %v948_v59 = vld [vmem:[#allocation2 + $0xe0] sm:$0xff] }
 0x1cd   : > { %v3949_v58 = vpop.f32.mrf.mxu1  ;;  %v5439_v60 = vpop.f32.mrf.mxu0 }
 0x1ce   : > { %5860 = vst [vmem:[#allocation12_spill] sm:$0xff] %v5437_v33  ;;  %v2038_v0 = vadd.f32 %v5356_v37, %v3948_v19 }
 0x1cf   : > { %v3950_v24 = vpop.f32.mrf.mxu1  ;;  %v5443_v6 = vpop.f32.mrf.mxu0 }
 0x1d0   : > { %v5445_v47 = vadd.f32 %v2038_v0, %v1496_v31  ;;  %v3951_v54 = vadd.f32 %v3950_v24, %v3949_v58  ;;  %v1498_v31 = vadd.f32 %v5299_v26, %v948_v59  ;;  %v949_v0 = vld [vmem:[#allocation2 + $0x90] sm:$0xff] }
 0x1d1   : > { %v3952_v14 = vpop.f32.mrf.mxu1  ;;  %v5447_v45 = vpop.f32.mrf.mxu0 }
 0x1d2   : > { %5861 = vst [vmem:[#allocation13_spill] sm:$0xff] %v5445_v47  ;;  %v2041_v30 = vadd.f32 %v5363_v62, %v3951_v54 }
 0x1d3   : > { %v3953_v11 = vpop.f32.mrf.mxu1  ;;  %v5451_v33 = vpop.f32.mrf.mxu0 }
 0x1d4   : > { %v5453_v63 = vadd.f32 %v2041_v30, %v1497_v16  ;;  %v3954_v37 = vadd.f32 %v3953_v11, %v3952_v14  ;;  %v1499_v16 = vadd.f32 %v5309_v23, %v949_v0  ;;  %v950_v30 = vld [vmem:[#allocation2 + $0x70] sm:$0xff] }
 0x1d5   : > { %v3955_v22 = vpop.f32.mrf.mxu1  ;;  %v5455_v19 = vpop.f32.mrf.mxu0 }
 0x1d6   : > { %5862 = vst [vmem:[#allocation14_spill] sm:$0xff] %v5453_v63  ;;  %v2046_v58 = vadd.f32 %v3954_v37, %v5373_v57 }
 0x1d7   : > { %v3956_v24 = vpop.f32.mrf.mxu1  ;;  %v5459_v47 = vpop.f32.mrf.mxu0 }
 0x1d8   : > { %v5461_v13 = vadd.f32 %v2046_v58, %v1498_v31  ;;  %v3957_v62 = vadd.f32 %v3956_v24, %v3955_v22  ;;  %v1500_v31 = vadd.f32 %v5317_v38, %v950_v30  ;;  %v951_v58 = vld [vmem:[#allocation2 + $0xc0] sm:$0xff] }
 0x1d9   : > { %v3958_v28 = vpop.f32.mrf.mxu1  ;;  %v5463_v54 = vpop.f32.mrf.mxu0 }
 0x1da   : > { %5863 = vst [vmem:[#allocation15_spill] sm:$0xff] %v5461_v13  ;;  %v2049_v14 = vadd.f32 %v3957_v62, %v5381_v15 }
 0x1db   : > { %v3959_v11 = vpop.f32.mrf.mxu1  ;;  %v5467_v63 = vpop.f32.mrf.mxu0 }
 0x1dc   : > { %v5469_v26 = vadd.f32 %v2049_v14, %v1499_v16  ;;  %v3960_v57 = vadd.f32 %v3959_v11, %v3958_v28  ;;  %v1501_v16 = vadd.f32 %v5325_v9, %v951_v58  ;;  %v952_v14 = vld [vmem:[#allocation2 + $0xa8] sm:$0xff] }
 0x1dd   : > { %v3961_v59 = vpop.f32.mrf.mxu1  ;;  %v5471_v37 = vpop.f32.mrf.mxu0 }
 0x1de   : > { %5864 = vst [vmem:[#allocation16_spill] sm:$0xff] %v5469_v26  ;;  %v2054_v22 = vadd.f32 %v5370_v1, %v3960_v57 }
 0x1df   : > { %v3962_v24 = vpop.f32.mrf.mxu1  ;;  %v5475_v13 = vpop.f32.mrf.mxu0 }
 0x1e0   : > { %v5477_v23 = vadd.f32 %v2054_v22, %v1500_v31  ;;  %v3963_v15 = vadd.f32 %v3962_v24, %v3961_v59  ;;  %v1502_v31 = vadd.f32 %v5297_v32, %v952_v14  ;;  %v953_v22 = vld [vmem:[#allocation2 + $0xd0] sm:$0xff] }
 0x1e1   : > { %v3964_v0 = vpop.f32.mrf.mxu1  ;;  %v5479_v62 = vpop.f32.mrf.mxu0 }
 0x1e2   : > { %5865 = vst [vmem:[#allocation17_spill] sm:$0xff] %v5477_v23  ;;  %v2057_v28 = vadd.f32 %v5377_v18, %v3963_v15 }
 0x1e3   : > { %v3965_v11 = vpop.f32.mrf.mxu1  ;;  %v5483_v26 = vpop.f32.mrf.mxu0 }
 0x1e4   : > { %v5485_v38 = vadd.f32 %v2057_v28, %v1501_v16  ;;  %v3966_v1 = vadd.f32 %v3965_v11, %v3964_v0  ;;  %v1503_v16 = vadd.f32 %v5305_v53, %v953_v22  ;;  %v954_v28 = vld [vmem:[#allocation2 + $0x10] sm:$0xff] }
 0x1e5   : > { %v3967_v30 = vpop.f32.mrf.mxu1  ;;  %v5487_v57 = vpop.f32.mrf.mxu0 }
 0x1e6   : > { %5866 = vst [vmem:[#allocation18_spill] sm:$0xff] %v5485_v38  ;;  %v2062_v59 = vadd.f32 %v3966_v1, %v5389_v40 }
 0x1e7   : > { %v3968_v24 = vpop.f32.mrf.mxu1  ;;  %v5491_v23 = vpop.f32.mrf.mxu0 }
 0x1e8   : > { %v5493_v9 = vadd.f32 %v2062_v59, %v1502_v31  ;;  %v3969_v18 = vadd.f32 %v3968_v24, %v3967_v30  ;;  %v1504_v31 = vadd.f32 %v5292_v48, %v954_v28  ;;  %v955_v59 = vld [vmem:[#allocation2 + $0x28] sm:$0xff] }
 0x1e9   : > { %v3970_v58 = vpop.f32.mrf.mxu1  ;;  %v5495_v15 = vpop.f32.mrf.mxu0 }
 0x1ea   : > { %5867 = vst [vmem:[#allocation19_spill] sm:$0xff] %v5493_v9  ;;  %v2065_v0 = vadd.f32 %v3969_v18, %v5396_v42 }
 0x1eb   : > { %v3971_v11 = vpop.f32.mrf.mxu1  ;;  %v5499_v38 = vpop.f32.mrf.mxu0 }
 0x1ec   : > { %v5501_v32 = vadd.f32 %v2065_v0, %v1503_v16  ;;  %v3972_v40 = vadd.f32 %v3971_v11, %v3970_v58  ;;  %v1505_v16 = vadd.f32 %v5302_v20, %v955_v59  ;;  %v956_v0 = vld [vmem:[#allocation2 + $0xa0] sm:$0xff] }
 0x1ed   : > { %v3973_v14 = vpop.f32.mrf.mxu1  ;;  %v5503_v1 = vpop.f32.mrf.mxu0 }
 0x1ee   : > { %5868 = vst [vmem:[#allocation20_spill] sm:$0xff] %v5501_v32  ;;  %v2070_v30 = vadd.f32 %v5385_v7, %v3972_v40 }
 0x1ef   : > { %v3974_v24 = vpop.f32.mrf.mxu1  ;;  %v5507_v9 = vpop.f32.mrf.mxu0 }
 0x1f0   : > { %v5509_v53 = vadd.f32 %v2070_v30, %v1504_v31  ;;  %v3975_v42 = vadd.f32 %v3974_v24, %v3973_v14  ;;  %v1506_v31 = vadd.f32 %v5315_v29, %v956_v0  ;;  %v957_v30 = vld [vmem:[#allocation2 + $0xf8] sm:$0xff] }
 0x1f1   : > { %v3976_v22 = vpop.f32.mrf.mxu1  ;;  %v5511_v18 = vpop.f32.mrf.mxu0 }
 0x1f2   : > { %5869 = vst [vmem:[#allocation21_spill] sm:$0xff] %v5509_v53  ;;  %v2073_v58 = vadd.f32 %v5393_v44, %v3975_v42 }
 0x1f3   : > { %v3977_v11 = vpop.f32.mrf.mxu1  ;;  %v5515_v32 = vpop.f32.mrf.mxu0 }
 0x1f4   : > { %v5517_v48 = vadd.f32 %v2073_v58, %v1505_v16  ;;  %v3978_v7 = vadd.f32 %v3977_v11, %v3976_v22  ;;  %v1507_v16 = vadd.f32 %v5323_v43, %v957_v30  ;;  %v958_v58 = vld [vmem:[#allocation2 + $0x20] sm:$0xff]  ;;  %v4036_v43 = vadd.f32 %v5435_v17, %v5431_v49 }
 0x1f5   : > { %v3979_v28 = vpop.f32.mrf.mxu1  ;;  %v5519_v40 = vpop.f32.mrf.mxu0  ;;  %v4039_v17 = vadd.f32 %v5443_v6, %v5439_v60  ;;  %v4048_v6 = vadd.f32 %v5467_v63, %v5463_v54 }
 0x1f6   : > { %5870 = vst [vmem:[#allocation22_spill] sm:$0xff] %v5517_v48  ;;  %v2078_v14 = vadd.f32 %v3978_v7, %v5403_v51 }
 0x1f7   : > { %v3980_v24 = vpop.f32.mrf.mxu1  ;;  %v5523_v53 = vpop.f32.mrf.mxu0 }
 0x1f8   : > { %v5525_v20 = vadd.f32 %v2078_v14, %v1506_v31  ;;  %v3981_v44 = vadd.f32 %v3980_v24, %v3979_v28  ;;  %v1508_v31 = vadd.f32 %v5312_v36, %v958_v58  ;;  %v959_v14 = vld [vmem:[#allocation2 + $0x98] sm:$0xff]  ;;  %v4030_v36 = vadd.f32 %v5419_v4, %v5415_v35 }
 0x1f9   : > { %v3982_v59 = vpop.f32.mrf.mxu1  ;;  %v5527_v42 = vpop.f32.mrf.mxu0  ;;  %v4033_v4 = vadd.f32 %v5427_v41, %v5423_v56  ;;  %v4042_v41 = vadd.f32 %v5451_v33, %v5447_v45 }
 0x1fa   : > { %5871 = vst [vmem:[#allocation23_spill] sm:$0xff] %v5525_v20  ;;  %v2081_v22 = vadd.f32 %v3981_v44, %v5411_v46 }
 0x1fb   : > { %v3983_v11 = vpop.f32.mrf.mxu1  ;;  %v5531_v48 = vpop.f32.mrf.mxu0 }
 0x1fc   : > { %v5533_v29 = vadd.f32 %v2081_v22, %v1507_v16  ;;  %v3984_v51 = vadd.f32 %v3983_v11, %v3982_v59  ;;  %v1509_v16 = vadd.f32 %v5320_v10, %v959_v14 }
 0x1fd   : > { %v3985_v0 = vpop.f32.mrf.mxu1  ;;  %v5535_v7 = vpop.f32.mrf.mxu0 }
 0x1fe   : > { %v2086_v28 = vadd.f32 %v5400_v39, %v3984_v51 }
 0x1ff   : > { %v3986_v24 = vpop.f32.mrf.mxu1  ;;  %v5539_v20 = vpop.f32.mrf.mxu0 }
 0x200   : > { %v5543_v46 = vadd.f32 %v2086_v28, %v1508_v31  ;;  %v3987_v30 = vadd.f32 %v3986_v24, %v3985_v0 }
 0x201   : > { %v5545_v44 = vpop.f32.mrf.mxu0  ;;  %v4262_v59 = vpop.f32.mrf.mxu1 }
 0x202   : > { %v2089_v39 = vadd.f32 %v5407_v50, %v3987_v30  ;;  %v2588_v22 = vadd.f32 %v4262_v59, %v4036_v43 }
 0x203   : > { %v5551_v58 = vpop.f32.mrf.mxu0  ;;  %v2579_v11 = vpop.f32.mrf.mxu1 }
 0x204   : > { %v5555_v49 = vadd.f32 %v2089_v39, %v1509_v16  ;;  %v2708_v51 = vadd.f32 %v2588_v22, %v5334_v25  ;;  %v2580_v0 = vadd.f32 %v4030_v36, %v2579_v11  ;;  %v4051_v16 = vadd.f32 %v5475_v13, %v5471_v37 }
 0x205   : > { %v5558_v31 = vpop.f32.mrf.mxu0  ;;  %v4263_v10 = vpop.f32.mrf.mxu1  ;;  %v4045_v39 = vadd.f32 %v5459_v47, %v5455_v19  ;;  %v4060_v11 = vadd.f32 %v5499_v38, %v5495_v15  ;;  %v4063_v38 = vadd.f32 %v5507_v9, %v5503_v1  ;;  %v4072_v9 = vadd.f32 %v5531_v48, %v5527_v42 }
 0x206   : > { %2740 = vst [vmem:[#allocation2 + $0xd8] sm:$0xff] %v2708_v51  ;;  %v2706_v50 = vadd.f32 %v2580_v0, %v5328_v5  ;;  %v2591_v35 = vadd.f32 %v4263_v10, %v4039_v17  ;;  %v4054_v51 = vadd.f32 %v5483_v26, %v5479_v62  ;;  %v4057_v26 = vadd.f32 %v5491_v23, %v5487_v57  ;;  %v5872_v23 = vld [vmem:[#allocation7_spill] sm:$0xff] }
 0x207   : > { %v5563_v28 = vpop.f32.mrf.mxu0  ;;  %v2582_v14 = vpop.f32.mrf.mxu1 }
 0x208   : > { %2738 = vst [vmem:[#allocation2 + $0xb0] sm:$0xff] %v2706_v50  ;;  %v2709_v25 = vadd.f32 %v2591_v35, %v5339_v3  ;;  %v2583_v60 = vadd.f32 %v4033_v4, %v2582_v14 }
 0x209   : > { %v5568_v24 = vpop.f32.mrf.mxu0  ;;  %v4266_v43 = vpop.f32.mrf.mxu1 }
 0x20a   : > { %2741 = vst [vmem:[#allocation2 + $0x18] sm:$0xff] %v2709_v25  ;;  %v2707_v5 = vadd.f32 %v2583_v60, %v5331_v2  ;;  %v2604_v56 = vadd.f32 %v4266_v43, %v4048_v6  ;;  %v4066_v25 = vadd.f32 %v5515_v32, %v5511_v18  ;;  %v5873_v32 = vld [vmem:[#allocation8_spill] sm:$0xff] }
 0x20b   : > { %v4083_v30 = vpop.f32.mrf.mxu0  ;;  %v2595_v59 = vpop.f32.mrf.mxu1 }
 0x20c   : > { %2739 = vst [vmem:[#allocation2] sm:$0xff] %v2707_v5  ;;  %v2712_v63 = vadd.f32 %v2604_v56, %v5354_v34  ;;  %v2596_v3 = vadd.f32 %v4042_v41, %v2595_v59  ;;  %v4075_v41 = vadd.f32 %v5539_v20, %v5535_v7  ;;  %v4069_v56 = vadd.f32 %v5523_v53, %v5519_v40 }
 0x20d   : > { %v5576_v54 = vpop.f32.mrf.mxu0  ;;  %v4267_v36 = vpop.f32.mrf.mxu1 }
 0x20e   : > { %2744 = vst [vmem:[#allocation2 + $0x30] sm:$0xff] %v2712_v63  ;;  %v2710_v33 = vadd.f32 %v2596_v3, %v5344_v12  ;;  %v2607_v2 = vadd.f32 %v4267_v36, %v4051_v16  ;;  %v4084_v3 = vadd.f32 %v4083_v30, %v5568_v24  ;;  %v5874_v36 = vld [vmem:[#allocation10_spill] sm:$0xff] }
 0x20f   : > { %v4086_v45 = vpop.f32.mrf.mxu0  ;;  %v2598_v22 = vpop.f32.mrf.mxu1 }
 0x210   : > { %2742 = vst [vmem:[#allocation2 + $0x50] sm:$0xff] %v2710_v33  ;;  %v2713_v13 = vadd.f32 %v2607_v2, %v5361_v61  ;;  %v2599_v34 = vadd.f32 %v4045_v39, %v2598_v22  ;;  %v4078_v33 = vadd.f32 %v5551_v58, %v5545_v44  ;;  %v5875_v2 = vld [vmem:[#allocation9_spill] sm:$0xff] }
 0x211   : > { %v5584_v37 = vpop.f32.mrf.mxu0  ;;  %v4270_v17 = vpop.f32.mrf.mxu1 }
 0x212   : > { %2745 = vst [vmem:[#allocation2 + $0x48] sm:$0xff] %v2713_v13  ;;  %v2711_v47 = vadd.f32 %v2599_v34, %v5349_v21  ;;  %v2620_v12 = vadd.f32 %v4270_v17, %v4060_v11  ;;  %v4087_v13 = vadd.f32 %v4086_v45, %v5576_v54  ;;  %v5876_v34 = vld [vmem:[#allocation13_spill] sm:$0xff] }
 0x213   : > { %v5589_v19 = vpop.f32.mrf.mxu0  ;;  %v2611_v0 = vpop.f32.mrf.mxu1 }
 0x214   : > { %2743 = vst [vmem:[#allocation2 + $0x68] sm:$0xff] %v2711_v47  ;;  %v2716_v61 = vadd.f32 %v2620_v12, %v5383_v8  ;;  %v2612_v15 = vadd.f32 %v4054_v51, %v2611_v0  ;;  %v4081_v47 = vadd.f32 %v5563_v28, %v5558_v31  ;;  %v5877_v12 = vld [vmem:[#allocation11_spill] sm:$0xff] }
 0x215   : > { %v5594_v10 = vpop.f32.mrf.mxu0  ;;  %v4271_v4 = vpop.f32.mrf.mxu1 }
 0x216   : > { %2748 = vst [vmem:[#allocation2 + $0xe8] sm:$0xff] %v2716_v61  ;;  %v2714_v21 = vadd.f32 %v2612_v15, %v5368_v27  ;;  %v2623_v62 = vadd.f32 %v4271_v4, %v4063_v38  ;;  %v5878_v15 = vld [vmem:[#allocation14_spill] sm:$0xff] }
 0x217   : > { %v5599_v50 = vpop.f32.mrf.mxu0  ;;  %v2614_v35 = vpop.f32.mrf.mxu1 }
 0x218   : > { %2746 = vst [vmem:[#allocation2 + $0x80] sm:$0xff] %v2714_v21  ;;  %v2717_v8 = vadd.f32 %v2623_v62, %v5391_v52  ;;  %v2615_v1 = vadd.f32 %v4057_v26, %v2614_v35  ;;  %v4090_v21 = vadd.f32 %v5589_v19, %v5584_v37  ;;  %v5879_v62 = vld [vmem:[#allocation12_spill] sm:$0xff] }
 0x219   : > { %v4094_v14 = vpop.f32.mrf.mxu0  ;;  %v4274_v6 = vpop.f32.mrf.mxu1 }
 0x21a   : > { %2749 = vst [vmem:[#allocation2 + $0xb8] sm:$0xff] %v2717_v8  ;;  %v2715_v57 = vadd.f32 %v2615_v1, %v5872_v23  ;;  %v2636_v27 = vadd.f32 %v4274_v6, %v4072_v9  ;;  %v5880_v1 = vld [vmem:[#allocation17_spill] sm:$0xff] }
 0x21b   : > { %v4095_v60 = vpop.f32.mrf.mxu0  ;;  %v2627_v43 = vpop.f32.mrf.mxu1 }
 0x21c   : > { %2747 = vst [vmem:[#allocation2 + $0x88] sm:$0xff] %v2715_v57  ;;  %v2720_v48 = vadd.f32 %v2636_v27, %v5413_v55  ;;  %v2628_v42 = vadd.f32 %v4066_v25, %v2627_v43  ;;  %v4096_v61 = vadd.f32 %v4095_v60, %v4094_v14  ;;  %v4093_v57 = vadd.f32 %v5599_v50, %v5594_v10  ;;  %v5881_v27 = vld [vmem:[#allocation15_spill] sm:$0xff] }
 0x21d   : > { %v4097_v52 = vpop.f32.mrf.mxu0  ;;  %v4275_v5 = vpop.f32.mrf.mxu1 }
 0x21e   : > { %2752 = vst [vmem:[#allocation2 + $0x8] sm:$0xff] %v2720_v48  ;;  %v2718_v18 = vadd.f32 %v2628_v42, %v5873_v32  ;;  %v2639_v59 = vadd.f32 %v4275_v5, %v4075_v41  ;;  %v5882_v48 = vld [vmem:[#allocation18_spill] sm:$0xff] }
 0x21f   : > { %v4098_v16 = vpop.f32.mrf.mxu0  ;;  %v2630_v63 = vpop.f32.mrf.mxu1 }
 0x220   : > { %2750 = vst [vmem:[#allocation2 + $0x60] sm:$0xff] %v2718_v18  ;;  %v2721_v20 = vadd.f32 %v2639_v59, %v5874_v36  ;;  %v2631_v7 = vadd.f32 %v4069_v56, %v2630_v63  ;;  %v4099_v8 = vadd.f32 %v4098_v16, %v4097_v52  ;;  %v5883_v18 = vld [vmem:[#allocation16_spill] sm:$0xff] }
 0x221   : > { %v4100_v39 = vpop.f32.mrf.mxu0  ;;  %v4278_v55 = vpop.f32.mrf.mxu1 }
 0x222   : > { %2753 = vst [vmem:[#allocation2 + $0x78] sm:$0xff] %v2721_v20  ;;  %v2719_v53 = vadd.f32 %v2631_v7, %v5875_v2  ;;  %v2652_v40 = vadd.f32 %v4278_v55, %v4084_v3  ;;  %v5884_v3 = vld [vmem:[#allocation21_spill] sm:$0xff]  ;;  %v5885_v2 = vld [vmem:[#allocation19_spill] sm:$0xff] }
 0x223   : > { %v4101_v22 = vpop.f32.mrf.mxu0  ;;  %v2643_v11 = vpop.f32.mrf.mxu1 }
 0x224   : > { %2751 = vst [vmem:[#allocation2 + $0xf0] sm:$0xff] %v2719_v53  ;;  %v2724_v24 = vadd.f32 %v2652_v40, %v5876_v34  ;;  %v2644_v30 = vadd.f32 %v4078_v33, %v2643_v11  ;;  %v4102_v32 = vadd.f32 %v4101_v22, %v4100_v39  ;;  %v5886_v22 = vld [vmem:[#allocation22_spill] sm:$0xff] }
 0x225   : > { %v4103_v17 = vpop.f32.mrf.mxu0  ;;  %v4279_v51 = vpop.f32.mrf.mxu1 }
 0x226   : > { %2756 = vst [vmem:[#allocation2 + $0x40] sm:$0xff] %v2724_v24  ;;  %v2722_v44 = vadd.f32 %v2644_v30, %v5877_v12  ;;  %v2655_v58 = vadd.f32 %v4279_v51, %v4087_v13 }
 0x227   : > { %v4104_v0 = vpop.f32.mrf.mxu0  ;;  %v2646_v38 = vpop.f32.mrf.mxu1 }
 0x228   : > { %2754 = vst [vmem:[#allocation2 + $0x38] sm:$0xff] %v2722_v44  ;;  %v2725_v4 = vadd.f32 %v2655_v58, %v5878_v15  ;;  %v2647_v54 = vadd.f32 %v4081_v47, %v2646_v38  ;;  %v4105_v33 = vadd.f32 %v4104_v0, %v4103_v17  ;;  %v5887_v47 = vld [vmem:[#allocation20_spill] sm:$0xff] }
 0x229   : > { %v4106_v45 = vpop.f32.mrf.mxu0  ;;  %v4282_v26 = vpop.f32.mrf.mxu1 }
 0x22a   : > { %2757 = vst [vmem:[#allocation2 + $0xc8] sm:$0xff] %v2725_v4  ;;  %v2723_v35 = vadd.f32 %v2647_v54, %v5879_v62  ;;  %v2668_v31 = vadd.f32 %v4282_v26, %v4096_v61  ;;  %v5888_v54 = vld [vmem:[#allocation23_spill] sm:$0xff] }
 0x22b   : > { %v4107_v28 = vpop.f32.mrf.mxu0  ;;  %v2659_v9 = vpop.f32.mrf.mxu1 }
 0x22c   : > { %2755 = vst [vmem:[#allocation2 + $0x58] sm:$0xff] %v2723_v35  ;;  %v2728_v6 = vadd.f32 %v2668_v31, %v5880_v1  ;;  %v2660_v14 = vadd.f32 %v4090_v21, %v2659_v9  ;;  %v4108_v41 = vadd.f32 %v4107_v28, %v4106_v45 }
 0x22d   : > { %v4109_v25 = vpop.f32.mrf.mxu0  ;;  %v4283_v23 = vpop.f32.mrf.mxu1 }
 0x22e   : > { %2760 = vst [vmem:[#allocation2 + $0x70] sm:$0xff] %v2728_v6  ;;  %v2726_v60 = vadd.f32 %v2660_v14, %v5881_v27  ;;  %v2671_v37 = vadd.f32 %v4283_v23, %v4099_v8 }
 0x22f   : > { %v4110_v19 = vpop.f32.mrf.mxu0  ;;  %v2662_v43 = vpop.f32.mrf.mxu1 }
 0x230   : > { %2758 = vst [vmem:[#allocation2 + $0xe0] sm:$0xff] %v2726_v60  ;;  %v2729_v42 = vadd.f32 %v2671_v37, %v5882_v48  ;;  %v2663_v52 = vadd.f32 %v4093_v57, %v2662_v43  ;;  %v4111_v50 = vadd.f32 %v4110_v19, %v4109_v25 }
 0x231   : > { %v4112_v5 = vpop.f32.mrf.mxu0  ;;  %v4286_v56 = vpop.f32.mrf.mxu1 }
 0x232   : > { %2761 = vst [vmem:[#allocation2 + $0xc0] sm:$0xff] %v2729_v42  ;;  %v2727_v59 = vadd.f32 %v2663_v52, %v5883_v18  ;;  %v2684_v16 = vadd.f32 %v4286_v56, %v4108_v41 }
 0x233   : > { %v4113_v63 = vpop.f32.mrf.mxu0  ;;  %v2675_v10 = vpop.f32.mrf.mxu1 }
 0x234   : > { %2759 = vst [vmem:[#allocation2 + $0x90] sm:$0xff] %v2727_v59  ;;  %v2732_v36 = vadd.f32 %v2684_v16, %v5884_v3  ;;  %v2676_v20 = vadd.f32 %v4102_v32, %v2675_v10  ;;  %v4114_v51 = vadd.f32 %v4113_v63, %v4112_v5 }
 0x235   : > { %v4115_v7 = vpop.f32.mrf.mxu0  ;;  %v4287_v55 = vpop.f32.mrf.mxu1 }
 0x236   : > { %2764 = vst [vmem:[#allocation2 + $0x10] sm:$0xff] %v2732_v36  ;;  %v2730_v53 = vadd.f32 %v2676_v20, %v5885_v2  ;;  %v2687_v40 = vadd.f32 %v4287_v55, %v4111_v50 }
 0x237   : > { %v4116_v11 = vpop.f32.mrf.mxu0  ;;  %v2678_v39 = vpop.f32.mrf.mxu1 }
 0x238   : > { %2762 = vst [vmem:[#allocation2 + $0xa8] sm:$0xff] %v2730_v53  ;;  %v2733_v13 = vadd.f32 %v2687_v40, %v5886_v22  ;;  %v2679_v34 = vadd.f32 %v4105_v33, %v2678_v39  ;;  %v4117_v15 = vadd.f32 %v4116_v11, %v4115_v7 }
 0x239   : > { %v4118_v24 = vpop.f32.mrf.mxu0  ;;  %v4290_v30 = vpop.f32.mrf.mxu1 }
 0x23a   : > { %2765 = vst [vmem:[#allocation2 + $0x28] sm:$0xff] %v2733_v13  ;;  %v2731_v12 = vadd.f32 %v2679_v34, %v5887_v47 }
 0x23b   : > { %v4119_v44 = vpop.f32.mrf.mxu0  ;;  %v2691_v58 = vpop.f32.mrf.mxu1 }
 0x23c   : > { %2763 = vst [vmem:[#allocation2 + $0xd0] sm:$0xff] %v2731_v12  ;;  %v4120_v17 = vadd.f32 %v4119_v44, %v4118_v24  ;;  %v2692_v0 = vadd.f32 %v4114_v51, %v2691_v58 }
 0x23d   : > { %v4121_v38 = vpop.f32.mrf.mxu0  ;;  %v4291_v61 = vpop.f32.mrf.mxu1 }
 0x23e   : > { %v2700_v4 = vadd.f32 %v4290_v30, %v4120_v17  ;;  %v2734_v45 = vadd.f32 %v2692_v0, %v5888_v54 }
 0x23f   : > { %v4122_v26 = vpop.f32.mrf.mxu0  ;;  %v2694_v21 = vpop.f32.mrf.mxu1 }
 0x240   : > { %v2736_v62 = vadd.f32 %v2700_v4, %v5543_v46  ;;  %2766 = vst [vmem:[#allocation2 + $0xa0] sm:$0xff] %v2734_v45  ;;  %v4123_v35 = vadd.f32 %v4122_v26, %v4121_v38  ;;  %v2695_v31 = vadd.f32 %v4117_v15, %v2694_v21 }
 0x242   : > { %2768 = vst [vmem:[#allocation2 + $0x20] sm:$0xff] %v2736_v62  ;;  %v2703_v28 = vadd.f32 %v4291_v61, %v4123_v35  ;;  %v2735_v9 = vadd.f32 %v2695_v31, %v5533_v29 }
 0x244   : > { %v2737_v8 = vadd.f32 %v2703_v28, %v5555_v49  ;;  %2767 = vst [vmem:[#allocation2 + $0xf8] sm:$0xff] %v2735_v9 }
 0x246   : > { %2769 = vst [vmem:[#allocation2 + $0x98] sm:$0xff] %v2737_v8 }
 0x247 PF: > { %p3492_p1 = scmp.ne.s32.totalorder %s4470_s21, 2 }
 0x249   : > { %2773 = sbr.rel (%p3492_p1) target bundleno = 668 (0x29c), region = 48 }
 0x24e   : > { %v2774_v1 = vld [vmem:[#allocation2 + $0xb0] sm:$0xff]  ;;  %v2775_v6 = vld [vmem:[#allocation2] sm:$0xff]  ;;  %v2776_v14 = vld [vmem:[#allocation2 + $0xd8] sm:$0xff] }
 0x24f   : > { %v3633_v46 = vpack.c.bf16 %v2775_v6, %v2774_v1  ;;  %v2966_v25 = vadd.f32 %v2775_v6, %v2774_v1  ;;  %v3004_v23 = vmul.f32 %v2774_v1, %v2774_v1  ;;  %v3005_v57 = vmul.f32 %v2775_v6, %v2775_v6  ;;  %v2777_v27 = vld [vmem:[#allocation2 + $0x18] sm:$0xff]  ;;  %v2778_v29 = vld [vmem:[#allocation2 + $0x50] sm:$0xff]  ;;  %v2779_v60 = vld [vmem:[#allocation2 + $0x68] sm:$0xff] }
 0x250   : > { %v3638_v49 = vpack.c.bf16 %v2777_v27, %v2776_v14  ;;  %v3006_v37 = vmul.f32 %v2776_v14, %v2776_v14  ;;  %v3643_v19 = vpack.c.bf16 %v2779_v60, %v2778_v29  ;;  %v2780_v43 = vld [vmem:[#allocation2 + $0x30] sm:$0xff]  ;;  %v3007_v42 = vmul.f32 %v2777_v27, %v2777_v27  ;;  %v2781_v52 = vld [vmem:[#allocation2 + $0x48] sm:$0xff]  ;;  %v2782_v5 = vld [vmem:[#allocation2 + $0x80] sm:$0xff] }
 0x251   : > { %3634 = vst [vmem:[%s4603_s14] sm:$0xff] %v3633_v46   ;;  %v3036_v41 = vadd.f32 %v3005_v57, %v3004_v23  ;;  %v2967_v48 = vadd.f32 %v2966_v25, %v2776_v14  ;;  %v5643_v56 = vld [vmem:[#allocation2 + $0x88] sm:$0xff]  ;;  %v3648_v32 = vpack.c.bf16 %v2781_v52, %v2780_v43  ;;  %v3008_v10 = vmul.f32 %v2778_v29, %v2778_v29  ;;  %v5650_v50 = vld [vmem:[#allocation2 + $0xb8] sm:$0xff]  ;;  %v5652_v3 = vld [vmem:[#allocation2 + $0x60] sm:$0xff] }
 0x252   : > { %3725 = vst [vmem:[%s4603_s14 + $0x8] sm:$0xff] %v3638_v49   ;;  %3726 = vst [vmem:[%s4603_s14 + $0x10] sm:$0xff] %v3643_v19   ;;  %v3653_v18 = vpack.c.bf16 %v5643_v56, %v2782_v5  ;;  %v5648_v59 = vld [vmem:[#allocation2 + $0xe8] sm:$0xff]  ;;  %v5654_v36 = vld [vmem:[#allocation2 + $0xf0] sm:$0xff]  ;;  %v3009_v53 = vmul.f32 %v2779_v60, %v2779_v60  ;;  %v3010_v51 = vmul.f32 %v2780_v43, %v2780_v43 }
 0x253   : > { %v2968_v16 = vadd.f32 %v2967_v48, %v2777_v27  ;;  %v3037_v63 = vadd.f32 %v3036_v41, %v3006_v37  ;;  %3727 = vst [vmem:[%s4603_s14 + $0x18] sm:$0xff] %v3648_v32   ;;  %v3658_v20 = vpack.c.bf16 %v5650_v50, %v5648_v59  ;;  %v3663_v7 = vpack.c.bf16 %v5654_v36, %v5652_v3  ;;  %v5662_v55 = vld [vmem:[#allocation2 + $0x8] sm:$0xff]  ;;  %v5664_v40 = vld [vmem:[#allocation2 + $0x78] sm:$0xff]  ;;  %v5676_v34 = vld [vmem:[#allocation2 + $0x40] sm:$0xff] }
 0x254   : > { %3728 = vst [vmem:[%s4603_s14 + $0x20] sm:$0xff] %v3653_v18   ;;  %v5666_v11 = vld [vmem:[#allocation2 + $0x38] sm:$0xff]  ;;  %v3668_v22 = vpack.c.bf16 %v5664_v40, %v5662_v55  ;;  %v5678_v47 = vld [vmem:[#allocation2 + $0xc8] sm:$0xff]  ;;  %v5680_v12 = vld [vmem:[#allocation2 + $0xe0] sm:$0xff]  ;;  %v3011_v15 = vmul.f32 %v2781_v52, %v2781_v52  ;;  %v3012_v28 = vmul.f32 %v2782_v5, %v2782_v5  ;;  %v3013_v23 = vmul.f32 %v5643_v56, %v5643_v56 }
 0x255   : > { %v3038_v33 = vadd.f32 %v3037_v63, %v3007_v42  ;;  %v2969_v2 = vadd.f32 %v2968_v16, %v2778_v29  ;;  %v5668_v39 = vld [vmem:[#allocation2 + $0x58] sm:$0xff]  ;;  %3729 = vst [vmem:[%s4603_s14 + $0x28] sm:$0xff] %v3658_v20   ;;  %3730 = vst [vmem:[%s4603_s14 + $0x30] sm:$0xff] %v3663_v7   ;;  %v5682_v44 = vld [vmem:[#allocation2 + $0x90] sm:$0xff]  ;;  %v3678_v58 = vpack.c.bf16 %v5678_v47, %v5676_v34 }
 0x256   : > { %v3673_v13 = vpack.c.bf16 %v5668_v39, %v5666_v11  ;;  %3731 = vst [vmem:[%s4603_s14 + $0x38] sm:$0xff] %v3668_v22   ;;  %v3683_v17 = vpack.c.bf16 %v5682_v44, %v5680_v12  ;;  %v5690_v0 = vld [vmem:[#allocation2 + $0x70] sm:$0xff]  ;;  %v5692_v4 = vld [vmem:[#allocation2 + $0xc0] sm:$0xff]  ;;  %v5694_v54 = vld [vmem:[#allocation2 + $0xa8] sm:$0xff]  ;;  %v3014_v37 = vmul.f32 %v5648_v59, %v5648_v59  ;;  %v3015_v41 = vmul.f32 %v5650_v50, %v5650_v50 }
 0x257   : > { %v2970_v24 = vadd.f32 %v2969_v2, %v2779_v60  ;;  %v3039_v30 = vadd.f32 %v3038_v33, %v3008_v10  ;;  %v5696_v45 = vld [vmem:[#allocation2 + $0xd0] sm:$0xff]  ;;  %3733 = vst [vmem:[%s4603_s14 + $0x48] sm:$0xff] %v3678_v58   ;;  %v3688_v26 = vpack.c.bf16 %v5692_v4, %v5690_v0  ;;  %v5706_v9 = vld [vmem:[#allocation2 + $0x28] sm:$0xff]  ;;  %v5708_v8 = vld [vmem:[#allocation2 + $0xa0] sm:$0xff]  ;;  %v3017_v32 = vmul.f32 %v5654_v36, %v5654_v36 }
 0x258   : > { %3732 = vst [vmem:[%s4603_s14 + $0x40] sm:$0xff] %v3673_v13   ;;  %3734 = vst [vmem:[%s4603_s14 + $0x50] sm:$0xff] %v3683_v17   ;;  %v3693_v21 = vpack.c.bf16 %v5696_v45, %v5694_v54  ;;  %v5704_v62 = vld [vmem:[#allocation2 + $0x10] sm:$0xff]  ;;  %v5710_v1 = vld [vmem:[#allocation2 + $0xf8] sm:$0xff] }
 0x259   : > { %v3040_v38 = vadd.f32 %v3039_v30, %v3009_v53  ;;  %v2971_v61 = vadd.f32 %v2970_v24, %v2780_v43  ;;  %3735 = vst [vmem:[%s4603_s14 + $0x58] sm:$0xff] %v3688_v26   ;;  %v3698_v6 = vpack.c.bf16 %v5706_v9, %v5704_v62  ;;  %v3703_v14 = vpack.c.bf16 %v5710_v1, %v5708_v8  ;;  %v5720_v57 = vld [vmem:[#allocation2 + $0x20] sm:$0xff]  ;;  %v5722_v27 = vld [vmem:[#allocation2 + $0x98] sm:$0xff] }
 0x25a   : > { %3736 = vst [vmem:[%s4603_s14 + $0x60] sm:$0xff] %v3693_v21   ;;  %v3708_v29 = vpack.c.bf16 %v5722_v27, %v5720_v57 }
 0x25b   : > { %v2972_v35 = vadd.f32 %v2971_v61, %v2781_v52  ;;  %v3041_v31 = vadd.f32 %v3040_v38, %v3010_v51  ;;  %3737 = vst [vmem:[%s4603_s14 + $0x68] sm:$0xff] %v3698_v6   ;;  %3738 = vst [vmem:[%s4603_s14 + $0x70] sm:$0xff] %v3703_v14   ;;  %v3016_v52 = vmul.f32 %v5652_v3, %v5652_v3 }
 0x25c   : > { %3739 = vst [vmem:[%s4603_s14 + $0x78] sm:$0xff] %v3708_v29  }
 0x25d   : > { %v3042_v46 = vadd.f32 %v3041_v31, %v3011_v15  ;;  %v2973_v25 = vadd.f32 %v2972_v35, %v2782_v5 }
 0x25f   : > { %v2974_v60 = vadd.f32 %v2973_v25, %v5643_v56  ;;  %v3043_v49 = vadd.f32 %v3042_v46, %v3012_v28 }
 0x261   : > { %v3044_v19 = vadd.f32 %v3043_v49, %v3013_v23  ;;  %v2975_v43 = vadd.f32 %v2974_v60, %v5648_v59  ;;  %v3018_v59 = vmul.f32 %v5662_v55, %v5662_v55 }
 0x263   : > { %v2976_v48 = vadd.f32 %v2975_v43, %v5650_v50  ;;  %v3045_v42 = vadd.f32 %v3044_v19, %v3014_v37  ;;  %v3019_v50 = vmul.f32 %v5664_v40, %v5664_v40 }
 0x265   : > { %v3046_v5 = vadd.f32 %v3045_v42, %v3015_v41  ;;  %v2977_v56 = vadd.f32 %v2976_v48, %v5652_v3  ;;  %v3020_v3 = vmul.f32 %v5666_v11, %v5666_v11 }
 0x267   : > { %v2978_v18 = vadd.f32 %v2977_v56, %v5654_v36  ;;  %v3047_v16 = vadd.f32 %v3046_v5, %v3016_v52  ;;  %v3021_v36 = vmul.f32 %v5668_v39, %v5668_v39 }
 0x269   : > { %v3048_v63 = vadd.f32 %v3047_v16, %v3017_v32  ;;  %v2979_v10 = vadd.f32 %v2978_v18, %v5662_v55  ;;  %v3022_v55 = vmul.f32 %v5676_v34, %v5676_v34 }
 0x26b   : > { %v2980_v20 = vadd.f32 %v2979_v10, %v5664_v40  ;;  %v3049_v7 = vadd.f32 %v3048_v63, %v3018_v59  ;;  %v3023_v40 = vmul.f32 %v5678_v47, %v5678_v47 }
 0x26d   : > { %v3050_v33 = vadd.f32 %v3049_v7, %v3019_v50  ;;  %v2981_v2 = vadd.f32 %v2980_v20, %v5666_v11  ;;  %v3024_v11 = vmul.f32 %v5680_v12, %v5680_v12 }
 0x26f   : > { %v2982_v53 = vadd.f32 %v2981_v2, %v5668_v39  ;;  %v3051_v22 = vadd.f32 %v3050_v33, %v3020_v3  ;;  %v3025_v39 = vmul.f32 %v5682_v44, %v5682_v44 }
 0x271   : > { %v3052_v13 = vadd.f32 %v3051_v22, %v3021_v36  ;;  %v2983_v24 = vadd.f32 %v2982_v53, %v5676_v34  ;;  %v3026_v34 = vmul.f32 %v5690_v0, %v5690_v0 }
 0x273   : > { %v2984_v30 = vadd.f32 %v2983_v24, %v5678_v47  ;;  %v3053_v51 = vadd.f32 %v3052_v13, %v3022_v55  ;;  %v3027_v47 = vmul.f32 %v5692_v4, %v5692_v4 }
 0x275   : > { %v3054_v58 = vadd.f32 %v3053_v51, %v3023_v40  ;;  %v2985_v17 = vadd.f32 %v2984_v30, %v5680_v12  ;;  %v3028_v12 = vmul.f32 %v5694_v54, %v5694_v54 }
 0x277   : > { %v2986_v38 = vadd.f32 %v2985_v17, %v5682_v44  ;;  %v3055_v61 = vadd.f32 %v3054_v58, %v3024_v11  ;;  %v3029_v44 = vmul.f32 %v5696_v45, %v5696_v45 }
 0x279   : > { %v3056_v15 = vadd.f32 %v3055_v61, %v3025_v39  ;;  %v2987_v26 = vadd.f32 %v2986_v38, %v5690_v0  ;;  %v3030_v0 = vmul.f32 %v5704_v62, %v5704_v62 }
 0x27b   : > { %v2988_v21 = vadd.f32 %v2987_v26, %v5692_v4  ;;  %v3057_v35 = vadd.f32 %v3056_v15, %v3026_v34  ;;  %v3031_v4 = vmul.f32 %v5706_v9, %v5706_v9 }
 0x27d   : > { %v3058_v31 = vadd.f32 %v3057_v35, %v3027_v47  ;;  %v2989_v28 = vadd.f32 %v2988_v21, %v5694_v54  ;;  %v3032_v54 = vmul.f32 %v5708_v8, %v5708_v8 }
 0x27f   : > { %v2990_v6 = vadd.f32 %v2989_v28, %v5696_v45  ;;  %v3059_v14 = vadd.f32 %v3058_v31, %v3028_v12  ;;  %v3033_v45 = vmul.f32 %v5710_v1, %v5710_v1 }
 0x281   : > { %v3060_v46 = vadd.f32 %v3059_v14, %v3029_v44  ;;  %v2991_v25 = vadd.f32 %v2990_v6, %v5704_v62  ;;  %v3034_v62 = vmul.f32 %v5720_v57, %v5720_v57 }
 0x283   : > { %v2992_v23 = vadd.f32 %v2991_v25, %v5706_v9  ;;  %v3061_v29 = vadd.f32 %v3060_v46, %v3030_v0  ;;  %v3035_v9 = vmul.f32 %v5722_v27, %v5722_v27 }
 0x285   : > { %v3062_v60 = vadd.f32 %v3061_v29, %v3031_v4  ;;  %v2993_v49 = vadd.f32 %v2992_v23, %v5708_v8 }
 0x287   : > { %v2994_v37 = vadd.f32 %v2993_v49, %v5710_v1  ;;  %v3063_v19 = vadd.f32 %v3062_v60, %v3032_v54 }
 0x289   : > { %v3064_v43 = vadd.f32 %v3063_v19, %v3033_v45  ;;  %v2995_v41 = vadd.f32 %v2994_v37, %v5720_v57 }
 0x28b   : > { %v2996_v48 = vadd.f32 %v2995_v41, %v5722_v27  ;;  %v3065_v8 = vadd.f32 %v3064_v43, %v3034_v62 }
 0x28d   : > { %v2997_v42 = vrot.slane %v2996_v48, 4  ;;  %v3066_v52 = vadd.f32 %v3065_v8, %v3035_v9 }
 0x28f   : > { %v2998_v5 = vadd.f32 %v2997_v42, %v2996_v48  ;;  %v3067_v56 = vrot.slane %v3066_v52, 4 }
 0x291   : > { %v2999_v1 = vrot.slane %v2998_v5, 2  ;;  %v3068_v32 = vadd.f32 %v3067_v56, %v3066_v52 }
 0x293   : > { %v3000_v18 = vadd.f32 %v2999_v1, %v2998_v5  ;;  %v3069_v16 = vrot.slane %v3068_v32, 2 }
 0x295   : > { %v3001_v59 = vrot.slane %v3000_v18, 1  ;;  %v3070_v63 = vadd.f32 %v3069_v16, %v3068_v32 }
 0x297   : > { %v3002_v10 = vadd.f32 %v3001_v59, %v3000_v18  ;;  %v3071_v57 = vrot.slane %v3070_v63, 1 }
 0x299   : > { %3003 = vst [vmem:[%s394_s17] sm:$0x1] %v3002_v10  ;;  %v3072_v27 = vadd.f32 %v3071_v57, %v3070_v63 }
 0x29b   : > { %3073 = vst [vmem:[%s401_s13] sm:$0x1] %v3072_v27 }
 0x29c PF: > { %s17_s27 = sadd.s32 1, %s4494_s27   ;;  %s5889_s23 = sld [smem:[#allocation3_spill]] }
 0x29d   : > { %p14_p2 = scmp.ge.s32.totalorder %s17_s27, 50   ;;  %s5890_s12 = sld [smem:[#allocation4_spill]] }
 0x29e   : > { %s5891_s16 = sld [smem:[#allocation5_spill]]  ;;  %s5893_s21 = smov %s4482_s24 }
 0x29f   : > { %s5892_s26 = sld [smem:[#allocation6_spill]]  ;;  %s5894_s22 = smov %s4486_s25 }
 0x2a0   :  { %16 = sbr.rel (!%p14_p2) target bundleno = 5 (0x5), region = 111 }
 0x2a3   : > { %s5895_s24 = smov %s5890_s12 }
 0x2a4   : > { %s5896_s25 = smov %s5891_s16 }

</bundles_post_ra>
